<compile_context>
chip_gen: v6e
topology: v6e:2x2x1
jax: 0.10.0
libtpu: 0.0.40
codegen_flags: <defaults>
</compile_context>

<pallas_src>
import functools
import numpy as np
import jax
import jax.numpy as jnp
from jax import lax
from jax.experimental import pallas as pl
from jax.experimental.pallas import tpu as pltpu

EPS = 1e-5


# ------------------------------------------------------------------
# Fused Inception kernel (grid over batch)
# ------------------------------------------------------------------
def _inception_kernel(x_ref, wcat_ref, bcat_ref, ring_ref, w23_ref, b23_ref,
                      w4_ref, b4_ref, o_ref, pad23_ref, pad4_ref):
    _, H, W, Cin = x_ref.shape
    c1 = wcat_ref.shape[1]
    C23 = pad23_ref.shape[-1]          # r2 + r3
    n1 = c1 - C23
    Cout23 = b23_ref.shape[1]          # n3 + n5
    npool = b4_ref.shape[1]
    cdt = pad23_ref.dtype              # bf16 compute dtype

    x = x_ref[0]                                        # (H, W, Cin) bf16

    # ---- fused 1x1 convs: branch1 + branch2-reduce + branch3-reduce (MXU) --
    y = jnp.dot(x.reshape(H * W, Cin), wcat_ref[...],
                preferred_element_type=jnp.float32)
    y = jnp.maximum(y + bcat_ref[...], 0.0)             # (H*W, c1) f32
    y1 = y[:, :n1]                                      # branch1 output
    y23 = y[:, n1:].astype(cdt)                         # [branch2 | branch3] reduces

    # ---- shared padded canvas for both 5x5 convs ---------------------------
    # channels [:r2] : branch2, zero border of width 2       (5x5, padding=2)
    # channels [r2:] : branch3, outer ring 0, inner ring relu(folded bias)
    #                  (1x1 conv had padding=1, then 5x5 padding=1)
    # Border values are batch-invariant; only thin strips are rewritten per
    # step, the (H, W) interior is overwritten with y23.
    ring = ring_ref[...].reshape(1, 1, C23)
    zrow = jnp.zeros((1, W + 4, C23), cdt)
    zcol = jnp.zeros((H + 2, 1, C23), cdt)
    pad23_ref[0:1, :, :] = zrow
    pad23_ref[H + 3:H + 4, :, :] = zrow
    pad23_ref[1:H + 3, 0:1, :] = zcol
    pad23_ref[1:H + 3, W + 3:W + 4, :] = zcol
    pad23_ref[1:2, 1:W + 3, :] = jnp.broadcast_to(ring, (1, W + 2, C23))
    pad23_ref[H + 2:H + 3, 1:W + 3, :] = jnp.broadcast_to(ring, (1, W + 2, C23))
    pad23_ref[2:H + 2, 1:2, :] = jnp.broadcast_to(ring, (H, 1, C23))
    pad23_ref[2:H + 2, W + 2:W + 3, :] = jnp.broadcast_to(ring, (H, 1, C23))
    pad23_ref[2:2 + H, 2:2 + W, :] = y23.reshape(H, W, C23)

    # ---- both 5x5 convs as 5 big-K matmuls (K = 5*C23) on the MXU ----------
    # For each dw: take one W-shifted view, stack the 5 dh-shifted patches
    # along the channel axis and contract against the pre-reshaped
    # block-diagonal weight slab w23_ref[dw]  ((5*C23, n3+n5)).
    acc = jnp.zeros((H * W, Cout23), jnp.float32)
    for dw in range(5):
        xw = pad23_ref[:, dw:dw + W, :].reshape((H + 4) * W, C23)
        patch = jnp.concatenate(
            [xw[dh * W:(dh + H) * W, :] for dh in range(5)], axis=-1)
        acc = acc + jnp.dot(patch, w23_ref[dw],
                            preferred_element_type=jnp.float32)
    x23 = jnp.maximum(acc + b23_ref[...], 0.0)          # (H*W, n3+n5) f32

    # ---- branch4: separable 3x3 maxpool (-inf pad) + 1x1 conv --------------
    ninf_r = jnp.full((1, W + 2, Cin), -jnp.inf, cdt)
    ninf_c = jnp.full((H, 1, Cin), -jnp.inf, cdt)
    pad4_ref[0:1, :, :] = ninf_r
    pad4_ref[H + 1:H + 2, :, :] = ninf_r
    pad4_ref[1:H + 1, 0:1, :] = ninf_c
    pad4_ref[1:H + 1, W + 1:W + 2, :] = ninf_c
    pad4_ref[1:1 + H, 1:1 + W, :] = x
    p = pad4_ref[...]
    mw = jnp.maximum(jnp.maximum(p[:, 0:W, :], p[:, 1:W + 1, :]), p[:, 2:W + 2, :])
    m = jnp.maximum(jnp.maximum(mw[0:H], mw[1:H + 1]), mw[2:H + 2])
    acc4 = jnp.dot(m.reshape(H * W, Cin), w4_ref[...],
                   preferred_element_type=jnp.float32)
    x4 = jnp.maximum(acc4 + b4_ref[...], 0.0)           # (H*W, npool) f32

    # ---- store each branch directly into its channel slice (no concat) -----
    odt = o_ref.dtype
    o_ref[0:1, :, :, 0:n1] = y1.reshape(1, H, W, n1).astype(odt)
    o_ref[0:1, :, :, n1:n1 + Cout23] = x23.reshape(1, H, W, Cout23).astype(odt)
    o_ref[0:1, :, :, n1 + Cout23:n1 + Cout23 + npool] = (
        x4.reshape(1, H, W, npool).astype(odt))


# ------------------------------------------------------------------
# BN folding + forward
# ------------------------------------------------------------------
def _fold_conv_bn(p):
    """Fold BN (running stats) + conv bias into (W*scale, bias)."""
    scale = p["gamma"] / jnp.sqrt(p["var"] + EPS)
    w = p["w"] * scale                                  # (k,k,Cin,Cout)*(Cout,)
    b = p["beta"] - p["mean"] * scale + p["b"] * scale
    return w, b


def inception_forward(x_nchw, params):
    x = jnp.transpose(x_nchw, (0, 2, 3, 1))             # NCHW -> NHWC
    N, H, W, Cin = x.shape

    w1, b1 = _fold_conv_bn(params["b1"])
    w2a, b2a = _fold_conv_bn(params["b2a"])
    w2b, b2b = _fold_conv_bn(params["b2b"])
    w3a, b3a = _fold_conv_bn(params["b3a"])
    w3b, b3b = _fold_conv_bn(params["b3b"])
    w4, b4 = _fold_conv_bn(params["b4"])

    n1, r2, r3 = w1.shape[-1], w2a.shape[-1], w3a.shape[-1]
    n3, n5, npool = w2b.shape[-1], w3b.shape[-1], w4.shape[-1]
    c1 = n1 + r2 + r3
    c23 = r2 + r3
    cout23 = n3 + n5
    ct = n1 + n3 + n5 + npool

    cdt = jnp.bfloat16                                   # MXU operand dtype

    # Fused 1x1 weight [branch1 | branch2-reduce | branch3-reduce].
    w_cat = jnp.concatenate([w1[0, 0], w2a[0, 0], w3a[0, 0]], axis=1).astype(cdt)
    b_cat = jnp.concatenate([b1, b2a, b3a], axis=0).reshape(1, c1)

    # Block-diagonal merged 5x5 weight for branch2+branch3, pre-reshaped to
    # (dw, 5*C23, n3+n5) so the kernel indexes w23[dw] with no relayout.
    w23 = jnp.zeros((5, 5, c23, cout23), jnp.float32)
    w23 = w23.at[:, :, :r2, :n3].set(w2b)
    w23 = w23.at[:, :, r2:, n3:].set(w3b)
    w23r = jnp.transpose(w23, (1, 0, 2, 3)).reshape(5, 5 * c23, cout23).astype(cdt)
    b23 = jnp.concatenate([b2b, b3b], axis=0).reshape(1, cout23)

    # branch3's 1x1 conv has padding=1: zero input -> relu(folded bias) ring;
    # the branch2 half of the shared canvas ring is plain zero.
    ring23 = jnp.concatenate(
        [jnp.zeros((r2,), jnp.float32), jnp.maximum(b3a, 0.0)]
    ).reshape(1, c23).astype(cdt)

    w4m = w4[0, 0].astype(cdt)
    b4m = b4.reshape(1, npool)

    xb = x.astype(cdt)

    out = pl.pallas_call(
        _inception_kernel,
        out_shape=jax.ShapeDtypeStruct((N, H, W, ct), jnp.float32),
        grid=(N,),
        in_specs=[
            pl.BlockSpec((1, H, W, Cin), lambda n: (n, 0, 0, 0)),
            pl.BlockSpec((Cin, c1), lambda n: (0, 0)),
            pl.BlockSpec((1, c1), lambda n: (0, 0)),
            pl.BlockSpec((1, c23), lambda n: (0, 0)),
            pl.BlockSpec((5, 5 * c23, cout23), lambda n: (0, 0, 0)),
            pl.BlockSpec((1, cout23), lambda n: (0, 0)),
            pl.BlockSpec((Cin, npool), lambda n: (0, 0)),
            pl.BlockSpec((1, npool), lambda n: (0, 0)),
        ],
        out_specs=pl.BlockSpec((1, H, W, ct), lambda n: (n, 0, 0, 0)),
        scratch_shapes=[
            pltpu.VMEM((H + 4, W + 4, c23), cdt),   # shared branch2/3 padded canvas
            pltpu.VMEM((H + 2, W + 2, Cin), cdt),   # branch4 -inf padded canvas
        ],
        compiler_params=pltpu.CompilerParams(dimension_semantics=("parallel",)),
    )(xb, w_cat, b_cat, ring23, w23r, b23, w4m, b4m)

    return jnp.transpose(out, (0, 3, 1, 2))              # NHWC -> NCHW


# ------------------------------------------------------------------
# Parameter init (deterministic, synthetic)
# ------------------------------------------------------------------
def init_conv_bn(key, cin, cout, k):
    kw, kb, kg, kbt, km, kv = jax.random.split(key, 6)
    return dict(
        w=jax.random.normal(kw, (k, k, cin, cout), jnp.float32) / np.sqrt(cin * k * k),
        b=0.1 * jax.random.normal(kb, (cout,), jnp.float32),
        gamma=1.0 + 0.1 * jax.random.normal(kg, (cout,), jnp.float32),
        beta=0.1 * jax.random.normal(kbt, (cout,), jnp.float32),
        mean=0.1 * jax.random.normal(km, (cout,), jnp.float32),
        var=1.0 + 0.1 * jnp.abs(jax.random.normal(kv, (cout,), jnp.float32)),
    )


# ------------------------------------------------------------------
# Pure-JAX reference (for verification)
# ------------------------------------------------------------------
def ref_inception(x_nchw, params):
    x = jnp.transpose(x_nchw, (0, 2, 3, 1))

    def conv_bn_relu(x, p, pad):
        y = lax.conv_general_dilated(
            x, p["w"], (1, 1), [(pad, pad), (pad, pad)],
            dimension_numbers=("NHWC", "HWIO", "NHWC"),
            precision=lax.Precision.HIGHEST) + p["b"]
        y = (y - p["mean"]) * p["gamma"] / jnp.sqrt(p["var"] + EPS) + p["beta"]
        return jnp.maximum(y, 0.0)

    x1 = conv_bn_relu(x, params["b1"], 0)
    x2 = conv_bn_relu(conv_bn_relu(x, params["b2a"], 0), params["b2b"], 2)
    x3 = conv_bn_relu(conv_bn_relu(x, params["b3a"], 1), params["b3b"], 1)
    xp = lax.reduce_window(x, -jnp.inf, lax.max, (1, 3, 3, 1), (1, 1, 1, 1),
                           [(0, 0), (1, 1), (1, 1), (0, 0)])
    x4 = conv_bn_relu(xp, params["b4"], 0)
    out = jnp.concatenate([x1, x2, x3, x4], axis=-1)
    return jnp.transpose(out, (0, 3, 1, 2))


if __name__ == "__main__":
    key = jax.random.PRNGKey(0)
    in_planes, n1x1, n3x3red, n3x3, n5x5red, n5x5, pool_planes = 4, 8, 6, 16, 6, 16, 8
    N, H, W = 2, 16, 16

    kx, k1, k2, k3, k4, k5, k6 = jax.random.split(key, 7)
    params = {
        "b1":  init_conv_bn(k1, in_planes, n1x1, 1),
        "b2a": init_conv_bn(k2, in_planes, n3x3red, 1),
        "b2b": init_conv_bn(k3, n3x3red, n3x3, 5),
        "b3a": init_conv_bn(k4, in_planes, n5x5red, 1),
        "b3b": init_conv_bn(k5, n5x5red, n5x5, 5),
        "b4":  init_conv_bn(k6, in_planes, pool_planes, 1),
    }
    x = jax.random.normal(kx, (N, in_planes, H, W), jnp.float32)

    fwd = jax.jit(functools.partial(inception_forward, params=params))
    out = jax.block_until_ready(fwd(x))

    ref = ref_inception(x, params)
    assert out.shape == (N, n1x1 + n3x3 + n5x5 + pool_planes, H, W), out.shape
    np.testing.assert_allclose(np.asarray(out), np.asarray(ref),
                               rtol=1e-2, atol=1e-2)
    print("KERNEL_OK")
</pallas_src>

<mosaic_0001>
module attributes {stable_mosaic.version = 11 : i64} {
  func.func @_inception_kernel(%arg0: i32, %arg1: memref<1x16x16x4xbf16, #tpu.memory_space<vmem>>, %arg2: memref<4x20xbf16, #tpu.memory_space<vmem>>, %arg3: memref<1x20xf32, #tpu.memory_space<vmem>>, %arg4: memref<1x12xbf16, #tpu.memory_space<vmem>>, %arg5: memref<5x60x32xbf16, #tpu.memory_space<vmem>>, %arg6: memref<1x32xf32, #tpu.memory_space<vmem>>, %arg7: memref<4x8xbf16, #tpu.memory_space<vmem>>, %arg8: memref<1x8xf32, #tpu.memory_space<vmem>>, %arg9: memref<1x16x16x48xf32, #tpu.memory_space<vmem>>, %arg10: memref<20x20x12xbf16, #tpu.memory_space<vmem>>, %arg11: memref<18x18x4xbf16, #tpu.memory_space<vmem>>) attributes {dimension_semantics = [#tpu.dimension_semantics<parallel>], iteration_bounds = array<i64: 2>, scalar_prefetch = 0 : i64, scratch_operands = 2 : i64, tpu.core_type = #tpu.core_type<tc>, window_params = [{transform_indices = @transform_0, window_bounds = array<i64: 1, 16, 16, 4>}, {pipeline_mode = #tpu.pipeline_mode<synchronous>, transform_indices = @transform_1, window_bounds = array<i64: 4, 20>}, {pipeline_mode = #tpu.pipeline_mode<synchronous>, transform_indices = @transform_2, window_bounds = array<i64: 1, 20>}, {pipeline_mode = #tpu.pipeline_mode<synchronous>, transform_indices = @transform_3, window_bounds = array<i64: 1, 12>}, {pipeline_mode = #tpu.pipeline_mode<synchronous>, transform_indices = @transform_4, window_bounds = array<i64: 5, 60, 32>}, {pipeline_mode = #tpu.pipeline_mode<synchronous>, transform_indices = @transform_5, window_bounds = array<i64: 1, 32>}, {pipeline_mode = #tpu.pipeline_mode<synchronous>, transform_indices = @transform_6, window_bounds = array<i64: 4, 8>}, {pipeline_mode = #tpu.pipeline_mode<synchronous>, transform_indices = @transform_7, window_bounds = array<i64: 1, 8>}, {transform_indices = @transform_8, window_bounds = array<i64: 1, 16, 16, 48>}]} {
    %c0 = arith.constant 0 : index
    %c0_0 = arith.constant 0 : index
    %c0_1 = arith.constant 0 : index
    %c0_2 = arith.constant 0 : index
    %0 = vector.load %arg1[%c0, %c0_0, %c0_1, %c0_2] : memref<1x16x16x4xbf16, #tpu.memory_space<vmem>>, vector<1x16x16x4xbf16>
    %1 = vector.shape_cast %0 : vector<1x16x16x4xbf16> to vector<16x16x4xbf16>
    %2 = vector.shape_cast %1 : vector<16x16x4xbf16> to vector<256x4xbf16>
    %c0_3 = arith.constant 0 : index
    %c0_4 = arith.constant 0 : index
    %3 = vector.load %arg2[%c0_3, %c0_4] : memref<4x20xbf16, #tpu.memory_space<vmem>>, vector<4x20xbf16>
    %cst = arith.constant dense<0.000000e+00> : vector<256x20xf32>
    %4 = tpu.matmul %2, %3, %cst {dimension_numbers = #tpu.dot_dimension_numbers<[1], [0], [0], [1], [0, 0, 1, 1], [], []>} : vector<256x4xbf16>, vector<4x20xbf16>, vector<256x20xf32> -> vector<256x20xf32>
    %c0_5 = arith.constant 0 : index
    %c0_6 = arith.constant 0 : index
    %5 = vector.load %arg3[%c0_5, %c0_6] : memref<1x20xf32, #tpu.memory_space<vmem>>, vector<1x20xf32>
    %6 = vector.broadcast %5 : vector<1x20xf32> to vector<256x20xf32>
    %7 = arith.addf %4, %6 : vector<256x20xf32>
    %cst_7 = arith.constant 0.000000e+00 : f32
    %8 = vector.broadcast %cst_7 : f32 to vector<256x20xf32>
    %9 = arith.maximumf %7, %8 : vector<256x20xf32>
    %10 = vector.extract_strided_slice %9 {offsets = [0, 0], sizes = [256, 8], strides = [1, 1]} : vector<256x20xf32> to vector<256x8xf32>
    %11 = vector.extract_strided_slice %9 {offsets = [0, 8], sizes = [256, 12], strides = [1, 1]} : vector<256x20xf32> to vector<256x12xf32>
    %12 = arith.truncf %11 : vector<256x12xf32> to vector<256x12xbf16>
    %c0_8 = arith.constant 0 : index
    %c0_9 = arith.constant 0 : index
    %13 = vector.load %arg4[%c0_8, %c0_9] : memref<1x12xbf16, #tpu.memory_space<vmem>>, vector<1x12xbf16>
    %14 = vector.shape_cast %13 : vector<1x12xbf16> to vector<1x1x12xbf16>
    %cst_10 = arith.constant 0.000000e+00 : bf16
    %15 = vector.broadcast %cst_10 : bf16 to vector<1x20x12xbf16>
    %cst_11 = arith.constant 0.000000e+00 : bf16
    %16 = vector.broadcast %cst_11 : bf16 to vector<18x1x12xbf16>
    %c0_12 = arith.constant 0 : index
    %c0_13 = arith.constant 0 : index
    %c0_14 = arith.constant 0 : index
    %17 = vector.load %arg10[%c0_12, %c0_13, %c0_14] : memref<20x20x12xbf16, #tpu.memory_space<vmem>>, vector<1x20x12xbf16>
    tpu.vector_store %arg10[%c0_12, %c0_13, %c0_14], %15 {strides = array<i32>} : memref<20x20x12xbf16, #tpu.memory_space<vmem>>, vector<1x20x12xbf16>,
    %c19 = arith.constant 19 : index
    %c0_15 = arith.constant 0 : index
    %c0_16 = arith.constant 0 : index
    %18 = vector.load %arg10[%c19, %c0_15, %c0_16] : memref<20x20x12xbf16, #tpu.memory_space<vmem>>, vector<1x20x12xbf16>
    tpu.vector_store %arg10[%c19, %c0_15, %c0_16], %15 {strides = array<i32>} : memref<20x20x12xbf16, #tpu.memory_space<vmem>>, vector<1x20x12xbf16>,
    %c1 = arith.constant 1 : index
    %c0_17 = arith.constant 0 : index
    %c0_18 = arith.constant 0 : index
    %19 = vector.load %arg10[%c1, %c0_17, %c0_18] : memref<20x20x12xbf16, #tpu.memory_space<vmem>>, vector<18x1x12xbf16>
    tpu.vector_store %arg10[%c1, %c0_17, %c0_18], %16 {strides = array<i32>} : memref<20x20x12xbf16, #tpu.memory_space<vmem>>, vector<18x1x12xbf16>,
    %c1_19 = arith.constant 1 : index
    %c19_20 = arith.constant 19 : index
    %c0_21 = arith.constant 0 : index
    %20 = vector.load %arg10[%c1_19, %c19_20, %c0_21] : memref<20x20x12xbf16, #tpu.memory_space<vmem>>, vector<18x1x12xbf16>
    tpu.vector_store %arg10[%c1_19, %c19_20, %c0_21], %16 {strides = array<i32>} : memref<20x20x12xbf16, #tpu.memory_space<vmem>>, vector<18x1x12xbf16>,
    %21 = vector.shape_cast %14 : vector<1x1x12xbf16> to vector<1x1x12xbf16>
    %22 = vector.broadcast %21 : vector<1x1x12xbf16> to vector<1x18x12xbf16>
    %c1_22 = arith.constant 1 : index
    %c1_23 = arith.constant 1 : index
    %c0_24 = arith.constant 0 : index
    %23 = vector.load %arg10[%c1_22, %c1_23, %c0_24] : memref<20x20x12xbf16, #tpu.memory_space<vmem>>, vector<1x18x12xbf16>
    tpu.vector_store %arg10[%c1_22, %c1_23, %c0_24], %22 {strides = array<i32>} : memref<20x20x12xbf16, #tpu.memory_space<vmem>>, vector<1x18x12xbf16>,
    %24 = vector.shape_cast %14 : vector<1x1x12xbf16> to vector<1x1x12xbf16>
    %25 = vector.broadcast %24 : vector<1x1x12xbf16> to vector<1x18x12xbf16>
    %c18 = arith.constant 18 : index
    %c1_25 = arith.constant 1 : index
    %c0_26 = arith.constant 0 : index
    %26 = vector.load %arg10[%c18, %c1_25, %c0_26] : memref<20x20x12xbf16, #tpu.memory_space<vmem>>, vector<1x18x12xbf16>
    tpu.vector_store %arg10[%c18, %c1_25, %c0_26], %25 {strides = array<i32>} : memref<20x20x12xbf16, #tpu.memory_space<vmem>>, vector<1x18x12xbf16>,
    %27 = vector.shape_cast %14 : vector<1x1x12xbf16> to vector<1x1x12xbf16>
    %28 = vector.broadcast %27 : vector<1x1x12xbf16> to vector<16x1x12xbf16>
    %c2 = arith.constant 2 : index
    %c1_27 = arith.constant 1 : index
    %c0_28 = arith.constant 0 : index
    %29 = vector.load %arg10[%c2, %c1_27, %c0_28] : memref<20x20x12xbf16, #tpu.memory_space<vmem>>, vector<16x1x12xbf16>
    tpu.vector_store %arg10[%c2, %c1_27, %c0_28], %28 {strides = array<i32>} : memref<20x20x12xbf16, #tpu.memory_space<vmem>>, vector<16x1x12xbf16>,
    %30 = vector.shape_cast %14 : vector<1x1x12xbf16> to vector<1x1x12xbf16>
    %31 = vector.broadcast %30 : vector<1x1x12xbf16> to vector<16x1x12xbf16>
    %c2_29 = arith.constant 2 : index
    %c18_30 = arith.constant 18 : index
    %c0_31 = arith.constant 0 : index
    %32 = vector.load %arg10[%c2_29, %c18_30, %c0_31] : memref<20x20x12xbf16, #tpu.memory_space<vmem>>, vector<16x1x12xbf16>
    tpu.vector_store %arg10[%c2_29, %c18_30, %c0_31], %31 {strides = array<i32>} : memref<20x20x12xbf16, #tpu.memory_space<vmem>>, vector<16x1x12xbf16>,
    %33 = vector.shape_cast %12 : vector<256x12xbf16> to vector<16x16x12xbf16>
    %c2_32 = arith.constant 2 : index
    %c2_33 = arith.constant 2 : index
    %c0_34 = arith.constant 0 : index
    %34 = vector.load %arg10[%c2_32, %c2_33, %c0_34] : memref<20x20x12xbf16, #tpu.memory_space<vmem>>, vector<16x16x12xbf16>
    tpu.vector_store %arg10[%c2_32, %c2_33, %c0_34], %33 {strides = array<i32>} : memref<20x20x12xbf16, #tpu.memory_space<vmem>>, vector<16x16x12xbf16>,
    %cst_35 = arith.constant 0.000000e+00 : f32
    %35 = vector.broadcast %cst_35 : f32 to vector<256x32xf32>
    %c0_36 = arith.constant 0 : index
    %c0_37 = arith.constant 0 : index
    %c0_38 = arith.constant 0 : index
    %36 = vector.load %arg10[%c0_36, %c0_37, %c0_38] : memref<20x20x12xbf16, #tpu.memory_space<vmem>>, vector<20x16x12xbf16>
    %37 = vector.shape_cast %36 : vector<20x16x12xbf16> to vector<320x12xbf16>
    %38 = vector.extract_strided_slice %37 {offsets = [0, 0], sizes = [256, 12], strides = [1, 1]} : vector<320x12xbf16> to vector<256x12xbf16>
    %39 = vector.extract_strided_slice %37 {offsets = [16, 0], sizes = [256, 12], strides = [1, 1]} : vector<320x12xbf16> to vector<256x12xbf16>
    %40 = vector.extract_strided_slice %37 {offsets = [32, 0], sizes = [256, 12], strides = [1, 1]} : vector<320x12xbf16> to vector<256x12xbf16>
    %41 = vector.extract_strided_slice %37 {offsets = [48, 0], sizes = [256, 12], strides = [1, 1]} : vector<320x12xbf16> to vector<256x12xbf16>
    %42 = vector.extract_strided_slice %37 {offsets = [64, 0], sizes = [256, 12], strides = [1, 1]} : vector<320x12xbf16> to vector<256x12xbf16>
    %43 = tpu.concatenate %38, %39, %40, %41, %42 in 1 : vector<256x12xbf16>, vector<256x12xbf16>, vector<256x12xbf16>, vector<256x12xbf16>, vector<256x12xbf16> -> vector<256x60xbf16>
    %c0_39 = arith.constant 0 : index
    %c0_40 = arith.constant 0 : index
    %c0_41 = arith.constant 0 : index
    %44 = vector.load %arg5[%c0_39, %c0_40, %c0_41] : memref<5x60x32xbf16, #tpu.memory_space<vmem>>, vector<1x60x32xbf16>
    %45 = vector.shape_cast %44 : vector<1x60x32xbf16> to vector<60x32xbf16>
    %cst_42 = arith.constant dense<0.000000e+00> : vector<256x32xf32>
    %46 = tpu.matmul %43, %45, %cst_42 {dimension_numbers = #tpu.dot_dimension_numbers<[1], [0], [0], [1], [0, 0, 1, 1], [], []>} : vector<256x60xbf16>, vector<60x32xbf16>, vector<256x32xf32> -> vector<256x32xf32>
    %47 = arith.addf %35, %46 : vector<256x32xf32>
    %c0_43 = arith.constant 0 : index
    %c1_44 = arith.constant 1 : index
    %c0_45 = arith.constant 0 : index
    %48 = vector.load %arg10[%c0_43, %c1_44, %c0_45] : memref<20x20x12xbf16, #tpu.memory_space<vmem>>, vector<20x16x12xbf16>
    %49 = vector.shape_cast %48 : vector<20x16x12xbf16> to vector<320x12xbf16>
    %50 = vector.extract_strided_slice %49 {offsets = [0, 0], sizes = [256, 12], strides = [1, 1]} : vector<320x12xbf16> to vector<256x12xbf16>
    %51 = vector.extract_strided_slice %49 {offsets = [16, 0], sizes = [256, 12], strides = [1, 1]} : vector<320x12xbf16> to vector<256x12xbf16>
    %52 = vector.extract_strided_slice %49 {offsets = [32, 0], sizes = [256, 12], strides = [1, 1]} : vector<320x12xbf16> to vector<256x12xbf16>
    %53 = vector.extract_strided_slice %49 {offsets = [48, 0], sizes = [256, 12], strides = [1, 1]} : vector<320x12xbf16> to vector<256x12xbf16>
    %54 = vector.extract_strided_slice %49 {offsets = [64, 0], sizes = [256, 12], strides = [1, 1]} : vector<320x12xbf16> to vector<256x12xbf16>
    %55 = tpu.concatenate %50, %51, %52, %53, %54 in 1 : vector<256x12xbf16>, vector<256x12xbf16>, vector<256x12xbf16>, vector<256x12xbf16>, vector<256x12xbf16> -> vector<256x60xbf16>
    %c1_46 = arith.constant 1 : index
    %c0_47 = arith.constant 0 : index
    %c0_48 = arith.constant 0 : index
    %56 = vector.load %arg5[%c1_46, %c0_47, %c0_48] : memref<5x60x32xbf16, #tpu.memory_space<vmem>>, vector<1x60x32xbf16>
    %57 = vector.shape_cast %56 : vector<1x60x32xbf16> to vector<60x32xbf16>
    %cst_49 = arith.constant dense<0.000000e+00> : vector<256x32xf32>
    %58 = tpu.matmul %55, %57, %cst_49 {dimension_numbers = #tpu.dot_dimension_numbers<[1], [0], [0], [1], [0, 0, 1, 1], [], []>} : vector<256x60xbf16>, vector<60x32xbf16>, vector<256x32xf32> -> vector<256x32xf32>
    %59 = arith.addf %47, %58 : vector<256x32xf32>
    %c0_50 = arith.constant 0 : index
    %c2_51 = arith.constant 2 : index
    %c0_52 = arith.constant 0 : index
    %60 = vector.load %arg10[%c0_50, %c2_51, %c0_52] : memref<20x20x12xbf16, #tpu.memory_space<vmem>>, vector<20x16x12xbf16>
    %61 = vector.shape_cast %60 : vector<20x16x12xbf16> to vector<320x12xbf16>
    %62 = vector.extract_strided_slice %61 {offsets = [0, 0], sizes = [256, 12], strides = [1, 1]} : vector<320x12xbf16> to vector<256x12xbf16>
    %63 = vector.extract_strided_slice %61 {offsets = [16, 0], sizes = [256, 12], strides = [1, 1]} : vector<320x12xbf16> to vector<256x12xbf16>
    %64 = vector.extract_strided_slice %61 {offsets = [32, 0], sizes = [256, 12], strides = [1, 1]} : vector<320x12xbf16> to vector<256x12xbf16>
    %65 = vector.extract_strided_slice %61 {offsets = [48, 0], sizes = [256, 12], strides = [1, 1]} : vector<320x12xbf16> to vector<256x12xbf16>
    %66 = vector.extract_strided_slice %61 {offsets = [64, 0], sizes = [256, 12], strides = [1, 1]} : vector<320x12xbf16> to vector<256x12xbf16>
    %67 = tpu.concatenate %62, %63, %64, %65, %66 in 1 : vector<256x12xbf16>, vector<256x12xbf16>, vector<256x12xbf16>, vector<256x12xbf16>, vector<256x12xbf16> -> vector<256x60xbf16>
    %c2_53 = arith.constant 2 : index
    %c0_54 = arith.constant 0 : index
    %c0_55 = arith.constant 0 : index
    %68 = vector.load %arg5[%c2_53, %c0_54, %c0_55] : memref<5x60x32xbf16, #tpu.memory_space<vmem>>, vector<1x60x32xbf16>
    %69 = vector.shape_cast %68 : vector<1x60x32xbf16> to vector<60x32xbf16>
    %cst_56 = arith.constant dense<0.000000e+00> : vector<256x32xf32>
    %70 = tpu.matmul %67, %69, %cst_56 {dimension_numbers = #tpu.dot_dimension_numbers<[1], [0], [0], [1], [0, 0, 1, 1], [], []>} : vector<256x60xbf16>, vector<60x32xbf16>, vector<256x32xf32> -> vector<256x32xf32>
    %71 = arith.addf %59, %70 : vector<256x32xf32>
    %c0_57 = arith.constant 0 : index
    %c3 = arith.constant 3 : index
    %c0_58 = arith.constant 0 : index
    %72 = vector.load %arg10[%c0_57, %c3, %c0_58] : memref<20x20x12xbf16, #tpu.memory_space<vmem>>, vector<20x16x12xbf16>
    %73 = vector.shape_cast %72 : vector<20x16x12xbf16> to vector<320x12xbf16>
    %74 = vector.extract_strided_slice %73 {offsets = [0, 0], sizes = [256, 12], strides = [1, 1]} : vector<320x12xbf16> to vector<256x12xbf16>
    %75 = vector.extract_strided_slice %73 {offsets = [16, 0], sizes = [256, 12], strides = [1, 1]} : vector<320x12xbf16> to vector<256x12xbf16>
    %76 = vector.extract_strided_slice %73 {offsets = [32, 0], sizes = [256, 12], strides = [1, 1]} : vector<320x12xbf16> to vector<256x12xbf16>
    %77 = vector.extract_strided_slice %73 {offsets = [48, 0], sizes = [256, 12], strides = [1, 1]} : vector<320x12xbf16> to vector<256x12xbf16>
    %78 = vector.extract_strided_slice %73 {offsets = [64, 0], sizes = [256, 12], strides = [1, 1]} : vector<320x12xbf16> to vector<256x12xbf16>
    %79 = tpu.concatenate %74, %75, %76, %77, %78 in 1 : vector<256x12xbf16>, vector<256x12xbf16>, vector<256x12xbf16>, vector<256x12xbf16>, vector<256x12xbf16> -> vector<256x60xbf16>
    %c3_59 = arith.constant 3 : index
    %c0_60 = arith.constant 0 : index
    %c0_61 = arith.constant 0 : index
    %80 = vector.load %arg5[%c3_59, %c0_60, %c0_61] : memref<5x60x32xbf16, #tpu.memory_space<vmem>>, vector<1x60x32xbf16>
    %81 = vector.shape_cast %80 : vector<1x60x32xbf16> to vector<60x32xbf16>
    %cst_62 = arith.constant dense<0.000000e+00> : vector<256x32xf32>
    %82 = tpu.matmul %79, %81, %cst_62 {dimension_numbers = #tpu.dot_dimension_numbers<[1], [0], [0], [1], [0, 0, 1, 1], [], []>} : vector<256x60xbf16>, vector<60x32xbf16>, vector<256x32xf32> -> vector<256x32xf32>
    %83 = arith.addf %71, %82 : vector<256x32xf32>
    %c0_63 = arith.constant 0 : index
    %c4 = arith.constant 4 : index
    %c0_64 = arith.constant 0 : index
    %84 = vector.load %arg10[%c0_63, %c4, %c0_64] : memref<20x20x12xbf16, #tpu.memory_space<vmem>>, vector<20x16x12xbf16>
    %85 = vector.shape_cast %84 : vector<20x16x12xbf16> to vector<320x12xbf16>
    %86 = vector.extract_strided_slice %85 {offsets = [0, 0], sizes = [256, 12], strides = [1, 1]} : vector<320x12xbf16> to vector<256x12xbf16>
    %87 = vector.extract_strided_slice %85 {offsets = [16, 0], sizes = [256, 12], strides = [1, 1]} : vector<320x12xbf16> to vector<256x12xbf16>
    %88 = vector.extract_strided_slice %85 {offsets = [32, 0], sizes = [256, 12], strides = [1, 1]} : vector<320x12xbf16> to vector<256x12xbf16>
    %89 = vector.extract_strided_slice %85 {offsets = [48, 0], sizes = [256, 12], strides = [1, 1]} : vector<320x12xbf16> to vector<256x12xbf16>
    %90 = vector.extract_strided_slice %85 {offsets = [64, 0], sizes = [256, 12], strides = [1, 1]} : vector<320x12xbf16> to vector<256x12xbf16>
    %91 = tpu.concatenate %86, %87, %88, %89, %90 in 1 : vector<256x12xbf16>, vector<256x12xbf16>, vector<256x12xbf16>, vector<256x12xbf16>, vector<256x12xbf16> -> vector<256x60xbf16>
    %c4_65 = arith.constant 4 : index
    %c0_66 = arith.constant 0 : index
    %c0_67 = arith.constant 0 : index
    %92 = vector.load %arg5[%c4_65, %c0_66, %c0_67] : memref<5x60x32xbf16, #tpu.memory_space<vmem>>, vector<1x60x32xbf16>
    %93 = vector.shape_cast %92 : vector<1x60x32xbf16> to vector<60x32xbf16>
    %cst_68 = arith.constant dense<0.000000e+00> : vector<256x32xf32>
    %94 = tpu.matmul %91, %93, %cst_68 {dimension_numbers = #tpu.dot_dimension_numbers<[1], [0], [0], [1], [0, 0, 1, 1], [], []>} : vector<256x60xbf16>, vector<60x32xbf16>, vector<256x32xf32> -> vector<256x32xf32>
    %95 = arith.addf %83, %94 : vector<256x32xf32>
    %c0_69 = arith.constant 0 : index
    %c0_70 = arith.constant 0 : index
    %96 = vector.load %arg6[%c0_69, %c0_70] : memref<1x32xf32, #tpu.memory_space<vmem>>, vector<1x32xf32>
    %97 = vector.broadcast %96 : vector<1x32xf32> to vector<256x32xf32>
    %98 = arith.addf %95, %97 : vector<256x32xf32>
    %cst_71 = arith.constant 0.000000e+00 : f32
    %99 = vector.broadcast %cst_71 : f32 to vector<256x32xf32>
    %100 = arith.maximumf %98, %99 : vector<256x32xf32>
    %cst_72 = arith.constant 0xFF80 : bf16
    %101 = vector.broadcast %cst_72 : bf16 to vector<1x18x4xbf16>
    %cst_73 = arith.constant 0xFF80 : bf16
    %102 = vector.broadcast %cst_73 : bf16 to vector<16x1x4xbf16>
    %c0_74 = arith.constant 0 : index
    %c0_75 = arith.constant 0 : index
    %c0_76 = arith.constant 0 : index
    %103 = vector.load %arg11[%c0_74, %c0_75, %c0_76] : memref<18x18x4xbf16, #tpu.memory_space<vmem>>, vector<1x18x4xbf16>
    tpu.vector_store %arg11[%c0_74, %c0_75, %c0_76], %101 {strides = array<i32>} : memref<18x18x4xbf16, #tpu.memory_space<vmem>>, vector<1x18x4xbf16>,
    %c17 = arith.constant 17 : index
    %c0_77 = arith.constant 0 : index
    %c0_78 = arith.constant 0 : index
    %104 = vector.load %arg11[%c17, %c0_77, %c0_78] : memref<18x18x4xbf16, #tpu.memory_space<vmem>>, vector<1x18x4xbf16>
    tpu.vector_store %arg11[%c17, %c0_77, %c0_78], %101 {strides = array<i32>} : memref<18x18x4xbf16, #tpu.memory_space<vmem>>, vector<1x18x4xbf16>,
    %c1_79 = arith.constant 1 : index
    %c0_80 = arith.constant 0 : index
    %c0_81 = arith.constant 0 : index
    %105 = vector.load %arg11[%c1_79, %c0_80, %c0_81] : memref<18x18x4xbf16, #tpu.memory_space<vmem>>, vector<16x1x4xbf16>
    tpu.vector_store %arg11[%c1_79, %c0_80, %c0_81], %102 {strides = array<i32>} : memref<18x18x4xbf16, #tpu.memory_space<vmem>>, vector<16x1x4xbf16>,
    %c1_82 = arith.constant 1 : index
    %c17_83 = arith.constant 17 : index
    %c0_84 = arith.constant 0 : index
    %106 = vector.load %arg11[%c1_82, %c17_83, %c0_84] : memref<18x18x4xbf16, #tpu.memory_space<vmem>>, vector<16x1x4xbf16>
    tpu.vector_store %arg11[%c1_82, %c17_83, %c0_84], %102 {strides = array<i32>} : memref<18x18x4xbf16, #tpu.memory_space<vmem>>, vector<16x1x4xbf16>,
    %c1_85 = arith.constant 1 : index
    %c1_86 = arith.constant 1 : index
    %c0_87 = arith.constant 0 : index
    %107 = vector.load %arg11[%c1_85, %c1_86, %c0_87] : memref<18x18x4xbf16, #tpu.memory_space<vmem>>, vector<16x16x4xbf16>
    tpu.vector_store %arg11[%c1_85, %c1_86, %c0_87], %1 {strides = array<i32>} : memref<18x18x4xbf16, #tpu.memory_space<vmem>>, vector<16x16x4xbf16>,
    %c0_88 = arith.constant 0 : index
    %c0_89 = arith.constant 0 : index
    %c0_90 = arith.constant 0 : index
    %108 = vector.load %arg11[%c0_88, %c0_89, %c0_90] : memref<18x18x4xbf16, #tpu.memory_space<vmem>>, vector<18x18x4xbf16>
    %109 = vector.extract_strided_slice %108 {offsets = [0, 0, 0], sizes = [18, 16, 4], strides = [1, 1, 1]} : vector<18x18x4xbf16> to vector<18x16x4xbf16>
    %110 = vector.extract_strided_slice %108 {offsets = [0, 1, 0], sizes = [18, 16, 4], strides = [1, 1, 1]} : vector<18x18x4xbf16> to vector<18x16x4xbf16>
    %111 = arith.maximumf %109, %110 : vector<18x16x4xbf16>
    %112 = vector.extract_strided_slice %108 {offsets = [0, 2, 0], sizes = [18, 16, 4], strides = [1, 1, 1]} : vector<18x18x4xbf16> to vector<18x16x4xbf16>
    %113 = arith.maximumf %111, %112 : vector<18x16x4xbf16>
    %114 = vector.extract_strided_slice %113 {offsets = [0, 0, 0], sizes = [16, 16, 4], strides = [1, 1, 1]} : vector<18x16x4xbf16> to vector<16x16x4xbf16>
    %115 = vector.extract_strided_slice %113 {offsets = [1, 0, 0], sizes = [16, 16, 4], strides = [1, 1, 1]} : vector<18x16x4xbf16> to vector<16x16x4xbf16>
    %116 = arith.maximumf %114, %115 : vector<16x16x4xbf16>
    %117 = vector.extract_strided_slice %113 {offsets = [2, 0, 0], sizes = [16, 16, 4], strides = [1, 1, 1]} : vector<18x16x4xbf16> to vector<16x16x4xbf16>
    %118 = arith.maximumf %116, %117 : vector<16x16x4xbf16>
    %119 = vector.shape_cast %118 : vector<16x16x4xbf16> to vector<256x4xbf16>
    %c0_91 = arith.constant 0 : index
    %c0_92 = arith.constant 0 : index
    %120 = vector.load %arg7[%c0_91, %c0_92] : memref<4x8xbf16, #tpu.memory_space<vmem>>, vector<4x8xbf16>
    %cst_93 = arith.constant dense<0.000000e+00> : vector<256x8xf32>
    %121 = tpu.matmul %119, %120, %cst_93 {dimension_numbers = #tpu.dot_dimension_numbers<[1], [0], [0], [1], [0, 0, 1, 1], [], []>} : vector<256x4xbf16>, vector<4x8xbf16>, vector<256x8xf32> -> vector<256x8xf32>
    %c0_94 = arith.constant 0 : index
    %c0_95 = arith.constant 0 : index
    %122 = vector.load %arg8[%c0_94, %c0_95] : memref<1x8xf32, #tpu.memory_space<vmem>>, vector<1x8xf32>
    %123 = vector.broadcast %122 : vector<1x8xf32> to vector<256x8xf32>
    %124 = arith.addf %121, %123 : vector<256x8xf32>
    %cst_96 = arith.constant 0.000000e+00 : f32
    %125 = vector.broadcast %cst_96 : f32 to vector<256x8xf32>
    %126 = arith.maximumf %124, %125 : vector<256x8xf32>
    %127 = vector.shape_cast %10 : vector<256x8xf32> to vector<1x16x16x8xf32>
    %c0_97 = arith.constant 0 : index
    %c0_98 = arith.constant 0 : index
    %c0_99 = arith.constant 0 : index
    %c0_100 = arith.constant 0 : index
    %128 = vector.load %arg9[%c0_97, %c0_98, %c0_99, %c0_100] : memref<1x16x16x48xf32, #tpu.memory_space<vmem>>, vector<1x16x16x8xf32>
    tpu.vector_store %arg9[%c0_97, %c0_98, %c0_99, %c0_100], %127 {strides = array<i32>} : memref<1x16x16x48xf32, #tpu.memory_space<vmem>>, vector<1x16x16x8xf32>,
    %129 = vector.shape_cast %100 : vector<256x32xf32> to vector<1x16x16x32xf32>
    %c0_101 = arith.constant 0 : index
    %c0_102 = arith.constant 0 : index
    %c0_103 = arith.constant 0 : index
    %c8 = arith.constant 8 : index
    %130 = vector.load %arg9[%c0_101, %c0_102, %c0_103, %c8] : memref<1x16x16x48xf32, #tpu.memory_space<vmem>>, vector<1x16x16x32xf32>
    tpu.vector_store %arg9[%c0_101, %c0_102, %c0_103, %c8], %129 {strides = array<i32>} : memref<1x16x16x48xf32, #tpu.memory_space<vmem>>, vector<1x16x16x32xf32>,
    %131 = vector.shape_cast %126 : vector<256x8xf32> to vector<1x16x16x8xf32>
    %c0_104 = arith.constant 0 : index
    %c0_105 = arith.constant 0 : index
    %c0_106 = arith.constant 0 : index
    %c40 = arith.constant 40 : index
    %132 = vector.load %arg9[%c0_104, %c0_105, %c0_106, %c40] : memref<1x16x16x48xf32, #tpu.memory_space<vmem>>, vector<1x16x16x8xf32>
    tpu.vector_store %arg9[%c0_104, %c0_105, %c0_106, %c40], %131 {strides = array<i32>} : memref<1x16x16x48xf32, #tpu.memory_space<vmem>>, vector<1x16x16x8xf32>,
    return
  }
  func.func @transform_0(%arg0: i32) -> (i32, i32, i32, i32) {
    %c0_i32 = arith.constant 0 : i32
    %c0_i32_0 = arith.constant 0 : i32
    %c0_i32_1 = arith.constant 0 : i32
    %c0_i32_2 = arith.constant 0 : i32
    return %arg0, %c0_i32, %c0_i32_0, %c0_i32_1 : i32, i32, i32, i32
  }
  func.func @transform_1(%arg0: i32) -> (i32, i32) {
    %c0_i32 = arith.constant 0 : i32
    %c0_i32_0 = arith.constant 0 : i32
    %c0_i32_1 = arith.constant 0 : i32
    return %c0_i32, %c0_i32_0 : i32, i32
  }
  func.func @transform_2(%arg0: i32) -> (i32, i32) {
    %c0_i32 = arith.constant 0 : i32
    %c0_i32_0 = arith.constant 0 : i32
    %c0_i32_1 = arith.constant 0 : i32
    return %c0_i32, %c0_i32_0 : i32, i32
  }
  func.func @transform_3(%arg0: i32) -> (i32, i32) {
    %c0_i32 = arith.constant 0 : i32
    %c0_i32_0 = arith.constant 0 : i32
    %c0_i32_1 = arith.constant 0 : i32
    return %c0_i32, %c0_i32_0 : i32, i32
  }
  func.func @transform_4(%arg0: i32) -> (i32, i32, i32) {
    %c0_i32 = arith.constant 0 : i32
    %c0_i32_0 = arith.constant 0 : i32
    %c0_i32_1 = arith.constant 0 : i32
    %c0_i32_2 = arith.constant 0 : i32
    return %c0_i32, %c0_i32_0, %c0_i32_1 : i32, i32, i32
  }
  func.func @transform_5(%arg0: i32) -> (i32, i32) {
    %c0_i32 = arith.constant 0 : i32
    %c0_i32_0 = arith.constant 0 : i32
    %c0_i32_1 = arith.constant 0 : i32
    return %c0_i32, %c0_i32_0 : i32, i32
  }
  func.func @transform_6(%arg0: i32) -> (i32, i32) {
    %c0_i32 = arith.constant 0 : i32
    %c0_i32_0 = arith.constant 0 : i32
    %c0_i32_1 = arith.constant 0 : i32
    return %c0_i32, %c0_i32_0 : i32, i32
  }
  func.func @transform_7(%arg0: i32) -> (i32, i32) {
    %c0_i32 = arith.constant 0 : i32
    %c0_i32_0 = arith.constant 0 : i32
    %c0_i32_1 = arith.constant 0 : i32
    return %c0_i32, %c0_i32_0 : i32, i32
  }
  func.func @transform_8(%arg0: i32) -> (i32, i32, i32, i32) {
    %c0_i32 = arith.constant 0 : i32
    %c0_i32_0 = arith.constant 0 : i32
    %c0_i32_1 = arith.constant 0 : i32
    %c0_i32_2 = arith.constant 0 : i32
    return %arg0, %c0_i32, %c0_i32_0, %c0_i32_1 : i32, i32, i32, i32
  }
}

</mosaic_0001>

<bundles_post_ra>
// kernel: inception_forward.1
= control target key start
LH: loop header
LB: loop body
LE: loop exit
PB: predicated region body
PF: predicated region fallthrough
CT: control target
= control target key end

     0   :  { %13 = vsyncpa [#allocation5], 0  ;;  %s14210_s0 = inlined_call_operand.vmem [shape: bf16[2,16,16,4], index: 0, kind: input, shape index: {}]   ;;  %s14211_s1 = inlined_call_operand.vmem [shape: bf16[4,20], index: 1, kind: input, shape index: {}]   ;;  %s14212_s2 = inlined_call_operand.vmem [shape: f32[1,20], index: 2, kind: input, shape index: {}]   ;;  %s14213_s3 = inlined_call_operand.vmem [shape: bf16[1,12], index: 3, kind: input, shape index: {}]   ;;  %s14214_s4 = inlined_call_operand.vmem [shape: bf16[5,60,32], index: 4, kind: input, shape index: {}]   ;;  %s14215_s5 = inlined_call_operand.vmem [shape: f32[1,32], index: 5, kind: input, shape index: {}]   ;;  %s14216_s6 = inlined_call_operand.vmem [shape: bf16[4,8], index: 6, kind: input, shape index: {}]   ;;  %s14217_s7 = inlined_call_operand.vmem [shape: f32[1,8], index: 7, kind: input, shape index: {}]   ;;  %s14218_s8 = inlined_call_operand.hbm [shape: f32[2,16,16,48], index: 8, kind: output, shape index: {}]  }
   0x1   :  { %15 = vsyncpa [#allocation5 + $0x1], 0  ;;  %s9070_s27 = smov 0   ;;  %s9072_s28 = smov 0  }
   0x2   :  { %s9074_s29 = smov 0   ;;  %s9076_s30 = smov 0  }
   0x3 LB: > { %s9091_s9 = sadd.s32 4294967295, %s9011_s30   ;;  %s7955_s10 = sadd.s32 4294967294, %s9011_s30   ;;  %s9011_s30 = sphi %s9076_s30, %s14937_s30   ;;  %s9007_s29 = sphi %s9074_s29, %s14936_s29   ;;  %s9003_s28 = sphi %s9072_s28, %s14935_s28   ;;  %s8999_s27 = sphi %s9070_s27, %s14934_s27  }
   0x4   : > { %s9095_s11 = sadd.s32 1, %s9011_s30   ;;  %s201_s12 = sadd.s32 1, %s9007_s29 }
   0x5   : > { %s198_s13 = ssub.s32 %s9011_s30, %s9095_s11  ;;  %p211_p0 = scmp.ne.s32.totalorder %s9007_s29, %s9003_s28 }
   0x6   : > { %p199_p1 = scmp.eq.s32.totalorder %s198_s13, 0  ;;  %p212_p2 = scmp.eq.s32.totalorder %s9091_s9, 1 }
   0x7   : > { %p217_p3 = scmp.ne.s32.totalorder %s9003_s28, %s8999_s27  ;;  %p218_p4 = scmp.eq.s32.totalorder %s7955_s10, 1 }
   0x8   : > { %s9106_s14 = scalar_select %p199_p1, %s9007_s29, %s201_s12  }
   0x9   : > { %p9108_p5 = por %p212_p2, %p211_p0  ;;  %p9112_p6 = por %p218_p4, %p217_p3 }
   0xa   : > { %p7958_p7 = scmp.ge.s32.totalorder %s9011_s30, 1  ;;  %p265_p8 = scmp.lt.s32.totalorder %s9011_s30, 3 }
   0xc   : > { %p266_p9 = pnand %p7958_p7, %p265_p8 }
   0xe   : > { %269 = sbr.rel (%p266_p9) target bundleno = 1451 (0x5ab), region = 52 }
  0x13   : > { %v338_v0 = vld [vmem:[%s14211_s1] sm:$0x3]  ;;  %vm475_vm0 = vcmask 1041408   ;;  %p299_p10 = scmp.lt.s32.totalorder %s9091_s9, 1  ;;  %v816_v1 = vlaneseq  ;;  %vm700_vm1 = vsmask.f32 256 }
  0x14   : > { %8795 = vmatprep.subr.msk.bf16.mxu0 %vm475_vm0, %v338_v0  ;;  %8796 = vmatprep.subr.msk.bf16.mxu1 %vm475_vm0, %v338_v0  ;;  %v477_v2 = vsel %vm475_vm0, %v338_v0, 0  ;;  %vm825_vm2 = vsmask.f32 7938  ;;  %vm14219_vm3 = vcmask 31744   ;;  %vm5773_vm4 = vcmask 27648   ;;  %s9015_s26 = smov 48  }
  0x15   : > { %8526 = vmatpush3.bf16.msra.mxu0 %v477_v2  ;;  %8794 = vmatpush3.bf16.msra.mxu1 %v477_v2  ;;  %s300_s19 = scalar_select %p299_p10, %s9091_s9, 1  ;;  %vm5776_vm5 = vcmask 24576   ;;  %v5785_v3 = vld [vmem:[#allocation3 + $0xc] sm:$0x1]  ;;  %v5834_v4 = vld [vmem:[#allocation3 + $0x14] sm:$0x1]  ;;  %vm9170_vm10 = vmand %vm5773_vm4, %vm825_vm2 }
  0x16   : > { %vm5882_vm6 = vsmask.f32 4368  ;;  %v5809_v5 = vld [vmem:[#allocation3 + $0x6c] sm:$0x1]  ;;  %vm9128_vm7 = vmand %vm5776_vm5, %vm700_vm1  ;;  %v5858_v7 = vld [vmem:[#allocation3 + $0x74] sm:$0x1] }
  0x17   : > { %s8357_s20 = sshll.u32 %s300_s19, 7  ;;  %v5788_v8 = vld [vmem:[#allocation3 + $0x18] sm:$0x1]  ;;  %v9132_v9 = vshrl.u32 %v816_v1, 7  ;;  %v5786_v10 = vsel %vm9128_vm7, 4286644096, %v5785_v3  ;;  %vm9143_vm8 = vmand %vm5776_vm5, %vm825_vm2 }
  0x18   : > { %s9137_s23 = scalar_lea.vmem %s14210_s0, %s8357_s20  ;;  %v5810_v12 = vsel %vm9128_vm7, 4286644096, %v5809_v5  ;;  %v5789_v13 = vsel %vm9128_vm7, 4286644096, %v5788_v8  ;;  %5787 = vst [vmem:[#allocation3 + $0xc] sm:$0x1] %v5786_v10  ;;  %vm9163_vm9 = vmor %vm700_vm1, %vm5882_vm6 }
  0x19   : > { %v306_v14 = vld [vmem:[%s9137_s23] sm:$0xf]  ;;  %v307_v15 = vld [vmem:[%s9137_s23 + $0x4] sm:$0xf]  ;;  %v5835_v16 = vsel %vm9143_vm8, 4286644096, %v5834_v4 }
  0x1a   : > { %5811 = vst [vmem:[#allocation3 + $0x6c] sm:$0x1] %v5810_v12  ;;  %5790 = vst [vmem:[#allocation3 + $0x18] sm:$0x1] %v5789_v13  ;;  %v7963_v17 = vcombine.low %v306_v14, %v307_v15  ;;  %v5885_v18 = vshrl.u32 %v306_v14, 16  ;;  %v5888_v19 = vshll.u32 %v306_v14, 16 }
  0x1b   : > { %5836 = vst [vmem:[#allocation3 + $0x14] sm:$0x1] %v5835_v16  ;;  %v5893_v20 = vshrl.u32 %v307_v15, 16  ;;  %v322_v21 = vld [vmem:[%s9137_s23 + $0x40] sm:$0xf]  ;;  %v5896_v22 = vshll.u32 %v307_v15, 16 }
  0x1c   : > { %v323_v23 = vld [vmem:[%s9137_s23 + $0x44] sm:$0xf]  ;;  %v5859_v24 = vsel %vm9143_vm8, 4286644096, %v5858_v7  ;;  %v6021_v25 = vshrl.u32 %v322_v21, 16  ;;  %8527 = vmatprep.mubr.msk.bf16.mxu0 %vm14219_vm3, %v7963_v17  ;;  %v5887_v26 = vrot.slane %v5885_v18, 7 }
  0x1d   : > { %v5895_v27 = vrot.slane %v5893_v20, 7  ;;  %v7971_v28 = vcombine.low %v322_v21, %v323_v23  ;;  %5860 = vst [vmem:[#allocation3 + $0x74] sm:$0x1] %v5859_v24  ;;  %v6024_v29 = vshll.u32 %v322_v21, 16  ;;  %v308_v30 = vld [vmem:[%s9137_s23 + $0x8] sm:$0xf] }
  0x1e   : > { %v6023_v32 = vrot.slane %v6021_v25, 7  ;;  %v6029_v33 = vshrl.u32 %v323_v23, 16  ;;  %v6032_v34 = vshll.u32 %v323_v23, 16  ;;  %v309_v35 = vld [vmem:[%s9137_s23 + $0xc] sm:$0xf]  ;;  %v5902_v36 = vshrl.u32 %v308_v30, 16 }
  0x1f   : > { %v5890_v37 = vor.u32 %v5888_v19, %v5887_v26  ;;  %v5891_v38 = vrot.slane %v5887_v26, 4  ;;  %v5898_v39 = vor.u32 %v5896_v22, %v5895_v27  ;;  %v5900_v40 = vrot.slane %v5895_v27, 4  ;;  %8543 = vmatprep.mubr.msk.bf16.mxu1 %vm14219_vm3, %v7971_v28  ;;  %v5837_v42 = vld [vmem:[#allocation3 + $0x20] sm:$0x1]  ;;  %v324_v43 = vld [vmem:[%s9137_s23 + $0x48] sm:$0xf] }
  0x20   : > { %v6026_v44 = vor.u32 %v6024_v29, %v6023_v32  ;;  %v6027_v45 = vrot.slane %v6023_v32, 4  ;;  %v6031_v46 = vrot.slane %v6029_v33, 7  ;;  %v7964_v47 = vcombine.low %v308_v30, %v309_v35  ;;  %v9177_v48 = vld [vmem:[%s9137_s23 + $0x4c] sm:$0xf]  ;;  %v5812_v49 = vld [vmem:[#allocation3 + $0x78] sm:$0x1] }
  0x21   : > { %v5899_v50 = vsel %vm9163_vm9, %v5891_v38, %v5898_v39  ;;  %v6206_v51 = vld [vmem:[#allocation3 + $0xc] sm:$0xf]  ;;  %v5838_v53 = vsel %vm9143_vm8, 4286644096, %v5837_v42  ;;  %v7972_v54 = vcombine.low %v324_v43, %v9177_v48  ;;  %v6213_v60 = vld [vmem:[#allocation3 + $0x18] sm:$0xf] }
  0x22   : > { %v6262_v52 = vld [vmem:[#allocation3 + $0x6c] sm:$0xf]  ;;  %v6207_v55 = vsel %vm9170_vm10, %v5890_v37, %v6206_v51  ;;  %6209 = vst.msk [vmem:[#allocation3 + $0x10] sm:$0xf] %vm5773_vm4, %v5899_v50  ;;  %v6210_v56 = vld [vmem:[#allocation3 + $0x14] sm:$0x1]  ;;  %v6034_v57 = vor.u32 %v6032_v34, %v6031_v46  ;;  %8528 = vmatmul.mubr.msk.bf16.vlgmr.msra.gmra.mxu0 %vm14219_vm3, %v7964_v47 }
  0x23   : > { %v6036_v58 = vrot.slane %v6031_v46, 4  ;;  %v6263_v59 = vsel %vm9170_vm10, %v6026_v44, %v6262_v52  ;;  %5839 = vst [vmem:[#allocation3 + $0x20] sm:$0x1] %v5838_v53  ;;  %6208 = vst [vmem:[#allocation3 + $0xc] sm:$0xf] %v6207_v55  ;;  %v6211_v61 = vsel %vm9128_vm7, %v5900_v40, %v6210_v56  ;;  %v5904_v62 = vrot.slane %v5902_v36, 7  ;;  %8544 = vmatmul.mubr.msk.bf16.vlgmr.msra.gmra.mxu1 %vm14219_vm3, %v7972_v54 }
  0x24   : > { %6264 = vst [vmem:[#allocation3 + $0x6c] sm:$0xf] %v6263_v59  ;;  %v5905_v63 = vshll.u32 %v308_v30, 16  ;;  %v5910_v0 = vshrl.u32 %v309_v35, 16  ;;  %v5861_v1 = vld [vmem:[#allocation3 + $0x80] sm:$0x1]  ;;  %v6035_v2 = vsel %vm9163_vm9, %v6027_v45, %v6034_v57 }
  0x25   : > { %6212 = vst [vmem:[#allocation3 + $0x14] sm:$0x1] %v6211_v61  ;;  %v6266_v3 = vld [vmem:[#allocation3 + $0x74] sm:$0x1]  ;;  %v5913_v4 = vshll.u32 %v309_v35, 16  ;;  %v6038_v7 = vshrl.u32 %v324_v43, 16 }
  0x26   : > { %v5813_v5 = vsel %vm9128_vm7, 4286644096, %v5812_v49  ;;  %6265 = vst.msk [vmem:[#allocation3 + $0x70] sm:$0xf] %vm5773_vm4, %v6035_v2  ;;  %v6267_v8 = vsel %vm9128_vm7, %v6036_v58, %v6266_v3  ;;  %v5907_v10 = vor.u32 %v5905_v63, %v5904_v62  ;;  %v5908_v12 = vrot.slane %v5904_v62, 4  ;;  %s9016_s10 = smov 12  }
  0x27   : > { %v5912_v13 = vrot.slane %v5910_v0, 7  ;;  %5814 = vst [vmem:[#allocation3 + $0x78] sm:$0x1] %v5813_v5  ;;  %v310_v14 = vld [vmem:[%s9137_s23 + $0x10] sm:$0xf]  ;;  %v6040_v17 = vrot.slane %v6038_v7, 7 }
  0x28   : > { %v311_v15 = vld [vmem:[%s9137_s23 + $0x14] sm:$0xf]  ;;  %6268 = vst [vmem:[#allocation3 + $0x74] sm:$0x1] %v6267_v8  ;;  %v5862_v16 = vsel %vm9143_vm8, 4286644096, %v5861_v1  ;;  %v6214_v22 = vsel %vm9170_vm10, %v5907_v10, %v6213_v60 }
  0x29   : > { %v6041_v18 = vshll.u32 %v324_v43, 16  ;;  %v6046_v19 = vshrl.u32 %v9177_v48, 16  ;;  %v5915_v20 = vor.u32 %v5913_v4, %v5912_v13  ;;  %v5917_v21 = vrot.slane %v5912_v13, 4  ;;  %5863 = vst [vmem:[#allocation3 + $0x80] sm:$0x1] %v5862_v16  ;;  %s9017_s12 = smov 36  }
  0x2a   : > { %v6049_v23 = vshll.u32 %v9177_v48, 16  ;;  %v5791_v24 = vld [vmem:[#allocation3 + $0x24] sm:$0x1]  ;;  %v5840_v25 = vld [vmem:[#allocation3 + $0x2c] sm:$0x1]  ;;  %v6044_v27 = vrot.slane %v6040_v17, 4  ;;  %v7965_v29 = vcombine.low %v310_v14, %v311_v15 }
  0x2b   : > { %6215 = vst [vmem:[#allocation3 + $0x18] sm:$0xf] %v6214_v22  ;;  %v6043_v26 = vor.u32 %v6041_v18, %v6040_v17  ;;  %v6048_v28 = vrot.slane %v6046_v19, 7  ;;  %v312_v30 = vld [vmem:[%s9137_s23 + $0x18] sm:$0xf]  ;;  %v5916_v33 = vsel %vm9163_vm9, %v5908_v12, %v5915_v20  ;;  %v5919_v42 = vshrl.u32 %v310_v14, 16 }
  0x2c   : > { %v313_v32 = vld [vmem:[%s9137_s23 + $0x1c] sm:$0xf]  ;;  %v6217_v34 = vld [vmem:[#allocation3 + $0x20] sm:$0x1]  ;;  %v5792_v35 = vsel %vm9128_vm7, 4286644096, %v5791_v24  ;;  %8531 = vmatprep.mubr.msk.bf16.mxu0 %vm14219_vm3, %v7965_v29 }
  0x2d   : > { %v5841_v36 = vsel %vm9143_vm8, 4286644096, %v5840_v25  ;;  %v7966_v37 = vcombine.low %v312_v30, %v313_v32  ;;  %6216 = vst.msk [vmem:[#allocation3 + $0x1c] sm:$0xf] %vm5773_vm4, %v5916_v33  ;;  %v6218_v38 = vsel %vm9128_vm7, %v5917_v21, %v6217_v34  ;;  %v6051_v39 = vor.u32 %v6049_v23, %v6048_v28  ;;  %5793 = vst [vmem:[#allocation3 + $0x24] sm:$0x1] %v5792_v35 }
  0x2e   : > { %v6053_v40 = vrot.slane %v6048_v28, 4  ;;  %5842 = vst [vmem:[#allocation3 + $0x2c] sm:$0x1] %v5841_v36  ;;  %v5794_v43 = vld [vmem:[#allocation3 + $0x30] sm:$0x1]  ;;  %v5922_v45 = vshll.u32 %v310_v14, 16 }
  0x2f   : > { %v5843_v44 = vld [vmem:[#allocation3 + $0x38] sm:$0x1]  ;;  %6219 = vst [vmem:[#allocation3 + $0x20] sm:$0x1] %v6218_v38  ;;  %v5927_v46 = vshrl.u32 %v311_v15, 16  ;;  %v5930_v47 = vshll.u32 %v311_v15, 16  ;;  %8532 = vmatmul.mubr.msk.bf16.gmra.mxu0 %vm14219_vm3, %v7966_v37  ;;  %v6052_v49 = vsel %vm9163_vm9, %v6044_v27, %v6051_v39 }
  0x30   : > { %v5795_v48 = vsel %vm9128_vm7, 4286644096, %v5794_v43  ;;  %v6269_v50 = vld [vmem:[#allocation3 + $0x78] sm:$0xf]  ;;  %v5921_v51 = vrot.slane %v5919_v42, 7  ;;  %v5936_v53 = vshrl.u32 %v312_v30, 16 }
  0x31   : > { %5796 = vst [vmem:[#allocation3 + $0x30] sm:$0x1] %v5795_v48  ;;  %v5844_v52 = vsel %vm9143_vm8, 4286644096, %v5843_v44  ;;  %v6270_v54 = vsel %vm9170_vm10, %v6043_v26, %v6269_v50  ;;  %6272 = vst.msk [vmem:[#allocation3 + $0x7c] sm:$0xf] %vm5773_vm4, %v6052_v49 }
  0x32   : > { %v5929_v55 = vrot.slane %v5927_v46, 7  ;;  %5845 = vst [vmem:[#allocation3 + $0x38] sm:$0x1] %v5844_v52  ;;  %v5939_v56 = vshll.u32 %v312_v30, 16  ;;  %v5944_v57 = vshrl.u32 %v313_v32, 16  ;;  %v5924_v60 = vor.u32 %v5922_v45, %v5921_v51  ;;  %s296_s13 = sand.u32 1, %s9003_s28  }
  0x33   : > { %v326_v58 = vld [vmem:[%s9137_s23 + $0x50] sm:$0xf]  ;;  %6271 = vst [vmem:[#allocation3 + $0x78] sm:$0xf] %v6270_v54  ;;  %v5925_v61 = vrot.slane %v5921_v51, 4  ;;  %v5938_v62 = vrot.slane %v5936_v53, 7 }
  0x34   : > { %v6273_v59 = vld [vmem:[#allocation3 + $0x80] sm:$0x1]  ;;  %v5947_v63 = vshll.u32 %v313_v32, 16  ;;  %v5932_v1 = vor.u32 %v5930_v47, %v5929_v55  ;;  %v5934_v2 = vrot.slane %v5929_v55, 4  ;;  %v5946_v3 = vrot.slane %v5944_v57, 7  ;;  %s7959_s19 = sshll.u32 %s296_s13, 8 }
  0x35   : > { %v6274_v0 = vsel %vm9128_vm7, %v6053_v40, %v6273_v59  ;;  %v327_v4 = vld [vmem:[%s9137_s23 + $0x54] sm:$0xf]  ;;  %v5941_v7 = vor.u32 %v5939_v56, %v5938_v62  ;;  %v5942_v8 = vrot.slane %v5938_v62, 4  ;;  %v5864_v13 = vld [vmem:[#allocation3 + $0x8c] sm:$0x1]  ;;  %v6055_v19 = vshrl.u32 %v326_v58, 16 }
  0x36   : > { %v5815_v5 = vld [vmem:[#allocation3 + $0x84] sm:$0x1]  ;;  %6275 = vst [vmem:[#allocation3 + $0x80] sm:$0x1] %v6274_v0  ;;  %v7973_v10 = vcombine.low %v326_v58, %v327_v4  ;;  %v5933_v14 = vsel %vm9163_vm9, %v5925_v61, %v5932_v1  ;;  %v6224_v16 = vld [vmem:[#allocation3 + $0x2c] sm:$0x1]  ;;  %v5949_v17 = vor.u32 %v5947_v63, %v5946_v3 }
  0x37   : > { %v5816_v12 = vsel %vm9128_vm7, 4286644096, %v5815_v5  ;;  %v6220_v15 = vld [vmem:[#allocation3 + $0x24] sm:$0xf]  ;;  %v5951_v18 = vrot.slane %v5946_v3, 4  ;;  %v6225_v21 = vsel %vm9128_vm7, %v5934_v2, %v6224_v16  ;;  %v6058_v23 = vshll.u32 %v326_v58, 16 }
  0x38   : > { %5817 = vst [vmem:[#allocation3 + $0x84] sm:$0x1] %v5816_v12  ;;  %v6221_v20 = vsel %vm9170_vm10, %v5924_v60, %v6220_v15  ;;  %6223 = vst.msk [vmem:[#allocation3 + $0x28] sm:$0xf] %vm5773_vm4, %v5933_v14  ;;  %8547 = vmatprep.mubr.msk.bf16.mxu1 %vm14219_vm3, %v7973_v10  ;;  %v5865_v22 = vsel %vm9143_vm8, 4286644096, %v5864_v13  ;;  %v5950_v25 = vsel %vm9163_vm9, %v5942_v8, %v5949_v17 }
  0x39   : > { %v328_v24 = vld [vmem:[%s9137_s23 + $0x58] sm:$0xf]  ;;  %6222 = vst [vmem:[#allocation3 + $0x24] sm:$0xf] %v6221_v20  ;;  %6226 = vst [vmem:[#allocation3 + $0x2c] sm:$0x1] %v6225_v21 }
  0x3a   : > { %v6227_v26 = vld [vmem:[#allocation3 + $0x30] sm:$0xf]  ;;  %5866 = vst [vmem:[#allocation3 + $0x8c] sm:$0x1] %v5865_v22  ;;  %v6057_v27 = vrot.slane %v6055_v19, 7  ;;  %v6063_v28 = vshrl.u32 %v327_v4, 16 }
  0x3b   : > { %v6066_v29 = vshll.u32 %v327_v4, 16  ;;  %v6228_v30 = vsel %vm9170_vm10, %v5941_v7, %v6227_v26  ;;  %6230 = vst.msk [vmem:[#allocation3 + $0x34] sm:$0xf] %vm5773_vm4, %v5950_v25  ;;  %v6231_v32 = vld [vmem:[#allocation3 + $0x38] sm:$0x1]  ;;  %v6072_v45 = vshrl.u32 %v328_v24, 16 }
  0x3c   : > { %v329_v33 = vld [vmem:[%s9137_s23 + $0x5c] sm:$0xf]  ;;  %v5818_v34 = vld [vmem:[#allocation3 + $0x90] sm:$0x1]  ;;  %6229 = vst [vmem:[#allocation3 + $0x30] sm:$0xf] %v6228_v30  ;;  %v6232_v35 = vsel %vm9128_vm7, %v5951_v18, %v6231_v32  ;;  %v6060_v36 = vor.u32 %v6058_v23, %v6057_v27 }
  0x3d   : > { %v6061_v37 = vrot.slane %v6057_v27, 4  ;;  %v6065_v38 = vrot.slane %v6063_v28, 7  ;;  %v5867_v39 = vld [vmem:[#allocation3 + $0x98] sm:$0x1]  ;;  %v314_v40 = vld [vmem:[%s9137_s23 + $0x20] sm:$0xf]  ;;  %v7974_v42 = vcombine.low %v328_v24, %v329_v33 }
  0x3e   : > { %6233 = vst [vmem:[#allocation3 + $0x38] sm:$0x1] %v6232_v35  ;;  %v5819_v43 = vsel %vm9128_vm7, 4286644096, %v5818_v34  ;;  %v5868_v44 = vsel %vm9143_vm8, 4286644096, %v5867_v39 }
  0x3f   : > { %v6068_v46 = vor.u32 %v6066_v29, %v6065_v38  ;;  %v6070_v47 = vrot.slane %v6065_v38, 4  ;;  %5820 = vst [vmem:[#allocation3 + $0x90] sm:$0x1] %v5819_v43  ;;  %5869 = vst [vmem:[#allocation3 + $0x98] sm:$0x1] %v5868_v44  ;;  %v6075_v48 = vshll.u32 %v328_v24, 16  ;;  %8548 = vmatmul.mubr.msk.bf16.gmra.mxu1 %vm14219_vm3, %v7974_v42 }
  0x40   : > { %v6080_v49 = vshrl.u32 %v329_v33, 16  ;;  %v315_v50 = vld [vmem:[%s9137_s23 + $0x24] sm:$0xf]  ;;  %v6276_v51 = vld [vmem:[#allocation3 + $0x84] sm:$0xf]  ;;  %v6074_v52 = vrot.slane %v6072_v45, 7 }
  0x41   : > { %v6083_v53 = vshll.u32 %v329_v33, 16  ;;  %v7967_v54 = vcombine.low %v314_v40, %v315_v50  ;;  %v5797_v55 = vld [vmem:[#allocation3 + $0x3c] sm:$0x1]  ;;  %v6069_v56 = vsel %vm9163_vm9, %v6061_v37, %v6068_v46  ;;  %v6277_v57 = vsel %vm9170_vm10, %v6060_v36, %v6276_v51  ;;  %v5846_v60 = vld [vmem:[#allocation3 + $0x44] sm:$0x1]  ;;  %s9590_s20 = scalar_lea.vmem [#allocation4], %s7959_s19 }
  0x42   : > { %v6082_v58 = vrot.slane %v6080_v49, 7  ;;  %v5798_v59 = vsel %vm9128_vm7, 4286644096, %v5797_v55  ;;  %6278 = vst [vmem:[#allocation3 + $0x84] sm:$0xf] %v6277_v57  ;;  %v6077_v62 = vor.u32 %v6075_v48, %v6074_v52  ;;  %v6078_v63 = vrot.slane %v6074_v52, 4 }
  0x43   : > { %6279 = vst.msk [vmem:[#allocation3 + $0x88] sm:$0xf] %vm5773_vm4, %v6069_v56  ;;  %v6280_v61 = vld [vmem:[#allocation3 + $0x8c] sm:$0x1]  ;;  %8535 = vmatprep.mubr.msk.bf16.mxu0 %vm14219_vm3, %v7967_v54  ;;  %5799 = vst [vmem:[#allocation3 + $0x3c] sm:$0x1] %v5798_v59 }
  0x44   : > { %v5847_v0 = vsel %vm9143_vm8, 4286644096, %v5846_v60  ;;  %v5953_v1 = vshrl.u32 %v314_v40, 16  ;;  %v6281_v2 = vsel %vm9128_vm7, %v6070_v47, %v6280_v61  ;;  %v6085_v3 = vor.u32 %v6083_v53, %v6082_v58  ;;  %v316_v7 = vld [vmem:[%s9137_s23 + $0x28] sm:$0xf]  ;;  %s9018_s21 = smov 120  }
  0x45   : > { %v6087_v4 = vrot.slane %v6082_v58, 4  ;;  %5848 = vst [vmem:[#allocation3 + $0x44] sm:$0x1] %v5847_v0  ;;  %v5956_v5 = vshll.u32 %v314_v40, 16  ;;  %v317_v8 = vld [vmem:[%s9137_s23 + $0x2c] sm:$0xf] }
  0x46   : > { %6282 = vst [vmem:[#allocation3 + $0x8c] sm:$0x1] %v6281_v2  ;;  %v5955_v10 = vrot.slane %v5953_v1, 7  ;;  %v5961_v12 = vshrl.u32 %v315_v50, 16  ;;  %v5964_v13 = vshll.u32 %v315_v50, 16  ;;  %v7968_v14 = vcombine.low %v316_v7, %v317_v8  ;;  %s9019_s22 = smov 24  }
  0x47   : > { %v5800_v15 = vld [vmem:[#allocation3 + $0x48] sm:$0x1]  ;;  %v6086_v16 = vsel %vm9163_vm9, %v6078_v63, %v6085_v3  ;;  %v5849_v18 = vld [vmem:[#allocation3 + $0x50] sm:$0x1]  ;;  %v5970_v19 = vshrl.u32 %v316_v7, 16  ;;  %v5973_v20 = vshll.u32 %v316_v7, 16 }
  0x48   : > { %v5801_v17 = vsel %vm9128_vm7, 4286644096, %v5800_v15  ;;  %v6283_v21 = vld [vmem:[#allocation3 + $0x90] sm:$0xf]  ;;  %6286 = vst.msk [vmem:[#allocation3 + $0x94] sm:$0xf] %vm5773_vm4, %v6086_v16  ;;  %v5958_v23 = vor.u32 %v5956_v5, %v5955_v10  ;;  %8536 = vmatmul.mubr.msk.bf16.gmra.mxu0 %vm14219_vm3, %v7968_v14 }
  0x49   : > { %v6287_v22 = vld [vmem:[#allocation3 + $0x98] sm:$0x1]  ;;  %v5959_v24 = vrot.slane %v5955_v10, 4  ;;  %v5963_v25 = vrot.slane %v5961_v12, 7  ;;  %5802 = vst [vmem:[#allocation3 + $0x48] sm:$0x1] %v5801_v17  ;;  %v6284_v26 = vsel %vm9170_vm10, %v6077_v62, %v6283_v21 }
  0x4a   : > { %v6288_v27 = vsel %vm9128_vm7, %v6087_v4, %v6287_v22  ;;  %v5850_v28 = vsel %vm9143_vm8, 4286644096, %v5849_v18  ;;  %v5972_v29 = vrot.slane %v5970_v19, 7  ;;  %v330_v30 = vld [vmem:[%s9137_s23 + $0x60] sm:$0xf]  ;;  %v5978_v34 = vshrl.u32 %v317_v8, 16 }
  0x4b   : > { %6285 = vst [vmem:[#allocation3 + $0x90] sm:$0xf] %v6284_v26  ;;  %6289 = vst [vmem:[#allocation3 + $0x98] sm:$0x1] %v6288_v27  ;;  %v5966_v32 = vor.u32 %v5964_v13, %v5963_v25  ;;  %v5968_v33 = vrot.slane %v5963_v25, 4  ;;  %v5981_v35 = vshll.u32 %v317_v8, 16 }
  0x4c   : > { %5851 = vst [vmem:[#allocation3 + $0x50] sm:$0x1] %v5850_v28  ;;  %v331_v36 = vld [vmem:[%s9137_s23 + $0x64] sm:$0xf]  ;;  %v6234_v37 = vld [vmem:[#allocation3 + $0x3c] sm:$0xf]  ;;  %v5975_v38 = vor.u32 %v5973_v20, %v5972_v29 }
  0x4d   : > { %v5976_v39 = vrot.slane %v5972_v29, 4  ;;  %v7975_v40 = vcombine.low %v330_v30, %v331_v36  ;;  %v5821_v42 = vld [vmem:[#allocation3 + $0x9c] sm:$0x1]  ;;  %v6089_v43 = vshrl.u32 %v330_v30, 16  ;;  %v5967_v44 = vsel %vm9163_vm9, %v5959_v24, %v5966_v32  ;;  %v6238_v46 = vld [vmem:[#allocation3 + $0x44] sm:$0x1] }
  0x4e   : > { %v6235_v45 = vsel %vm9170_vm10, %v5958_v23, %v6234_v37  ;;  %v5980_v47 = vrot.slane %v5978_v34, 7  ;;  %v5822_v48 = vsel %vm9128_vm7, 4286644096, %v5821_v42  ;;  %6237 = vst.msk [vmem:[#allocation3 + $0x40] sm:$0xf] %vm5773_vm4, %v5967_v44  ;;  %v6239_v49 = vsel %vm9128_vm7, %v5968_v33, %v6238_v46  ;;  %s9022_s24 = smov 8  }
  0x4f   : > { %6236 = vst [vmem:[#allocation3 + $0x3c] sm:$0xf] %v6235_v45  ;;  %8551 = vmatprep.mubr.msk.bf16.mxu1 %vm14219_vm3, %v7975_v40  ;;  %5823 = vst [vmem:[#allocation3 + $0x9c] sm:$0x1] %v5822_v48  ;;  %v5870_v50 = vld [vmem:[#allocation3 + $0xa4] sm:$0x1] }
  0x50   : > { %v6091_v51 = vrot.slane %v6089_v43, 7  ;;  %v6092_v52 = vshll.u32 %v330_v30, 16  ;;  %v6097_v53 = vshrl.u32 %v331_v36, 16  ;;  %6240 = vst [vmem:[#allocation3 + $0x44] sm:$0x1] %v6239_v49  ;;  %v5983_v54 = vor.u32 %v5981_v35, %v5980_v47  ;;  %s8390_s25 = sshll.u32 %s9091_s9, 12 }
  0x51   : > { %v5985_v55 = vrot.slane %v5980_v47, 4  ;;  %v5871_v56 = vsel %vm9143_vm8, 4286644096, %v5870_v50  ;;  %v6100_v57 = vshll.u32 %v331_v36, 16  ;;  %v332_v58 = vld [vmem:[%s9137_s23 + $0x68] sm:$0xf] }
  0x52   : > { %v6241_v59 = vld [vmem:[#allocation3 + $0x48] sm:$0xf]  ;;  %5872 = vst [vmem:[#allocation3 + $0xa4] sm:$0x1] %v5871_v56  ;;  %v6094_v60 = vor.u32 %v6092_v52, %v6091_v51  ;;  %v6095_v61 = vrot.slane %v6091_v51, 4  ;;  %v6099_v62 = vrot.slane %v6097_v53, 7  ;;  %v5984_v0 = vsel %vm9163_vm9, %v5976_v39, %v5983_v54 }
  0x53   : > { %v333_v63 = vld [vmem:[%s9137_s23 + $0x6c] sm:$0xf]  ;;  %v6242_v1 = vsel %vm9170_vm10, %v5975_v38, %v6241_v59  ;;  %v5824_v3 = vld [vmem:[#allocation3 + $0xa8] sm:$0x1]  ;;  %v5873_v4 = vld [vmem:[#allocation3 + $0xb0] sm:$0x1] }
  0x54   : > { %v7976_v2 = vcombine.low %v332_v58, %v333_v63  ;;  %v6106_v5 = vshrl.u32 %v332_v58, 16  ;;  %6243 = vst [vmem:[#allocation3 + $0x48] sm:$0xf] %v6242_v1  ;;  %6244 = vst.msk [vmem:[#allocation3 + $0x4c] sm:$0xf] %vm5773_vm4, %v5984_v0  ;;  %v6102_v8 = vor.u32 %v6100_v57, %v6099_v62  ;;  %v6104_v10 = vrot.slane %v6099_v62, 4 }
  0x55   : > { %v6245_v7 = vld [vmem:[#allocation3 + $0x50] sm:$0x1]  ;;  %v5825_v12 = vsel %vm9128_vm7, 4286644096, %v5824_v3  ;;  %v6109_v13 = vshll.u32 %v332_v58, 16  ;;  %v6114_v17 = vshrl.u32 %v333_v63, 16 }
  0x56   : > { %v6246_v14 = vsel %vm9128_vm7, %v5985_v55, %v6245_v7  ;;  %8552 = vmatmul.mubr.msk.bf16.gmra.mxu1 %vm14219_vm3, %v7976_v2  ;;  %5826 = vst [vmem:[#allocation3 + $0xa8] sm:$0x1] %v5825_v12  ;;  %v5874_v15 = vsel %vm9143_vm8, 4286644096, %v5873_v4  ;;  %v6108_v16 = vrot.slane %v6106_v5, 7  ;;  %v6103_v19 = vsel %vm9163_vm9, %v6095_v61, %v6102_v8  ;;  %s7893_s17 = sshll.u32 %s9590_s20, 4  ;;  %s14163_s17 = int_to_ptr.vmem [resolvable:$true] %s7893_s17 }
  0x57   : > { %v318_v18 = vld [vmem:[%s9137_s23 + $0x30] sm:$0xf]  ;;  %6247 = vst [vmem:[#allocation3 + $0x50] sm:$0x1] %v6246_v14  ;;  %5875 = vst [vmem:[#allocation3 + $0xb0] sm:$0x1] %v5874_v15 }
  0x58   : > { %v6117_v20 = vshll.u32 %v333_v63, 16  ;;  %v319_v21 = vld [vmem:[%s9137_s23 + $0x34] sm:$0xf]  ;;  %v5803_v22 = vld [vmem:[#allocation3 + $0x54] sm:$0x1]  ;;  %v5987_v23 = vshrl.u32 %v318_v18, 16  ;;  %v6111_v35 = vor.u32 %v6109_v13, %v6108_v16 }
  0x59   : > { %v6290_v24 = vld [vmem:[#allocation3 + $0x9c] sm:$0xf]  ;;  %6293 = vst.msk [vmem:[#allocation3 + $0xa0] sm:$0xf] %vm5773_vm4, %v6103_v19  ;;  %v6112_v25 = vrot.slane %v6108_v16, 4  ;;  %v6116_v26 = vrot.slane %v6114_v17, 7  ;;  %v7969_v27 = vcombine.low %v318_v18, %v319_v21 }
  0x5a   : > { %v5852_v28 = vld [vmem:[#allocation3 + $0x5c] sm:$0x1]  ;;  %v6291_v29 = vsel %vm9170_vm10, %v6094_v60, %v6290_v24  ;;  %v5804_v30 = vsel %vm9128_vm7, 4286644096, %v5803_v22  ;;  %v5989_v33 = vrot.slane %v5987_v23, 7  ;;  %v5990_v37 = vshll.u32 %v318_v18, 16 }
  0x5b   : > { %v5853_v32 = vsel %vm9143_vm8, 4286644096, %v5852_v28  ;;  %6292 = vst [vmem:[#allocation3 + $0x9c] sm:$0xf] %v6291_v29  ;;  %v6294_v34 = vld [vmem:[#allocation3 + $0xa4] sm:$0x1]  ;;  %v6119_v36 = vor.u32 %v6117_v20, %v6116_v26  ;;  %8539 = vmatprep.mubr.msk.bf16.mxu0 %vm14219_vm3, %v7969_v27 }
  0x5c   : > { %5805 = vst [vmem:[#allocation3 + $0x54] sm:$0x1] %v5804_v30  ;;  %5854 = vst [vmem:[#allocation3 + $0x5c] sm:$0x1] %v5853_v32  ;;  %v5995_v38 = vshrl.u32 %v319_v21, 16  ;;  %vm699_vm11 = vcmask 90112   ;;  %v6295_v39 = vsel %vm9128_vm7, %v6104_v10, %v6294_v34  ;;  %v5992_v52 = vor.u32 %v5990_v37, %v5989_v33 }
  0x5d   : > { %v6121_v40 = vrot.slane %v6116_v26, 4  ;;  %v5998_v42 = vshll.u32 %v319_v21, 16  ;;  %v320_v43 = vld [vmem:[%s9137_s23 + $0x38] sm:$0xf]  ;;  %v321_v44 = vld [vmem:[%s9137_s23 + $0x3c] sm:$0xf]  ;;  %v6120_v45 = vsel %vm9163_vm9, %v6112_v25, %v6119_v36  ;;  %vm9369_vm13 = vmand %vm699_vm11, %vm700_vm1 }
  0x5e   : > { %6296 = vst [vmem:[#allocation3 + $0xa4] sm:$0x1] %v6295_v39  ;;  %v5993_v46 = vrot.slane %v5989_v33, 4  ;;  %v5997_v47 = vrot.slane %v5995_v38, 7  ;;  %v7970_v48 = vcombine.low %v320_v43, %v321_v44  ;;  %v5806_v49 = vld [vmem:[#allocation3 + $0x60] sm:$0x1] }
  0x5f   : > { %v5855_v50 = vld [vmem:[#allocation3 + $0x68] sm:$0x1]  ;;  %6300 = vst.msk [vmem:[#allocation3 + $0xac] sm:$0xf] %vm5773_vm4, %v6120_v45  ;;  %v5807_v53 = vsel %vm9128_vm7, 4286644096, %v5806_v49 }
  0x60   : > { %v6297_v51 = vld [vmem:[#allocation3 + $0xa8] sm:$0xf]  ;;  %v5856_v54 = vsel %vm9143_vm8, 4286644096, %v5855_v50  ;;  %v6301_v56 = vld [vmem:[#allocation3 + $0xb0] sm:$0x1]  ;;  %v6000_v57 = vor.u32 %v5998_v42, %v5997_v47  ;;  %8540 = vmatmul.mubr.msk.bf16.gmra.mxu0 %vm14219_vm3, %v7970_v48 }
  0x61   : > { %v6298_v55 = vsel %vm9170_vm10, %v6111_v35, %v6297_v51  ;;  %v6002_v58 = vrot.slane %v5997_v47, 4  ;;  %5808 = vst [vmem:[#allocation3 + $0x60] sm:$0x1] %v5807_v53  ;;  %5857 = vst [vmem:[#allocation3 + $0x68] sm:$0x1] %v5856_v54  ;;  %v6004_v59 = vshrl.u32 %v320_v43, 16  ;;  %v6302_v61 = vsel %vm9128_vm7, %v6121_v40, %v6301_v56 }
  0x62   : > { %v334_v60 = vld [vmem:[%s9137_s23 + $0x70] sm:$0xf]  ;;  %6299 = vst [vmem:[#allocation3 + $0xa8] sm:$0xf] %v6298_v55  ;;  %v6007_v62 = vshll.u32 %v320_v43, 16  ;;  %v6012_v63 = vshrl.u32 %v321_v44, 16  ;;  %v6001_v2 = vsel %vm9163_vm9, %v5993_v46, %v6000_v57 }
  0x63   : > { %v6015_v0 = vshll.u32 %v321_v44, 16  ;;  %v335_v1 = vld [vmem:[%s9137_s23 + $0x74] sm:$0xf]  ;;  %6303 = vst [vmem:[#allocation3 + $0xb0] sm:$0x1] %v6302_v61  ;;  %v6006_v3 = vrot.slane %v6004_v59, 7 }
  0x64   : > { %v7977_v4 = vcombine.low %v334_v60, %v335_v1  ;;  %v5827_v5 = vld [vmem:[#allocation3 + $0xb4] sm:$0x1]  ;;  %v5876_v7 = vld [vmem:[#allocation3 + $0xbc] sm:$0x1]  ;;  %v6123_v8 = vshrl.u32 %v334_v60, 16  ;;  %vm689_vm12 = vcmask 93184  }
  0x65   : > { %v6248_v10 = vld [vmem:[#allocation3 + $0x54] sm:$0xf]  ;;  %6251 = vst.msk [vmem:[#allocation3 + $0x58] sm:$0xf] %vm5773_vm4, %v6001_v2  ;;  %v6252_v12 = vld [vmem:[#allocation3 + $0x5c] sm:$0x1]  ;;  %v6009_v17 = vor.u32 %v6007_v62, %v6006_v3  ;;  %vm9414_vm15 = vmand %vm689_vm12, %vm825_vm2 }
  0x66   : > { %v6014_v13 = vrot.slane %v6012_v63, 7  ;;  %v6126_v14 = vshll.u32 %v334_v60, 16  ;;  %v6249_v15 = vsel %vm9170_vm10, %v5992_v52, %v6248_v10  ;;  %v6253_v16 = vsel %vm9128_vm7, %v6002_v58, %v6252_v12  ;;  %8555 = vmatprep.mubr.msk.bf16.mxu1 %vm14219_vm3, %v7977_v4  ;;  %v336_v19 = vld [vmem:[%s9137_s23 + $0x78] sm:$0xf]  ;;  %v9356_v20 = vld [vmem:[%s9137_s23 + $0x7c] sm:$0xf] }
  0x67   : > { %v6010_v18 = vrot.slane %v6006_v3, 4  ;;  %6250 = vst [vmem:[#allocation3 + $0x54] sm:$0xf] %v6249_v15  ;;  %6254 = vst [vmem:[#allocation3 + $0x5c] sm:$0x1] %v6253_v16  ;;  %v6125_v25 = vrot.slane %v6123_v8, 7  ;;  %v7978_v28 = vcombine.low %v336_v19, %v9356_v20 }
  0x68   : > { %v6017_v21 = vor.u32 %v6015_v0, %v6014_v13  ;;  %v6019_v22 = vrot.slane %v6014_v13, 4  ;;  %v5828_v23 = vsel %vm9128_vm7, 4286644096, %v5827_v5  ;;  %v5877_v24 = vsel %vm9143_vm8, 4286644096, %v5876_v7  ;;  %s14169_s9 = scalar_lea.sflag [#allocation5], %s296_s13 }
  0x69   : > { %5829 = vst [vmem:[#allocation3 + $0xb4] sm:$0x1] %v5828_v23  ;;  %5878 = vst [vmem:[#allocation3 + $0xbc] sm:$0x1] %v5877_v24  ;;  %v6131_v26 = vshrl.u32 %v335_v1, 16  ;;  %v6134_v27 = vshll.u32 %v335_v1, 16  ;;  %v6128_v38 = vor.u32 %v6126_v14, %v6125_v25  ;;  %8556 = vmatmul.mubr.msk.bf16.gmra.mxu1 %vm14219_vm3, %v7978_v28 }
  0x6a   : > { %v5830_v29 = vld [vmem:[#allocation3 + $0xc0] sm:$0x1]  ;;  %v6018_v30 = vsel %vm9163_vm9, %v6010_v18, %v6017_v21  ;;  %v6259_v33 = vld [vmem:[#allocation3 + $0x68] sm:$0x1]  ;;  %v6129_v39 = vrot.slane %v6125_v25, 4  ;;  %v6140_v45 = vshrl.u32 %v336_v19, 16 }
  0x6b   : > { %v6255_v32 = vld [vmem:[#allocation3 + $0x60] sm:$0xf]  ;;  %v5831_v34 = vsel %vm9128_vm7, 4286644096, %v5830_v29  ;;  %6258 = vst.msk [vmem:[#allocation3 + $0x64] sm:$0xf] %vm5773_vm4, %v6018_v30  ;;  %v6260_v37 = vsel %vm9128_vm7, %v6019_v22, %v6259_v33 }
  0x6c   : > { %v6256_v36 = vsel %vm9170_vm10, %v6009_v17, %v6255_v32  ;;  %5832 = vst [vmem:[#allocation3 + $0xc0] sm:$0x1] %v5831_v34  ;;  %v5879_v40 = vld [vmem:[#allocation3 + $0xc8] sm:$0x1]  ;;  %v9382_v42 = vld [vmem:[%s14213_s3] sm:$0x1] }
  0x6d   : > { %6257 = vst [vmem:[#allocation3 + $0x60] sm:$0xf] %v6256_v36  ;;  %6261 = vst [vmem:[#allocation3 + $0x68] sm:$0x1] %v6260_v37  ;;  %v6133_v43 = vrot.slane %v6131_v26, 7  ;;  %v6143_v46 = vshll.u32 %v336_v19, 16  ;;  %v814_v50 = vpack.i.b16 %v9382_v42, %v9382_v42 }
  0x6e   : > { %v5880_v44 = vsel %vm9143_vm8, 4286644096, %v5879_v40  ;;  %v6148_v47 = vshrl.u32 %v9356_v20, 16  ;;  %v6151_v48 = vshll.u32 %v9356_v20, 16  ;;  %v702_v49 = vld [vmem:[#allocation2 + $0xc] sm:$0x1] }
  0x6f   : > { %5881 = vst [vmem:[#allocation3 + $0xc8] sm:$0x1] %v5880_v44  ;;  %v818_v51 = vsub.s32 0, %v9132_v9  ;;  %v6136_v52 = vor.u32 %v6134_v27, %v6133_v43  ;;  %v6138_v53 = vrot.slane %v6133_v43, 4  ;;  %v6142_v54 = vrot.slane %v6140_v45, 7 }
  0x70   : > { %v703_v11 = vsel %vm9369_vm13, 0, %v702_v49  ;;  %v6150_v55 = vrot.slane %v6148_v47, 7  ;;  %v753_v57 = vld [vmem:[#allocation2 + $0xd8] sm:$0x1]  ;;  %v6304_v59 = vld [vmem:[#allocation3 + $0xb4] sm:$0xf] }
  0x71   : > { %704 = vst [vmem:[#allocation2 + $0xc] sm:$0x1] %v703_v11  ;;  %v819_v56 = vrot.slane %v814_v50, %v818_v51  ;;  %v6137_v58 = vsel %vm9163_vm9, %v6129_v39, %v6136_v52  ;;  %v6308_v60 = vld [vmem:[#allocation3 + $0xbc] sm:$0x1]  ;;  %v6145_v61 = vor.u32 %v6143_v46, %v6142_v54  ;;  %v6146_v62 = vrot.slane %v6142_v54, 4 }
  0x72   : > { %v9013_v63 = vmov 1935823168   ;;  %v9014_v1 = vmov 0   ;;  %v759_v2 = vld [vmem:[#allocation2 + $0x14] sm:$0x2]  ;;  %v6305_v3 = vsel %vm9170_vm10, %v6128_v38, %v6304_v59  ;;  %v6309_v4 = vsel %vm9128_vm7, %v6138_v53, %v6308_v60 }
  0x73   : > { %v847_v0 = vunpack.c.l.s4 %v9013_v63  ;;  %695 = vst.msk [vmem:[#allocation2 + $0xe4] sm:$0xf] %vm689_vm12, %v9014_v1  ;;  %696 = vst.msk [vmem:[#allocation2 + $0xe8] sm:$0xf] %vm689_vm12, %v9014_v1  ;;  %v6153_v5 = vor.u32 %v6151_v48, %v6150_v55  ;;  %v6155_v7 = vrot.slane %v6150_v55, 4  ;;  %v9404_v12 = vcombine.low %v819_v56, %v819_v56 }
  0x74   : > { %690 = vst.msk [vmem:[#allocation2] sm:$0xf] %vm689_vm12, %v9014_v1  ;;  %691 = vst.msk [vmem:[#allocation2 + $0x4] sm:$0xf] %vm689_vm12, %v9014_v1  ;;  %v810_v8 = vld [vmem:[#allocation2 + $0xe0] sm:$0x2] }
  0x75   : > { %6307 = vst.msk [vmem:[#allocation3 + $0xb8] sm:$0xf] %vm5773_vm4, %v6137_v58  ;;  %6306 = vst [vmem:[#allocation3 + $0xb4] sm:$0xf] %v6305_v3  ;;  %v6311_v10 = vld [vmem:[#allocation3 + $0xc0] sm:$0xf]  ;;  %v848_v13 = vunpack.c.0.s8 %v847_v0  ;;  %v6154_v15 = vsel %vm9163_vm9, %v6146_v62, %v6153_v5 }
  0x76   : > { %6310 = vst [vmem:[#allocation3 + $0xbc] sm:$0x1] %v6309_v4  ;;  %v754_v14 = vsel %vm9369_vm13, 0, %v753_v57  ;;  %vm692_vm14 = vcmask 91136   ;;  %v6312_v16 = vsel %vm9170_vm10, %v6145_v61, %v6311_v10  ;;  %vm756_vm1 = vcmask 91137  }
  0x77   : > { %755 = vst [vmem:[#allocation2 + $0xd8] sm:$0x1] %v754_v14  ;;  %697 = vst.msk [vmem:[#allocation2 + $0xec] sm:$0x3] %vm692_vm14, %v9014_v1  ;;  %vm757_vm6 = vsmask.f32 7942  ;;  %v9424_v41 = vsub.s32 %v848_v13, %v9132_v9 }
  0x78   : > { %693 = vst.msk [vmem:[#allocation2 + $0x8] sm:$0x3] %vm692_vm14, %v9014_v1  ;;  %6313 = vst [vmem:[#allocation3 + $0xc0] sm:$0xf] %v6312_v16  ;;  %v6315_v31 = vld [vmem:[#allocation3 + $0xc8] sm:$0x1] }
  0x79   : > { %6314 = vst.msk [vmem:[#allocation3 + $0xc4] sm:$0xf] %vm5773_vm4, %v6154_v15  ;;  %vm9429_vm8 = vmand %vm756_vm1, %vm757_vm6  ;;  %v6316_v19 = vsel %vm9128_vm7, %v6155_v7, %v6315_v31  ;;  %vm832_vm9 = vsmask.f32 1280  ;;  %v827_v21 = vld [vmem:[#allocation2 + $0xc] sm:$0xf]  ;;  %v9439_v9 = vrot.slane %v9382_v42, %v9424_v41 }
  0x7a   : > { %830 = vst.msk [vmem:[#allocation2 + $0x10] sm:$0xf] %vm689_vm12, %v9404_v12  ;;  %841 = vst.msk [vmem:[#allocation2 + $0xdc] sm:$0xf] %vm689_vm12, %v9404_v12  ;;  %v760_v20 = vsel %vm9429_vm8, 0, %v759_v2  ;;  %v811_v6 = vsel %vm9429_vm8, 0, %v810_v8  ;;  %v828_v23 = vsel %vm9414_vm15, %v9404_v12, %v827_v21 }
  0x7b   : > { %6317 = vst [vmem:[#allocation3 + $0xc8] sm:$0x1] %v6316_v19  ;;  %vm9443_vm10 = vmand %vm756_vm1, %vm832_vm9  ;;  %v1367_v24 = vld [vmem:[#allocation2 + $0xe4] sm:$0xf]  ;;  %v9452_v25 = vld [vmem:[#allocation2 + $0xe8] sm:$0xf]  ;;  %v859_v26 = vrot.slane %v9439_v9, %v9424_v41  ;;  %v914_v27 = vcombine.low %v9439_v9, %v9439_v9 }
  0x7c   : > { %761 = vst [vmem:[#allocation2 + $0x14] sm:$0x2] %v760_v20  ;;  %14408 = vst [vmem:[#allocation7_spill] sm:$0xff] %v9452_v25  ;;  %vm1773_vm7 = vsmask.f32 3328  ;;  %v8047_v28 = vcombine.low %v1367_v24, %v9452_v25  ;;  %v2233_v29 = vshrl.u32 %v1367_v24, 16 }
  0x7d   : > { %812 = vst [vmem:[#allocation2 + $0xe0] sm:$0x2] %v811_v6  ;;  %829 = vst [vmem:[#allocation2 + $0xc] sm:$0xf] %v828_v23  ;;  %v2236_v30 = vshll.u32 %v1367_v24, 16  ;;  %v14223_v32 = vshll.u32 %v9452_v25, 16  ;;  %v9462_v34 = vrot.slane %v914_v27, %v9424_v41 }
  0x7e   : > { %v14220_v33 = vshrl.u32 %v9452_v25, 16  ;;  %v2235_v36 = vrot.slane %v2233_v29, 4  ;;  %1595 = vrot.lane.b32.xlu1 %v8047_v28, %s9015_s26  ;;  %v838_v37 = vld [vmem:[#allocation2 + $0xd8] sm:$0xf]  ;;  %v1772_v38 = vld [vmem:[#allocation2 + $0xec] sm:$0x1]  ;;  %vm9470_vm1 = vmand %vm692_vm14, %vm832_vm9 }
  0x7f   : > { %v2238_v39 = vrot.slane %v2236_v30, 5  ;;  %v839_v40 = vsel %vm9414_vm15, %v9404_v12, %v838_v37  ;;  %vm1774_vm6 = vsmask.f32 7440  ;;  %v2244_v43 = vrot.slane %v14223_v32, 5 }
  0x80   : > { %840 = vst [vmem:[#allocation2 + $0xd8] sm:$0xf] %v839_v40  ;;  %v2248_v44 = vrot.slane %v14220_v33, 4  ;;  %v2252_v45 = vshll.u32 %v1772_v38, 16  ;;  %vm3097_vm15 = vcmask 1042432   ;;  %vm9481_vm3 = vmor %vm1773_vm7, %vm1774_vm6  ;;  %v14411_v49 = vmov 0 }
  0x81   : > { %v9478_v46 = vld [vmem:[#allocation2 + $0x10] sm:$0xf]  ;;  %v2239_v47 = vor.u32 %v2238_v39, %v2235_v36  ;;  %v14412_v49 = vsel %vm9481_vm3, 4294967295, %v14411_v49  ;;  %vm3098_vm14 = vcmask 1046532   ;;  %v9495_v62 = vld [vmem:[#allocation2 + $0xdc] sm:$0xf]  ;;  %vm9560_vm7 = vmand %vm699_vm11, %vm825_vm2 }
  0x82   : > { %14413 = vst [vmem:[#allocation8_spill] sm:$0xff] %v14412_v49  ;;  %v2249_v50 = vor.u32 %v2248_v44, %v2244_v43  ;;  %v2254_v51 = vrot.slane %v2252_v45, 5  ;;  %v14229_v56 = vshll.u32 %v9478_v46, 16  ;;  %14414 = vst [vmem:[#allocation9_spill] sm:$0xff] %v9495_v62  ;;  %v3109_v0 = vrot.slane %v9478_v46, 5 }
  0x83   : > { %v834_v48 = vld [vmem:[#allocation2 + $0x14] sm:$0x3]  ;;  %v2240_v11 = vrot.slane %v2239_v47, 4  ;;  %v14228_v1 = vshrl.u32 %v9478_v46, 16  ;;  %vm9507_vm9 = vmor %vm3097_vm15, %vm3098_vm14  ;;  %v14415_v10 = vmov 0  ;;  %v14222_v19 = vshll.u32 %v9495_v62, 16 }
  0x84   : > { %v835_v52 = vsel %vm9470_vm1, %v9404_v12, %v834_v48  ;;  %v842_v53 = vld [vmem:[#allocation2 + $0xe0] sm:$0x3]  ;;  %v1331_v54 = vld [vmem:[#allocation2 + $0xc] sm:$0xf]  ;;  %v2250_v61 = vrot.slane %v2249_v50, 4  ;;  %v14416_v10 = vsel %vm9507_vm9, 4294967295, %v14415_v10 }
  0x85   : > { %836 = vst [vmem:[#allocation2 + $0x14] sm:$0x3] %v835_v52  ;;  %v3038_v55 = vld [vmem:[#allocation2 + $0xc] sm:$0xe]  ;;  %v843_v57 = vsel %vm9470_vm1, %v9404_v12, %v842_v53  ;;  %v9493_v58 = vcombine.low %v1331_v54, %v9478_v46  ;;  %v1801_v59 = vshrl.u32 %v1331_v54, 16  ;;  %v1804_v60 = vshll.u32 %v1331_v54, 16 }
  0x86   : > { %844 = vst [vmem:[#allocation2 + $0xe0] sm:$0x3] %v843_v57  ;;  %v2245_v63 = vsel %vm9481_vm3, %v2240_v11, %v2244_v43  ;;  %v2255_v4 = vsel %vm9481_vm3, %v2250_v61, %v2254_v51  ;;  %v8117_v5 = vrot.slane %v3038_v55, 9  ;;  %14417 = vst [vmem:[#allocation10_spill] sm:$0xff] %v14416_v10  ;;  %v1812_v12 = vrot.slane %v14229_v56, 5 }
  0x87   : > { %v1803_v2 = vrot.slane %v1801_v59, 4  ;;  %v1806_v3 = vrot.slane %v1804_v60, 5  ;;  %1454 = vrot.lane.b32.xlu0 %v9493_v58, %s9016_s10  ;;  %v1365_v7 = vld [vmem:[#allocation2 + $0xd8] sm:$0xf]  ;;  %v8067_v8 = vcombine.low %v2245_v63, %v2255_v4  ;;  %v3111_v17 = vrot.slane %v3109_v0, 4 }
  0x88   : > { %v8046_v14 = vcombine.low %v1365_v7, %v9495_v62  ;;  %v2209_v15 = vshrl.u32 %v1365_v7, 16  ;;  %v2212_v16 = vshll.u32 %v1365_v7, 16  ;;  %v1816_v31 = vrot.slane %v14228_v1, 4  ;;  %v708_v59 = vld [vmem:[#allocation2 + $0x24] sm:$0x1] }
  0x89   : > { %v1807_v13 = vor.u32 %v1806_v3, %v1803_v2  ;;  %2442 = vrot.lane.b32.xlu1 %v8067_v8, %s9015_s26  ;;  %v14221_v20 = vshrl.u32 %v9495_v62, 16  ;;  %v3110_v27 = vsel %vm9507_vm9, %v8117_v5, %v3109_v0  ;;  %v2220_v37 = vrot.slane %v14222_v19, 5  ;;  %v705_v61 = vld [vmem:[#allocation2 + $0x18] sm:$0x1]  ;;  %v732_v0 = vld [vmem:[#allocation2 + $0x84] sm:$0x1] }
  0x8a   : > { %v2211_v6 = vrot.slane %v2209_v15, 4  ;;  %v2214_v23 = vrot.slane %v2212_v16, 5  ;;  %v1817_v29 = vor.u32 %v1816_v31, %v1812_v12  ;;  %v709_v60 = vsel %vm9369_vm13, 0, %v708_v59  ;;  %v729_v4 = vld [vmem:[#allocation2 + $0x78] sm:$0x1] }
  0x8b   : > { %v1808_v21 = vrot.slane %v1807_v13, 4  ;;  %1593 = vrot.lane.b32.xlu0 %v8046_v14, %s9015_s26  ;;  %v2224_v39 = vrot.slane %v14221_v20, 4  ;;  %710 = vst [vmem:[#allocation2 + $0x24] sm:$0x1] %v709_v60  ;;  %v706_v63 = vsel %vm9369_vm13, 0, %v705_v61  ;;  %v733_v2 = vsel %vm9369_vm13, 0, %v732_v0 }
  0x8c   : > { %v1754_v24 = vld [vmem:[#allocation2 + $0x14] sm:$0x1]  ;;  %v2215_v38 = vor.u32 %v2214_v23, %v2211_v6  ;;  %v1818_v44 = vrot.slane %v1817_v29, 4  ;;  %707 = vst [vmem:[#allocation2 + $0x18] sm:$0x1] %v706_v63  ;;  %v9556_v3 = vshll.u32 %v859_v26, 16 }
  0x8d   : > { %v3112_v28 = vrot.slane %v1754_v24, 5  ;;  %v1820_v30 = vshll.u32 %v1754_v24, 16  ;;  %v1771_v36 = vld [vmem:[#allocation2 + $0xe0] sm:$0x1]  ;;  %1558 = vrot.lane.b32.xlu1 %v8046_v14, %s9017_s12  ;;  %v1813_v43 = vsel %vm9481_vm3, %v1808_v21, %v1812_v12  ;;  %v2225_v50 = vor.u32 %v2224_v39, %v2220_v37  ;;  %734 = vst [vmem:[#allocation2 + $0x84] sm:$0x1] %v733_v2 }
  0x8e   : > { %v2228_v40 = vshll.u32 %v1771_v36, 16  ;;  %v2216_v48 = vrot.slane %v2215_v38, 4  ;;  %v730_v7 = vsel %vm9369_vm13, 0, %v729_v4  ;;  %v9573_v26 = vld [vmem:[%s14212_s2] ss:$0 sm:$0xff]  ;;  %vm7524_vm2 = vcmask 64512  }
  0x8f   : > { %v3113_v42 = vsel %vm9507_vm9, %v3111_v17, %v3112_v28  ;;  %v1822_v45 = vrot.slane %v1820_v30, 5  ;;  %v2226_v11 = vrot.slane %v2225_v50, 4  ;;  %731 = vst [vmem:[#allocation2 + $0x78] sm:$0x1] %v730_v7  ;;  %vm1052_vm1 = vcmask 1040384  }
  0x90   : > { %v9531_v47 = vcombine.low %v3110_v27, %v3113_v42  ;;  %v2230_v51 = vrot.slane %v2228_v40, 5  ;;  %v2221_v54 = vsel %vm9481_vm3, %v2216_v48, %v2220_v37  ;;  %vm1053_vm6 = vcmask 1044484  }
  0x91   : > { %v1823_v52 = vsel %vm9481_vm3, %v1818_v44, %v1822_v45  ;;  %vm9625_vm15 = vmor %vm1052_vm1, %vm1053_vm6  ;;  %vm2653_vm14 = vcmask 1045504   ;;  %vm1712_vm1 = vcmask 392192   ;;  %vm2620_vm6 = vcmask 490496  }
  0x92   : > { %14418 = vst [vmem:[#allocation11_spill] sm:$0xff] %v9531_v47  ;;  %3291 = vrot.lane.b32.xlu0 %v9531_v47, %s9016_s10  ;;  %v9537_v53 = vcombine.low %v1813_v43, %v1823_v52  ;;  %v2231_v55 = vsel %vm9481_vm3, %v2226_v11, %v2230_v51  ;;  %v869_v8 = vld [vmem:[#allocation2 + $0x24] sm:$0x1] }
  0x93   : > { %v8066_v57 = vcombine.low %v2221_v54, %v2231_v55  ;;  %v870_v41 = vsel %vm9560_vm7, %v9556_v3, %v869_v8  ;;  %v866_v9 = vld [vmem:[#allocation2 + $0x18] sm:$0x1] }
  0x94   : > { %14419 = vst [vmem:[#allocation12_spill] sm:$0xff] %v9537_v53  ;;  %871 = vst [vmem:[#allocation2 + $0x24] sm:$0x1] %v870_v41  ;;  %v867_v12 = vsel %vm9560_vm7, %v9556_v3, %v866_v9  ;;  %v893_v13 = vld [vmem:[#allocation2 + $0x84] sm:$0x1] }
  0x95   : > { %2407 = vrot.lane.b32.xlu1 %v8066_v57, %s9017_s12  ;;  %868 = vst [vmem:[#allocation2 + $0x18] sm:$0x1] %v867_v12  ;;  %v894_v15 = vsel %vm9560_vm7, %v9556_v3, %v893_v13 }
  0x96   : > { %2307 = vrot.lane.b32.xlu0 %v9537_v53, %s9016_s10  ;;  %895 = vst [vmem:[#allocation2 + $0x84] sm:$0x1] %v894_v15  ;;  %v890_v31 = vld [vmem:[#allocation2 + $0x78] sm:$0x1] }
  0x97   : > { %v891_v23 = vsel %vm9560_vm7, %v9556_v3, %v890_v31 }
  0x98   : > { %892 = vst [vmem:[#allocation2 + $0x78] sm:$0x1] %v891_v23 }
  0x9a   : > { %2440 = vrot.lane.b32.xlu0 %v8066_v57, %s9015_s26 }
  0xe2   : > { %v8529_v14 = vpop.f32.mrf.mxu0 }
  0xe3   : > { %v522_v16 = vadd.f32 %v8529_v14, %v9573_v26  ;;  %v8545_v17 = vpop.f32.mrf.mxu1 }
  0xe4   : > { %v586_v21 = vadd.f32 %v8545_v17, %v9573_v26  ;;  %v513_v6 = vpop.f32.mrf.mxu0 }
  0xe5   : > { %v642_v24 = vmax.f32 %v522_v16, 0.0  ;;  %v514_v27 = vadd.f32 %v9573_v26, %v513_v6  ;;  %v577_v28 = vpop.f32.mrf.mxu1 }
  0xe6   : > { %v658_v29 = vmax.f32 %v586_v21, 0.0  ;;  %v578_v30 = vadd.f32 %v9573_v26, %v577_v28  ;;  %v8530_v36 = vpop.f32.mrf.mxu0  ;;  %v762_v28 = vld [vmem:[#allocation2 + $0x20] sm:$0x2] }
  0xe7   : > { %v8360_v37 = vpack.c.bf16 %v642_v24, %v642_v24  ;;  %7527 = vst.msk [vmem:[%s9590_s20 + $0x10] sm:$0xff] %vm7524_vm2, %v642_v24  ;;  %v640_v38 = vmax.f32 %v514_v27, 0.0  ;;  %v525_v39 = vadd.f32 %v8530_v36, %v9573_v26  ;;  %v8546_v40 = vpop.f32.mrf.mxu1 }
  0xe8   : > { %v8376_v42 = vpack.c.bf16 %v658_v29, %v658_v29  ;;  %7543 = vst.msk [vmem:[%s9590_s20 + $0x90] sm:$0xff] %vm7524_vm2, %v658_v29  ;;  %v656_v43 = vmax.f32 %v578_v30, 0.0  ;;  %v589_v44 = vadd.f32 %v8546_v40, %v9573_v26  ;;  %v516_v45 = vpop.f32.mrf.mxu0  ;;  %v763_v40 = vsel %vm9429_vm8, 0, %v762_v28 }
  0xe9   : > { %v1060_v48 = vrot.slane %v8360_v37, 7  ;;  %v8358_v50 = vpack.c.bf16 %v640_v38, %v640_v38  ;;  %7525 = vst.msk [vmem:[%s9590_s20] sm:$0xff] %vm7524_vm2, %v640_v38  ;;  %v643_v51 = vmax.f32 %v525_v39, 0.0  ;;  %v517_v52 = vadd.f32 %v9573_v26, %v516_v45  ;;  %v580_v54 = vpop.f32.mrf.mxu1  ;;  %v714_v39 = vld [vmem:[#allocation2 + $0x3c] sm:$0x1] }
  0xea   : > { %7541 = vst.msk [vmem:[%s9590_s20 + $0x80] sm:$0xff] %vm7524_vm2, %v656_v43  ;;  %v659_v11 = vmax.f32 %v589_v44, 0.0  ;;  %v581_v55 = vadd.f32 %v9573_v26, %v580_v54  ;;  %v8374_v59 = vpack.c.bf16 %v656_v43, %v656_v43  ;;  %v1100_v2 = vrot.slane %v8376_v42, 7  ;;  %764 = vst [vmem:[#allocation2 + $0x20] sm:$0x2] %v763_v40 }
  0xeb   : > { %v9604_v57 = vrot.slane %v8358_v50, 7  ;;  %v8361_v60 = vpack.c.bf16 %v643_v51, %v643_v51  ;;  %7528 = vst.msk [vmem:[%s9590_s20 + $0x18] sm:$0xff] %vm7524_vm2, %v643_v51  ;;  %v641_v61 = vmax.f32 %v517_v52, 0.0  ;;  %1141 = vrot.lane.b32.xlu1 %v1060_v48, %s9018_s21  ;;  %v1061_v23 = vrot.slane %v1060_v48, 4  ;;  %v711_v48 = vld [vmem:[#allocation2 + $0x30] sm:$0x1] }
  0xec   : > { %7544 = vst.msk [vmem:[%s9590_s20 + $0x98] sm:$0xff] %vm7524_vm2, %v659_v11  ;;  %v657_v0 = vmax.f32 %v581_v55, 0.0  ;;  %v8377_v7 = vpack.c.bf16 %v659_v11, %v659_v11  ;;  %v1095_v12 = vrot.slane %v8374_v59, 7  ;;  %v1101_v29 = vrot.slane %v1100_v2, 4  ;;  %v738_v11 = vld [vmem:[#allocation2 + $0x9c] sm:$0x1] }
  0xed   : > { %v1062_v4 = vrot.slane %v8361_v60, 7  ;;  %7526 = vst.msk [vmem:[%s9590_s20 + $0x8] sm:$0xff] %vm7524_vm2, %v641_v61  ;;  %1135 = vrot.lane.b32.xlu0 %v9604_v57, %s9018_s21  ;;  %v8359_v36 = vpack.c.bf16 %v641_v61, %v641_v61  ;;  %v715_v43 = vsel %vm9369_vm13, 0, %v714_v39  ;;  %v712_v50 = vsel %vm9369_vm13, 0, %v711_v48 }
  0xee   : > { %7542 = vst.msk [vmem:[%s9590_s20 + $0x88] sm:$0xff] %vm7524_vm2, %v657_v0  ;;  %v1102_v16 = vrot.slane %v8377_v7, 7  ;;  %v8375_v24 = vpack.c.bf16 %v657_v0, %v657_v0  ;;  %v1096_v44 = vrot.slane %v1095_v12, 4  ;;  %716 = vst [vmem:[#allocation2 + $0x3c] sm:$0x1] %v715_v43  ;;  %v739_v59 = vsel %vm9369_vm13, 0, %v738_v11 }
  0xef   : > { %v8533_v63 = vpop.f32.mrf.mxu0  ;;  %1189 = vrot.lane.b32.xlu1 %v1100_v2, %s9018_s21  ;;  %v1064_v17 = vrot.slane %v1062_v4, 4  ;;  %v1063_v37 = vsel %vm9625_vm15, %v1061_v23, %v1062_v4  ;;  %v1057_v51 = vrot.slane %v8359_v36, 7  ;;  %713 = vst [vmem:[#allocation2 + $0x30] sm:$0x1] %v712_v50  ;;  %v1056_v60 = vrot.slane %v9604_v57, 4 }
  0xf0   : > { %v538_v8 = vadd.f32 %v8533_v63, %v9573_v26  ;;  %v1104_v42 = vrot.slane %v1102_v16, 4  ;;  %v1097_v45 = vrot.slane %v8375_v24, 7  ;;  %v1103_v52 = vsel %vm9625_vm15, %v1101_v29, %v1102_v16  ;;  %740 = vst [vmem:[#allocation2 + $0x9c] sm:$0x1] %v739_v59  ;;  %v735_v2 = vld [vmem:[#allocation2 + $0x90] sm:$0x1] }
  0xf1   : > { %v529_v41 = vpop.f32.mrf.mxu0  ;;  %1183 = vrot.lane.b32.xlu0 %v1095_v12, %s9018_s21  ;;  %v1058_v57 = vsel %vm9625_vm15, %v1056_v60, %v1057_v51  ;;  %v924_v12 = vld [vmem:[#allocation2 + $0x20] sm:$0x2] }
  0xf2   : > { %v530_v9 = vadd.f32 %v9573_v26, %v529_v41  ;;  %v9620_v13 = vmax.f32 %v538_v8, 0.0  ;;  %v1098_v63 = vsel %vm9625_vm15, %v1096_v44, %v1097_v45  ;;  %v736_v8 = vsel %vm9369_vm13, 0, %v735_v2 }
  0xf3   : > { %v8534_v14 = vpop.f32.mrf.mxu0  ;;  %1145 = vrot.lane.b32.xlu1 %v1064_v17, %s9018_s21  ;;  %v1059_v41 = vrot.slane %v1057_v51, 4  ;;  %737 = vst [vmem:[#allocation2 + $0x90] sm:$0x1] %v736_v8  ;;  %v1099_v23 = vrot.slane %v1097_v45, 4 }
  0xf4   : > { %v9622_v15 = vmax.f32 %v530_v9, 0.0  ;;  %7531 = vst.msk [vmem:[%s9590_s20 + $0x30] sm:$0xff] %vm7524_vm2, %v9620_v13  ;;  %v541_v21 = vadd.f32 %v8534_v14, %v9573_v26  ;;  %v8364_v61 = vpack.c.bf16 %v9620_v13, %v9620_v13 }
  0xf5   : > { %v532_v6 = vpop.f32.mrf.mxu0  ;;  %1143 = vrot.lane.b32.xlu0 %v1063_v37, %s9018_s21  ;;  %v875_v17 = vld [vmem:[#allocation2 + $0x3c] sm:$0x1] }
  0xf6   : > { %7529 = vst.msk [vmem:[%s9590_s20 + $0x20] sm:$0xff] %vm7524_vm2, %v9622_v15  ;;  %v533_v27 = vadd.f32 %v9573_v26, %v532_v6  ;;  %v9638_v30 = vmax.f32 %v541_v21, 0.0  ;;  %v8362_v13 = vpack.c.bf16 %v9622_v15, %v9622_v15  ;;  %v925_v21 = vsel %vm9443_vm10, %v9462_v34, %v924_v12  ;;  %v872_v39 = vld [vmem:[#allocation2 + $0x30] sm:$0x1] }
  0xf7   : > { %1193 = vrot.lane.b32.xlu1 %v1104_v42, %s9018_s21  ;;  %v1070_v6 = vrot.slane %v8364_v61, 7  ;;  %v876_v15 = vsel %vm9560_vm7, %v9556_v3, %v875_v17  ;;  %926 = vst [vmem:[#allocation2 + $0x20] sm:$0x2] %v925_v21  ;;  %v873_v43 = vsel %vm9560_vm7, %v9556_v3, %v872_v39  ;;  %v899_v48 = vld [vmem:[#allocation2 + $0x9c] sm:$0x1] }
  0xf8   : > { %v9642_v38 = vmax.f32 %v533_v27, 0.0  ;;  %7532 = vst.msk [vmem:[%s9590_s20 + $0x38] sm:$0xff] %vm7524_vm2, %v9638_v30  ;;  %v8365_v29 = vpack.c.bf16 %v9638_v30, %v9638_v30  ;;  %877 = vst [vmem:[#allocation2 + $0x3c] sm:$0x1] %v876_v15  ;;  %v9697_v44 = vrot.slane %v8362_v13, 7 }
  0xf9   : > { %1191 = vrot.lane.b32.xlu0 %v1103_v52, %s9018_s21  ;;  %874 = vst [vmem:[#allocation2 + $0x30] sm:$0x1] %v873_v43  ;;  %v1071_v8 = vrot.slane %v1070_v6, 4 }
  0xfa   : > { %7530 = vst.msk [vmem:[%s9590_s20 + $0x28] sm:$0xff] %vm7524_vm2, %v9642_v38  ;;  %v896_v61 = vld [vmem:[#allocation2 + $0x90] sm:$0x1]  ;;  %v8363_v17 = vpack.c.bf16 %v9642_v38, %v9642_v38 }
  0xfb   : > { %1185 = vrot.lane.b32.xlu1 %v1098_v63, %s9018_s21  ;;  %v897_v2 = vsel %vm9560_vm7, %v9556_v3, %v896_v61 }
  0xfc   : > { %898 = vst [vmem:[#allocation2 + $0x90] sm:$0x1] %v897_v2 }
  0xfd   : > { %1137 = vrot.lane.b32.xlu0 %v1058_v57, %s9018_s21 }
  0xff   : > { %v8549_v54 = vpop.f32.mrf.mxu1  ;;  %1139 = vrot.lane.b32.xlu1 %v1059_v41, %s9018_s21 }
 0x100   : > { %v602_v55 = vadd.f32 %v8549_v54, %v9573_v26  ;;  %v900_v54 = vsel %vm9560_vm7, %v9556_v3, %v899_v48 }
 0x101   : > { %v593_v0 = vpop.f32.mrf.mxu1  ;;  %1187 = vrot.lane.b32.xlu0 %v1099_v23, %s9018_s21  ;;  %901 = vst [vmem:[#allocation2 + $0x9c] sm:$0x1] %v900_v54 }
 0x102   : > { %v662_v4 = vmax.f32 %v602_v55, 0.0  ;;  %v594_v7 = vadd.f32 %v9573_v26, %v593_v0  ;;  %v1072_v55 = vrot.slane %v8365_v29, 7  ;;  %v1066_v29 = vrot.slane %v9697_v44, 4 }
 0x103   : > { %v8550_v9 = vpop.f32.mrf.mxu1  ;;  %1153 = vrot.lane.b32.xlu1 %v1070_v6, %s9018_s21 }
 0x104   : > { %7547 = vst.msk [vmem:[%s9590_s20 + $0xb0] sm:$0xff] %vm7524_vm2, %v662_v4  ;;  %v660_v14 = vmax.f32 %v594_v7, 0.0  ;;  %v605_v16 = vadd.f32 %v8550_v9, %v9573_v26  ;;  %v8380_v28 = vpack.c.bf16 %v662_v4, %v662_v4  ;;  %v1074_v9 = vrot.slane %v1072_v55, 4 }
 0x105   : > { %v596_v24 = vpop.f32.mrf.mxu1  ;;  %1147 = vrot.lane.b32.xlu0 %v9697_v44, %s9018_s21  ;;  %v1073_v21 = vsel %vm9625_vm15, %v1071_v8, %v1072_v55 }
 0x106   : > { %7545 = vst.msk [vmem:[%s9590_s20 + $0xa0] sm:$0xff] %vm7524_vm2, %v660_v14  ;;  %v663_v36 = vmax.f32 %v605_v16, 0.0  ;;  %v597_v37 = vadd.f32 %v9573_v26, %v596_v24  ;;  %v8378_v45 = vpack.c.bf16 %v660_v14, %v660_v14  ;;  %v1110_v11 = vrot.slane %v8380_v28, 7 }
 0x108   : > { %v8537_v27 = vpop.f32.mrf.mxu0  ;;  %7548 = vst.msk [vmem:[%s9590_s20 + $0xb8] sm:$0xff] %vm7524_vm2, %v663_v36  ;;  %v661_v30 = vmax.f32 %v597_v37, 0.0  ;;  %v8381_v59 = vpack.c.bf16 %v663_v36, %v663_v36  ;;  %v1105_v4 = vrot.slane %v8378_v45, 7  ;;  %1201 = vrot.lane.b32.xlu1 %v1110_v11, %s9018_s21  ;;  %v1111_v16 = vrot.slane %v1110_v11, 4 }
 0x109   : > { %v554_v40 = vadd.f32 %v8537_v27, %v9573_v26  ;;  %v1067_v36 = vrot.slane %v8363_v17, 7 }
 0x10a   : > { %v545_v42 = vpop.f32.mrf.mxu0  ;;  %7546 = vst.msk [vmem:[%s9590_s20 + $0xa8] sm:$0xff] %vm7524_vm2, %v661_v30  ;;  %v1112_v41 = vrot.slane %v8381_v59, 7  ;;  %1195 = vrot.lane.b32.xlu0 %v1105_v4, %s9018_s21  ;;  %v8379_v37 = vpack.c.bf16 %v661_v30, %v661_v30  ;;  %v1106_v30 = vrot.slane %v1105_v4, 4 }
 0x10b   : > { %v9702_v50 = vmax.f32 %v554_v40, 0.0  ;;  %v546_v51 = vadd.f32 %v9573_v26, %v545_v42  ;;  %v1069_v11 = vrot.slane %v1067_v36, 4 }
 0x10c   : > { %v8538_v52 = vpop.f32.mrf.mxu0  ;;  %1157 = vrot.lane.b32.xlu1 %v1074_v9, %s9018_s21  ;;  %v1114_v23 = vrot.slane %v1112_v41, 4  ;;  %v1113_v39 = vsel %vm9625_vm15, %v1111_v16, %v1112_v41  ;;  %v1107_v48 = vrot.slane %v8379_v37, 7 }
 0x10d   : > { %v557_v60 = vadd.f32 %v8538_v52, %v9573_v26  ;;  %7535 = vst.msk [vmem:[%s9590_s20 + $0x50] sm:$0xff] %vm7524_vm2, %v9702_v50  ;;  %v9715_v63 = vmax.f32 %v546_v51, 0.0  ;;  %v1068_v51 = vsel %vm9625_vm15, %v1066_v29, %v1067_v36  ;;  %v8368_v55 = vpack.c.bf16 %v9702_v50, %v9702_v50 }
 0x10e   : > { %v548_v0 = vpop.f32.mrf.mxu0  ;;  %1155 = vrot.lane.b32.xlu0 %v1073_v21, %s9018_s21  ;;  %v1108_v4 = vsel %vm9625_vm15, %v1106_v30, %v1107_v48  ;;  %v1109_v41 = vrot.slane %v1107_v48, 4 }
 0x10f   : > { %v9722_v7 = vmax.f32 %v557_v60, 0.0  ;;  %7533 = vst.msk [vmem:[%s9590_s20 + $0x40] sm:$0xff] %vm7524_vm2, %v9715_v63  ;;  %v549_v57 = vadd.f32 %v9573_v26, %v548_v0  ;;  %v8366_v0 = vpack.c.bf16 %v9715_v63, %v9715_v63  ;;  %v1080_v9 = vrot.slane %v8368_v55, 7 }
 0x110   : > { %1205 = vrot.lane.b32.xlu1 %v1114_v23, %s9018_s21 }
 0x111   : > { %7536 = vst.msk [vmem:[%s9590_s20 + $0x58] sm:$0xff] %vm7524_vm2, %v9722_v7  ;;  %v9732_v13 = vmax.f32 %v549_v57, 0.0  ;;  %v8369_v50 = vpack.c.bf16 %v9722_v7, %v9722_v7  ;;  %v1075_v16 = vrot.slane %v8366_v0, 7 }
 0x112   : > { %1203 = vrot.lane.b32.xlu0 %v1113_v39, %s9018_s21 }
 0x113   : > { %7534 = vst.msk [vmem:[%s9590_s20 + $0x48] sm:$0xff] %vm7524_vm2, %v9732_v13  ;;  %v1082_v23 = vrot.slane %v8369_v50, 7 }
 0x114   : > { %1149 = vrot.lane.b32.xlu1 %v1068_v51, %s9018_s21  ;;  %v8367_v51 = vpack.c.bf16 %v9732_v13, %v9732_v13 }
 0x116   : > { %v8553_v12 = vpop.f32.mrf.mxu1  ;;  %1151 = vrot.lane.b32.xlu0 %v1069_v11, %s9018_s21 }
 0x117   : > { %v618_v14 = vadd.f32 %v8553_v12, %v9573_v26 }
 0x118   : > { %v609_v6 = vpop.f32.mrf.mxu1  ;;  %1197 = vrot.lane.b32.xlu1 %v1108_v4, %s9018_s21 }
 0x119   : > { %v666_v24 = vmax.f32 %v618_v14, 0.0  ;;  %v610_v27 = vadd.f32 %v9573_v26, %v609_v6 }
 0x11a   : > { %v8554_v15 = vpop.f32.mrf.mxu1  ;;  %1199 = vrot.lane.b32.xlu0 %v1109_v41, %s9018_s21 }
 0x11b   : > { %7551 = vst.msk [vmem:[%s9590_s20 + $0xd0] sm:$0xff] %vm7524_vm2, %v666_v24  ;;  %v664_v38 = vmax.f32 %v610_v27, 0.0  ;;  %v621_v28 = vadd.f32 %v8554_v15, %v9573_v26  ;;  %v8384_v63 = vpack.c.bf16 %v666_v24, %v666_v24 }
 0x11c   : > { %v612_v40 = vpop.f32.mrf.mxu1  ;;  %1165 = vrot.lane.b32.xlu1 %v1080_v9, %s9018_s21 }
 0x11d   : > { %7549 = vst.msk [vmem:[%s9590_s20 + $0xc0] sm:$0xff] %vm7524_vm2, %v664_v38  ;;  %v667_v42 = vmax.f32 %v621_v28, 0.0  ;;  %v613_v43 = vadd.f32 %v9573_v26, %v612_v40  ;;  %v8382_v17 = vpack.c.bf16 %v664_v38, %v664_v38  ;;  %v1120_v27 = vrot.slane %v8384_v63, 7 }
 0x11e   : > { %1159 = vrot.lane.b32.xlu0 %v1075_v16, %s9018_s21  ;;  %v1081_v40 = vrot.slane %v1080_v9, 4 }
 0x11f   : > { %7552 = vst.msk [vmem:[%s9590_s20 + $0xd8] sm:$0xff] %vm7524_vm2, %v667_v42  ;;  %v9759_v44 = vmax.f32 %v613_v43, 0.0  ;;  %v8385_v15 = vpack.c.bf16 %v667_v42, %v667_v42  ;;  %v1115_v36 = vrot.slane %v8382_v17, 7  ;;  %v765_v17 = vld [vmem:[#allocation2 + $0x2c] sm:$0x2] }
 0x120   : > { %v8541_v45 = vpop.f32.mrf.mxu0  ;;  %1213 = vrot.lane.b32.xlu1 %v1120_v27, %s9018_s21  ;;  %v1083_v11 = vsel %vm9625_vm15, %v1081_v40, %v1082_v23 }
 0x121   : > { %v570_v52 = vadd.f32 %v8541_v45, %v9573_v26  ;;  %7550 = vst.msk [vmem:[%s9590_s20 + $0xc8] sm:$0xff] %vm7524_vm2, %v9759_v44  ;;  %v1122_v42 = vrot.slane %v8385_v15, 7  ;;  %v1084_v45 = vrot.slane %v1082_v23, 4  ;;  %v8383_v13 = vpack.c.bf16 %v9759_v44, %v9759_v44  ;;  %v720_v23 = vld [vmem:[#allocation2 + $0x54] sm:$0x1] }
 0x122   : > { %v561_v54 = vpop.f32.mrf.mxu0  ;;  %1207 = vrot.lane.b32.xlu0 %v1115_v36, %s9018_s21  ;;  %v1116_v0 = vrot.slane %v1115_v36, 4 }
 0x123   : > { %v562_v59 = vadd.f32 %v9573_v26, %v561_v54  ;;  %v9771_v60 = vmax.f32 %v570_v52, 0.0  ;;  %v1121_v54 = vrot.slane %v1120_v27, 4  ;;  %v1124_v55 = vrot.slane %v1122_v42, 4 }
 0x124   : > { %v8542_v61 = vpop.f32.mrf.mxu0  ;;  %1169 = vrot.lane.b32.xlu1 %v1084_v45, %s9018_s21  ;;  %v1117_v4 = vrot.slane %v8383_v13, 7 }
 0x125   : > { %v9776_v2 = vmax.f32 %v562_v59, 0.0  ;;  %7539 = vst.msk [vmem:[%s9590_s20 + $0x70] sm:$0xff] %vm7524_vm2, %v9771_v60  ;;  %v573_v8 = vadd.f32 %v8542_v61, %v9573_v26  ;;  %v1077_v59 = vrot.slane %v8367_v51, 7  ;;  %v1123_v61 = vsel %vm9625_vm15, %v1121_v54, %v1122_v42 }
 0x126   : > { %v564_v57 = vpop.f32.mrf.mxu0  ;;  %1167 = vrot.lane.b32.xlu0 %v1083_v11, %s9018_s21  ;;  %v1118_v44 = vsel %vm9625_vm15, %v1116_v0, %v1117_v4  ;;  %v1119_v9 = vrot.slane %v1117_v4, 4 }
 0x127   : > { %7537 = vst.msk [vmem:[%s9590_s20 + $0x60] sm:$0xff] %vm7524_vm2, %v9776_v2  ;;  %v565_v12 = vadd.f32 %v9573_v26, %v564_v57  ;;  %v9791_v7 = vmax.f32 %v573_v8, 0.0  ;;  %v1079_v8 = vrot.slane %v1077_v59, 4  ;;  %v8372_v57 = vpack.c.bf16 %v9771_v60, %v9771_v60 }
 0x128   : > { %1217 = vrot.lane.b32.xlu1 %v1124_v55, %s9018_s21  ;;  %v8370_v41 = vpack.c.bf16 %v9776_v2, %v9776_v2  ;;  %v766_v2 = vsel %vm9429_vm8, 0, %v765_v17 }
 0x129   : > { %v8557_v14 = vpop.f32.mrf.mxu1  ;;  %v9795_v6 = vmax.f32 %v565_v12, 0.0  ;;  %7540 = vst.msk [vmem:[%s9590_s20 + $0x78] sm:$0xff] %vm7524_vm2, %v9791_v7  ;;  %v8373_v63 = vpack.c.bf16 %v9791_v7, %v9791_v7  ;;  %v1090_v12 = vrot.slane %v8372_v57, 7  ;;  %v721_v7 = vsel %vm9369_vm13, 0, %v720_v23  ;;  %767 = vst [vmem:[#allocation2 + $0x2c] sm:$0x2] %v766_v2 }
 0x12a   : > { %v634_v21 = vadd.f32 %v8557_v14, %v9573_v26  ;;  %1215 = vrot.lane.b32.xlu0 %v1123_v61, %s9018_s21  ;;  %722 = vst [vmem:[#allocation2 + $0x54] sm:$0x1] %v721_v7  ;;  %v723_v23 = vld [vmem:[#allocation2 + $0x60] sm:$0x1]  ;;  %v750_v7 = vld [vmem:[#allocation2 + $0xcc] sm:$0x1] }
 0x12b   : > { %v625_v24 = vpop.f32.mrf.mxu1  ;;  %7538 = vst.msk [vmem:[%s9590_s20 + $0x68] sm:$0xff] %vm7524_vm2, %v9795_v6  ;;  %v8371_v36 = vpack.c.bf16 %v9795_v6, %v9795_v6  ;;  %v724_v31 = vsel %vm9369_vm13, 0, %v723_v23 }
 0x12c   : > { %v670_v28 = vmax.f32 %v634_v21, 0.0  ;;  %v626_v29 = vadd.f32 %v9573_v26, %v625_v24  ;;  %v1092_v21 = vrot.slane %v8373_v63, 7  ;;  %v717_v24 = vld [vmem:[#allocation2 + $0x48] sm:$0x1]  ;;  %v9889_v63 = vpop.permute.xlu0 %1454  ;;  %725 = vst [vmem:[#allocation2 + $0x60] sm:$0x1] %v724_v31 }
 0x12d   : > { %v8558_v38 = vpop.f32.mrf.mxu1  ;;  %v1087_v54 = vrot.slane %v8371_v36, 7 }
 0x12e   : > { %7555 = vst.msk [vmem:[%s9590_s20 + $0xf0] sm:$0xff] %vm7524_vm2, %v670_v28  ;;  %v668_v37 = vmax.f32 %v626_v29, 0.0  ;;  %v637_v39 = vadd.f32 %v8558_v38, %v9573_v26  ;;  %1163 = vrot.lane.b32.xlu0 %v1079_v8, %s9018_s21  ;;  %v8388_v14 = vpack.c.bf16 %v670_v28, %v670_v28  ;;  %v718_v28 = vsel %vm9369_vm13, 0, %v717_v24 }
 0x12f   : > { %v628_v43 = vpop.f32.mrf.mxu1  ;;  %719 = vst [vmem:[#allocation2 + $0x48] sm:$0x1] %v718_v28  ;;  %v1091_v38 = vrot.slane %v1090_v12, 4  ;;  %v747_v28 = vld [vmem:[#allocation2 + $0xc0] sm:$0x1] }
 0x130   : > { %7553 = vst.msk [vmem:[%s9590_s20 + $0xe0] sm:$0xff] %vm7524_vm2, %v668_v37  ;;  %v671_v30 = vmax.f32 %v637_v39, 0.0  ;;  %v629_v48 = vadd.f32 %v9573_v26, %v628_v43  ;;  %v1076_v26 = vrot.slane %v1075_v16, 4  ;;  %v1085_v16 = vrot.slane %v8370_v41, 7  ;;  %v741_v39 = vld [vmem:[#allocation2 + $0xa8] sm:$0x1]  ;;  %v9898_v17 = vpop.permute.xlu0 %1593 }
 0x131   : > { %v8386_v60 = vpack.c.bf16 %v668_v37, %v668_v37  ;;  %v1130_v27 = vrot.slane %v8388_v14, 7  ;;  %v744_v37 = vld [vmem:[#allocation2 + $0xb4] sm:$0x1]  ;;  %v1094_v43 = vrot.slane %v1092_v21, 4  ;;  %v742_v45 = vsel %vm9369_vm13, 0, %v741_v39  ;;  %14425 = vst [vmem:[#allocation14_spill] sm:$0xff] %v9898_v17 }
 0x132   : > { %7556 = vst.msk [vmem:[%s9590_s20 + $0xf8] sm:$0xff] %vm7524_vm2, %v671_v30  ;;  %v9818_v52 = vmax.f32 %v629_v48, 0.0  ;;  %v1078_v50 = vsel %vm9625_vm15, %v1076_v26, %v1077_v59  ;;  %1211 = vrot.lane.b32.xlu0 %v1119_v9, %s9018_s21  ;;  %v8389_v15 = vpack.c.bf16 %v671_v30, %v671_v30  ;;  %v745_v42 = vsel %vm9369_vm13, 0, %v744_v37  ;;  %743 = vst [vmem:[#allocation2 + $0xa8] sm:$0x1] %v742_v45 }
 0x133   : > { %1161 = vrot.lane.b32.xlu1 %v1078_v50, %s9018_s21  ;;  %v1125_v29 = vrot.slane %v8386_v60, 7  ;;  %746 = vst [vmem:[#allocation2 + $0xb4] sm:$0x1] %v745_v42  ;;  %v1086_v30 = vrot.slane %v1085_v16, 4  ;;  %v1131_v48 = vrot.slane %v1130_v27, 4  ;;  %v1093_v6 = vsel %vm9625_vm15, %v1091_v38, %v1092_v21 }
 0x134   : > { %7554 = vst.msk [vmem:[%s9590_s20 + $0xe8] sm:$0xff] %vm7524_vm2, %v9818_v52  ;;  %v1132_v40 = vrot.slane %v8389_v15, 7  ;;  %v927_v51 = vld [vmem:[#allocation2 + $0x2c] sm:$0x2]  ;;  %v881_v55 = vld [vmem:[#allocation2 + $0x54] sm:$0x1]  ;;  %v8387_v13 = vpack.c.bf16 %v9818_v52, %v9818_v52 }
 0x135   : > { %v928_v59 = vsel %vm9443_vm10, %v9462_v34, %v927_v51  ;;  %v882_v61 = vsel %vm9560_vm7, %v9556_v3, %v881_v55  ;;  %v1088_v52 = vsel %vm9625_vm15, %v1086_v30, %v1087_v54  ;;  %v1126_v57 = vrot.slane %v1125_v29, 4  ;;  %v726_v21 = vld [vmem:[#allocation2 + $0x6c] sm:$0x1]  ;;  %v786_v15 = vld [vmem:[#allocation2 + $0x80] sm:$0x2] }
 0x136   : > { %1171 = vrot.lane.b32.xlu0 %v1085_v16, %s9018_s21  ;;  %v1134_v11 = vrot.slane %v1132_v40, 4  ;;  %v878_v26 = vld [vmem:[#allocation2 + $0x48] sm:$0x1]  ;;  %929 = vst [vmem:[#allocation2 + $0x2c] sm:$0x2] %v928_v59  ;;  %v1133_v4 = vsel %vm9625_vm15, %v1131_v48, %v1132_v40  ;;  %v9895_v16 = vpop.permute.xlu1 %1595  ;;  %v727_v2 = vsel %vm9369_vm13, 0, %v726_v21 }
 0x137   : > { %1209 = vrot.lane.b32.xlu1 %v1118_v44, %s9018_s21  ;;  %v879_v0 = vsel %vm9560_vm7, %v9556_v3, %v878_v26  ;;  %883 = vst [vmem:[#allocation2 + $0x54] sm:$0x1] %v882_v61  ;;  %v1127_v44 = vrot.slane %v8387_v13, 7  ;;  %14424 = vst [vmem:[#allocation13_spill] sm:$0xff] %v9895_v16  ;;  %v751_v38 = vsel %vm9369_vm13, 0, %v750_v7  ;;  %v748_v36 = vsel %vm9369_vm13, 0, %v747_v28 }
 0x138   : > { %880 = vst [vmem:[#allocation2 + $0x48] sm:$0x1] %v879_v0  ;;  %728 = vst [vmem:[#allocation2 + $0x6c] sm:$0x1] %v727_v2  ;;  %v771_v26 = vld [vmem:[#allocation2 + $0x44] sm:$0x2] }
 0x139   : > { %v902_v8 = vld [vmem:[#allocation2 + $0xa8] sm:$0x1]  ;;  %v1128_v14 = vsel %vm9625_vm15, %v1126_v57, %v1127_v44  ;;  %v1129_v60 = vrot.slane %v1127_v44, 4  ;;  %752 = vst [vmem:[#allocation2 + $0xcc] sm:$0x1] %v751_v38  ;;  %v772_v59 = vsel %vm9429_vm8, 0, %v771_v26 }
 0x13a   : > { %1219 = vrot.lane.b32.xlu0 %v1125_v29, %s9018_s21  ;;  %v905_v50 = vld [vmem:[#allocation2 + $0xb4] sm:$0x1]  ;;  %v903_v9 = vsel %vm9560_vm7, %v9556_v3, %v902_v8  ;;  %v9902_v24 = vpop.permute.xlu1 %2442  ;;  %v787_v29 = vsel %vm9429_vm8, 0, %v786_v15  ;;  %749 = vst [vmem:[#allocation2 + $0xc0] sm:$0x1] %v748_v36  ;;  %vm1279_vm13 = vcmask 93185  }
 0x13b   : > { %1177 = vrot.lane.b32.xlu1 %v1090_v12, %s9018_s21  ;;  %v906_v41 = vsel %vm9560_vm7, %v9556_v3, %v905_v50  ;;  %v1089_v12 = vrot.slane %v1087_v54, 4  ;;  %904 = vst [vmem:[#allocation2 + $0xa8] sm:$0x1] %v903_v9  ;;  %14426 = vst [vmem:[#allocation15_spill] sm:$0xff] %v9902_v24  ;;  %v789_v61 = vld [vmem:[#allocation2 + $0x8c] sm:$0x2] }
 0x13c   : > { %907 = vst [vmem:[#allocation2 + $0xb4] sm:$0x1] %v906_v41  ;;  %788 = vst [vmem:[#allocation2 + $0x80] sm:$0x2] %v787_v29  ;;  %v790_v0 = vsel %vm9429_vm8, 0, %v789_v61  ;;  %vm1679_vm2 = vcmask 293888  }
 0x13d   : > { %773 = vst [vmem:[#allocation2 + $0x44] sm:$0x2] %v772_v59  ;;  %791 = vst [vmem:[#allocation2 + $0x8c] sm:$0x2] %v790_v0  ;;  %vm4968_vm15 = vcmask 1045508  }
 0x13e   : > { %1179 = vrot.lane.b32.xlu0 %v1093_v6, %s9018_s21  ;;  %v9916_v37 = vpop.permute.xlu1 %1558 }
 0x13f   : > { %1225 = vrot.lane.b32.xlu1 %v1130_v27, %s9018_s21  ;;  %v9908_v27 = vpop.permute.xlu0 %3291  ;;  %14428 = vst [vmem:[#allocation17_spill] sm:$0xff] %v9916_v37  ;;  %v887_v40 = vld [vmem:[#allocation2 + $0x6c] sm:$0x1] }
 0x140   : > { %14427 = vst [vmem:[#allocation16_spill] sm:$0xff] %v9908_v27  ;;  %v888_v42 = vsel %vm9560_vm7, %v9556_v3, %v887_v40  ;;  %v911_v48 = vld [vmem:[#allocation2 + $0xcc] sm:$0x1] }
 0x141   : > { %889 = vst [vmem:[#allocation2 + $0x6c] sm:$0x1] %v888_v42  ;;  %v908_v6 = vld [vmem:[#allocation2 + $0xc0] sm:$0x1]  ;;  %v912_v54 = vsel %vm9560_vm7, %v9556_v3, %v911_v48 }
 0x142   : > { %1227 = vrot.lane.b32.xlu0 %v1133_v4, %s9018_s21  ;;  %v9926_v30 = vpop.permute.xlu1 %2407  ;;  %913 = vst [vmem:[#allocation2 + $0xcc] sm:$0x1] %v912_v54  ;;  %v768_v4 = vld [vmem:[#allocation2 + $0x38] sm:$0x2] }
 0x143   : > { %1181 = vrot.lane.b32.xlu1 %v1094_v43, %s9018_s21  ;;  %v9918_v39 = vpop.permute.xlu0 %2307  ;;  %v884_v43 = vld [vmem:[#allocation2 + $0x60] sm:$0x1]  ;;  %v948_v35 = vld [vmem:[#allocation2 + $0x80] sm:$0x2]  ;;  %14430 = vst [vmem:[#allocation19_spill] sm:$0xff] %v9926_v30 }
 0x144   : > { %14429 = vst [vmem:[#allocation18_spill] sm:$0xff] %v9918_v39  ;;  %v885_v45 = vsel %vm9560_vm7, %v9556_v3, %v884_v43  ;;  %v949_v51 = vsel %vm9443_vm10, %v9462_v34, %v948_v35  ;;  %v933_v50 = vld [vmem:[#allocation2 + $0x44] sm:$0x2]  ;;  %v951_v41 = vld [vmem:[#allocation2 + $0x8c] sm:$0x2] }
 0x145   : > { %886 = vst [vmem:[#allocation2 + $0x60] sm:$0x1] %v885_v45  ;;  %950 = vst [vmem:[#allocation2 + $0x80] sm:$0x2] %v949_v51  ;;  %v934_v57 = vsel %vm9443_vm10, %v9462_v34, %v933_v50 }
 0x146   : > { %1175 = vrot.lane.b32.xlu0 %v1089_v12, %s9018_s21  ;;  %935 = vst [vmem:[#allocation2 + $0x44] sm:$0x2] %v934_v57  ;;  %v952_v12 = vsel %vm9443_vm10, %v9462_v34, %v951_v41 }
 0x147   : > { %1229 = vrot.lane.b32.xlu1 %v1134_v11, %s9018_s21  ;;  %v909_v11 = vsel %vm9560_vm7, %v9556_v3, %v908_v6  ;;  %v9937_v55 = vpop.permute.xlu0 %2440  ;;  %953 = vst [vmem:[#allocation2 + $0x8c] sm:$0x2] %v952_v12 }
 0x148   : > { %14431 = vst [vmem:[#allocation20_spill] sm:$0xff] %v9937_v55  ;;  %910 = vst [vmem:[#allocation2 + $0xc0] sm:$0x1] %v909_v11 }
 0x14a   : > { %1223 = vrot.lane.b32.xlu0 %v1129_v60, %s9018_s21 }
 0x14b   : > { %1173 = vrot.lane.b32.xlu1 %v1088_v52, %s9018_s21  ;;  %v769_v52 = vsel %vm9429_vm8, 0, %v768_v4 }
 0x14c   : > { %770 = vst [vmem:[#allocation2 + $0x38] sm:$0x2] %v769_v52 }
 0x14f   : > { %1221 = vrot.lane.b32.xlu1 %v1128_v14, %s9018_s21  ;;  %s14161_s21 = scalar_lea.hbm %s14218_s8, %s8390_s25 }
 0x15d   : > { %v1142_v13 = vpop.permute.xlu1 %1141 }
 0x15e   : > { %1284 = vst.msk [vmem:[#allocation2 + $0x24] sm:$0xe] %vm1279_vm13, %v1142_v13 }
 0x15f   : > { %v1136_v5 = vpop.permute.xlu0 %1135 }
 0x160   : > { %1280 = vst.msk [vmem:[#allocation2 + $0x18] sm:$0xe] %vm1279_vm13, %v1136_v5 }
 0x161   : > { %v1190_v3 = vpop.permute.xlu1 %1189 }
 0x162   : > { %1308 = vst.msk [vmem:[#allocation2 + $0x84] sm:$0xe] %vm1279_vm13, %v1190_v3 }
 0x163   : > { %v1184_v8 = vpop.permute.xlu0 %1183 }
 0x164   : > { %1305 = vst.msk [vmem:[#allocation2 + $0x78] sm:$0xe] %vm1279_vm13, %v1184_v8 }
 0x165   : > { %v1146_v44 = vpop.permute.xlu1 %1145  ;;  %v9960_v2 = vld [vmem:[#allocation2 + $0x24] sm:$0xf] }
 0x166   : > { %1286 = vst.msk [vmem:[#allocation2 + $0x2c] sm:$0x1] %vm699_vm11, %v1146_v44 }
 0x167   : > { %v1144_v9 = vpop.permute.xlu0 %1143  ;;  %v9996_v48 = vld [vmem:[#allocation2 + $0x18] sm:$0xf] }
 0x168   : > { %1285 = vst.msk [vmem:[#allocation2 + $0x28] sm:$0xf] %vm689_vm12, %v1144_v9  ;;  %v10020_v5 = vld [vmem:[#allocation2 + $0x18] sm:$0xe] }
 0x169   : > { %v1194_v14 = vpop.permute.xlu1 %1193  ;;  %v9974_v29 = vld [vmem:[#allocation2 + $0x84] sm:$0xf]  ;;  %v8118_v44 = vrot.slane %v10020_v5, 9 }
 0x16a   : > { %1310 = vst.msk [vmem:[#allocation2 + $0x8c] sm:$0x1] %vm699_vm11, %v1194_v14  ;;  %v3040_v14 = vld [vmem:[#allocation2 + $0x24] sm:$0xe]  ;;  %v2044_v20 = vshll.u32 %v9974_v29, 16 }
 0x16b   : > { %v1192_v60 = vpop.permute.xlu0 %1191  ;;  %v10013_v13 = vld [vmem:[#allocation2 + $0x78] sm:$0xf] }
 0x16c   : > { %1309 = vst.msk [vmem:[#allocation2 + $0x88] sm:$0xf] %vm689_vm12, %v1192_v60 }
 0x16d   : > { %v1186_v21 = vpop.permute.xlu1 %1185  ;;  %v10034_v41 = vld [vmem:[#allocation2 + $0x2c] sm:$0x1] }
 0x16e   : > { %1306 = vst.msk [vmem:[#allocation2 + $0x7c] sm:$0xf] %vm689_vm12, %v1186_v21 }
 0x16f   : > { %v1138_v23 = vpop.permute.xlu0 %1137  ;;  %v9962_v31 = vld [vmem:[#allocation2 + $0x28] sm:$0xf] }
 0x170   : > { %14432 = vst [vmem:[#allocation21_spill] sm:$0xff] %v9962_v31  ;;  %1281 = vst.msk [vmem:[#allocation2 + $0x1c] sm:$0xf] %vm689_vm12, %v1138_v23  ;;  %v9967_v15 = vcombine.low %v9960_v2, %v9962_v31  ;;  %v3123_v52 = vrot.slane %v9962_v31, 5 }
 0x171   : > { %v1140_v7 = vpop.permute.xlu1 %1139 }
 0x172   : > { %14433 = vst [vmem:[#allocation22_spill] sm:$0xff] %v9967_v15  ;;  %1283 = vst.msk [vmem:[#allocation2 + $0x20] sm:$0x1] %vm699_vm11, %v1140_v7  ;;  %1493 = vrot.lane.b32.xlu1 %v9967_v15, %s9019_s22  ;;  %1458 = vrot.lane.b32.xlu0 %v9967_v15, %s9016_s10  ;;  %v3125_v60 = vrot.slane %v3123_v52, 4  ;;  %v3047_v7 = vld [vmem:[#allocation2 + $0x78] sm:$0xe] }
 0x173   : > { %v1188_v28 = vpop.permute.xlu0 %1187  ;;  %v9976_v38 = vld [vmem:[#allocation2 + $0x88] sm:$0xf] }
 0x174   : > { %14434 = vst [vmem:[#allocation23_spill] sm:$0xff] %v9976_v38  ;;  %1307 = vst.msk [vmem:[#allocation2 + $0x80] sm:$0x1] %vm699_vm11, %v1188_v28  ;;  %v9981_v36 = vcombine.low %v9974_v29, %v9976_v38  ;;  %v3179_v23 = vrot.slane %v9976_v38, 5 }
 0x175   : > { %v1154_v40 = vpop.permute.xlu1 %1153  ;;  %v10003_v54 = vld [vmem:[#allocation2 + $0x7c] sm:$0xf] }
 0x176   : > { %14435 = vst [vmem:[#allocation24_spill] sm:$0xff] %v9981_v36  ;;  %1290 = vst.msk [vmem:[#allocation2 + $0x3c] sm:$0xe] %vm1279_vm13, %v1154_v40  ;;  %1509 = vrot.lane.b32.xlu1 %v9981_v36, %s9019_s22  ;;  %1474 = vrot.lane.b32.xlu0 %v9981_v36, %s9016_s10  ;;  %v10018_v61 = vcombine.low %v10013_v13, %v10003_v54  ;;  %v3172_v57 = vrot.slane %v10003_v54, 5 }
 0x177   : > { %v1148_v43 = vpop.permute.xlu0 %1147  ;;  %v9989_v45 = vld [vmem:[#allocation2 + $0x1c] sm:$0xf]  ;;  %14436 = vst [vmem:[#allocation25_spill] sm:$0xff] %v10003_v54 }
 0x178   : > { %1287 = vst.msk [vmem:[#allocation2 + $0x30] sm:$0xe] %vm1279_vm13, %v1148_v43  ;;  %v10001_v6 = vcombine.low %v9996_v48, %v9989_v45  ;;  %v3116_v11 = vrot.slane %v9989_v45, 5  ;;  %14437 = vst [vmem:[#allocation26_spill] sm:$0xff] %v10018_v61  ;;  %v3126_v43 = vrot.slane %v10034_v41, 5  ;;  %v14456_v37 = vshrl.u32 %v9989_v45, 16 }
 0x179   : > { %v10011_v26 = vld [vmem:[#allocation2 + $0x20] sm:$0x1] }
 0x17a   : > { %v1202_v42 = vpop.permute.xlu1 %1201  ;;  %1579 = vrot.lane.b32.xlu1 %v9981_v36, %s9015_s26  ;;  %1528 = vrot.lane.b32.xlu0 %v9967_v15, %s9017_s12  ;;  %v3118_v3 = vrot.slane %v3116_v11, 4  ;;  %v3119_v4 = vrot.slane %v10011_v26, 5  ;;  %v3117_v40 = vsel %vm9507_vm9, %v8118_v44, %v3116_v11  ;;  %v3048_v11 = vld [vmem:[#allocation2 + $0x84] sm:$0xe]  ;;  %v3834_v16 = vld [vmem:[#allocation2 + $0x20] sm:$0x3] }
 0x17b   : > { %1314 = vst.msk [vmem:[#allocation2 + $0x9c] sm:$0xe] %vm1279_vm13, %v1202_v42  ;;  %v10029_v50 = vld [vmem:[#allocation2 + $0x80] sm:$0x1]  ;;  %v3174_v42 = vrot.slane %v3172_v57, 4 }
 0x17c   : > { %v1196_v35 = vpop.permute.xlu0 %1195  ;;  %v3120_v12 = vsel %vm9507_vm9, %v3118_v3, %v3119_v4  ;;  %v3175_v21 = vrot.slane %v10029_v50, 5  ;;  %v3127_v3 = vsel %vm9507_vm9, %v3125_v60, %v3126_v43  ;;  %v8126_v4 = vrot.slane %v3047_v7, 9 }
 0x17d   : > { %1311 = vst.msk [vmem:[#allocation2 + $0x90] sm:$0xe] %vm1279_vm13, %v1196_v35  ;;  %v10049_v35 = vcombine.low %v3117_v40, %v3120_v12  ;;  %v2036_v55 = vshll.u32 %v10029_v50, 16 }
 0x17e   : > { %v1158_v51 = vpop.permute.xlu1 %1157  ;;  %1544 = vrot.lane.b32.xlu0 %v9981_v36, %s9017_s12  ;;  %1456 = vrot.lane.b32.xlu1 %v10001_v6, %s9016_s10 }
 0x17f   : > { %1292 = vst.msk [vmem:[#allocation2 + $0x44] sm:$0x1] %vm699_vm11, %v1158_v51  ;;  %14438 = vst [vmem:[#allocation27_spill] sm:$0xff] %v10049_v35  ;;  %v8119_v51 = vrot.slane %v3040_v14, 9  ;;  %v3173_v14 = vsel %vm9507_vm9, %v8126_v4, %v3172_v57  ;;  %v1849_v4 = vshrl.u32 %v9960_v2, 16  ;;  %v2038_v50 = vrot.slane %v2036_v55, 5 }
 0x180   : > { %v1156_v59 = vpop.permute.xlu0 %1155 }
 0x181   : > { %1291 = vst.msk [vmem:[#allocation2 + $0x40] sm:$0xf] %vm689_vm12, %v1156_v59  ;;  %v10051_v59 = vld [vmem:[#allocation2 + $0x8c] sm:$0x1]  ;;  %v3124_v12 = vsel %vm9507_vm9, %v8119_v51, %v3123_v52  ;;  %v14224_v52 = vshll.u32 %v9962_v31, 16  ;;  %v14226_v51 = vshrl.u32 %v9962_v31, 16 }
 0x182   : > { %v1206_v0 = vpop.permute.xlu1 %1205  ;;  %1491 = vrot.lane.b32.xlu0 %v10001_v6, %s9019_s22  ;;  %1472 = vrot.lane.b32.xlu1 %v10018_v61, %s9016_s10  ;;  %v3182_v60 = vrot.slane %v10051_v59, 5 }
 0x183   : > { %1316 = vst.msk [vmem:[#allocation2 + $0xa4] sm:$0x1] %vm699_vm11, %v1206_v0 }
 0x184   : > { %v1204_v8 = vpop.permute.xlu0 %1203 }
 0x185   : > { %1315 = vst.msk [vmem:[#allocation2 + $0xa0] sm:$0xf] %vm689_vm12, %v1204_v8  ;;  %v3176_v8 = vsel %vm9507_vm9, %v3174_v42, %v3175_v21  ;;  %v10068_v21 = vcombine.low %v3124_v12, %v3127_v3  ;;  %v1864_v12 = vrot.slane %v14226_v51, 4 }
 0x186   : > { %v1150_v9 = vpop.permute.xlu1 %1149  ;;  %1507 = vrot.lane.b32.xlu0 %v10018_v61, %s9019_s22  ;;  %1542 = vrot.lane.b32.xlu1 %v10018_v61, %s9017_s12  ;;  %v10070_v7 = vcombine.low %v3173_v14, %v3176_v8  ;;  %v1852_v8 = vshll.u32 %v9960_v2, 16  ;;  %v14227_v2 = vshrl.u32 %v9976_v38, 16  ;;  %v3837_v10 = vld [vmem:[#allocation2 + $0x44] sm:$0x3] }
 0x187   : > { %1288 = vst.msk [vmem:[#allocation2 + $0x34] sm:$0xf] %vm689_vm12, %v1150_v9  ;;  %v3181_v9 = vrot.slane %v3179_v23, 4  ;;  %14439 = vst [vmem:[#allocation28_spill] sm:$0xff] %v10068_v21 }
 0x188   : > { %v1152_v28 = vpop.permute.xlu0 %1151  ;;  %14440 = vst [vmem:[#allocation29_spill] sm:$0xff] %v10070_v7  ;;  %v10074_v43 = vld [vmem:[#allocation2 + $0x40] sm:$0xf] }
 0x189   : > { %1289 = vst.msk [vmem:[#allocation2 + $0x38] sm:$0x1] %vm699_vm11, %v1152_v28  ;;  %v8127_v28 = vrot.slane %v3048_v11, 9  ;;  %v3183_v40 = vsel %vm9507_vm9, %v3181_v9, %v3182_v60  ;;  %14441 = vst [vmem:[#allocation30_spill] sm:$0xff] %v10074_v43  ;;  %v14225_v60 = vshll.u32 %v9976_v38, 16 }
 0x18a   : > { %v1198_v0 = vpop.permute.xlu1 %1197  ;;  %1577 = vrot.lane.b32.xlu0 %v10018_v61, %s9015_s26  ;;  %3293 = vrot.lane.b32.xlu1 %v10049_v35, %s9016_s10 }
 0x18b   : > { %1312 = vst.msk [vmem:[#allocation2 + $0x94] sm:$0xf] %vm689_vm12, %v1198_v0  ;;  %v3180_v57 = vsel %vm9507_vm9, %v8127_v28, %v3179_v23  ;;  %v10085_v0 = vld [vmem:[#allocation2 + $0x3c] sm:$0xf]  ;;  %v1860_v23 = vrot.slane %v14224_v52, 5  ;;  %v2052_v32 = vrot.slane %v14225_v60, 5 }
 0x18c   : > { %v1200_v44 = vpop.permute.xlu0 %1199  ;;  %v10089_v9 = vcombine.low %v3180_v57, %v3183_v40  ;;  %v10093_v11 = vcombine.low %v10085_v0, %v10074_v43  ;;  %v10109_v28 = vld [vmem:[#allocation2 + $0x9c] sm:$0xf]  ;;  %v1854_v57 = vrot.slane %v1852_v8, 5 }
 0x18d   : > { %1313 = vst.msk [vmem:[#allocation2 + $0x98] sm:$0x1] %vm699_vm11, %v1200_v44  ;;  %v10096_v44 = vld [vmem:[#allocation2 + $0xa0] sm:$0xf]  ;;  %v1865_v19 = vor.u32 %v1864_v12, %v1860_v23 }
 0x18e   : > { %v1166_v42 = vpop.permute.xlu1 %1165  ;;  %3295 = vrot.lane.b32.xlu0 %v10068_v21, %s9016_s10  ;;  %3309 = vrot.lane.b32.xlu1 %v10070_v7, %s9016_s10  ;;  %14442 = vst [vmem:[#allocation31_spill] sm:$0xff] %v10089_v9  ;;  %14443 = vst [vmem:[#allocation32_spill] sm:$0xff] %v10093_v11  ;;  %v10114_v33 = vcombine.low %v10109_v28, %v10096_v44 }
 0x18f   : > { %1296 = vst.msk [vmem:[#allocation2 + $0x54] sm:$0xe] %vm1279_vm13, %v1166_v42  ;;  %14444 = vst [vmem:[#allocation33_spill] sm:$0xff] %v10096_v44  ;;  %v1851_v42 = vrot.slane %v1849_v4, 4  ;;  %v1868_v4 = vshll.u32 %v10034_v41, 16  ;;  %v1866_v60 = vrot.slane %v1865_v19, 4 }
 0x190   : > { %v1160_v3 = vpop.permute.xlu0 %1159  ;;  %14445 = vst [vmem:[#allocation34_spill] sm:$0xff] %v10114_v33  ;;  %v2060_v41 = vshll.u32 %v10051_v59, 16 }
 0x191   : > { %1293 = vst.msk [vmem:[#allocation2 + $0x48] sm:$0xe] %vm1279_vm13, %v1160_v3  ;;  %v2041_v3 = vshrl.u32 %v9974_v29, 16  ;;  %v1855_v29 = vor.u32 %v1854_v57, %v1851_v42 }
 0x192   : > { %v1214_v14 = vpop.permute.xlu1 %1213  ;;  %3311 = vrot.lane.b32.xlu0 %v10089_v9, %s9016_s10  ;;  %1497 = vrot.lane.b32.xlu1 %v10093_v11, %s9019_s22 }
 0x193   : > { %1320 = vst.msk [vmem:[#allocation2 + $0xb4] sm:$0xe] %vm1279_vm13, %v1214_v14  ;;  %v2056_v14 = vrot.slane %v14227_v2, 4  ;;  %v2043_v12 = vrot.slane %v2041_v3, 4  ;;  %v1856_v42 = vrot.slane %v1855_v29, 4 }
 0x194   : > { %v1208_v40 = vpop.permute.xlu0 %1207 }
 0x195   : > { %1317 = vst.msk [vmem:[#allocation2 + $0xa8] sm:$0xe] %vm1279_vm13, %v1208_v40  ;;  %v2046_v40 = vrot.slane %v2044_v20, 5  ;;  %v2057_v51 = vor.u32 %v2056_v14, %v2052_v32  ;;  %v1861_v59 = vsel %vm9481_vm3, %v1856_v42, %v1860_v23  ;;  %v8887_v23 = vld [vmem:[%s14214_s4 + $0x18] sm:$0x3f]  }
 0x196   : > { %v1170_v52 = vpop.permute.xlu1 %1169  ;;  %1462 = vrot.lane.b32.xlu0 %v10093_v11, %s9016_s10  ;;  %1513 = vrot.lane.b32.xlu1 %v10114_v33, %s9019_s22  ;;  %v10174_v42 = vld [vmem:[#allocation2 + $0x34] sm:$0xf] }
 0x197   : > { %1298 = vst.msk [vmem:[#allocation2 + $0x5c] sm:$0x1] %vm699_vm11, %v1170_v52  ;;  %v1870_v52 = vrot.slane %v1868_v4, 5  ;;  %v2047_v20 = vor.u32 %v2046_v40, %v2043_v12  ;;  %v2058_v57 = vrot.slane %v2057_v51, 4  ;;  %8798 = vmatprep.subr.msk.bf16.mxu0 %vm2653_vm14, %v8887_v23  ;;  %v2874_v40 = vsel %vm2653_vm14, %v8887_v23, 0 }
 0x198   : > { %v1168_v8 = vpop.permute.xlu0 %1167  ;;  %8600 = vmatpush3.bf16.msra.mxu0 %v2874_v40  ;;  %v10195_v23 = vld [vmem:[#allocation2 + $0x94] sm:$0xf]  ;;  %v3130_v55 = vrot.slane %v10174_v42, 5  ;;  %v14466_v36 = vshll.u32 %v10174_v42, 16 }
 0x199   : > { %1297 = vst.msk [vmem:[#allocation2 + $0x58] sm:$0xf] %vm689_vm12, %v1168_v8  ;;  %v1871_v19 = vsel %vm9481_vm3, %v1866_v60, %v1870_v52  ;;  %v2048_v60 = vrot.slane %v2047_v20, 4  ;;  %v14231_v20 = vshll.u32 %v9989_v45, 16  ;;  %14449 = vst [vmem:[#allocation38_spill] sm:$0xff] %v10195_v23 }
 0x19a   : > { %v1218_v2 = vpop.permute.xlu1 %1217  ;;  %1567 = vrot.lane.b32.xlu1 %v10093_v11, %s9015_s26  ;;  %1478 = vrot.lane.b32.xlu0 %v10114_v33, %s9016_s10  ;;  %v10145_v14 = vcombine.low %v1861_v59, %v1871_v19  ;;  %v930_v59 = vld [vmem:[#allocation2 + $0x38] sm:$0x2]  ;;  %v3957_v61 = vrot.slane %v14466_v36, 6 }
 0x19b   : > { %1322 = vst.msk [vmem:[#allocation2 + $0xbc] sm:$0x1] %vm699_vm11, %v1218_v2  ;;  %v2062_v2 = vrot.slane %v2060_v41, 5  ;;  %v2053_v8 = vsel %vm9481_vm3, %v2048_v60, %v2052_v32  ;;  %v8888_v32 = vld [vmem:[%s14214_s4 + $0x10] sm:$0xff]   ;;  %v1825_v60 = vshrl.u32 %v9996_v48, 16 }
 0x19c   : > { %v1216_v1 = vpop.permute.xlu0 %1215  ;;  %14446 = vst [vmem:[#allocation35_spill] sm:$0xff] %v10145_v14  ;;  %8601 = vmatprep.subr.bf16.mxu0 %v8888_v32 }
 0x19d   : > { %1321 = vst.msk [vmem:[#allocation2 + $0xb8] sm:$0xf] %vm689_vm12, %v1216_v1  ;;  %v2063_v51 = vsel %vm9481_vm3, %v2058_v57, %v2062_v2  ;;  %v14230_v57 = vshrl.u32 %v9989_v45, 16  ;;  %8602 = vmatpush3.bf16.msra.mxu0 %v8888_v32  ;;  %v10186_v2 = vld [vmem:[#allocation2 + $0x30] sm:$0xf] }
 0x19e   : > { %1583 = vrot.lane.b32.xlu1 %v10114_v33, %s9015_s26  ;;  %1532 = vrot.lane.b32.xlu0 %v10093_v11, %s9017_s12  ;;  %v10160_v12 = vcombine.low %v2053_v8, %v2063_v51  ;;  %v1828_v51 = vshll.u32 %v9996_v48, 16  ;;  %v1836_v8 = vrot.slane %v14231_v20, 5  ;;  %v931_v48 = vsel %vm9443_vm10, %v9462_v34, %v930_v59  ;;  %v10212_v32 = vld [vmem:[#allocation2 + $0x90] sm:$0xf] }
 0x19f   : > { %932 = vst [vmem:[#allocation2 + $0x38] sm:$0x2] %v931_v48  ;;  %v1827_v59 = vrot.slane %v1825_v60, 4  ;;  %v10218_v56 = vcombine.low %v10212_v32, %v10195_v23  ;;  %v2020_v48 = vshll.u32 %v10013_v13, 16  ;;  %v1844_v60 = vshll.u32 %v10011_v26, 16 }
 0x1a0   : > { %v1164_v1 = vpop.permute.xlu0 %1163  ;;  %14447 = vst [vmem:[#allocation36_spill] sm:$0xff] %v10160_v12  ;;  %v2065_v53 = vshrl.u32 %v10212_v32, 16 }
 0x1a1   : > { %1295 = vst.msk [vmem:[#allocation2 + $0x50] sm:$0x1] %vm699_vm11, %v1164_v1  ;;  %14450 = vst [vmem:[#allocation39_spill] sm:$0xff] %v10218_v56  ;;  %v2022_v24 = vrot.slane %v2020_v48, 5  ;;  %v1846_v26 = vrot.slane %v1844_v60, 5 }
 0x1a2   : > { %2344 = vrot.lane.b32.xlu1 %v10145_v14, %s9019_s22  ;;  %1548 = vrot.lane.b32.xlu0 %v10114_v33, %s9017_s12  ;;  %v14465_v33 = vshrl.u32 %v10174_v42, 16  ;;  %v2067_v15 = vrot.slane %v2065_v53, 4 }
 0x1a4   : > { %v1212_v29 = vpop.permute.xlu0 %1211 }
 0x1a5   : > { %v1162_v3 = vpop.permute.xlu1 %1161  ;;  %1319 = vst.msk [vmem:[#allocation2 + $0xb0] sm:$0x1] %vm699_vm11, %v1212_v29  ;;  %v1840_v29 = vrot.slane %v14230_v57, 4 }
 0x1a6   : > { %1294 = vst.msk [vmem:[#allocation2 + $0x4c] sm:$0xf] %vm689_vm12, %v1162_v3  ;;  %2360 = vrot.lane.b32.xlu1 %v10160_v12, %s9019_s22  ;;  %2311 = vrot.lane.b32.xlu0 %v10145_v14, %s9016_s10  ;;  %v8889_v3 = vld [vmem:[%s14214_s4 + $0x8] sm:$0xff]  }
 0x1a7   : > { %8603 = vmatprep.subr.bf16.mxu0 %v8889_v3  ;;  %v1841_v57 = vor.u32 %v1840_v29, %v1836_v8 }
 0x1a8   : > { %v1172_v41 = vpop.permute.xlu0 %1171  ;;  %8604 = vmatpush3.bf16.msra.mxu0 %v8889_v3 }
 0x1a9   : > { %v1210_v4 = vpop.permute.xlu1 %1209  ;;  %1299 = vst.msk [vmem:[#allocation2 + $0x60] sm:$0xe] %vm1279_vm13, %v1172_v41  ;;  %v14233_v41 = vshll.u32 %v10003_v54, 16  ;;  %v1842_v30 = vrot.slane %v1841_v57, 4 }
 0x1aa   : > { %1318 = vst.msk [vmem:[#allocation2 + $0xac] sm:$0xf] %vm689_vm12, %v1210_v4  ;;  %2426 = vrot.lane.b32.xlu1 %v10160_v12, %s9015_s26  ;;  %2327 = vrot.lane.b32.xlu0 %v10160_v12, %s9016_s10  ;;  %v10192_v4 = vcombine.low %v10186_v2, %v10174_v42 }
 0x1ab   : > { %v1847_v57 = vsel %vm9481_vm3, %v1842_v30, %v1846_v26  ;;  %v3041_v26 = vld [vmem:[#allocation2 + $0x30] sm:$0xe] }
 0x1ac   : > { %v1220_v1 = vpop.permute.xlu0 %1219  ;;  %14448 = vst [vmem:[#allocation37_spill] sm:$0xff] %v10192_v4 }
 0x1ad   : > { %v1178_v52 = vpop.permute.xlu1 %1177  ;;  %1323 = vst.msk [vmem:[#allocation2 + $0xc0] sm:$0xe] %vm1279_vm13, %v1220_v1  ;;  %v1830_v1 = vrot.slane %v1828_v51, 5  ;;  %v2028_v51 = vrot.slane %v14233_v41, 5 }
 0x1ae   : > { %1302 = vst.msk [vmem:[#allocation2 + $0x6c] sm:$0xe] %vm1279_vm13, %v1178_v52  ;;  %1460 = vrot.lane.b32.xlu1 %v10192_v4, %s9016_s10  ;;  %2377 = vrot.lane.b32.xlu0 %v10145_v14, %s9017_s12  ;;  %v8890_v52 = vld [vmem:[%s14214_s4] sm:$0xff]  }
 0x1af   : > { %8605 = vmatprep.subr.bf16.mxu0 %v8890_v52  ;;  %v1831_v29 = vor.u32 %v1830_v1, %v1827_v59 }
 0x1b0   : > { %v1180_v3 = vpop.permute.xlu0 %1179  ;;  %8606 = vmatpush3.bf16.msra.mxu0 %v8890_v52 }
 0x1b1   : > { %v1226_v19 = vpop.permute.xlu1 %1225  ;;  %1303 = vst.msk [vmem:[#allocation2 + $0x70] sm:$0xf] %vm689_vm12, %v1180_v3  ;;  %v1832_v59 = vrot.slane %v1831_v29, 4 }
 0x1b2   : > { %1326 = vst.msk [vmem:[#allocation2 + $0xcc] sm:$0xe] %vm1279_vm13, %v1226_v19  ;;  %v14234_v19 = vshrl.u32 %v10003_v54, 16  ;;  %1476 = vrot.lane.b32.xlu1 %v10218_v56, %s9016_s10  ;;  %2393 = vrot.lane.b32.xlu0 %v10160_v12, %s9017_s12  ;;  %vm12053_vm13 = vmor %vm475_vm0, %vm4968_vm15 }
 0x1b4   : > { %v2032_v3 = vrot.slane %v14234_v19, 4  ;;  %v10292_v19 = vld [vmem:[#allocation2 + $0x44] sm:$0x1] }
 0x1b5   : > { %v1182_v40 = vpop.permute.xlu1 %1181 }
 0x1b6   : > { %1304 = vst.msk [vmem:[#allocation2 + $0x74] sm:$0x1] %vm699_vm11, %v1182_v40  ;;  %v2017_v40 = vshrl.u32 %v10013_v13, 16  ;;  %v1228_v13 = vpop.permute.xlu0 %1227  ;;  %1530 = vrot.lane.b32.xlu1 %v10192_v4, %s9017_s12  ;;  %1495 = vrot.lane.b32.xlu0 %v10192_v4, %s9019_s22 }
 0x1b7   : > { %1327 = vst.msk [vmem:[#allocation2 + $0xd0] sm:$0xf] %vm689_vm12, %v1228_v13  ;;  %v3905_v13 = vshll.u32 %v10020_v5, 16 }
 0x1b8   : > { %v2019_v52 = vrot.slane %v2017_v40, 4 }
 0x1b9   : > { %v1230_v20 = vpop.permute.xlu1 %1229 }
 0x1ba   : > { %1328 = vst.msk [vmem:[#allocation2 + $0xd4] sm:$0x1] %vm699_vm11, %v1230_v20  ;;  %v2033_v20 = vor.u32 %v2032_v3, %v2028_v51  ;;  %v1176_v41 = vpop.permute.xlu0 %1175  ;;  %v2023_v1 = vor.u32 %v2022_v24, %v2019_v52  ;;  %1546 = vrot.lane.b32.xlu1 %v10218_v56, %s9017_s12  ;;  %1511 = vrot.lane.b32.xlu0 %v10218_v56, %s9019_s22  ;;  %v3902_v3 = vshrl.u32 %v10020_v5, 16 }
 0x1bb   : > { %1301 = vst.msk [vmem:[#allocation2 + $0x68] sm:$0x1] %vm699_vm11, %v1176_v41 }
 0x1bc   : > { %v2034_v48 = vrot.slane %v2033_v20, 4  ;;  %v2024_v24 = vrot.slane %v2023_v1, 4  ;;  %v3132_v20 = vrot.slane %v3130_v55, 4  ;;  %v3904_v5 = vrot.slane %v3902_v3, 5  ;;  %v3049_v3 = vld [vmem:[#allocation2 + $0x90] sm:$0xe] }
 0x1bd   : > { %v1174_v47 = vpop.permute.xlu1 %1173  ;;  %v3907_v1 = vrot.slane %v3905_v13, 6  ;;  %v8128_v62 = vrot.slane %v3049_v3, 9 }
 0x1be   : > { %1300 = vst.msk [vmem:[#allocation2 + $0x64] sm:$0xf] %vm689_vm12, %v1174_v47  ;;  %v1837_v47 = vsel %vm9481_vm3, %v1832_v59, %v1836_v8  ;;  %v1224_v41 = vpop.permute.xlu0 %1223  ;;  %v2039_v30 = vsel %vm9481_vm3, %v2034_v48, %v2038_v50  ;;  %1565 = vrot.lane.b32.xlu0 %v10192_v4, %s9015_s26  ;;  %v10262_v8 = vld [vmem:[#allocation2 + $0x38] sm:$0x1]  ;;  %v2029_v29 = vsel %vm9481_vm3, %v2024_v24, %v2028_v51  ;;  %v1897_v24 = vshrl.u32 %v10085_v0, 16 }
 0x1bf   : > { %v10250_v60 = vcombine.low %v1837_v47, %v1847_v57  ;;  %1325 = vst.msk [vmem:[#allocation2 + $0xc8] sm:$0x1] %vm699_vm11, %v1224_v41  ;;  %v10266_v52 = vcombine.low %v2029_v29, %v2039_v30  ;;  %v3133_v59 = vrot.slane %v10262_v8, 5  ;;  %v3186_v57 = vrot.slane %v10195_v23, 5  ;;  %v10274_v50 = vld [vmem:[#allocation2 + $0x98] sm:$0x1] }
 0x1c0   : > { %v3189_v48 = vrot.slane %v10274_v50, 5  ;;  %v3137_v41 = vrot.slane %v10074_v43, 5  ;;  %v1900_v30 = vshll.u32 %v10085_v0, 16  ;;  %v3908_v13 = vor.u32 %v3907_v1, %v3904_v5  ;;  %v3042_v0 = vld [vmem:[#allocation2 + $0x3c] sm:$0xe] }
 0x1c1   : > { %v1222_v40 = vpop.permute.xlu1 %1221  ;;  %14451 = vst [vmem:[#allocation40_spill] sm:$0xff] %v10250_v60  ;;  %2309 = vrot.lane.b32.xlu1 %v10250_v60, %s9016_s10  ;;  %14452 = vst [vmem:[#allocation41_spill] sm:$0xff] %v10266_v52  ;;  %v3134_v51 = vsel %vm9507_vm9, %v3132_v20, %v3133_v59  ;;  %v3188_v47 = vrot.slane %v3186_v57, 4  ;;  %v2089_v29 = vshrl.u32 %v10109_v28, 16  ;;  %vm3852_vm11 = vsmask.f32 2304 }
 0x1c2   : > { %1324 = vst.msk [vmem:[#allocation2 + $0xc4] sm:$0xf] %vm689_vm12, %v1222_v40  ;;  %1581 = vrot.lane.b32.xlu0 %v10218_v56, %s9015_s26  ;;  %v8120_v40 = vrot.slane %v3041_v26, 9  ;;  %v2092_v26 = vshll.u32 %v10109_v28, 16  ;;  %vm3853_vm12 = vsmask.f32 6416 }
 0x1c3   : > { %v3190_v27 = vsel %vm9507_vm9, %v3188_v47, %v3189_v48  ;;  %v3139_v25 = vrot.slane %v3137_v41, 4  ;;  %v3050_v5 = vld [vmem:[#allocation2 + $0x9c] sm:$0xe]  ;;  %v3193_v1 = vrot.slane %v10096_v44, 5  ;;  %v10297_v12 = vrot.slane %v1897_v24, 4  ;;  %vm10351_vm7 = vmor %vm3852_vm11, %vm3853_vm12 }
 0x1c4   : > { %v3131_v20 = vsel %vm9507_vm9, %v8120_v40, %v3130_v55  ;;  %v10299_v28 = vrot.slane %v1900_v30, 5  ;;  %v14454_v55 = vshll.u32 %v9989_v45, 16  ;;  %v10307_v3 = vrot.slane %v2089_v29, 4  ;;  %v10314_v30 = vld [vmem:[#allocation2 + $0xa4] sm:$0x1] }
 0x1c5   : > { %2325 = vrot.lane.b32.xlu1 %v10266_v52, %s9016_s10  ;;  %v10290_v59 = vcombine.low %v3131_v20, %v3134_v51  ;;  %v3909_v51 = vrot.slane %v3908_v13, 4  ;;  %v10309_v47 = vrot.slane %v2092_v26, 5  ;;  %v3187_v48 = vsel %vm9507_vm9, %v8128_v62, %v3186_v57  ;;  %v10330_v57 = vld [vmem:[#allocation2 + $0x54] sm:$0xf]  ;;  %v10478_v4 = vld [vmem:[#allocation2 + $0x6c] sm:$0xe] }
 0x1c6   : > { %2342 = vrot.lane.b32.xlu0 %v10250_v60, %s9019_s22  ;;  %v3911_v40 = vrot.slane %v14454_v55, 6  ;;  %v3140_v24 = vrot.slane %v10292_v19, 5  ;;  %v10316_v20 = vcombine.low %v3187_v48, %v3190_v27  ;;  %v8121_v55 = vrot.slane %v3042_v0, 9  ;;  %v10335_v48 = vld [vmem:[#allocation2 + $0x58] sm:$0xf] }
 0x1c7   : > { %14453 = vst [vmem:[#allocation42_spill] sm:$0xff] %v10290_v59  ;;  %v8129_v38 = vrot.slane %v3050_v5, 9  ;;  %v3195_v29 = vrot.slane %v3193_v1, 4  ;;  %v3910_v62 = vrot.slane %v14456_v37, 5  ;;  %v3196_v0 = vrot.slane %v10314_v30, 5 }
 0x1c8   : > { %14455 = vst [vmem:[#allocation43_spill] sm:$0xff] %v10316_v20  ;;  %v3141_v13 = vsel %vm9507_vm9, %v3139_v25, %v3140_v24  ;;  %v3138_v27 = vsel %vm9507_vm9, %v8121_v55, %v3137_v41  ;;  %v14249_v25 = vshll.u32 %v10096_v44, 16  ;;  %v3916_v26 = vshrl.u32 %v3834_v16, 16 }
 0x1c9   : > { %2391 = vrot.lane.b32.xlu1 %v10266_v52, %s9017_s12  ;;  %v3912_v24 = vor.u32 %v3911_v40, %v3910_v62  ;;  %v10339_v54 = vcombine.low %v3138_v27, %v3141_v13  ;;  %v10343_v41 = vcombine.low %v10330_v57, %v10335_v48  ;;  %v14459_v55 = vshll.u32 %v10074_v43, 16 }
 0x1ca   : > { %2358 = vrot.lane.b32.xlu0 %v10266_v52, %s9019_s22  ;;  %v3919_v37 = vshll.u32 %v3834_v16, 16  ;;  %v3197_v40 = vsel %vm9507_vm9, %v3195_v29, %v3196_v0  ;;  %v14462_v13 = vshrl.u32 %v10074_v43, 16  ;;  %v3918_v45 = vrot.slane %v3916_v26, 5  ;;  %v10375_v26 = vld [vmem:[#allocation2 + $0xb8] sm:$0xf] }
 0x1cb   : > { %14457 = vst [vmem:[#allocation44_spill] sm:$0xff] %v10339_v54  ;;  %14458 = vst [vmem:[#allocation45_spill] sm:$0xff] %v10343_v41  ;;  %v3913_v27 = vsel %vm10351_vm7, %v3909_v51, %v3912_v24  ;;  %v14463_v16 = vshrl.u32 %v10096_v44, 16  ;;  %v3914_v0 = vrot.slane %v3912_v24, 4  ;;  %v10373_v51 = vld [vmem:[#allocation2 + $0xb4] sm:$0xf] }
 0x1cc   : > { %v1912_v62 = vrot.slane %v14462_v13, 4  ;;  %v3921_v17 = vrot.slane %v3919_v37, 6  ;;  %v3194_v13 = vsel %vm9507_vm9, %v8129_v38, %v3193_v1  ;;  %14464 = vst [vmem:[#allocation46_spill] sm:$0xff] %v10375_v26  ;;  %v3956_v56 = vrot.slane %v14465_v33, 5 }
 0x1cd   : > { %3297 = vrot.lane.b32.xlu1 %v10290_v59, %s9016_s10  ;;  %v2104_v29 = vrot.slane %v14463_v16, 4  ;;  %v10385_v16 = vcombine.low %v10373_v51, %v10375_v26  ;;  %v1903_v38 = vor.u32 %v10299_v28, %v10297_v12  ;;  %v2095_v33 = vor.u32 %v10309_v47, %v10307_v3 }
 0x1ce   : > { %2424 = vrot.lane.b32.xlu0 %v10266_v52, %s9015_s26  ;;  %v10347_v52 = vrot.slane %v14459_v55, 5  ;;  %v10367_v55 = vrot.slane %v14249_v25, 5  ;;  %v10381_v25 = vcombine.low %v3194_v13, %v3197_v40  ;;  %v3922_v37 = vor.u32 %v3921_v17, %v3918_v45  ;;  %v774_v45 = vld [vmem:[#allocation2 + $0x50] sm:$0x2]  ;;  %v10407_v13 = vld [vmem:[#allocation2 + $0x48] sm:$0xe] }
 0x1cf   : > { %14468 = vst [vmem:[#allocation48_spill] sm:$0xff] %v10385_v16  ;;  %v10390_v24 = vor.u32 %v3957_v61, %v3956_v56  ;;  %v1916_v12 = vshll.u32 %v10292_v19, 16  ;;  %v2108_v56 = vshll.u32 %v10314_v30, 16  ;;  %v10405_v61 = vld [vmem:[#allocation2 + $0x4c] sm:$0xf]  ;;  %v1904_v40 = vrot.slane %v1903_v38, 4 }
 0x1d0   : > { %14467 = vst [vmem:[#allocation47_spill] sm:$0xff] %v10381_v25  ;;  %v1913_v1 = vor.u32 %v1912_v62, %v10347_v52  ;;  %v2105_v36 = vor.u32 %v2104_v29, %v10367_v55  ;;  %v3923_v17 = vsel %vm10351_vm7, %v3914_v0, %v3922_v37  ;;  %v2096_v3 = vrot.slane %v2095_v33, 4  ;;  %v777_v38 = vld [vmem:[#allocation2 + $0x5c] sm:$0x2] }
 0x1d1   : > { %3313 = vrot.lane.b32.xlu1 %v10316_v20, %s9016_s10  ;;  %14469 = vst [vmem:[#allocation49_spill] sm:$0xff] %v10390_v24  ;;  %v10402_v28 = vcombine.low %v3913_v27, %v3923_v17  ;;  %v1918_v19 = vrot.slane %v1916_v12, 5  ;;  %v14250_v27 = vshrl.u32 %v10405_v61, 16  ;;  %v775_v30 = vsel %vm9429_vm8, 0, %v774_v45 }
 0x1d2   : > { %3299 = vrot.lane.b32.xlu0 %v10339_v54, %s9016_s10  ;;  %v1914_v62 = vrot.slane %v1913_v1, 4  ;;  %v2106_v47 = vrot.slane %v2105_v36, 4  ;;  %v2110_v29 = vrot.slane %v2108_v56, 5  ;;  %v14254_v0 = vshll.u32 %v10405_v61, 16  ;;  %776 = vst [vmem:[#allocation2 + $0x50] sm:$0x2] %v775_v30 }
 0x1d3   : > { %14470 = vst [vmem:[#allocation50_spill] sm:$0xff] %v10402_v28  ;;  %v3994_v37 = vshrl.u32 %v10407_v13, 16  ;;  %v1909_v1 = vsel %vm9481_vm3, %v1904_v40, %v10347_v52  ;;  %v10423_v36 = vld [vmem:[#allocation2 + $0x54] sm:$0xe]  ;;  %v3997_v17 = vshll.u32 %v10407_v13, 16  ;;  %v4002_v12 = vrot.slane %v14250_v27, 5 }
 0x1d4   : > { %v1919_v33 = vsel %vm9481_vm3, %v1914_v62, %v1918_v19  ;;  %v2101_v52 = vsel %vm9481_vm3, %v2096_v3, %v10367_v55  ;;  %v2111_v56 = vsel %vm9481_vm3, %v2106_v47, %v2110_v29  ;;  %v4003_v40 = vrot.slane %v14254_v0, 6  ;;  %v10441_v30 = vld [vmem:[#allocation2 + $0x64] sm:$0xf]  ;;  %v10447_v55 = vld [vmem:[#allocation2 + $0x60] sm:$0xe] }
 0x1d5   : > { %1501 = vrot.lane.b32.xlu1 %v10343_v41, %s9019_s22  ;;  %v3996_v45 = vrot.slane %v3994_v37, 5  ;;  %v14255_v19 = vshrl.u32 %v10335_v48, 16  ;;  %v3999_v27 = vrot.slane %v3997_v17, 6  ;;  %v778_v44 = vsel %vm9429_vm8, 0, %v777_v38  ;;  %v780_v37 = vld [vmem:[#allocation2 + $0x68] sm:$0x2] }
 0x1d6   : > { %3315 = vrot.lane.b32.xlu0 %v10381_v25, %s9016_s10  ;;  %v10445_v14 = vcombine.low %v1909_v1, %v1919_v33  ;;  %v10449_v3 = vor.u32 %v4003_v40, %v4002_v12  ;;  %779 = vst [vmem:[#allocation2 + $0x5c] sm:$0x2] %v778_v44  ;;  %v4017_v47 = vshrl.u32 %v10423_v36, 16  ;;  %v4020_v29 = vshll.u32 %v10423_v36, 16  ;;  %v783_v33 = vld [vmem:[#allocation2 + $0x74] sm:$0x2] }
 0x1d7   : > { %v10453_v0 = vcombine.low %v2101_v52, %v2111_v56  ;;  %v4000_v62 = vor.u32 %v3999_v27, %v3996_v45  ;;  %v4025_v17 = vrot.slane %v14255_v19, 5  ;;  %v14473_v38 = vshll.u32 %v10335_v48, 16  ;;  %v10463_v44 = vld [vmem:[#allocation2 + $0x70] sm:$0xf] }
 0x1d8   : > { %14471 = vst [vmem:[#allocation51_spill] sm:$0xff] %v10445_v14  ;;  %v14261_v52 = vshrl.u32 %v10441_v30, 16  ;;  %v4019_v27 = vrot.slane %v4017_v47, 5  ;;  %v4022_v56 = vrot.slane %v4020_v29, 6  ;;  %v4040_v60 = vshrl.u32 %v10447_v55, 16 }
 0x1d9   : > { %1517 = vrot.lane.b32.xlu1 %v10385_v16, %s9019_s22  ;;  %14472 = vst [vmem:[#allocation52_spill] sm:$0xff] %v10453_v0  ;;  %v4026_v1 = vrot.slane %v14473_v38, 6  ;;  %v936_v45 = vld [vmem:[#allocation2 + $0x50] sm:$0x2]  ;;  %v10467_v40 = vrot.slane %v4000_v62, 4  ;;  %v781_v38 = vsel %vm9429_vm8, 0, %v780_v37 }
 0x1da   : > { %1466 = vrot.lane.b32.xlu0 %v10343_v41, %s9016_s10  ;;  %v937_v47 = vsel %vm9443_vm10, %v9462_v34, %v936_v45  ;;  %v4023_v29 = vor.u32 %v4022_v56, %v4019_v27  ;;  %782 = vst [vmem:[#allocation2 + $0x68] sm:$0x2] %v781_v38  ;;  %v4043_v62 = vshll.u32 %v10447_v55, 16  ;;  %v4042_v28 = vrot.slane %v4040_v60, 5 }
 0x1db   : > { %v10469_v19 = vor.u32 %v4026_v1, %v4025_v17  ;;  %v4048_v17 = vrot.slane %v14261_v52, 5  ;;  %v14266_v1 = vshrl.u32 %v10463_v44, 16  ;;  %938 = vst [vmem:[#allocation2 + $0x50] sm:$0x2] %v937_v47  ;;  %v14474_v45 = vshll.u32 %v10441_v30, 16 }
 0x1dc   : > { %v10496_v27 = vrot.slane %v4023_v29, 4  ;;  %v4045_v56 = vrot.slane %v4043_v62, 6  ;;  %v784_v47 = vsel %vm9429_vm8, 0, %v783_v33  ;;  %v4063_v12 = vshrl.u32 %v10478_v4, 16 }
 0x1dd   : > { %1571 = vrot.lane.b32.xlu1 %v10343_v41, %s9015_s26  ;;  %v4049_v38 = vrot.slane %v14474_v45, 6  ;;  %v939_v52 = vld [vmem:[#allocation2 + $0x5c] sm:$0x2]  ;;  %785 = vst [vmem:[#allocation2 + $0x74] sm:$0x2] %v784_v47  ;;  %v4066_v60 = vshll.u32 %v10478_v4, 16 }
 0x1de   : > { %1482 = vrot.lane.b32.xlu0 %v10385_v16, %s9016_s10  ;;  %v4071_v37 = vrot.slane %v14266_v1, 5  ;;  %v940_v33 = vsel %vm9443_vm10, %v9462_v34, %v939_v52  ;;  %v4046_v47 = vor.u32 %v4045_v56, %v4042_v28  ;;  %v4065_v1 = vrot.slane %v4063_v12, 5 }
 0x1df   : > { %v10519_v43 = vor.u32 %v4049_v38, %v4048_v17  ;;  %941 = vst [vmem:[#allocation2 + $0x5c] sm:$0x2] %v940_v33  ;;  %v4068_v31 = vrot.slane %v4066_v60, 6  ;;  %v10549_v33 = vld [vmem:[#allocation2 + $0x48] sm:$0xf]  ;;  %v14515_v22 = vshrl.u32 %v10335_v48, 16 }
 0x1e0   : > { %v10527_v52 = vrot.slane %v4046_v47, 4  ;;  %v10564_v45 = vcombine.low %v10549_v33, %v10405_v61 }
 0x1e1   : > { %1587 = vrot.lane.b32.xlu1 %v10385_v16, %s9015_s26 }
 0x1e2   : > { %1536 = vrot.lane.b32.xlu0 %v10343_v41, %s9017_s12  ;;  %v3838_v17 = vld [vmem:[#allocation2 + $0x50] sm:$0x3] }
 0x1e3   : > { %v4008_v56 = vshrl.u32 %v3838_v17, 16  ;;  %v4011_v38 = vshll.u32 %v3838_v17, 16 }
 0x1e4   : > { %v10474_v11 = vpop.permute.xlu1 %1493  ;;  %v10476_v41 = vpop.permute.xlu0 %1458 }
 0x1e5   : > { %2348 = vrot.lane.b32.xlu1 %v10445_v14, %s9019_s22  ;;  %v4010_v47 = vrot.slane %v4008_v56, 5  ;;  %v4013_v17 = vrot.slane %v4011_v38, 6  ;;  %v14480_v56 = vshll.u32 %v10174_v42, 16 }
 0x1e6   : > { %1552 = vrot.lane.b32.xlu0 %v10385_v16, %s9017_s12  ;;  %v14475_v16 = vshll.u32 %v10463_v44, 16  ;;  %v3839_v9 = vld [vmem:[#allocation2 + $0x5c] sm:$0x3] }
 0x1e7   : > { %v10568_v38 = vrot.slane %v14480_v56, 5  ;;  %v4014_v7 = vor.u32 %v4013_v17, %v4010_v47  ;;  %v4031_v54 = vshrl.u32 %v3839_v9, 16  ;;  %v4029_v47 = vrot.slane %v10469_v19, 4 }
 0x1e8   : > { %v4072_v29 = vrot.slane %v14475_v16, 6  ;;  %v10508_v24 = vpop.permute.xlu1 %1509  ;;  %v10510_v62 = vpop.permute.xlu0 %1474 }
 0x1e9   : > { %2364 = vrot.lane.b32.xlu1 %v10453_v0, %s9019_s22  ;;  %14476 = vst [vmem:[#allocation53_spill] sm:$0xff] %v10508_v24  ;;  %14477 = vst [vmem:[#allocation54_spill] sm:$0xff] %v10510_v62  ;;  %v942_v24 = vld [vmem:[#allocation2 + $0x68] sm:$0x2]  ;;  %v4069_v62 = vor.u32 %v4068_v31, %v4065_v1  ;;  %v1873_v31 = vshrl.u32 %v10186_v2, 16  ;;  %v1876_v1 = vshll.u32 %v10186_v2, 16 }
 0x1ea   : > { %v10521_v16 = vor.u32 %v4072_v29, %v4071_v37  ;;  %2315 = vrot.lane.b32.xlu0 %v10445_v14, %s9016_s10  ;;  %v943_v12 = vsel %vm9443_vm10, %v9462_v34, %v942_v24  ;;  %v4006_v24 = vrot.slane %v10449_v3, 4  ;;  %v945_v29 = vld [vmem:[#allocation2 + $0x74] sm:$0x2] }
 0x1eb   : > { %944 = vst [vmem:[#allocation2 + $0x68] sm:$0x2] %v943_v12  ;;  %v10540_v60 = vrot.slane %v4069_v62, 4  ;;  %v946_v62 = vsel %vm9443_vm10, %v9462_v34, %v945_v29  ;;  %v1875_v59 = vrot.slane %v1873_v31, 4  ;;  %v1878_v21 = vrot.slane %v1876_v1, 5 }
 0x1ec   : > { %v10529_v25 = vpop.permute.xlu1 %1579  ;;  %v10531_v28 = vpop.permute.xlu0 %1528  ;;  %947 = vst [vmem:[#allocation2 + $0x74] sm:$0x2] %v946_v62  ;;  %v4015_v62 = vsel %vm10351_vm7, %v4006_v24, %v4014_v7  ;;  %v2068_v1 = vshll.u32 %v10212_v32, 16  ;;  %v14485_v7 = vsel %vm10351_vm7, %v10467_v40, %v10449_v3  ;;  %v14487_v32 = vshll.u32 %v10195_v23, 16 }
 0x1ed   : > { %2414 = vrot.lane.b32.xlu1 %v10445_v14, %s9015_s26  ;;  %14478 = vst [vmem:[#allocation55_spill] sm:$0xff] %v10529_v25  ;;  %v14481_v25 = vshrl.u32 %v10174_v42, 16  ;;  %v10579_v42 = vld [vmem:[#allocation2 + $0xa8] sm:$0xf]  ;;  %v10601_v24 = vcombine.low %v14485_v7, %v4015_v62  ;;  %v1892_v3 = vshll.u32 %v10262_v8, 16 }
 0x1ee   : > { %2331 = vrot.lane.b32.xlu0 %v10453_v0, %s9016_s10  ;;  %v8893_v62 = vld [vmem:[%s14214_s4 + $0x38] sm:$0x3f]  }
 0x1ef   : > { %v1888_v29 = vrot.slane %v14481_v25, 4  ;;  %v10581_v25 = vld [vmem:[#allocation2 + $0xac] sm:$0xf]  ;;  %14486 = vst [vmem:[#allocation60_spill] sm:$0xff] %v10601_v24  ;;  %8797 = vmatprep.subr.msk.bf16.mxu1 %vm2653_vm14, %v8893_v62  ;;  %v2655_v24 = vsel %vm2653_vm14, %v8893_v62, 0 }
 0x1f0   : > { %v10558_v12 = vpop.permute.xlu1 %1456  ;;  %v10560_v37 = vpop.permute.xlu0 %1544  ;;  %14482 = vst [vmem:[#allocation57_spill] sm:$0xff] %v10581_v25  ;;  %v10593_v2 = vcombine.low %v10579_v42, %v10581_v25  ;;  %8560 = vmatpush3.bf16.msra.mxu1 %v2655_v24 }
 0x1f1   : > { %2430 = vrot.lane.b32.xlu1 %v10453_v0, %s9015_s26  ;;  %14479 = vst [vmem:[#allocation56_spill] sm:$0xff] %v10560_v37  ;;  %v4034_v37 = vshll.u32 %v3839_v9, 16  ;;  %v4033_v9 = vrot.slane %v4031_v54, 5  ;;  %v1889_v20 = vor.u32 %v1888_v29, %v10568_v38  ;;  %v1879_v29 = vor.u32 %v1878_v21, %v1875_v59 }
 0x1f2   : > { %2381 = vrot.lane.b32.xlu0 %v10445_v14, %s9017_s12  ;;  %14484 = vst [vmem:[#allocation59_spill] sm:$0xff] %v10593_v2  ;;  %v3840_v54 = vld [vmem:[#allocation2 + $0x68] sm:$0x3]  ;;  %v14488_v14 = vshrl.u32 %v10195_v23, 16  ;;  %v14491_v21 = vsel %vm10351_vm7, %v10496_v27, %v10469_v19  ;;  %v792_v23 = vld [vmem:[#allocation2 + $0x98] sm:$0x2] }
 0x1f3   : > { %v4036_v31 = vrot.slane %v4034_v37, 6  ;;  %v10605_v37 = vrot.slane %v14487_v32, 5  ;;  %v4054_v35 = vshrl.u32 %v3840_v54, 16  ;;  %v4057_v40 = vshll.u32 %v3840_v54, 16  ;;  %v8894_v19 = vld [vmem:[%s14214_s4 + $0x30] sm:$0xff]  }
 0x1f4   : > { %v10587_v17 = vpop.permute.xlu1 %1472  ;;  %v10589_v56 = vpop.permute.xlu0 %1491  ;;  %v793_v62 = vsel %vm9429_vm8, 0, %v792_v23  ;;  %8561 = vmatprep.subr.bf16.mxu1 %v8894_v19  ;;  %v14495_v23 = vsel %vm10351_vm7, %v10527_v52, %v10519_v43  ;;  %v14497_v52 = vsel %vm10351_vm7, %v10540_v60, %v10521_v16 }
 0x1f5   : > { %1464 = vrot.lane.b32.xlu1 %v10564_v45, %s9016_s10  ;;  %14483 = vst [vmem:[#allocation58_spill] sm:$0xff] %v10587_v17  ;;  %v2080_v17 = vrot.slane %v14488_v14, 4  ;;  %v4037_v39 = vor.u32 %v4036_v31, %v4033_v9  ;;  %v4052_v9 = vrot.slane %v10519_v43, 4  ;;  %v4056_v53 = vrot.slane %v4054_v35, 5  ;;  %v3841_v31 = vld [vmem:[#allocation2 + $0x74] sm:$0x3]  ;;  %8562 = vmatpush3.bf16.msra.mxu1 %v8894_v19 }
 0x1f6   : > { %2397 = vrot.lane.b32.xlu0 %v10453_v0, %s9017_s12  ;;  %v4059_v59 = vrot.slane %v4057_v40, 6  ;;  %v4077_v54 = vshrl.u32 %v3841_v31, 16  ;;  %v4080_v0 = vshll.u32 %v3841_v31, 16  ;;  %794 = vst [vmem:[#allocation2 + $0x98] sm:$0x2] %v793_v62 }
 0x1f7   : > { %v4038_v14 = vsel %vm10351_vm7, %v4029_v47, %v4037_v39  ;;  %v2070_v39 = vrot.slane %v2068_v1, 5  ;;  %v1890_v47 = vrot.slane %v1889_v20, 4  ;;  %v2081_v35 = vor.u32 %v2080_v17, %v10605_v37 }
 0x1f8   : > { %v10620_v7 = vpop.permute.xlu1 %1542  ;;  %v10622_v32 = vpop.permute.xlu0 %1507  ;;  %v10629_v8 = vcombine.low %v14491_v21, %v4038_v14  ;;  %v4060_v27 = vor.u32 %v4059_v59, %v4056_v53  ;;  %v4075_v1 = vrot.slane %v10521_v16, 4  ;;  %v4079_v20 = vrot.slane %v4077_v54, 5  ;;  %v795_v54 = vld [vmem:[#allocation2 + $0xa4] sm:$0x2] }
 0x1f9   : > { %1480 = vrot.lane.b32.xlu1 %v10593_v2, %s9016_s10  ;;  %14489 = vst [vmem:[#allocation61_spill] sm:$0xff] %v10620_v7  ;;  %14490 = vst [vmem:[#allocation62_spill] sm:$0xff] %v10622_v32  ;;  %v4082_v40 = vrot.slane %v4080_v0, 6  ;;  %v1894_v17 = vrot.slane %v1892_v3, 5  ;;  %v2084_v14 = vshll.u32 %v10274_v50, 16  ;;  %v2071_v50 = vor.u32 %v2070_v39, %v2067_v15  ;;  %v8896_v16 = vld [vmem:[%s14214_s4 + $0x20] sm:$0xff]  }
 0x1fa   : > { %14492 = vst [vmem:[#allocation63_spill] sm:$0xff] %v10629_v8  ;;  %1499 = vrot.lane.b32.xlu0 %v10564_v45, %s9019_s22  ;;  %v1880_v8 = vrot.slane %v1879_v29, 4  ;;  %v4061_v53 = vsel %vm10351_vm7, %v4052_v9, %v4060_v27  ;;  %v2082_v24 = vrot.slane %v2081_v35, 4  ;;  %v8895_v29 = vld [vmem:[%s14214_s4 + $0x28] sm:$0xff]  }
 0x1fb   : > { %v4083_v59 = vor.u32 %v4082_v40, %v4079_v20  ;;  %v1895_v0 = vsel %vm9481_vm3, %v1890_v47, %v1894_v17  ;;  %v10658_v3 = vcombine.low %v14495_v23, %v4061_v53  ;;  %v2086_v43 = vrot.slane %v2084_v14, 5  ;;  %8563 = vmatprep.subr.bf16.mxu1 %v8895_v29  ;;  %v801_v17 = vld [vmem:[#allocation2 + $0xbc] sm:$0x2] }
 0x1fc   : > { %v10645_v31 = vpop.permute.xlu1 %3293  ;;  %v10647_v21 = vpop.permute.xlu0 %1577  ;;  %v1885_v9 = vsel %vm9481_vm3, %v1880_v8, %v10568_v38  ;;  %v796_v47 = vsel %vm9429_vm8, 0, %v795_v54  ;;  %v798_v38 = vld [vmem:[#allocation2 + $0xb0] sm:$0x2]  ;;  %v2072_v8 = vrot.slane %v2071_v50, 4  ;;  %8564 = vmatpush3.bf16.msra.mxu1 %v8895_v29  ;;  %v10715_v54 = vld [vmem:[#allocation2 + $0x50] sm:$0x1] }
 0x1fd   : > { %1534 = vrot.lane.b32.xlu1 %v10564_v45, %s9017_s12  ;;  %14493 = vst [vmem:[#allocation64_spill] sm:$0xff] %v10645_v31  ;;  %14494 = vst [vmem:[#allocation65_spill] sm:$0xff] %v10647_v21  ;;  %v4084_v15 = vsel %vm10351_vm7, %v4075_v1, %v4083_v59  ;;  %v10685_v1 = vcombine.low %v1885_v9, %v1895_v0  ;;  %v2087_v19 = vsel %vm9481_vm3, %v2082_v24, %v2086_v43  ;;  %v954_v20 = vld [vmem:[#allocation2 + $0x98] sm:$0x2]  ;;  %v804_v24 = vld [vmem:[#allocation2 + $0xc8] sm:$0x2] }
 0x1fe   : > { %14496 = vst [vmem:[#allocation66_spill] sm:$0xff] %v10658_v3  ;;  %1515 = vrot.lane.b32.xlu0 %v10593_v2, %s9019_s22  ;;  %v10677_v39 = vcombine.low %v14497_v52, %v4084_v15  ;;  %797 = vst [vmem:[#allocation2 + $0xa4] sm:$0x2] %v796_v47  ;;  %v2077_v60 = vsel %vm9481_vm3, %v2072_v8, %v10605_v37  ;;  %v799_v40 = vsel %vm9429_vm8, 0, %v798_v38  ;;  %8565 = vmatprep.subr.bf16.mxu1 %v8896_v16  ;;  %v3051_v47 = vld [vmem:[#allocation2 + $0xa8] sm:$0xe] }
 0x1ff   : > { %14501 = vst [vmem:[#allocation70_spill] sm:$0xff] %v10685_v1  ;;  %v10705_v53 = vcombine.low %v2077_v60, %v2087_v19  ;;  %v955_v59 = vsel %vm9443_vm10, %v9462_v34, %v954_v20  ;;  %800 = vst [vmem:[#allocation2 + $0xb0] sm:$0x2] %v799_v40  ;;  %v3144_v37 = vrot.slane %v10405_v61, 5  ;;  %v802_v0 = vsel %vm9429_vm8, 0, %v801_v17 }
 0x200   : > { %14498 = vst [vmem:[#allocation67_spill] sm:$0xff] %v10677_v39  ;;  %v10681_v35 = vpop.permute.xlu1 %3309  ;;  %v10683_v27 = vpop.permute.xlu0 %3295  ;;  %956 = vst [vmem:[#allocation2 + $0x98] sm:$0x2] %v955_v59  ;;  %8566 = vmatpush3.bf16.msra.mxu1 %v8896_v16  ;;  %v8122_v9 = vrot.slane %v10407_v13, 9  ;;  %v3147_v52 = vrot.slane %v10715_v54, 5  ;;  %v3200_v38 = vrot.slane %v10581_v25, 5 }
 0x201   : > { %1550 = vrot.lane.b32.xlu1 %v10593_v2, %s9017_s12  ;;  %14499 = vst [vmem:[#allocation68_spill] sm:$0xff] %v10681_v35  ;;  %14500 = vst [vmem:[#allocation69_spill] sm:$0xff] %v10683_v27  ;;  %v3146_v43 = vrot.slane %v3144_v37, 4  ;;  %v10733_v8 = vld [vmem:[#allocation2 + $0xb0] sm:$0x1]  ;;  %v805_v19 = vsel %vm9429_vm8, 0, %v804_v24 }
 0x202   : > { %1569 = vrot.lane.b32.xlu0 %v10564_v45, %s9015_s26  ;;  %14503 = vst [vmem:[#allocation72_spill] sm:$0xff] %v10705_v53  ;;  %803 = vst [vmem:[#allocation2 + $0xbc] sm:$0x2] %v802_v0  ;;  %v807_v13 = vld [vmem:[#allocation2 + $0xd4] sm:$0x2]  ;;  %v8130_v40 = vrot.slane %v3051_v47, 9  ;;  %v3145_v0 = vsel %vm9507_vm9, %v8122_v9, %v3144_v37 }
 0x203   : > { %806 = vst [vmem:[#allocation2 + $0xc8] sm:$0x2] %v805_v19  ;;  %v3151_v17 = vrot.slane %v10335_v48, 5  ;;  %v3202_v24 = vrot.slane %v3200_v38, 4  ;;  %v10754_v47 = vld [vmem:[#allocation2 + $0x5c] sm:$0x1] }
 0x204   : > { %v10701_v14 = vpop.permute.xlu1 %1497  ;;  %v10703_v62 = vpop.permute.xlu0 %3311  ;;  %v3154_v27 = vrot.slane %v10754_v47, 5  ;;  %v10796_v35 = vld [vmem:[#allocation2 + $0x6c] sm:$0xf]  ;;  %v1964_v3 = vshll.u32 %v10754_v47, 16 }
 0x205   : > { %2313 = vrot.lane.b32.xlu1 %v10685_v1, %s9016_s10  ;;  %14502 = vst [vmem:[#allocation71_spill] sm:$0xff] %v10703_v62  ;;  %v957_v50 = vld [vmem:[#allocation2 + $0xa4] sm:$0x2]  ;;  %v3201_v62 = vsel %vm9507_vm9, %v8130_v40, %v3200_v38 }
 0x206   : > { %1585 = vrot.lane.b32.xlu0 %v10593_v2, %s9015_s26  ;;  %v958_v15 = vsel %vm9443_vm10, %v9462_v34, %v957_v50  ;;  %v960_v16 = vld [vmem:[#allocation2 + $0xb0] sm:$0x2]  ;;  %v3148_v50 = vsel %vm9507_vm9, %v3146_v43, %v3147_v52  ;;  %v14519_v2 = vshll.u32 %v10375_v26, 16 }
 0x207   : > { %959 = vst [vmem:[#allocation2 + $0xa4] sm:$0x2] %v958_v15  ;;  %v961_v59 = vsel %vm9443_vm10, %v9462_v34, %v960_v16  ;;  %v3203_v15 = vrot.slane %v10733_v8, 5  ;;  %v808_v16 = vsel %vm9429_vm8, 0, %v807_v13  ;;  %v10765_v52 = vcombine.low %v3145_v0, %v3148_v50 }
 0x208   : > { %v10719_v23 = vpop.permute.xlu1 %1513  ;;  %v10721_v29 = vpop.permute.xlu0 %1462  ;;  %962 = vst [vmem:[#allocation2 + $0xb0] sm:$0x2] %v961_v59  ;;  %809 = vst [vmem:[#allocation2 + $0xd4] sm:$0x2] %v808_v16  ;;  %v8123_v59 = vrot.slane %v10423_v36, 9  ;;  %v3153_v13 = vrot.slane %v3151_v17, 4 }
 0x209   : > { %2329 = vrot.lane.b32.xlu1 %v10705_v53, %s9016_s10  ;;  %14504 = vst [vmem:[#allocation73_spill] sm:$0xff] %v10719_v23  ;;  %v963_v19 = vld [vmem:[#allocation2 + $0xbc] sm:$0x2]  ;;  %14507 = vst [vmem:[#allocation76_spill] sm:$0xff] %v10765_v52  ;;  %v3204_v18 = vsel %vm9507_vm9, %v3202_v24, %v3203_v15  ;;  %v1945_v50 = vshrl.u32 %v10330_v57, 16  ;;  %v1948_v36 = vshll.u32 %v10330_v57, 16 }
 0x20a   : > { %2346 = vrot.lane.b32.xlu0 %v10685_v1, %s9019_s22  ;;  %v964_v37 = vsel %vm9443_vm10, %v9462_v34, %v963_v19  ;;  %v966_v0 = vld [vmem:[#allocation2 + $0xc8] sm:$0x2]  ;;  %v10786_v15 = vcombine.low %v3201_v62, %v3204_v18  ;;  %v3152_v19 = vsel %vm9507_vm9, %v8123_v59, %v3151_v17  ;;  %v3155_v16 = vsel %vm9507_vm9, %v3153_v13, %v3154_v27 }
 0x20b   : > { %965 = vst [vmem:[#allocation2 + $0xbc] sm:$0x2] %v964_v37  ;;  %v967_v38 = vsel %vm9443_vm10, %v9462_v34, %v966_v0  ;;  %v1947_v37 = vrot.slane %v1945_v50, 4  ;;  %v1950_v0 = vrot.slane %v1948_v36, 5  ;;  %v2137_v17 = vshrl.u32 %v10373_v51, 16 }
 0x20c   : > { %v10737_v60 = vpop.permute.xlu1 %1567  ;;  %v10739_v20 = vpop.permute.xlu0 %1478  ;;  %14509 = vst [vmem:[#allocation78_spill] sm:$0xff] %v10786_v15  ;;  %968 = vst [vmem:[#allocation2 + $0xc8] sm:$0x2] %v967_v38  ;;  %v2140_v59 = vshll.u32 %v10373_v51, 16  ;;  %v10805_v27 = vcombine.low %v10796_v35, %v10463_v44  ;;  %v10811_v50 = vcombine.low %v3152_v19, %v3155_v16  ;;  %v14514_v36 = vshll.u32 %v10335_v48, 16 }
 0x20d   : > { %2379 = vrot.lane.b32.xlu1 %v10685_v1, %s9017_s12  ;;  %14505 = vst [vmem:[#allocation74_spill] sm:$0xff] %v10739_v20  ;;  %v10823_v16 = vld [vmem:[#allocation2 + $0xcc] sm:$0xf]  ;;  %v2139_v48 = vrot.slane %v2137_v17, 4  ;;  %v2148_v23 = vrot.slane %v14519_v2, 5  ;;  %v1966_v2 = vrot.slane %v1964_v3, 5 }
 0x20e   : > { %2362 = vrot.lane.b32.xlu0 %v10705_v53, %s9019_s22  ;;  %14510 = vst [vmem:[#allocation79_spill] sm:$0xff] %v10805_v27  ;;  %14513 = vst [vmem:[#allocation82_spill] sm:$0xff] %v10811_v50  ;;  %v1956_v38 = vrot.slane %v14514_v36, 5  ;;  %v1951_v36 = vor.u32 %v1950_v0, %v1947_v37  ;;  %v14520_v37 = vshrl.u32 %v10375_v26, 16  ;;  %vm1597_vm8 = vcmask 97280  }
 0x20f   : > { %v969_v57 = vld [vmem:[#allocation2 + $0xd4] sm:$0x2] }
 0x210   : > { %v10761_v9 = vpop.permute.xlu1 %1583  ;;  %v10763_v43 = vpop.permute.xlu0 %1532  ;;  %v970_v62 = vsel %vm9443_vm10, %v9462_v34, %v969_v57  ;;  %v1960_v34 = vrot.slane %v14515_v22, 4  ;;  %v2142_v22 = vrot.slane %v2140_v59, 5  ;;  %v1952_v0 = vrot.slane %v1951_v36, 4 }
 0x211   : > { %2395 = vrot.lane.b32.xlu1 %v10705_v53, %s9017_s12  ;;  %14506 = vst [vmem:[#allocation75_spill] sm:$0xff] %v10761_v9  ;;  %971 = vst [vmem:[#allocation2 + $0xd4] sm:$0x2] %v970_v62  ;;  %v10825_v62 = vld [vmem:[#allocation2 + $0xd0] sm:$0xf]  ;;  %vm1646_vm10 = vcmask 195584  }
 0x212   : > { %2412 = vrot.lane.b32.xlu0 %v10685_v1, %s9015_s26  ;;  %14516 = vst [vmem:[#allocation83_spill] sm:$0xff] %v10825_v62  ;;  %v8045_v51 = vcombine.low %v10823_v16, %v10825_v62  ;;  %v1961_v39 = vor.u32 %v1960_v34, %v1956_v38  ;;  %v10834_v1 = vld [vmem:[#allocation2 + $0xbc] sm:$0x1]  ;;  %v2143_v47 = vor.u32 %v2142_v22, %v2139_v48 }
 0x213   : > { %v1957_v36 = vsel %vm9481_vm3, %v1952_v0, %v1956_v38 }
 0x214   : > { %v10782_v40 = vpop.permute.xlu1 %2344  ;;  %v10784_v24 = vpop.permute.xlu0 %1548  ;;  %v1962_v20 = vrot.slane %v1961_v39, 4  ;;  %v2144_v39 = vrot.slane %v2143_v47, 4 }
 0x215   : > { %3301 = vrot.lane.b32.xlu1 %v10765_v52, %s9016_s10  ;;  %14508 = vst [vmem:[#allocation77_spill] sm:$0xff] %v10784_v24  ;;  %v14525_v24 = vshrl.u32 %v9478_v46, 16 }
 0x216   : > { %2428 = vrot.lane.b32.xlu0 %v10705_v53, %s9015_s26  ;;  %v8909_v53 = vld [vmem:[#allocation2 + $0xc] sm:$0xe] }
 0x217   : > { %v3879_v19 = vshrl.u32 %v8909_v53, 16  ;;  %v3882_v31 = vshll.u32 %v8909_v53, 16  ;;  %v2152_v53 = vrot.slane %v14520_v37, 4  ;;  %v14521_v37 = vshll.u32 %v9478_v46, 16 }
 0x218   : > { %v10807_v18 = vpop.permute.xlu1 %2360  ;;  %v10809_v13 = vpop.permute.xlu0 %2311 }
 0x219   : > { %3317 = vrot.lane.b32.xlu1 %v10786_v15, %s9016_s10  ;;  %14511 = vst [vmem:[#allocation80_spill] sm:$0xff] %v10807_v18  ;;  %14512 = vst [vmem:[#allocation81_spill] sm:$0xff] %v10809_v13  ;;  %v3881_v17 = vrot.slane %v3879_v19, 5  ;;  %v3884_v59 = vrot.slane %v3882_v31, 6  ;;  %v2153_v9 = vor.u32 %v2152_v53, %v2148_v23  ;;  %v3888_v26 = vrot.slane %v14521_v37, 6 }
 0x21a   : > { %3303 = vrot.lane.b32.xlu0 %v10811_v50, %s9016_s10  ;;  %v10854_v31 = vld [vmem:[#allocation2] sm:$0xf]  ;;  %v10856_v19 = vld [vmem:[#allocation2 + $0x4] sm:$0xf]  ;;  %v3833_v53 = vld [vmem:[#allocation2 + $0x14] sm:$0x3] }
 0x21b   : > { %14522 = vst [vmem:[#allocation86_spill] sm:$0xff] %v10856_v19  ;;  %v3885_v37 = vor.u32 %v3884_v59, %v3881_v17  ;;  %v3887_v13 = vrot.slane %v14525_v24, 5  ;;  %v2154_v7 = vrot.slane %v2153_v9, 4  ;;  %v3893_v32 = vshrl.u32 %v3833_v53, 16 }
 0x21c   : > { %v10827_v18 = vpop.permute.xlu1 %2426  ;;  %v10829_v57 = vpop.permute.xlu0 %2327  ;;  %v3896_v21 = vshll.u32 %v3833_v53, 16 }
 0x21d   : > { %1505 = vrot.lane.b32.xlu1 %v10805_v27, %s9019_s22  ;;  %14517 = vst [vmem:[#allocation84_spill] sm:$0xff] %v10827_v18  ;;  %14518 = vst [vmem:[#allocation85_spill] sm:$0xff] %v10829_v57  ;;  %v2156_v18 = vshll.u32 %v10834_v1, 16  ;;  %v3886_v38 = vrot.slane %v3885_v37, 4  ;;  %v3889_v0 = vor.u32 %v3888_v26, %v3887_v13  ;;  %v3895_v47 = vrot.slane %v3893_v32, 5 }
 0x21e   : > { %1470 = vrot.lane.b32.xlu0 %v10805_v27, %s9016_s10  ;;  %v3898_v17 = vrot.slane %v3896_v21, 6 }
 0x21f   : > { %v2158_v22 = vrot.slane %v2156_v18, 5  ;;  %v8028_v18 = vcombine.low %v10854_v31, %v10856_v19  ;;  %v3891_v9 = vrot.slane %v3889_v0, 4 }
 0x220   : > { %v10843_v57 = vpop.permute.xlu1 %1460  ;;  %v10845_v34 = vpop.permute.xlu0 %2377  ;;  %v3899_v13 = vor.u32 %v3898_v17, %v3895_v47  ;;  %v10933_v47 = vld [vmem:[#allocation2 + $0x60] sm:$0xf]  ;;  %v2113_v17 = vshrl.u32 %v10579_v42, 16 }
 0x221   : > { %1521 = vrot.lane.b32.xlu1 %v8045_v51, %s9019_s22  ;;  %v2159_v26 = vsel %vm9481_vm3, %v2154_v7, %v2158_v22  ;;  %v1600_v32 = vsel %vm1597_vm8, %v8028_v18, %v9889_v63 }
 0x222   : > { %1540 = vrot.lane.b32.xlu0 %v10805_v27, %s9017_s12  ;;  %v3900_v21 = vsel %vm10351_vm7, %v3891_v9, %v3899_v13  ;;  %v10943_v9 = vcombine.low %v10933_v47, %v10441_v30  ;;  %v14533_v13 = vshrl.u32 %v10405_v61, 16 }
 0x224   : > { %v10860_v48 = vpop.permute.xlu1 %1476  ;;  %v10862_v3 = vpop.permute.xlu0 %2393 }
 0x225   : > { %1575 = vrot.lane.b32.xlu1 %v10805_v27, %s9015_s26  ;;  %14523 = vst [vmem:[#allocation87_spill] sm:$0xff] %v10860_v48  ;;  %14524 = vst [vmem:[#allocation88_spill] sm:$0xff] %v10862_v3  ;;  %v1967_v27 = vsel %vm9481_vm3, %v1962_v20, %v1966_v2  ;;  %v3890_v20 = vsel %vm10351_vm7, %v3886_v38, %v3889_v0  ;;  %v1924_v38 = vshll.u32 %v10549_v33, 16 }
 0x226   : > { %1556 = vrot.lane.b32.xlu0 %v8045_v51, %s9017_s12  ;;  %v10874_v59 = vcombine.low %v1957_v36, %v1967_v27  ;;  %v10899_v36 = vcombine.low %v3890_v20, %v3900_v21  ;;  %v14301_v21 = vshll.u32 %v10581_v25, 16 }
 0x228   : > { %v1531_v46 = vpop.permute.xlu1 %1530  ;;  %v10872_v24 = vpop.permute.xlu0 %1495  ;;  %14526 = vst [vmem:[#allocation89_spill] sm:$0xff] %v10874_v59  ;;  %14529 = vst [vmem:[#allocation92_spill] sm:$0xff] %v10899_v36 }
 0x229   : > { %1591 = vrot.lane.b32.xlu1 %v8045_v51, %s9015_s26  ;;  %v2149_v51 = vsel %vm9481_vm3, %v2144_v39, %v2148_v23  ;;  %v1603_v23 = vsel %vm1597_vm8, %v9493_v58, %v10558_v12  ;;  %v1648_v39 = vsel %vm1646_vm10, %v1600_v32, %v10589_v56  ;;  %v1936_v32 = vrot.slane %v14533_v13, 4 }
 0x22a   : > { %2319 = vrot.lane.b32.xlu0 %v10874_v59, %s9016_s10  ;;  %v10897_v2 = vcombine.low %v2149_v51, %v2159_v26  ;;  %v1650_v58 = vsel %vm1646_vm10, %v1603_v23, %v10474_v11  ;;  %v1681_v22 = vsel %vm1679_vm2, %v1648_v39, %v10531_v28  ;;  %v1921_v11 = vshrl.u32 %v10549_v33, 16  ;;  %v10957_v39 = vld [vmem:[#allocation2 + $0xc4] sm:$0xf] }
 0x22b   : > { %v1683_v63 = vsel %vm1679_vm2, %v1650_v58, %v1531_v46  ;;  %v2116_v33 = vshll.u32 %v10579_v42, 16  ;;  %v14532_v51 = vshll.u32 %v10405_v61, 16  ;;  %v14302_v23 = vshrl.u32 %v10581_v25, 16  ;;  %v10955_v42 = vld [vmem:[#allocation2 + $0xc0] sm:$0xf]  ;;  %14534 = vst [vmem:[#allocation95_spill] sm:$0xff] %v10957_v39 }
 0x22c   : > { %v10893_v27 = vpop.permute.xlu1 %1546  ;;  %v10895_v7 = vpop.permute.xlu0 %1511  ;;  %14528 = vst [vmem:[#allocation91_spill] sm:$0xff] %v10897_v2  ;;  %v1716_v37 = vsel %vm1712_vm1, %v1683_v63, %v10737_v60  ;;  %v1923_v18 = vrot.slane %v1921_v11, 4  ;;  %v1926_v60 = vrot.slane %v1924_v38, 5  ;;  %v2115_v58 = vrot.slane %v2113_v17, 4 }
 0x22d   : > { %2352 = vrot.lane.b32.xlu1 %v10874_v59, %s9019_s22  ;;  %14527 = vst [vmem:[#allocation90_spill] sm:$0xff] %v10895_v7  ;;  %v1932_v26 = vrot.slane %v14532_v51, 5  ;;  %v2118_v63 = vrot.slane %v2116_v33, 5  ;;  %v2124_v38 = vrot.slane %v14301_v21, 5  ;;  %v2128_v51 = vrot.slane %v14302_v23, 4 }
 0x22e   : > { %2335 = vrot.lane.b32.xlu0 %v10897_v2, %s9016_s10 }
 0x22f   : > { %v1937_v11 = vor.u32 %v1936_v32, %v1932_v26  ;;  %v2129_v32 = vor.u32 %v2128_v51, %v2124_v38 }
 0x230   : > { %v1566_v53 = vpop.permute.xlu0 %1565 }
 0x231   : > { %2368 = vrot.lane.b32.xlu1 %v10897_v2, %s9019_s22  ;;  %v1714_v56 = vsel %vm1712_vm1, %v1681_v22, %v1566_v53  ;;  %v8044_v53 = vcombine.low %v10955_v42, %v10957_v39 }
 0x232   : > { %2385 = vrot.lane.b32.xlu0 %v10874_v59, %s9017_s12  ;;  %8607 = vmatprep.mubr.msk.bf16.mxu0 %vm2620_vm6, %v1714_v56  ;;  %v1927_v56 = vor.u32 %v1926_v60, %v1923_v18  ;;  %v1938_v18 = vrot.slane %v1937_v11, 4 }
 0x233   : > { %v10910_v12 = vpop.permute.xlu1 %2309  ;;  %8608 = vmatmul.mubr.msk.bf16.vlgmr.msra.gmra.mxu0 %vm2620_vm6, %v1716_v37  ;;  %v1940_v37 = vshll.u32 %v10715_v54, 16  ;;  %v2132_v54 = vshll.u32 %v10733_v8, 16  ;;  %v1993_v8 = vshrl.u32 %v10796_v35, 16 }
 0x234   : > { %v10927_v0 = vpop.permute.xlu0 %1581  ;;  %v1928_v13 = vrot.slane %v1927_v56, 4  ;;  %v2130_v56 = vrot.slane %v2129_v32, 4 }
 0x235   : > { %2418 = vrot.lane.b32.xlu1 %v10874_v59, %s9015_s26  ;;  %v1942_v60 = vrot.slane %v1940_v37, 5  ;;  %v2134_v11 = vrot.slane %v2132_v54, 5  ;;  %v1996_v37 = vshll.u32 %v10796_v35, 16  ;;  %v14543_v54 = vshrl.u32 %v10463_v44, 16 }
 0x236   : > { %2401 = vrot.lane.b32.xlu0 %v10897_v2, %s9017_s12 }
 0x237   : > { %v10925_v28 = vpop.permute.xlu1 %2325  ;;  %v1998_v35 = vrot.slane %v1996_v37, 5 }
 0x238   : > { %14530 = vst [vmem:[#allocation93_spill] sm:$0xff] %v10925_v28  ;;  %v10939_v20 = vpop.permute.xlu0 %2342 }
 0x239   : > { %2434 = vrot.lane.b32.xlu1 %v10897_v2, %s9015_s26 }
 0x23a   : > { %1503 = vrot.lane.b32.xlu0 %v10943_v9, %s9019_s22 }
 0x23b   : > { %v10937_v46 = vpop.permute.xlu1 %2391 }
 0x23c   : > { %14531 = vst [vmem:[#allocation94_spill] sm:$0xff] %v10937_v46  ;;  %v10961_v61 = vpop.permute.xlu0 %2358 }
 0x23d   : > { %1468 = vrot.lane.b32.xlu1 %v10943_v9, %s9016_s10  ;;  %14536 = vst [vmem:[#allocation97_spill] sm:$0xff] %v10961_v61 }
 0x23e   : > { %1519 = vrot.lane.b32.xlu0 %v8044_v53, %s9019_s22 }
 0x23f   : > { %v10959_v22 = vpop.permute.xlu1 %3297 }
 0x240   : > { %14535 = vst [vmem:[#allocation96_spill] sm:$0xff] %v10959_v22  ;;  %v10974_v33 = vpop.permute.xlu0 %2424  ;;  %v2119_v22 = vor.u32 %v2118_v63, %v2115_v58  ;;  %v1943_v58 = vsel %vm9481_vm3, %v1938_v18, %v1942_v60  ;;  %v2188_v18 = vshll.u32 %v10823_v16, 16  ;;  %v3165_v60 = vrot.slane %v10463_v44, 5 }
 0x241   : > { %1484 = vrot.lane.b32.xlu1 %v8044_v53, %s9016_s10  ;;  %14538 = vst [vmem:[#allocation99_spill] sm:$0xff] %v10974_v33  ;;  %v11039_v33 = vld [vmem:[#allocation2 + $0xd4] sm:$0x1] }
 0x242   : > { %1573 = vrot.lane.b32.xlu0 %v10943_v9, %s9015_s26  ;;  %v2120_v63 = vrot.slane %v2119_v22, 4  ;;  %v2135_v22 = vsel %vm9481_vm3, %v2130_v56, %v2134_v11  ;;  %v3167_v28 = vrot.slane %v3165_v60, 4 }
 0x243   : > { %v10972_v17 = vpop.permute.xlu1 %3313 }
 0x244   : > { %14537 = vst [vmem:[#allocation98_spill] sm:$0xff] %v10972_v17  ;;  %v10983_v23 = vpop.permute.xlu0 %3299  ;;  %v1933_v17 = vsel %vm9481_vm3, %v1928_v13, %v1932_v26  ;;  %v2125_v26 = vsel %vm9481_vm3, %v2120_v63, %v2124_v38  ;;  %v2185_v13 = vshrl.u32 %v10823_v16, 16  ;;  %v14542_v38 = vshll.u32 %v10463_v44, 16  ;;  %v11030_v44 = vld [vmem:[#allocation2 + $0x68] sm:$0x1] }
 0x245   : > { %1538 = vrot.lane.b32.xlu1 %v10943_v9, %s9017_s12  ;;  %14539 = vst [vmem:[#allocation100_spill] sm:$0xff] %v10983_v23  ;;  %v10997_v2 = vcombine.low %v1933_v17, %v1943_v58  ;;  %v1762_v17 = vld [vmem:[#allocation2 + $0x74] sm:$0x1]  ;;  %v2008_v58 = vrot.slane %v14543_v54, 4  ;;  %v11020_v11 = vcombine.low %v2125_v26, %v2135_v22  ;;  %v2190_v54 = vrot.slane %v2188_v18, 5 }
 0x246   : > { %1589 = vrot.lane.b32.xlu0 %v8044_v53, %s9015_s26  ;;  %v11012_v32 = vrot.slane %v14542_v38, 5  ;;  %v2187_v38 = vrot.slane %v2185_v13, 4  ;;  %v2012_v22 = vshll.u32 %v1762_v17, 16  ;;  %v3168_v25 = vrot.slane %v1762_v17, 5 }
 0x247   : > { %v10981_v21 = vpop.permute.xlu1 %1501  ;;  %14544 = vst [vmem:[#allocation103_spill] sm:$0xff] %v11020_v11  ;;  %v3161_v61 = vrot.slane %v11030_v44, 5  ;;  %v14547_v13 = vshll.u32 %v10825_v62, 16  ;;  %v1969_v17 = vshrl.u32 %v10933_v47, 16 }
 0x248   : > { %v10995_v23 = vpop.permute.xlu0 %3315  ;;  %v2009_v16 = vor.u32 %v2008_v58, %v11012_v32  ;;  %v1972_v58 = vshll.u32 %v10933_v47, 16  ;;  %v2014_v59 = vrot.slane %v2012_v22, 5  ;;  %v2204_v47 = vshll.u32 %v11039_v33, 16 }
 0x249   : > { %1554 = vrot.lane.b32.xlu1 %v8044_v53, %s9017_s12  ;;  %14541 = vst [vmem:[#allocation102_spill] sm:$0xff] %v10995_v23  ;;  %v1995_v53 = vrot.slane %v1993_v8, 4  ;;  %v3158_v8 = vrot.slane %v10441_v30, 5  ;;  %v8125_v23 = vrot.slane %v10478_v4, 9  ;;  %v8124_v4 = vrot.slane %v10447_v55, 9 }
 0x24a   : > { %2350 = vrot.lane.b32.xlu0 %v10997_v2, %s9019_s22  ;;  %v2196_v18 = vrot.slane %v14547_v13, 5  ;;  %v3169_v13 = vsel %vm9507_vm9, %v3167_v28, %v3168_v25  ;;  %v1974_v22 = vrot.slane %v1972_v58, 5 }
 0x24b   : > { %v10993_v51 = vpop.permute.xlu1 %1517  ;;  %v1999_v26 = vor.u32 %v1998_v35, %v1995_v53  ;;  %v3160_v46 = vrot.slane %v3158_v8, 4  ;;  %v14548_v53 = vshrl.u32 %v10825_v62, 16  ;;  %v3159_v7 = vsel %vm9507_vm9, %v8124_v4, %v3158_v8 }
 0x24c   : > { %14540 = vst [vmem:[#allocation101_spill] sm:$0xff] %v10993_v51  ;;  %v11018_v56 = vpop.permute.xlu0 %1466  ;;  %v2191_v51 = vor.u32 %v2190_v54, %v2187_v38  ;;  %v1971_v54 = vrot.slane %v1969_v17, 4 }
 0x24d   : > { %2317 = vrot.lane.b32.xlu1 %v10997_v2, %s9016_s10  ;;  %v2200_v35 = vrot.slane %v14548_v53, 4  ;;  %v2000_v55 = vrot.slane %v1999_v26, 4  ;;  %v2010_v53 = vrot.slane %v2009_v16, 4  ;;  %v3162_v26 = vsel %vm9507_vm9, %v3160_v46, %v3161_v61 }
 0x24e   : > { %2366 = vrot.lane.b32.xlu0 %v11020_v11, %s9019_s22  ;;  %v2192_v46 = vrot.slane %v2191_v51, 4  ;;  %v11081_v4 = vcombine.low %v3159_v7, %v3162_v26  ;;  %v14308_v51 = vshrl.u32 %v10957_v39, 16  ;;  %v1975_v26 = vor.u32 %v1974_v22, %v1971_v54 }
 0x24f   : > { %v11016_v63 = vpop.permute.xlu1 %1571  ;;  %v2201_v38 = vor.u32 %v2200_v35, %v2196_v18  ;;  %v2005_v28 = vsel %vm9481_vm3, %v2000_v55, %v11012_v32  ;;  %v2015_v61 = vsel %vm9481_vm3, %v2010_v53, %v2014_v59  ;;  %v2206_v35 = vrot.slane %v2204_v47, 5 }
 0x250   : > { %v11035_v37 = vpop.permute.xlu0 %1482  ;;  %14550 = vst [vmem:[#allocation107_spill] sm:$0xff] %v11081_v4  ;;  %v11093_v55 = vcombine.low %v2005_v28, %v2015_v61  ;;  %v2176_v28 = vrot.slane %v14308_v51, 4 }
 0x251   : > { %2333 = vrot.lane.b32.xlu1 %v11020_v11, %s9016_s10  ;;  %14546 = vst [vmem:[#allocation105_spill] sm:$0xff] %v11035_v37  ;;  %v3166_v37 = vsel %vm9507_vm9, %v8125_v23, %v3165_v60  ;;  %v2161_v23 = vshrl.u32 %v10955_v42, 16  ;;  %v2164_v60 = vshll.u32 %v10955_v42, 16  ;;  %v2202_v58 = vrot.slane %v2201_v38, 4 }
 0x252   : > { %2416 = vrot.lane.b32.xlu0 %v10997_v2, %s9015_s26  ;;  %v11069_v25 = vcombine.low %v3166_v37, %v3169_v13  ;;  %v14551_v37 = vshll.u32 %v10441_v30, 16  ;;  %v14552_v13 = vshrl.u32 %v10441_v30, 16  ;;  %v14307_v42 = vshll.u32 %v10957_v39, 16  ;;  %14553 = vst [vmem:[#allocation108_spill] sm:$0xff] %v11093_v55 }
 0x253   : > { %v11033_v3 = vpop.permute.xlu1 %1587  ;;  %v2163_v59 = vrot.slane %v2161_v23, 4  ;;  %v2166_v7 = vrot.slane %v2164_v60, 5  ;;  %v2197_v30 = vsel %vm9481_vm3, %v2192_v46, %v2196_v18  ;;  %v1988_v38 = vshll.u32 %v11030_v44, 16  ;;  %v11112_v18 = vld [vmem:[#allocation2 + $0xc8] sm:$0x1] }
 0x254   : > { %14545 = vst [vmem:[#allocation104_spill] sm:$0xff] %v11033_v3  ;;  %v11057_v48 = vpop.permute.xlu0 %1536  ;;  %v1980_v17 = vrot.slane %v14551_v37, 5  ;;  %v1984_v32 = vrot.slane %v14552_v13, 4  ;;  %v2207_v37 = vsel %vm9481_vm3, %v2202_v58, %v2206_v35  ;;  %v2172_v23 = vrot.slane %v14307_v42, 5 }
 0x255   : > { %2383 = vrot.lane.b32.xlu1 %v10997_v2, %s9017_s12  ;;  %v8065_v22 = vcombine.low %v2197_v30, %v2207_v37  ;;  %v1976_v60 = vrot.slane %v1975_v26, 4  ;;  %v2167_v46 = vor.u32 %v2166_v7, %v2163_v59  ;;  %v1990_v35 = vrot.slane %v1988_v38, 5 }
 0x256   : > { %2432 = vrot.lane.b32.xlu0 %v11020_v11, %s9015_s26  ;;  %v1985_v13 = vor.u32 %v1984_v32, %v1980_v17  ;;  %v2177_v58 = vor.u32 %v2176_v28, %v2172_v23  ;;  %v2180_v32 = vshll.u32 %v11112_v18, 16  ;;  %v1777_v38 = vshrl.u32 %v10854_v31, 16 }
 0x257   : > { %v11055_v3 = vpop.permute.xlu1 %2348  ;;  %v1981_v30 = vsel %vm9481_vm3, %v1976_v60, %v1980_v17  ;;  %v1780_v37 = vshll.u32 %v10854_v31, 16  ;;  %v14311_v28 = vshrl.u32 %v10856_v19, 16 }
 0x258   : > { %v11079_v16 = vpop.permute.xlu0 %1552  ;;  %v1986_v61 = vrot.slane %v1985_v13, 4  ;;  %v2178_v7 = vrot.slane %v2177_v58, 4  ;;  %v2182_v26 = vrot.slane %v2180_v32, 5  ;;  %v14310_v13 = vshll.u32 %v10856_v19, 16 }
 0x259   : > { %2399 = vrot.lane.b32.xlu1 %v11020_v11, %s9017_s12  ;;  %v2168_v11 = vrot.slane %v2167_v46, 4  ;;  %v1779_v31 = vrot.slane %v1777_v38, 4  ;;  %v1782_v58 = vrot.slane %v1780_v37, 5 }
 0x25a   : > { %3307 = vrot.lane.b32.xlu0 %v11069_v25, %s9016_s10  ;;  %v1991_v59 = vsel %vm9481_vm3, %v1986_v61, %v1990_v35  ;;  %v2183_v35 = vsel %vm9481_vm3, %v2178_v7, %v2182_v26  ;;  %v1788_v32 = vrot.slane %v14310_v13, 5  ;;  %v8910_v7 = vld [vmem:[#allocation2 + $0xb8] sm:$0xf] }
 0x25b   : > { %v11077_v8 = vpop.permute.xlu1 %2364  ;;  %v11141_v60 = vcombine.low %v1981_v30, %v1991_v59  ;;  %v2173_v61 = vsel %vm9481_vm3, %v2168_v11, %v2172_v23  ;;  %v1792_v30 = vrot.slane %v14311_v28, 4  ;;  %v11156_v23 = vld [vmem:[#allocation2 + $0xb4] sm:$0xe]  ;;  %v3207_v26 = vrot.slane %v8910_v7, 5 }
 0x25c   : > { %14549 = vst [vmem:[#allocation106_spill] sm:$0xff] %v11077_v8  ;;  %v11097_v47 = vpop.permute.xlu0 %2315  ;;  %v8064_v11 = vcombine.low %v2173_v61, %v2183_v35  ;;  %14558 = vst [vmem:[#allocation113_spill] sm:$0xff] %v11156_v23  ;;  %v1783_v38 = vor.u32 %v1782_v58, %v1779_v31  ;;  %v1606_v28 = vsel %vm1597_vm8, %v10001_v6, %v10476_v41  ;;  %v14560_v61 = vld [vmem:[#allocation22_spill] sm:$0xff]  ;;  %v3214_v6 = vrot.slane %v10957_v39, 5 }
 0x25d   : > { %3305 = vrot.lane.b32.xlu1 %v11081_v4, %s9016_s10  ;;  %14557 = vst [vmem:[#allocation112_spill] sm:$0xff] %v11141_v60  ;;  %v1793_v37 = vor.u32 %v1792_v30, %v1788_v32  ;;  %v1609_v35 = vsel %vm1597_vm8, %v14560_v61, %v10843_v57  ;;  %v1652_v31 = vsel %vm1646_vm10, %v1606_v28, %v10872_v24  ;;  %v3209_v58 = vrot.slane %v3207_v26, 4 }
 0x25e   : > { %2323 = vrot.lane.b32.xlu0 %v11093_v55, %s9016_s10  ;;  %v3210_v30 = vrot.slane %v10834_v1, 5  ;;  %v1784_v41 = vrot.slane %v1783_v38, 4  ;;  %v1685_v1 = vsel %vm1679_vm2, %v1652_v31, %v10763_v43  ;;  %v3216_v38 = vrot.slane %v3214_v6, 4 }
 0x25f   : > { %v11095_v53 = vpop.permute.xlu1 %2414  ;;  %v1794_v57 = vrot.slane %v1793_v37, 4 }
 0x260   : > { %v11116_v44 = vpop.permute.xlu0 %2331 }
 0x261   : > { %2356 = vrot.lane.b32.xlu1 %v11093_v55, %s9019_s22  ;;  %14555 = vst [vmem:[#allocation110_spill] sm:$0xff] %v11116_v44  ;;  %v8131_v44 = vrot.slane %v11156_v23, 9  ;;  %v1654_v23 = vsel %vm1646_vm10, %v1609_v35, %v10701_v14  ;;  %v3211_v14 = vsel %vm9507_vm9, %v3209_v58, %v3210_v30 }
 0x262   : > { %2389 = vrot.lane.b32.xlu0 %v11093_v55, %s9017_s12 }
 0x263   : > { %v11114_v54 = vpop.permute.xlu1 %2430 }
 0x264   : > { %14554 = vst [vmem:[#allocation109_spill] sm:$0xff] %v11114_v54  ;;  %v11124_v51 = vpop.permute.xlu0 %2381  ;;  %v11178_v54 = vld [vmem:[#allocation2 + $0xc0] sm:$0xe] }
 0x265   : > { %2372 = vrot.lane.b32.xlu1 %v8065_v22, %s9019_s22  ;;  %14561 = vst [vmem:[#allocation22_spill] sm:$0xff] %v11178_v54  ;;  %v8132_v39 = vrot.slane %v11178_v54, 9 }
 0x266   : > { %2405 = vrot.lane.b32.xlu0 %v8065_v22, %s9017_s12 }
 0x267   : > { %v11122_v42 = vpop.permute.xlu1 %1464 }
 0x268   : > { %v11139_v17 = vpop.permute.xlu0 %2397 }
 0x269   : > { %2422 = vrot.lane.b32.xlu1 %v11093_v55, %s9015_s26  ;;  %14556 = vst [vmem:[#allocation111_spill] sm:$0xff] %v11139_v17  ;;  %v3217_v55 = vrot.slane %v11112_v18, 5 }
 0x26a   : > { %2354 = vrot.lane.b32.xlu0 %v11141_v60, %s9019_s22 }
 0x26b   : > { %v11137_v46 = vpop.permute.xlu1 %1480 }
 0x26c   : > { %v11154_v8 = vpop.permute.xlu0 %1499 }
 0x26d   : > { %2438 = vrot.lane.b32.xlu1 %v8065_v22, %s9015_s26  ;;  %v11158_v22 = vld [vmem:[#allocation2 + $0x8] sm:$0x1] }
 0x26e   : > { %14559 = vst [vmem:[#allocation114_spill] sm:$0xff] %v11158_v22  ;;  %2370 = vrot.lane.b32.xlu0 %v8064_v11, %s9019_s22  ;;  %v1796_v13 = vshll.u32 %v11158_v22, 16 }
 0x26f   : > { %v1535_v59 = vpop.permute.xlu1 %1534 }
 0x270   : > { %v11172_v19 = vpop.permute.xlu0 %1515  ;;  %v1798_v61 = vrot.slane %v1796_v13, 5  ;;  %v1687_v24 = vsel %vm1679_vm2, %v1654_v23, %v1535_v59  ;;  %v3208_v13 = vsel %vm9507_vm9, %v8131_v44, %v3207_v26  ;;  %v1789_v59 = vsel %vm9481_vm3, %v1784_v41, %v1788_v32  ;;  %v14565_v32 = vld [vmem:[#allocation27_spill] sm:$0xff] }
 0x271   : > { %2321 = vrot.lane.b32.xlu1 %v11141_v60, %s9016_s10  ;;  %v1720_v43 = vsel %vm1712_vm1, %v1687_v24, %v11016_v63  ;;  %v11209_v44 = vcombine.low %v3208_v13, %v3211_v14  ;;  %v3215_v26 = vsel %vm9507_vm9, %v8132_v39, %v3214_v6  ;;  %v3218_v63 = vsel %vm9507_vm9, %v3216_v38, %v3217_v55  ;;  %v14566_v39 = vld [vmem:[#allocation18_spill] sm:$0xff] }
 0x272   : > { %2420 = vrot.lane.b32.xlu0 %v11141_v60, %s9015_s26  ;;  %v1799_v23 = vsel %vm9481_vm3, %v1794_v57, %v1798_v61  ;;  %v11224_v31 = vcombine.low %v3215_v26, %v3218_v63  ;;  %v14570_v57 = vld [vmem:[#allocation28_spill] sm:$0xff]  ;;  %v14571_v61 = vld [vmem:[#allocation42_spill] sm:$0xff]  ;;  %v14577_v63 = vld [vmem:[#allocation29_spill] sm:$0xff] }
 0x273   : > { %v11170_v7 = vpop.permute.xlu1 %1550  ;;  %14563 = vst [vmem:[#allocation116_spill] sm:$0xff] %v11209_v44 }
 0x274   : > { %v1570_v17 = vpop.permute.xlu0 %1569  ;;  %14564 = vst [vmem:[#allocation117_spill] sm:$0xff] %v11224_v31 }
 0x275   : > { %2337 = vrot.lane.b32.xlu1 %v8064_v11, %s9016_s10  ;;  %v1718_v22 = vsel %vm1712_vm1, %v1685_v1, %v1570_v17 }
 0x276   : > { %2436 = vrot.lane.b32.xlu0 %v8064_v11, %s9015_s26  ;;  %8611 = vmatprep.mubr.msk.bf16.mxu0 %vm2620_vm6, %v1718_v22  ;;  %v8048_v22 = vcombine.low %v1789_v59, %v1799_v23 }
 0x277   : > { %v11187_v28 = vpop.permute.xlu1 %2313  ;;  %8612 = vmatmul.mubr.msk.bf16.gmra.mxu0 %vm2620_vm6, %v1720_v43 }
 0x278   : > { %v11207_v17 = vpop.permute.xlu0 %1585  ;;  %v2446_v55 = vsel %vm1597_vm8, %v8048_v22, %v14566_v39  ;;  %v8898_v22 = vld [vmem:[%s14214_s4 + $0x50] sm:$0xff]  }
 0x279   : > { %2387 = vrot.lane.b32.xlu1 %v11141_v60, %s9017_s12  ;;  %v2493_v41 = vsel %vm1646_vm10, %v2446_v55, %v10939_v20  ;;  %v14573_v20 = vld [vmem:[#allocation44_spill] sm:$0xff]  ;;  %v3221_v55 = vrot.slane %v10825_v62, 5 }
 0x27a   : > { %3319 = vrot.lane.b32.xlu0 %v11209_v44, %s9016_s10 }
 0x27b   : > { %v11205_v18 = vpop.permute.xlu1 %2329 }
 0x27c   : > { %14562 = vst [vmem:[#allocation115_spill] sm:$0xff] %v11205_v18  ;;  %v11222_v35 = vpop.permute.xlu0 %2346 }
 0x27d   : > { %2403 = vrot.lane.b32.xlu1 %v8064_v11, %s9017_s12  ;;  %v14567_v11 = vld [vmem:[#allocation12_spill] sm:$0xff] }
 0x27e   : > { %3326 = vrot.lane.b32.xlu0 %v14565_v32, %s9019_s22  ;;  %v2449_v58 = vsel %vm1597_vm8, %v14567_v11, %v10910_v12  ;;  %v2525_v12 = vsel %vm1679_vm2, %v2493_v41, %v10845_v34  ;;  %v8897_v34 = vld [vmem:[%s14214_s4 + $0x58] sm:$0x3f]   ;;  %v14578_v11 = vld [vmem:[#allocation31_spill] sm:$0xff] }
 0x27f   : > { %v2380_v37 = vpop.permute.xlu1 %2379  ;;  %v2495_v24 = vsel %vm1646_vm10, %v2449_v58, %v10782_v40  ;;  %8799 = vmatprep.subr.msk.bf16.mxu1 %vm2653_vm14, %v8897_v34  ;;  %v3637_v26 = vsel %vm2653_vm14, %v8897_v34, 0  ;;  %v14579_v58 = vld [vmem:[#allocation43_spill] sm:$0xff] }
 0x280   : > { %v11237_v6 = vpop.permute.xlu0 %2362  ;;  %v2527_v1 = vsel %vm1679_vm2, %v2495_v24, %v2380_v37  ;;  %v11294_v41 = vld [vmem:[#allocation2 + $0xcc] sm:$0xe] }
 0x281   : > { %3321 = vrot.lane.b32.xlu1 %v11224_v31, %s9016_s10  ;;  %14569 = vst [vmem:[#allocation12_spill] sm:$0xff] %v11237_v6  ;;  %v2559_v43 = vsel %vm1712_vm1, %v2527_v1, %v11095_v53  ;;  %14580 = vst [vmem:[#allocation121_spill] sm:$0xff] %v11294_v41  ;;  %v8899_v24 = vld [vmem:[%s14214_s4 + $0x48] sm:$0xff]  }
 0x282   : > { %3330 = vrot.lane.b32.xlu0 %v14571_v61, %s9019_s22  ;;  %v14581_v34 = vld [vmem:[#allocation47_spill] sm:$0xff] }
 0x283   : > { %v11235_v30 = vpop.permute.xlu1 %2395 }
 0x284   : > { %14568 = vst [vmem:[#allocation18_spill] sm:$0xff] %v11235_v30  ;;  %v2413_v14 = vpop.permute.xlu0 %2412 }
 0x285   : > { %3328 = vrot.lane.b32.xlu1 %v14570_v57, %s9019_s22  ;;  %v2557_v38 = vsel %vm1712_vm1, %v2525_v12, %v2413_v14  ;;  %v8133_v14 = vrot.slane %v11294_v41, 9 }
 0x286   : > { %3334 = vrot.lane.b32.xlu0 %v10765_v52, %s9019_s22  ;;  %8567 = vmatprep.mubr.msk.bf16.mxu1 %vm2620_vm6, %v2557_v38  ;;  %v3223_v38 = vrot.slane %v3221_v55, 4 }
 0x287   : > { %v11248_v13 = vpop.permute.xlu1 %3301  ;;  %8568 = vmatmul.mubr.msk.bf16.vlgmr.msra.gmra.mxu1 %vm2620_vm6, %v2559_v43  ;;  %v3224_v43 = vrot.slane %v11039_v33, 5 }
 0x288   : > { %14572 = vst [vmem:[#allocation118_spill] sm:$0xff] %v11248_v13  ;;  %v11263_v59 = vpop.permute.xlu0 %2428  ;;  %8640 = vmatpush3.bf16.msra.mxu1 %v3637_v26  ;;  %v8900_v26 = vld [vmem:[%s14214_s4 + $0x40] sm:$0xff]  }
 0x289   : > { %3332 = vrot.lane.b32.xlu1 %v14573_v20, %s9019_s22  ;;  %14575 = vst [vmem:[#allocation119_spill] sm:$0xff] %v11263_v59  ;;  %8641 = vmatprep.subr.bf16.mxu1 %v8898_v22  ;;  %v3225_v33 = vsel %vm9507_vm9, %v3223_v38, %v3224_v43  ;;  %v8911_v13 = vld [vmem:[#allocation2 + $0x24] sm:$0xe]  ;;  %v14584_v43 = vld [vmem:[#allocation21_spill] sm:$0xff] }
 0x28a   : > { %3338 = vrot.lane.b32.xlu0 %v11081_v4, %s9019_s22  ;;  %v3928_v62 = vshll.u32 %v8911_v13, 16 }
 0x28b   : > { %v11261_v40 = vpop.permute.xlu1 %3317 }
 0x28c   : > { %14574 = vst [vmem:[#allocation44_spill] sm:$0xff] %v11261_v40  ;;  %v11274_v53 = vpop.permute.xlu0 %3303  ;;  %8642 = vmatpush3.bf16.msra.mxu1 %v8898_v22  ;;  %v3835_v40 = vld [vmem:[#allocation2 + $0x2c] sm:$0x3] }
 0x28d   : > { %3336 = vrot.lane.b32.xlu1 %v10811_v50, %s9019_s22  ;;  %14576 = vst [vmem:[#allocation120_spill] sm:$0xff] %v11274_v53  ;;  %8643 = vmatprep.subr.bf16.mxu1 %v8899_v24  ;;  %v3222_v53 = vsel %vm9507_vm9, %v8133_v14, %v3221_v55 }
 0x28e   : > { %3342 = vrot.lane.b32.xlu0 %v14577_v63, %s9019_s22  ;;  %v11331_v38 = vcombine.low %v3222_v53, %v3225_v33  ;;  %v3942_v53 = vshll.u32 %v3835_v40, 16 }
 0x28f   : > { %v11272_v23 = vpop.permute.xlu1 %1505 }
 0x290   : > { %v11287_v39 = vpop.permute.xlu0 %1470  ;;  %8644 = vmatpush3.bf16.msra.mxu1 %v8899_v24  ;;  %v8901_v24 = vld [vmem:[%s14214_s4 + $0x78] sm:$0x3f]   ;;  %14583 = vst [vmem:[#allocation123_spill] sm:$0xff] %v11331_v38 }
 0x291   : > { %3340 = vrot.lane.b32.xlu1 %v11069_v25, %s9019_s22  ;;  %8645 = vmatprep.subr.bf16.mxu1 %v8900_v26 }
 0x292   : > { %3346 = vrot.lane.b32.xlu0 %v14579_v58, %s9019_s22  ;;  %8800 = vmatprep.subr.msk.bf16.mxu0 %vm2653_vm14, %v8901_v24  ;;  %v8912_v58 = vld [vmem:[#allocation2 + $0x30] sm:$0xe] }
 0x293   : > { %v11285_v37 = vpop.permute.xlu1 %1521  ;;  %v3948_v32 = vshrl.u32 %v8912_v58, 16 }
 0x294   : > { %v11301_v12 = vpop.permute.xlu0 %1540  ;;  %8646 = vmatpush3.bf16.msra.mxu1 %v8900_v26  ;;  %v3836_v26 = vld [vmem:[#allocation2 + $0x38] sm:$0x3] }
 0x295   : > { %3344 = vrot.lane.b32.xlu1 %v14578_v11, %s9019_s22  ;;  %v3962_v18 = vshrl.u32 %v3836_v26, 16  ;;  %v3950_v6 = vrot.slane %v3948_v32, 5  ;;  %v8904_v32 = vld [vmem:[%s14214_s4 + $0x60] sm:$0xff]  }
 0x296   : > { %3350 = vrot.lane.b32.xlu0 %v10786_v15, %s9019_s22  ;;  %v3925_v15 = vshrl.u32 %v8911_v13, 16  ;;  %v3939_v13 = vshrl.u32 %v3835_v40, 16  ;;  %v3944_v40 = vrot.slane %v3942_v53, 6  ;;  %v14589_v53 = vld [vmem:[#allocation30_spill] sm:$0xff] }
 0x297   : > { %v11299_v1 = vpop.permute.xlu1 %1575  ;;  %v14590_v59 = vshrl.u32 %v14589_v53, 16  ;;  %v14591_v63 = vshll.u32 %v14589_v53, 16 }
 0x298   : > { %v11314_v49 = vpop.permute.xlu0 %1556  ;;  %v3927_v33 = vrot.slane %v3925_v15, 5  ;;  %v3941_v15 = vrot.slane %v3939_v13, 5 }
 0x299   : > { %3348 = vrot.lane.b32.xlu1 %v14581_v34, %s9019_s22  ;;  %v4712_v34 = vsel %vm2653_vm14, %v8901_v24, 0  ;;  %v3930_v24 = vrot.slane %v3928_v62, 6  ;;  %v8903_v62 = vld [vmem:[%s14214_s4 + $0x68] sm:$0xff]   ;;  %v3979_v11 = vrot.slane %v14590_v59, 5  ;;  %v3980_v60 = vrot.slane %v14591_v63, 6 }
 0x29a   : > { %3354 = vrot.lane.b32.xlu0 %v11224_v31, %s9019_s22  ;;  %v14586_v31 = vshll.u32 %v14584_v43, 16  ;;  %8680 = vmatpush3.bf16.msra.mxu0 %v4712_v34 }
 0x29b   : > { %v11312_v22 = vpop.permute.xlu1 %1591 }
 0x29c   : > { %v11329_v14 = vpop.permute.xlu0 %2319  ;;  %v3934_v54 = vrot.slane %v14586_v31, 6 }
 0x29d   : > { %3352 = vrot.lane.b32.xlu1 %v11209_v44, %s9019_s22  ;;  %v14585_v44 = vshrl.u32 %v14584_v43, 16 }
 0x29e   : > { %3361 = vrot.lane.b32.xlu0 %v14570_v57, %s9017_s12  ;;  %v3965_v57 = vshll.u32 %v3836_v26, 16  ;;  %v3931_v26 = vor.u32 %v3930_v24, %v3927_v33  ;;  %v3945_v33 = vor.u32 %v3944_v40, %v3941_v15  ;;  %v3988_v24 = vshll.u32 %v3837_v10, 16 }
 0x29f   : > { %v11327_v55 = vpop.permute.xlu1 %2352  ;;  %v3933_v41 = vrot.slane %v14585_v44, 5  ;;  %v8902_v44 = vld [vmem:[%s14214_s4 + $0x70] sm:$0xff]  }
 0x2a0   : > { %14582 = vst [vmem:[#allocation122_spill] sm:$0xff] %v11327_v55  ;;  %v11348_v43 = vpop.permute.xlu0 %2335  ;;  %8681 = vmatprep.subr.bf16.mxu0 %v8902_v44  ;;  %v3967_v13 = vrot.slane %v3965_v57, 6  ;;  %v3932_v63 = vrot.slane %v3931_v26, 4  ;;  %v3981_v55 = vor.u32 %v3980_v60, %v3979_v11 }
 0x2a1   : > { %3356 = vrot.lane.b32.xlu1 %v11331_v38, %s9019_s22  ;;  %14588 = vst [vmem:[#allocation124_spill] sm:$0xff] %v11348_v43  ;;  %v3935_v34 = vor.u32 %v3934_v54, %v3933_v41  ;;  %v3951_v38 = vshll.u32 %v8912_v58, 16  ;;  %8682 = vmatpush3.bf16.msra.mxu0 %v8902_v44  ;;  %v8913_v54 = vld [vmem:[#allocation2 + $0x3c] sm:$0xe] }
 0x2a2   : > { %3396 = vrot.lane.b32.xlu0 %v14571_v61, %s9015_s26  ;;  %v3971_v41 = vshrl.u32 %v8913_v54, 16  ;;  %8683 = vmatprep.subr.bf16.mxu0 %v8903_v62 }
 0x2a3   : > { %v11346_v31 = vpop.permute.xlu1 %2368  ;;  %v3937_v44 = vrot.slane %v3935_v34, 4  ;;  %v3953_v30 = vrot.slane %v3951_v38, 6  ;;  %v3985_v38 = vshrl.u32 %v3837_v10, 16  ;;  %v3936_v10 = vsel %vm10351_vm7, %v3932_v63, %v3935_v34 }
 0x2a4   : > { %14587 = vst [vmem:[#allocation21_spill] sm:$0xff] %v11346_v31  ;;  %v3974_v31 = vshll.u32 %v8913_v54, 16  ;;  %v11359_v43 = vpop.permute.xlu0 %2385  ;;  %v1618_v63 = vsel %vm1597_vm8, %v10564_v45, %v11018_v56 }
 0x2a5   : > { %3363 = vrot.lane.b32.xlu1 %v14571_v61, %s9017_s12  ;;  %v3964_v61 = vrot.slane %v3962_v18, 5  ;;  %8684 = vmatpush3.bf16.msra.mxu0 %v8903_v62  ;;  %v3973_v18 = vrot.slane %v3971_v41, 5  ;;  %v3954_v62 = vor.u32 %v3953_v30, %v3950_v6  ;;  %v3946_v53 = vsel %vm10351_vm7, %v3937_v44, %v3945_v33  ;;  %v14594_v41 = vld [vmem:[#allocation50_spill] sm:$0xff] }
 0x2a6   : > { %3398 = vrot.lane.b32.xlu0 %v14573_v20, %s9015_s26  ;;  %v3976_v57 = vrot.slane %v3974_v31, 6  ;;  %8685 = vmatprep.subr.bf16.mxu0 %v8904_v32  ;;  %v3987_v30 = vrot.slane %v3985_v38, 5  ;;  %v3990_v6 = vrot.slane %v3988_v24, 6  ;;  %v11385_v44 = vcombine.low %v3936_v10, %v3946_v53 }
 0x2a7   : > { %v11357_v58 = vpop.permute.xlu1 %2418  ;;  %v3968_v40 = vor.u32 %v3967_v13, %v3964_v61  ;;  %v3955_v33 = vrot.slane %v3954_v62, 4  ;;  %v3983_v61 = vrot.slane %v3981_v55, 4  ;;  %v14597_v62 = vld [vmem:[#allocation32_spill] sm:$0xff] }
 0x2a8   : > { %v11374_v54 = vpop.permute.xlu0 %2401  ;;  %v3977_v31 = vor.u32 %v3976_v57, %v3973_v18  ;;  %v3991_v13 = vor.u32 %v3990_v6, %v3987_v30  ;;  %v14599_v6 = vld [vmem:[#allocation45_spill] sm:$0xff] }
 0x2a9   : > { %4366 = vrot.lane.b32.xlu1 %v10899_v36, %s9016_s10  ;;  %v14593_v36 = vld [vmem:[#allocation49_spill] sm:$0xff]  ;;  %8686 = vmatpush3.bf16.msra.mxu0 %v8904_v32 }
 0x2aa   : > { %v3960_v15 = vrot.slane %v14593_v36, 4  ;;  %4401 = vrot.lane.b32.xlu0 %v14594_v41, %s9019_s22  ;;  %v3959_v11 = vsel %vm10351_vm7, %v3955_v33, %v14593_v36  ;;  %v3978_v34 = vrot.slane %v3977_v31, 4  ;;  %v14595_v32 = vld [vmem:[#allocation37_spill] sm:$0xff]  ;;  %v1615_v36 = vsel %vm1597_vm8, %v14597_v62, %v11122_v42  ;;  %v14605_v62 = vld [vmem:[#allocation58_spill] sm:$0xff] }
 0x2ab   : > { %v11372_v59 = vpop.permute.xlu1 %2434  ;;  %v1612_v18 = vsel %vm1597_vm8, %v14595_v32, %v10721_v29  ;;  %v3992_v29 = vsel %vm10351_vm7, %v3983_v61, %v3991_v13  ;;  %v1658_v56 = vsel %vm1646_vm10, %v1615_v36, %v10981_v21  ;;  %v1624_v21 = vsel %vm1597_vm8, %v10943_v9, %v11287_v39  ;;  %v14603_v32 = vld [vmem:[#allocation56_spill] sm:$0xff]  ;;  %v14606_v36 = vld [vmem:[#allocation79_spill] sm:$0xff] }
 0x2ac   : > { %14592 = vst [vmem:[#allocation30_spill] sm:$0xff] %v11372_v59  ;;  %v1504_v59 = vpop.permute.xlu0 %1503  ;;  %v3969_v60 = vsel %vm10351_vm7, %v3960_v15, %v3968_v40  ;;  %v1656_v53 = vsel %vm1646_vm10, %v1612_v18, %v11154_v8  ;;  %v3982_v45 = vsel %vm10351_vm7, %v3978_v34, %v3981_v55  ;;  %v14602_v34 = vld [vmem:[#allocation61_spill] sm:$0xff]  ;;  %v14604_v18 = vld [vmem:[#allocation55_spill] sm:$0xff] }
 0x2ad   : > { %4368 = vrot.lane.b32.xlu1 %v14594_v41, %s9016_s10  ;;  %v11403_v24 = vcombine.low %v3959_v11, %v3969_v60  ;;  %v1660_v15 = vsel %vm1646_vm10, %v1618_v63, %v1504_v59  ;;  %v1689_v8 = vsel %vm1679_vm2, %v1656_v53, %v11057_v48  ;;  %v11426_v10 = vcombine.low %v3982_v45, %v3992_v29  ;;  %v14607_v29 = vld [vmem:[#allocation81_spill] sm:$0xff] }
 0x2ae   : > { %4436 = vrot.lane.b32.xlu0 %v11385_v44, %s9017_s12  ;;  %v1693_v59 = vsel %vm1679_vm2, %v1660_v15, %v11301_v12  ;;  %v1627_v53 = vsel %vm1597_vm8, %v14606_v36, %v14605_v62  ;;  %v14608_v15 = vld [vmem:[#allocation40_spill] sm:$0xff] }
 0x2af   : > { %v1469_v26 = vpop.permute.xlu1 %1468  ;;  %14596 = vst [vmem:[#allocation49_spill] sm:$0xff] %v11403_v24  ;;  %14598 = vst [vmem:[#allocation50_spill] sm:$0xff] %v11426_v10  ;;  %v2452_v45 = vsel %vm1597_vm8, %v14608_v15, %v14607_v29  ;;  %v14619_v29 = vld [vmem:[#allocation74_spill] sm:$0xff]  ;;  %v14620_v15 = vld [vmem:[#allocation39_spill] sm:$0xff] }
 0x2b0   : > { %v11401_v38 = vpop.permute.xlu0 %1519  ;;  %v1621_v55 = vsel %vm1597_vm8, %v14599_v6, %v1469_v26  ;;  %v14600_v26 = vld [vmem:[#allocation65_spill] sm:$0xff]  ;;  %v14611_v6 = vld [vmem:[#allocation26_spill] sm:$0xff] }
 0x2b1   : > { %4403 = vrot.lane.b32.xlu1 %v11385_v44, %s9019_s22  ;;  %v1726_v33 = vsel %vm1712_vm1, %v1693_v59, %v14600_v26  ;;  %v1662_v61 = vsel %vm1646_vm10, %v1621_v55, %v11272_v23  ;;  %v14612_v55 = vld [vmem:[#allocation53_spill] sm:$0xff] }
 0x2b2   : > { %4471 = vrot.lane.b32.xlu0 %v11403_v24, %s9015_s26  ;;  %v1695_v13 = vsel %vm1679_vm2, %v1662_v61, %v14602_v34 }
 0x2b3   : > { %v11399_v57 = vpop.permute.xlu1 %1484  ;;  %v1728_v63 = vsel %vm1712_vm1, %v1695_v13, %v14604_v18  ;;  %v14614_v13 = vld [vmem:[#allocation77_spill] sm:$0xff]  ;;  %v14617_v18 = vld [vmem:[#allocation24_spill] sm:$0xff] }
 0x2b4   : > { %v1574_v40 = vpop.permute.xlu0 %1573 }
 0x2b5   : > { %4438 = vrot.lane.b32.xlu1 %v11403_v24, %s9017_s12  ;;  %v1722_v30 = vsel %vm1712_vm1, %v1689_v8, %v1574_v40  ;;  %v14609_v40 = vld [vmem:[#allocation35_spill] sm:$0xff] }
 0x2b6   : > { %3365 = vrot.lane.b32.xlu0 %v14573_v20, %s9017_s12  ;;  %8615 = vmatprep.mubr.msk.bf16.mxu0 %vm2620_vm6, %v1722_v30  ;;  %v2455_v59 = vsel %vm1597_vm8, %v14609_v40, %v11187_v28  ;;  %v14610_v30 = vld [vmem:[#allocation54_spill] sm:$0xff] }
 0x2b7   : > { %v1539_v42 = vpop.permute.xlu1 %1538  ;;  %v2499_v26 = vsel %vm1646_vm10, %v2455_v59, %v11055_v3 }
 0x2b8   : > { %v1691_v31 = vsel %vm1679_vm2, %v1658_v56, %v1539_v42  ;;  %v1590_v60 = vpop.permute.xlu0 %1589 }
 0x2b9   : > { %4473 = vrot.lane.b32.xlu1 %v11426_v10, %s9015_s26  ;;  %v1724_v48 = vsel %vm1712_vm1, %v1691_v31, %v11299_v1  ;;  %v14601_v1 = vld [vmem:[#allocation62_spill] sm:$0xff]  ;;  %v2497_v31 = vsel %vm1646_vm10, %v2452_v45, %v11222_v35  ;;  %v14621_v45 = vld [vmem:[#allocation73_spill] sm:$0xff] }
 0x2ba   : > { %8616 = vmatmul.mubr.msk.bf16.gmra.mxu0 %vm2620_vm6, %v1724_v48  ;;  %v1664_v11 = vsel %vm1646_vm10, %v1624_v21, %v14601_v1  ;;  %3400 = vrot.lane.b32.xlu0 %v10765_v52, %s9015_s26  ;;  %v1666_v48 = vsel %vm1646_vm10, %v1627_v53, %v14612_v55  ;;  %v14613_v21 = vld [vmem:[#allocation90_spill] sm:$0xff]  ;;  %v2529_v61 = vsel %vm1679_vm2, %v2497_v31, %v11124_v51  ;;  %v14615_v51 = vld [vmem:[#allocation75_spill] sm:$0xff]  ;;  %v14618_v53 = vld [vmem:[#allocation60_spill] sm:$0xff] }
 0x2bb   : > { %v11445_v12 = vpop.permute.xlu1 %1554  ;;  %8619 = vmatprep.mubr.msk.bf16.mxu0 %vm2620_vm6, %v1726_v33  ;;  %v1697_v23 = vsel %vm1679_vm2, %v1664_v11, %v14603_v32  ;;  %v1699_v28 = vsel %vm1679_vm2, %v1666_v48, %v10893_v27  ;;  %v14625_v55 = vld [vmem:[#allocation104_spill] sm:$0xff] }
 0x2bc   : > { %v11460_v39 = vpop.permute.xlu0 %2350  ;;  %v1730_v42 = vsel %vm1712_vm1, %v1697_v23, %v10927_v0  ;;  %v1630_v0 = vsel %vm1597_vm8, %v14611_v6, %v14610_v30  ;;  %v1732_v32 = vsel %vm1712_vm1, %v1699_v28, %v14615_v51  ;;  %v14616_v23 = vld [vmem:[#allocation87_spill] sm:$0xff]  ;;  %v14631_v51 = vld [vmem:[#allocation14_spill] sm:$0xff] }
 0x2bd   : > { %3367 = vrot.lane.b32.xlu1 %v10765_v52, %s9017_s12  ;;  %v1668_v35 = vsel %vm1646_vm10, %v1630_v0, %v14613_v21  ;;  %v14624_v6 = vld [vmem:[#allocation63_spill] sm:$0xff] }
 0x2be   : > { %3402 = vrot.lane.b32.xlu0 %v10811_v50, %s9015_s26  ;;  %v1701_v3 = vsel %vm1679_vm2, %v1668_v35, %v14614_v13 }
 0x2bf   : > { %v11458_v9 = vpop.permute.xlu1 %2317  ;;  %v1734_v62 = vsel %vm1712_vm1, %v1701_v3, %v11207_v17  ;;  %v1636_v17 = vsel %vm1597_vm8, %v14620_v15, %v14619_v29  ;;  %v14634_v29 = vld [vmem:[#allocation70_spill] sm:$0xff] }
 0x2c0   : > { %v11483_v8 = vpop.permute.xlu0 %2366  ;;  %v1672_v59 = vsel %vm1646_vm10, %v1636_v17, %v11172_v19  ;;  %v2458_v15 = vsel %vm1597_vm8, %v14634_v29, %v11097_v47  ;;  %v8915_v29 = vld [vmem:[#allocation2 + $0x4] sm:$0xf] }
 0x2c1   : > { %4370 = vrot.lane.b32.xlu1 %v11385_v44, %s9016_s10  ;;  %v1705_v0 = vsel %vm1679_vm2, %v1672_v59, %v11079_v16  ;;  %v2464_v59 = vsel %vm1597_vm8, %v10997_v2, %v11329_v14  ;;  %v8914_v2 = vld [vmem:[#allocation2 + $0x78] sm:$0xe] }
 0x2c2   : > { %8620 = vmatmul.mubr.msk.bf16.gmra.mxu0 %vm2620_vm6, %v1728_v63  ;;  %4405 = vrot.lane.b32.xlu0 %v11403_v24, %s9019_s22  ;;  %v1633_v63 = vsel %vm1597_vm8, %v14617_v18, %v14616_v23  ;;  %v1738_v28 = vsel %vm1712_vm1, %v1705_v0, %v1590_v60  ;;  %v14632_v18 = vld [vmem:[#allocation17_spill] sm:$0xff]  ;;  %v4086_v14 = vshrl.u32 %v8914_v2, 16 }
 0x2c3   : > { %v11479_v56 = vpop.permute.xlu1 %2333  ;;  %8623 = vmatprep.mubr.msk.bf16.mxu0 %vm2620_vm6, %v1730_v42  ;;  %v1670_v42 = vsel %vm1646_vm10, %v1633_v63, %v14621_v45 }
 0x2c4   : > { %v2417_v1 = vpop.permute.xlu0 %2416  ;;  %v1703_v40 = vsel %vm1679_vm2, %v1670_v42, %v11170_v7  ;;  %v14626_v7 = vld [vmem:[#allocation34_spill] sm:$0xff]  ;;  %v2501_v42 = vsel %vm1646_vm10, %v2458_v15, %v11460_v39  ;;  %v3102_v15 = vrot.slane %v8915_v29, 5 }
 0x2c5   : > { %4372 = vrot.lane.b32.xlu1 %v11403_v24, %s9016_s10  ;;  %v2561_v34 = vsel %vm1712_vm1, %v2529_v61, %v2417_v1  ;;  %v1736_v48 = vsel %vm1712_vm1, %v1703_v40, %v14625_v55  ;;  %v1639_v19 = vsel %vm1597_vm8, %v14626_v7, %v11137_v46  ;;  %v14629_v46 = vld [vmem:[#allocation101_spill] sm:$0xff]  ;;  %v14635_v40 = vld [vmem:[#allocation66_spill] sm:$0xff]  ;;  %v2533_v47 = vsel %vm1679_vm2, %v2501_v42, %v11359_v43 }
 0x2c6   : > { %4440 = vrot.lane.b32.xlu0 %v11426_v10, %s9017_s12  ;;  %8571 = vmatprep.mubr.msk.bf16.mxu1 %vm2620_vm6, %v2561_v34  ;;  %v1674_v60 = vsel %vm1646_vm10, %v1639_v19, %v14629_v46  ;;  %v4089_v43 = vshll.u32 %v8914_v2, 16  ;;  %v4088_v42 = vrot.slane %v4086_v14, 5 }
 0x2c7   : > { %v2384_v33 = vpop.permute.xlu1 %2383  ;;  %v1707_v1 = vsel %vm1679_vm2, %v1674_v60, %v11445_v12 }
 0x2c8   : > { %v2531_v11 = vsel %vm1679_vm2, %v2499_v26, %v2384_v33  ;;  %v11530_v36 = vpop.permute.xlu0 %2432  ;;  %v14627_v26 = vld [vmem:[#allocation105_spill] sm:$0xff]  ;;  %v14628_v33 = vld [vmem:[#allocation59_spill] sm:$0xff]  ;;  %v1740_v3 = vsel %vm1712_vm1, %v1707_v1, %v11312_v22 }
 0x2c9   : > { %4407 = vrot.lane.b32.xlu1 %v11426_v10, %s9019_s22  ;;  %v2563_v27 = vsel %vm1712_vm1, %v2531_v11, %v11357_v58  ;;  %v1642_v61 = vsel %vm1597_vm8, %v14628_v33, %v14627_v26  ;;  %v14637_v26 = vld [vmem:[#allocation67_spill] sm:$0xff] }
 0x2ca   : > { %8572 = vmatmul.mubr.msk.bf16.gmra.mxu1 %vm2620_vm6, %v2563_v27  ;;  %8624 = vmatmul.mubr.msk.bf16.gmra.mxu0 %vm2620_vm6, %v1732_v32  ;;  %v1676_v16 = vsel %vm1646_vm10, %v1642_v61, %v11401_v38  ;;  %v14630_v38 = vld [vmem:[#allocation48_spill] sm:$0xff] }
 0x2cb   : > { %v11528_v58 = vpop.permute.xlu1 %2399  ;;  %8627 = vmatprep.mubr.msk.bf16.mxu0 %vm2620_vm6, %v1734_v62  ;;  %4475 = vrot.lane.b32.xlu0 %v14618_v53, %s9015_s26  ;;  %v1709_v27 = vsel %vm1679_vm2, %v1676_v16, %v11314_v49  ;;  %v1645_v13 = vsel %vm1597_vm8, %v14630_v38, %v11399_v57 }
 0x2cc   : > { %v11548_v30 = vpop.permute.xlu0 %3307  ;;  %v1742_v32 = vsel %vm1712_vm1, %v1709_v27, %v14631_v51  ;;  %v1678_v57 = vsel %vm1646_vm10, %v1645_v13, %v11285_v37  ;;  %v14633_v37 = vld [vmem:[#allocation13_spill] sm:$0xff] }
 0x2cd   : > { %4442 = vrot.lane.b32.xlu1 %v14618_v53, %s9017_s12  ;;  %14623 = vst [vmem:[#allocation32_spill] sm:$0xff] %v11548_v30  ;;  %v1711_v63 = vsel %vm1679_vm2, %v1678_v57, %v14632_v18  ;;  %v14639_v27 = vld [vmem:[#allocation89_spill] sm:$0xff]  ;;  %v14693_v30 = vld [vmem:[#allocation68_spill] sm:$0xff] }
 0x2ce   : > { %v1744_v62 = vsel %vm1712_vm1, %v1711_v63, %v14633_v37  ;;  %v14642_v57 = vld [vmem:[#allocation25_spill] sm:$0xff] }
 0x2cf   : > { %v11546_v31 = vpop.permute.xlu1 %3305  ;;  %3369 = vrot.lane.b32.xlu0 %v10811_v50, %s9017_s12  ;;  %v14644_v63 = vshll.u32 %v14642_v57, 16 }
 0x2d0   : > { %14622 = vst [vmem:[#allocation37_spill] sm:$0xff] %v11546_v31  ;;  %v2324_v35 = vpop.permute.xlu0 %2323  ;;  %v14703_v31 = vld [vmem:[#allocation103_spill] sm:$0xff] }
 0x2d1   : > { %4477 = vrot.lane.b32.xlu1 %v14624_v6, %s9015_s26  ;;  %v4095_v37 = vrot.slane %v14644_v63, 6  ;;  %v3104_v63 = vrot.slane %v3102_v15, 4 }
 0x2d2   : > { %8628 = vmatmul.mubr.msk.bf16.gmra.mxu0 %vm2620_vm6, %v1736_v48  ;;  %v14636_v48 = vld [vmem:[#allocation51_spill] sm:$0xff] }
 0x2d3   : > { %v11563_v21 = vpop.permute.xlu1 %2356  ;;  %8631 = vmatprep.mubr.msk.bf16.mxu0 %vm2620_vm6, %v1738_v28  ;;  %3404 = vrot.lane.b32.xlu0 %v11081_v4, %s9015_s26  ;;  %v2461_v39 = vsel %vm1597_vm8, %v14636_v48, %v11458_v9  ;;  %v11638_v28 = vld [vmem:[#allocation2 + $0x80] sm:$0x3] }
 0x2d4   : > { %v2390_v34 = vpop.permute.xlu0 %2389  ;;  %v14638_v9 = vld [vmem:[#allocation122_spill] sm:$0xff]  ;;  %v4100_v60 = vshrl.u32 %v11638_v28, 16  ;;  %v4103_v1 = vshll.u32 %v11638_v28, 16 }
 0x2d5   : > { %3371 = vrot.lane.b32.xlu1 %v11081_v4, %s9017_s12  ;;  %v2503_v61 = vsel %vm1646_vm10, %v2461_v39, %v14638_v9  ;;  %v14647_v9 = vld [vmem:[#allocation97_spill] sm:$0xff]  ;;  %v14689_v4 = vld [vmem:[#allocation106_spill] sm:$0xff] }
 0x2d6   : > { %v4102_v48 = vrot.slane %v4100_v60, 5  ;;  %v4105_v39 = vrot.slane %v4103_v1, 6  ;;  %v14651_v60 = vld [vmem:[#allocation31_spill] sm:$0xff] }
 0x2d7   : > { %v11579_v11 = vpop.permute.xlu1 %2372  ;;  %3406 = vrot.lane.b32.xlu0 %v11069_v25, %s9015_s26 }
 0x2d8   : > { %v11595_v49 = vpop.permute.xlu0 %2405 }
 0x2d9   : > { %4374 = vrot.lane.b32.xlu1 %v11426_v10, %s9016_s10 }
 0x2da   : > { %8632 = vmatmul.mubr.msk.bf16.gmra.mxu0 %vm2620_vm6, %v1740_v3  ;;  %v14640_v3 = vld [vmem:[#allocation112_spill] sm:$0xff] }
 0x2db   : > { %v2423_v12 = vpop.permute.xlu1 %2422  ;;  %8635 = vmatprep.mubr.msk.bf16.mxu0 %vm2620_vm6, %v1742_v32  ;;  %4409 = vrot.lane.b32.xlu0 %v14618_v53, %s9019_s22  ;;  %v2470_v51 = vsel %vm1597_vm8, %v14640_v3, %v2324_v35  ;;  %v14645_v35 = vld [vmem:[#allocation99_spill] sm:$0xff] }
 0x2dc   : > { %v2355_v23 = vpop.permute.xlu0 %2354 }
 0x2dd   : > { %4376 = vrot.lane.b32.xlu1 %v14618_v53, %s9016_s10  ;;  %v2505_v7 = vsel %vm1646_vm10, %v2464_v59, %v2355_v23  ;;  %v14643_v23 = vshrl.u32 %v14642_v57, 16  ;;  %v4091_v59 = vrot.slane %v4089_v43, 6  ;;  %v14648_v43 = vld [vmem:[#allocation23_spill] sm:$0xff] }
 0x2de   : > { %v2537_v33 = vsel %vm1679_vm2, %v2505_v7, %v2390_v34  ;;  %v14641_v34 = vld [vmem:[#allocation29_spill] sm:$0xff]  ;;  %v11678_v7 = vld [vmem:[#allocation2 + $0x8c] sm:$0x3] }
 0x2df   : > { %v11604_v22 = vpop.permute.xlu1 %2438  ;;  %4444 = vrot.lane.b32.xlu0 %v14624_v6, %s9017_s12  ;;  %v4094_v18 = vrot.slane %v14643_v23, 5  ;;  %v4123_v57 = vshrl.u32 %v11678_v7, 16  ;;  %v4126_v23 = vshll.u32 %v11678_v7, 16 }
 0x2e0   : > { %v11618_v45 = vpop.permute.xlu0 %2370 }
 0x2e1   : > { %4411 = vrot.lane.b32.xlu1 %v14624_v6, %s9019_s22  ;;  %v4096_v1 = vor.u32 %v4095_v37, %v4094_v18 }
 0x2e2   : > { %8636 = vmatmul.mubr.msk.bf16.gmra.mxu0 %vm2620_vm6, %v1744_v62  ;;  %v11666_v62 = vld [vmem:[#allocation2] sm:$0xe] }
 0x2e3   : > { %v2322_v17 = vpop.permute.xlu1 %2321  ;;  %4479 = vrot.lane.b32.xlu0 %v14635_v40, %s9015_s26 }
 0x2e4   : > { %v2421_v55 = vpop.permute.xlu0 %2420  ;;  %v2467_v38 = vsel %vm1597_vm8, %v14639_v27, %v2322_v17  ;;  %v2569_v17 = vsel %vm1712_vm1, %v2537_v33, %v14645_v35  ;;  %v2509_v33 = vsel %vm1646_vm10, %v2470_v51, %v14647_v9  ;;  %v4092_v9 = vor.u32 %v4091_v59, %v4088_v42  ;;  %v14659_v42 = vld [vmem:[#allocation119_spill] sm:$0xff] }
 0x2e5   : > { %4446 = vrot.lane.b32.xlu1 %v14635_v40, %s9017_s12  ;;  %v2565_v19 = vsel %vm1712_vm1, %v2533_v47, %v2421_v55 }
 0x2e6   : > { %8575 = vmatprep.mubr.msk.bf16.mxu1 %vm2620_vm6, %v2565_v19  ;;  %v8916_v19 = vld [vmem:[#allocation2 + $0x84] sm:$0xe] }
 0x2e7   : > { %v11629_v0 = vpop.permute.xlu1 %2337  ;;  %3373 = vrot.lane.b32.xlu0 %v11069_v25, %s9017_s12  ;;  %v4109_v2 = vshrl.u32 %v8916_v19, 16  ;;  %v4112_v14 = vshll.u32 %v8916_v19, 16 }
 0x2e8   : > { %v11648_v46 = vpop.permute.xlu0 %2436 }
 0x2e9   : > { %4481 = vrot.lane.b32.xlu1 %v14637_v26, %s9015_s26  ;;  %v4111_v18 = vrot.slane %v4109_v2, 5  ;;  %v4114_v37 = vrot.slane %v4112_v14, 6 }
 0x2eb   : > { %v2388_v16 = vpop.permute.xlu1 %2387  ;;  %3408 = vrot.lane.b32.xlu0 %v14641_v34, %s9015_s26 }
 0x2ec   : > { %v2535_v13 = vsel %vm1679_vm2, %v2503_v61, %v2388_v16  ;;  %v11676_v55 = vpop.permute.xlu0 %3319  ;;  %v14649_v61 = vshrl.u32 %v14648_v43, 16 }
 0x2ed   : > { %3375 = vrot.lane.b32.xlu1 %v14641_v34, %s9017_s12  ;;  %v2567_v32 = vsel %vm1712_vm1, %v2535_v13, %v2423_v12  ;;  %v2507_v12 = vsel %vm1646_vm10, %v2467_v38, %v11563_v21  ;;  %14646 = vst [vmem:[#allocation45_spill] sm:$0xff] %v11676_v55  ;;  %v14650_v21 = vshll.u32 %v14648_v43, 16  ;;  %v8116_v38 = vrot.slane %v11666_v62, 9  ;;  %v14652_v13 = vld [vmem:[#allocation114_spill] sm:$0xff]  ;;  %v14688_v55 = vld [vmem:[#allocation72_spill] sm:$0xff] }
 0x2ee   : > { %8576 = vmatmul.mubr.msk.bf16.gmra.mxu1 %vm2620_vm6, %v2567_v32  ;;  %v4117_v16 = vrot.slane %v14649_v61, 5  ;;  %v3105_v3 = vrot.slane %v14652_v13, 5  ;;  %v14653_v32 = vld [vmem:[#allocation94_spill] sm:$0xff]  ;;  %v4106_v43 = vor.u32 %v4105_v39, %v4102_v48  ;;  %v4098_v13 = vrot.slane %v4096_v1, 4 }
 0x2ef   : > { %v11673_v47 = vpop.permute.xlu1 %2403  ;;  %8579 = vmatprep.mubr.msk.bf16.mxu1 %vm2620_vm6, %v2569_v17  ;;  %v4118_v27 = vrot.slane %v14650_v21, 6  ;;  %3410 = vrot.lane.b32.xlu0 %v14651_v60, %s9015_s26  ;;  %v2539_v51 = vsel %vm1679_vm2, %v2507_v12, %v14653_v32  ;;  %v14655_v17 = vld [vmem:[#allocation88_spill] sm:$0xff]  ;;  %v14657_v32 = vld [vmem:[#allocation93_spill] sm:$0xff]  ;;  %v4125_v48 = vrot.slane %v4123_v57, 5  ;;  %v4128_v39 = vrot.slane %v4126_v23, 6 }
 0x2f0   : > { %v11698_v35 = vpop.permute.xlu0 %3326  ;;  %v2541_v19 = vsel %vm1679_vm2, %v2509_v33, %v14655_v17  ;;  %v14656_v12 = vld [vmem:[#allocation84_spill] sm:$0xff]  ;;  %v3103_v33 = vsel %vm9507_vm9, %v8116_v38, %v3102_v15  ;;  %v3106_v14 = vsel %vm9507_vm9, %v3104_v63, %v3105_v3  ;;  %v4115_v17 = vor.u32 %v4114_v37, %v4111_v18  ;;  %v14662_v15 = vld [vmem:[#allocation41_spill] sm:$0xff] }
 0x2f1   : > { %4378 = vrot.lane.b32.xlu1 %v14624_v6, %s9016_s10  ;;  %v4119_v61 = vor.u32 %v4118_v27, %v4117_v16  ;;  %v2571_v21 = vsel %vm1712_vm1, %v2539_v51, %v14656_v12  ;;  %v14658_v6 = vld [vmem:[#allocation108_spill] sm:$0xff]  ;;  %v2573_v59 = vsel %vm1712_vm1, %v2541_v19, %v14659_v42  ;;  %v4093_v27 = vrot.slane %v4092_v9, 4  ;;  %v14664_v9 = vld [vmem:[#allocation18_spill] sm:$0xff] }
 0x2f2   : > { %v2473_v53 = vsel %vm1597_vm8, %v14658_v6, %v14657_v32  ;;  %v4107_v6 = vsel %vm10351_vm7, %v4098_v13, %v4106_v43  ;;  %v8917_v57 = vld [vmem:[#allocation2 + $0x90] sm:$0xe]  ;;  %v4129_v32 = vor.u32 %v4128_v39, %v4125_v48  ;;  %v8136_v42 = vcombine.low %v3103_v33, %v3106_v14  ;;  %v14669_v48 = vld [vmem:[#allocation109_spill] sm:$0xff]  ;;  %v14670_v33 = vld [vmem:[#allocation115_spill] sm:$0xff] }
 0x2f3   : > { %v11696_v29 = vpop.permute.xlu1 %3321  ;;  %4413 = vrot.lane.b32.xlu0 %v14635_v40, %s9019_s22  ;;  %v4121_v19 = vrot.slane %v4119_v61, 4  ;;  %v4132_v23 = vshrl.u32 %v8917_v57, 16  ;;  %v4135_v12 = vshll.u32 %v8917_v57, 16  ;;  %v14663_v3 = vld [vmem:[#allocation80_spill] sm:$0xff]  ;;  %v4097_v13 = vsel %vm10351_vm7, %v4093_v27, %v4096_v1 }
 0x2f4   : > { %14654 = vst [vmem:[#allocation65_spill] sm:$0xff] %v11696_v29  ;;  %v11723_v51 = vpop.permute.xlu0 %3330  ;;  %v2511_v63 = vsel %vm1646_vm10, %v2473_v53, %v14663_v3  ;;  %v14665_v18 = vld [vmem:[#allocation12_spill] sm:$0xff]  ;;  %v11742_v53 = vcombine.low %v4097_v13, %v4107_v6  ;;  %v11774_v13 = vld [vmem:[#allocation2 + $0x98] sm:$0x3]  ;;  %v14687_v29 = vld [vmem:[#allocation110_spill] sm:$0xff] }
 0x2f5   : > { %4380 = vrot.lane.b32.xlu1 %v14635_v40, %s9016_s10  ;;  %v2543_v43 = vsel %vm1679_vm2, %v2511_v63, %v14664_v9  ;;  %v4134_v3 = vrot.slane %v4132_v23, 5  ;;  %v4137_v63 = vrot.slane %v4135_v12, 6  ;;  %v11748_v9 = vld [vmem:[#allocation2 + $0xec] sm:$0x1]  ;;  %v14671_v14 = vld [vmem:[#allocation36_spill] sm:$0xff] }
 0x2f6   : > { %8580 = vmatmul.mubr.msk.bf16.gmra.mxu1 %vm2620_vm6, %v2571_v21  ;;  %v14661_v21 = vld [vmem:[#allocation85_spill] sm:$0xff]  ;;  %14666 = vst [vmem:[#allocation62_spill] sm:$0xff] %v11742_v53  ;;  %14667 = vst [vmem:[#allocation61_spill] sm:$0xff] %v11748_v9  ;;  %v2575_v39 = vsel %vm1712_vm1, %v2543_v43, %v14669_v48  ;;  %v2479_v27 = vsel %vm1597_vm8, %v14671_v14, %v14670_v33  ;;  %v14686_v40 = vld [vmem:[#allocation11_spill] sm:$0xff]  ;;  %v2482_v14 = vsel %vm1597_vm8, %v14688_v55, %v14687_v29 }
 0x2f7   : > { %v11718_v16 = vpop.permute.xlu1 %3328  ;;  %8583 = vmatprep.mubr.msk.bf16.mxu1 %vm2620_vm6, %v2573_v59  ;;  %v2476_v38 = vsel %vm1597_vm8, %v14662_v15, %v14661_v21  ;;  %4448 = vrot.lane.b32.xlu0 %v14637_v26, %s9017_s12  ;;  %v4116_v21 = vrot.slane %v4115_v17, 4  ;;  %v4130_v15 = vsel %vm10351_vm7, %v4121_v19, %v4129_v32  ;;  %v14672_v19 = vld [vmem:[#allocation38_spill] sm:$0xff]  ;;  %v8928_v9 = vld [vmem:[#allocation2 + $0x38] sm:$0x3] }
 0x2f8   : > { %v2513_v37 = vsel %vm1646_vm10, %v2476_v38, %v14665_v18  ;;  %v11744_v57 = vpop.permute.xlu0 %3334  ;;  %v14668_v18 = vld [vmem:[#allocation111_spill] sm:$0xff]  ;;  %v14673_v23 = vshrl.u32 %v14672_v19, 16  ;;  %v14676_v32 = vshll.u32 %v14672_v19, 16  ;;  %v14682_v19 = vld [vmem:[#allocation9_spill] sm:$0xff] }
 0x2f9   : > { %4415 = vrot.lane.b32.xlu1 %v14637_v26, %s9019_s22  ;;  %v2545_v1 = vsel %vm1679_vm2, %v2513_v37, %v14668_v18  ;;  %v4120_v17 = vsel %vm10351_vm7, %v4116_v21, %v4119_v61  ;;  %v11782_v21 = vld [vmem:[#allocation2 + $0xe0] sm:$0x1] }
 0x2fa   : > { %v2577_v6 = vsel %vm1712_vm1, %v2545_v1, %v11530_v36  ;;  %v4140_v12 = vrot.slane %v14673_v23, 5  ;;  %v11772_v43 = vcombine.low %v4120_v17, %v4130_v15  ;;  %v4141_v18 = vrot.slane %v14676_v32, 6  ;;  %v8919_v36 = vld [vmem:[#allocation2 + $0x9c] sm:$0xe]  ;;  %v14680_v23 = vld [vmem:[#allocation16_spill] sm:$0xff] }
 0x2fb   : > { %v11740_v59 = vpop.permute.xlu1 %3332  ;;  %4483 = vrot.lane.b32.xlu0 %v11742_v53, %s9015_s26  ;;  %v4155_v1 = vshrl.u32 %v8919_v36, 16  ;;  %v4158_v48 = vshll.u32 %v8919_v36, 16  ;;  %v11787_v15 = vsel %vm1597_vm8, %v8136_v42, %v14680_v23  ;;  %v4138_v17 = vor.u32 %v4137_v63, %v4134_v3  ;;  %v14685_v36 = vld [vmem:[#allocation64_spill] sm:$0xff] }
 0x2fc   : > { %14675 = vst [vmem:[#allocation55_spill] sm:$0xff] %v11772_v43  ;;  %v14683_v32 = vshll.u32 %v14682_v19, 16  ;;  %v2515_v42 = vsel %vm1646_vm10, %v2479_v27, %v14689_v4  ;;  %v2517_v3 = vsel %vm1646_vm10, %v2482_v14, %v11483_v8  ;;  %v4146_v63 = vshrl.u32 %v11774_v13, 16  ;;  %v14695_v14 = vld [vmem:[#allocation69_spill] sm:$0xff] }
 0x2fd   : > { %4450 = vrot.lane.b32.xlu1 %v11742_v53, %s9017_s12  ;;  %v4149_v23 = vshll.u32 %v11774_v13, 16  ;;  %v11817_v29 = vor.u32 %v4141_v18, %v4140_v12  ;;  %v4157_v4 = vrot.slane %v4155_v1, 5  ;;  %v4160_v27 = vrot.slane %v4158_v48, 6  ;;  %v14699_v48 = vld [vmem:[#allocation43_spill] sm:$0xff] }
 0x2fe   : > { %8584 = vmatmul.mubr.msk.bf16.gmra.mxu1 %vm2620_vm6, %v2575_v39  ;;  %v14677_v39 = vld [vmem:[#allocation7_spill] sm:$0xff]  ;;  %v11793_v38 = vrot.slane %v14683_v32, 6  ;;  %v14691_v32 = vld [vmem:[#allocation33_spill] sm:$0xff]  ;;  %v11824_v8 = vsel %vm1597_vm8, %v11069_v25, %v14693_v30  ;;  %v2549_v1 = vsel %vm1679_vm2, %v2517_v3, %v11374_v54  ;;  %v14700_v25 = vld [vmem:[#allocation30_spill] sm:$0xff]  ;;  %v4148_v3 = vrot.slane %v4146_v63, 5 }
 0x2ff   : > { %v11769_v37 = vpop.permute.xlu1 %3336  ;;  %8587 = vmatprep.mubr.msk.bf16.mxu1 %vm2620_vm6, %v2577_v6  ;;  %v14678_v33 = vshll.u32 %v14677_v39, 16  ;;  %v11789_v6 = vpop.permute.xlu0 %3338  ;;  %3377 = vrot.lane.b32.xlu0 %v14651_v60, %s9017_s12  ;;  %14694 = vst [vmem:[#allocation35_spill] sm:$0xff] %v11824_v8  ;;  %v14698_v12 = vshll.u32 %v14691_v32, 16  ;;  %v2581_v54 = vsel %vm1712_vm1, %v2549_v1, %v11648_v46  ;;  %v4151_v8 = vrot.slane %v4149_v23, 6 }
 0x300   : > { %14674 = vst [vmem:[#allocation56_spill] sm:$0xff] %v11769_v37  ;;  %14681 = vst [vmem:[#allocation79_spill] sm:$0xff] %v11789_v6 }
 0x301   : > { %v11780_v61 = vrot.slane %v14678_v33, 6  ;;  %14684 = vst [vmem:[#allocation81_spill] sm:$0xff] %v11793_v38  ;;  %v11798_v33 = vsel %vm1597_vm8, %v14686_v40, %v14685_v36  ;;  %4485 = vrot.lane.b32.xlu1 %v11772_v43, %s9015_s26  ;;  %v2547_v40 = vsel %vm1679_vm2, %v2515_v42, %v11528_v58  ;;  %v14692_v36 = vshrl.u32 %v14691_v32, 16  ;;  %v14696_v58 = vld [vmem:[#allocation27_spill] sm:$0xff]  ;;  %v14701_v32 = vld [vmem:[#allocation52_spill] sm:$0xff] }
 0x302   : > { %v11829_v42 = vsel %vm1597_vm8, %v14696_v58, %v14695_v14  ;;  %v4164_v18 = vrot.slane %v14698_v12, 6  ;;  %v2579_v30 = vsel %vm1712_vm1, %v2547_v40, %v14700_v25  ;;  %v8921_v14 = vld [vmem:[#allocation2 + $0xa8] sm:$0xe]  ;;  %v2485_v12 = vsel %vm1597_vm8, %v14701_v32, %v11479_v56  ;;  %v14705_v32 = vld [vmem:[#allocation113_spill] sm:$0xff] }
 0x303   : > { %14679 = vst [vmem:[#allocation58_spill] sm:$0xff] %v11780_v61  ;;  %v11815_v55 = vpop.permute.xlu1 %3340  ;;  %v4163_v6 = vrot.slane %v14692_v36, 5  ;;  %v11831_v50 = vpop.permute.xlu0 %3342  ;;  %3412 = vrot.lane.b32.xlu0 %v14699_v48, %s9015_s26  ;;  %v11845_v36 = vld [vmem:[#allocation2 + $0xa4] sm:$0x3]  ;;  %v4181_v58 = vshll.u32 %v8921_v14, 16  ;;  %v4201_v46 = vshrl.u32 %v14705_v32, 16 }
 0x304   : > { %14690 = vst [vmem:[#allocation40_spill] sm:$0xff] %v11815_v55  ;;  %14697 = vst [vmem:[#allocation54_spill] sm:$0xff] %v11831_v50  ;;  %v11833_v55 = vrot.slane %v4138_v17, 4  ;;  %v4178_v17 = vshrl.u32 %v8921_v14, 16  ;;  %v14702_v50 = vld [vmem:[#allocation124_spill] sm:$0xff]  ;;  %v4161_v14 = vor.u32 %v4160_v27, %v4157_v4  ;;  %v4169_v1 = vshrl.u32 %v11845_v36, 16 }
 0x305   : > { %3379 = vrot.lane.b32.xlu1 %v14699_v48, %s9017_s12  ;;  %v2488_v40 = vsel %vm1597_vm8, %v14703_v31, %v14702_v50  ;;  %v4172_v50 = vshll.u32 %v11845_v36, 16  ;;  %v4204_v31 = vshll.u32 %v14705_v32, 16  ;;  %v4144_v27 = vrot.slane %v11817_v29, 4  ;;  %v4911_v48 = vld [vmem:[#allocation2 + $0x30] sm:$0xc] }
 0x306   : > { %8588 = vmatmul.mubr.msk.bf16.gmra.mxu1 %vm2620_vm6, %v2579_v30  ;;  %v4143_v56 = vsel %vm10351_vm7, %v11833_v55, %v11817_v29  ;;  %v2521_v63 = vsel %vm1646_vm10, %v2488_v40, %v11618_v45  ;;  %v14707_v30 = vld [vmem:[#allocation71_spill] sm:$0xff]  ;;  %v14709_v55 = vld [vmem:[#allocation21_spill] sm:$0xff]  ;;  %v11883_v40 = vor.u32 %v4164_v18, %v4163_v6  ;;  %v4203_v52 = vrot.slane %v4201_v46, 5  ;;  %v14717_v46 = vld [vmem:[#allocation20_spill] sm:$0xff] }
 0x307   : > { %v11856_v25 = vpop.permute.xlu1 %3344  ;;  %8591 = vmatprep.mubr.msk.bf16.mxu1 %vm2620_vm6, %v2581_v54  ;;  %v11866_v23 = vpop.permute.xlu0 %3346  ;;  %v11874_v54 = vsel %vm1597_vm8, %v14641_v34, %v14707_v30  ;;  %v2519_v4 = vsel %vm1646_vm10, %v2485_v12, %v14709_v55  ;;  %v14710_v45 = vld [vmem:[#allocation47_spill] sm:$0xff]  ;;  %v4183_v34 = vrot.slane %v4181_v58, 6  ;;  %v2553_v30 = vsel %vm1679_vm2, %v2521_v63, %v11595_v49 }
 0x308   : > { %14704 = vst [vmem:[#allocation26_spill] sm:$0xff] %v11856_v25  ;;  %14706 = vst [vmem:[#allocation53_spill] sm:$0xff] %v11866_v23  ;;  %3414 = vrot.lane.b32.xlu0 %v14710_v45, %s9015_s26  ;;  %v2551_v32 = vsel %vm1679_vm2, %v2519_v4, %v11673_v47  ;;  %v4152_v23 = vor.u32 %v4151_v8, %v4148_v3  ;;  %v4180_v25 = vrot.slane %v4178_v17, 5  ;;  %v4162_v55 = vrot.slane %v4161_v14, 4  ;;  %v14714_v29 = vld [vmem:[#allocation91_spill] sm:$0xff]  ;;  %v14716_v3 = vld [vmem:[#allocation22_spill] sm:$0xff] }
 0x309   : > { %14708 = vst [vmem:[#allocation90_spill] sm:$0xff] %v11874_v54  ;;  %4382 = vrot.lane.b32.xlu1 %v14637_v26, %s9016_s10  ;;  %v14712_v26 = vld [vmem:[#allocation57_spill] sm:$0xff]  ;;  %v2491_v6 = vsel %vm1597_vm8, %v14714_v29, %v11629_v0  ;;  %v4171_v47 = vrot.slane %v4169_v1, 5  ;;  %v4174_v8 = vrot.slane %v4172_v50, 6  ;;  %v4206_v17 = vrot.slane %v4204_v31, 6 }
 0x30a   : > { %v14713_v54 = vshrl.u32 %v14712_v26, 16  ;;  %v2583_v49 = vsel %vm1712_vm1, %v2551_v32, %v11604_v22  ;;  %v4167_v58 = vrot.slane %v11883_v40, 4  ;;  %v4224_v14 = vshrl.u32 %v14716_v3, 16 }
 0x30b   : > { %v11889_v12 = vpop.permute.xlu1 %3348  ;;  %v11896_v18 = vpop.permute.xlu0 %3350  ;;  %v4227_v0 = vshll.u32 %v14716_v3, 16  ;;  %v2585_v63 = vsel %vm1712_vm1, %v2553_v30, %v14717_v46  ;;  %v4153_v1 = vsel %vm10351_vm7, %v4144_v27, %v4152_v23  ;;  %v4184_v50 = vor.u32 %v4183_v34, %v4180_v25  ;;  %v11928_v23 = vld [vmem:[#allocation2 + $0x8] sm:$0x3] }
 0x30c   : > { %14711 = vst [vmem:[#allocation77_spill] sm:$0xff] %v11889_v12  ;;  %v4186_v10 = vrot.slane %v14713_v54, 5  ;;  %14715 = vst [vmem:[#allocation75_spill] sm:$0xff] %v11896_v18  ;;  %4417 = vrot.lane.b32.xlu0 %v11742_v53, %s9019_s22  ;;  %v14718_v31 = vshll.u32 %v14712_v26, 16  ;;  %v2523_v22 = vsel %vm1646_vm10, %v2491_v6, %v11579_v11  ;;  %v3856_v32 = vshrl.u32 %v11666_v62, 16 }
 0x30d   : > { %4384 = vrot.lane.b32.xlu1 %v11742_v53, %s9016_s10  ;;  %v3859_v29 = vshll.u32 %v11666_v62, 16  ;;  %v4166_v26 = vsel %vm10351_vm7, %v4162_v55, %v11883_v40  ;;  %v4175_v25 = vor.u32 %v4174_v8, %v4171_v47  ;;  %14723 = vst [vmem:[#allocation74_spill] sm:$0xff] %v11928_v23  ;;  %v4207_v11 = vor.u32 %v4206_v17, %v4203_v52  ;;  %v14727_v40 = vld [vmem:[#allocation19_spill] sm:$0xff]  ;;  %v14728_v47 = vld [vmem:[#allocation86_spill] sm:$0xff] }
 0x30e   : > { %8592 = vmatmul.mubr.msk.bf16.gmra.mxu1 %vm2620_vm6, %v2583_v49  ;;  %v4187_v54 = vrot.slane %v14718_v31, 6  ;;  %v14720_v49 = vld [vmem:[#allocation46_spill] sm:$0xff]  ;;  %v11936_v62 = vcombine.low %v4143_v56, %v4153_v1  ;;  %v4226_v6 = vrot.slane %v4224_v14, 5  ;;  %v14726_v31 = vld [vmem:[#allocation121_spill] sm:$0xff]  ;;  %v2555_v55 = vsel %vm1679_vm2, %v2523_v22, %v14727_v40 }
 0x30f   : > { %v11916_v4 = vpop.permute.xlu1 %3352  ;;  %8595 = vmatprep.mubr.msk.bf16.mxu1 %vm2620_vm6, %v2585_v63  ;;  %v14721_v30 = vshrl.u32 %v14720_v49, 16  ;;  %v11923_v46 = vpop.permute.xlu0 %3354  ;;  %v14724_v27 = vshll.u32 %v14720_v49, 16  ;;  %v4229_v63 = vrot.slane %v4227_v0, 6  ;;  %v4176_v52 = vsel %vm10351_vm7, %v4167_v58, %v4175_v25  ;;  %v8923_v18 = vld [vmem:[#allocation2 + $0x20] sm:$0x3] }
 0x310   : > { %14719 = vst [vmem:[#allocation87_spill] sm:$0xff] %v11916_v4  ;;  %14722 = vst [vmem:[#allocation24_spill] sm:$0xff] %v11923_v46  ;;  %4452 = vrot.lane.b32.xlu0 %v11772_v43, %s9017_s12  ;;  %v14729_v8 = vshrl.u32 %v14728_v47, 16  ;;  %v14730_v49 = vshll.u32 %v14728_v47, 16  ;;  %v3858_v56 = vrot.slane %v3856_v32, 5  ;;  %v3861_v1 = vrot.slane %v3859_v29, 6 }
 0x311   : > { %v4209_v3 = vrot.slane %v14721_v30, 5  ;;  %v4210_v34 = vrot.slane %v14724_v27, 6  ;;  %4419 = vrot.lane.b32.xlu1 %v11772_v43, %s9019_s22  ;;  %14725 = vst [vmem:[#allocation39_spill] sm:$0xff] %v11936_v62  ;;  %v4247_v30 = vshrl.u32 %v14726_v31, 16  ;;  %v3870_v14 = vshrl.u32 %v11928_v23, 16  ;;  %v14732_v32 = vld [vmem:[#allocation15_spill] sm:$0xff] }
 0x312   : > { %v3864_v17 = vrot.slane %v14729_v8, 5  ;;  %v3865_v27 = vrot.slane %v14730_v49, 6  ;;  %v3873_v0 = vshll.u32 %v11928_v23, 16  ;;  %v11951_v4 = vrot.slane %v4184_v50, 4  ;;  %v14733_v47 = vld [vmem:[#allocation95_spill] sm:$0xff] }
 0x313   : > { %v11947_v53 = vpop.permute.xlu1 %3356  ;;  %v3362_v46 = vpop.permute.xlu0 %3361  ;;  %v11953_v22 = vor.u32 %v4187_v54, %v4186_v10  ;;  %v11955_v58 = vor.u32 %v4210_v34, %v4209_v3  ;;  %v4250_v25 = vshll.u32 %v14726_v31, 16  ;;  %v2587_v29 = vsel %vm1712_vm1, %v2555_v55, %v14732_v32  ;;  %v11975_v31 = vld [vmem:[#allocation2 + $0xb0] sm:$0x3] }
 0x314   : > { %14731 = vst [vmem:[#allocation73_spill] sm:$0xff] %v11947_v53  ;;  %4487 = vrot.lane.b32.xlu0 %v11936_v62, %s9015_s26  ;;  %v11964_v40 = vrot.slane %v4207_v11, 4  ;;  %v14734_v50 = vshrl.u32 %v14733_v47, 16  ;;  %v14735_v10 = vshll.u32 %v14733_v47, 16  ;;  %v11971_v3 = vcombine.low %v4166_v26, %v4176_v52  ;;  %v14737_v52 = vld [vmem:[#allocation83_spill] sm:$0xff] }
 0x315   : > { %4454 = vrot.lane.b32.xlu1 %v11936_v62, %s9017_s12  ;;  %v11973_v34 = vor.u32 %v3865_v27, %v3864_v17  ;;  %v4230_v49 = vor.u32 %v4229_v63, %v4226_v6  ;;  %v4249_v23 = vrot.slane %v4247_v30, 5  ;;  %v3477_v11 = vsel %vm1646_vm10, %v11787_v15, %v11698_v35  ;;  %v8925_v30 = vld [vmem:[#allocation2 + $0x34] sm:$0xf] }
 0x316   : > { %v4232_v8 = vrot.slane %v14734_v50, 5  ;;  %v4233_v54 = vrot.slane %v14735_v10, 6  ;;  %8596 = vmatmul.mubr.msk.bf16.gmra.mxu1 %vm2620_vm6, %v2587_v29  ;;  %14736 = vst [vmem:[#allocation104_spill] sm:$0xff] %v11971_v3  ;;  %v3862_v32 = vor.u32 %v3861_v1, %v3858_v56  ;;  %v3872_v50 = vrot.slane %v3870_v14, 5  ;;  %v12014_v56 = vld [vmem:[#allocation2 + $0xc8] sm:$0x3] }
 0x317   : > { %v3364_v55 = vpop.permute.xlu1 %3363  ;;  %v3875_v53 = vrot.slane %v3873_v0, 6  ;;  %v3509_v47 = vsel %vm1679_vm2, %v3477_v11, %v3362_v46  ;;  %v3397_v29 = vpop.permute.xlu0 %3396  ;;  %v4252_v26 = vrot.slane %v4250_v25, 6  ;;  %v14738_v17 = vshrl.u32 %v14737_v52, 16  ;;  %14740 = vst [vmem:[#allocation34_spill] sm:$0xff] %v12014_v56 }
 0x318   : > { %v14739_v10 = vshll.u32 %v14737_v52, 16  ;;  %v3541_v63 = vsel %vm1712_vm1, %v3509_v47, %v3397_v29  ;;  %3381 = vrot.lane.b32.xlu0 %v14710_v45, %s9017_s12  ;;  %v4192_v15 = vshrl.u32 %v11975_v31, 16  ;;  %v4195_v46 = vshll.u32 %v11975_v31, 16  ;;  %v12011_v52 = vld [vmem:[#allocation2 + $0xbc] sm:$0x3] }
 0x319   : > { %v4255_v27 = vrot.slane %v14738_v17, 5  ;;  %4489 = vrot.lane.b32.xlu1 %v11971_v3, %s9015_s26  ;;  %8647 = vmatprep.mubr.msk.bf16.mxu1 %vm2620_vm6, %v3541_v63  ;;  %v12003_v14 = vor.u32 %v4233_v54, %v4232_v8  ;;  %v3479_v0 = vsel %vm1646_vm10, %v11798_v33, %v11718_v16  ;;  %v3863_v25 = vrot.slane %v3862_v32, 4  ;;  %v4909_v17 = vld [vmem:[#allocation2 + $0x18] sm:$0xc]  ;;  %v14741_v33 = vld [vmem:[#allocation78_spill] sm:$0xff] }
 0x31a   : > { %v4256_v6 = vrot.slane %v14739_v10, 6  ;;  %v3868_v11 = vrot.slane %v11973_v34, 4  ;;  %v3876_v47 = vor.u32 %v3875_v53, %v3872_v50  ;;  %v3511_v10 = vsel %vm1679_vm2, %v3479_v0, %v3364_v55  ;;  %v12025_v50 = vld [vmem:[#allocation2 + $0xd4] sm:$0x3]  ;;  %v8922_v55 = vld [vmem:[#allocation2 + $0x1c] sm:$0xf] }
 0x31b   : > { %v12009_v29 = vpop.permute.xlu1 %4366  ;;  %v3399_v63 = vpop.permute.xlu0 %3398  ;;  %v12016_v8 = vrot.slane %v4230_v49, 4  ;;  %v4253_v54 = vor.u32 %v4252_v26, %v4249_v23  ;;  %v4194_v53 = vrot.slane %v4192_v15, 5  ;;  %v4197_v32 = vrot.slane %v4195_v46, 6  ;;  %14742 = vst [vmem:[#allocation105_spill] sm:$0xff] %v12025_v50  ;;  %v8924_v45 = vld [vmem:[#allocation2 + $0x28] sm:$0xf] }
 0x31c   : > { %v12018_v1 = vor.u32 %v4256_v6, %v4255_v27  ;;  %v3543_v16 = vsel %vm1712_vm1, %v3511_v10, %v3399_v63  ;;  %3416 = vrot.lane.b32.xlu0 %v14741_v33, %s9015_s26  ;;  %v4986_v0 = vrot.slane %v8922_v55, 6  ;;  %v4215_v23 = vshrl.u32 %v12011_v52, 16 }
 0x31d   : > { %3383 = vrot.lane.b32.xlu1 %v14741_v33, %s9017_s12  ;;  %v4218_v49 = vshll.u32 %v12011_v52, 16  ;;  %v8234_v27 = vrot.slane %v4909_v17, 10  ;;  %v3867_v6 = vsel %vm10351_vm7, %v3863_v25, %v11973_v34  ;;  %v3877_v15 = vsel %vm10351_vm7, %v3868_v11, %v3876_v47  ;;  %v4910_v25 = vld [vmem:[#allocation2 + $0x24] sm:$0xc]  ;;  %v14743_v11 = vld [vmem:[#allocation116_spill] sm:$0xff] }
 0x31e   : > { %8648 = vmatmul.mubr.msk.bf16.vlgmr.msra.gmra.mxu1 %vm2620_vm6, %v3543_v16  ;;  %v4238_v10 = vshrl.u32 %v12014_v56, 16  ;;  %v4241_v63 = vshll.u32 %v12014_v56, 16  ;;  %v12042_v26 = vrot.slane %v4253_v54, 4  ;;  %v4261_v17 = vshrl.u32 %v12025_v50, 16 }
 0x31f   : > { %v4369_v46 = vpop.permute.xlu1 %4368  ;;  %v4402_v16 = vpop.permute.xlu0 %4401  ;;  %v4264_v34 = vshll.u32 %v12025_v50, 16  ;;  %v4198_v47 = vor.u32 %v4197_v32, %v4194_v53  ;;  %v4988_v35 = vrot.slane %v4986_v0, 4  ;;  %v4989_v12 = vrot.slane %v8923_v18, 6  ;;  %v7192_v18 = vld [vmem:[%s14216_s6] sm:$0x3] }
 0x320   : > { %3418 = vrot.lane.b32.xlu0 %v14743_v11, %s9015_s26  ;;  %v8184_v55 = vcombine.low %v3867_v6, %v3877_v15  ;;  %v4217_v54 = vrot.slane %v4215_v23, 5  ;;  %v4220_v33 = vrot.slane %v4218_v49, 6  ;;  %v4993_v24 = vrot.slane %v8924_v45, 6  ;;  %8802 = vmatprep.subr.msk.bf16.mxu0 %vm475_vm0, %v7192_v18 }
 0x321   : > { %4386 = vrot.lane.b32.xlu1 %v11772_v43, %s9016_s10  ;;  %v4240_v61 = vrot.slane %v4238_v10, 5  ;;  %v4243_v53 = vrot.slane %v4241_v63, 6  ;;  %v8235_v32 = vrot.slane %v4910_v25, 10  ;;  %v5000_v38 = vrot.slane %v8925_v30, 6  ;;  %v8927_v25 = vld [vmem:[#allocation2 + $0x40] sm:$0xf] }
 0x322   : > { %v4263_v49 = vrot.slane %v4261_v17, 5  ;;  %v4266_v6 = vrot.slane %v4264_v34, 6  ;;  %v4987_v15 = vsel %vm12053_vm13, %v8234_v27, %v4986_v0  ;;  %v14746_v30 = vrot.slane %v11953_v22, 4  ;;  %v8926_v17 = vld [vmem:[#allocation2 + $0x2c] sm:$0x3] }
 0x323   : > { %v4404_v43 = vpop.permute.xlu1 %4403  ;;  %v4437_v23 = vpop.permute.xlu0 %4436  ;;  %v4990_v63 = vsel %vm12053_vm13, %v4988_v35, %v4989_v12  ;;  %v4996_v34 = vrot.slane %v8926_v17, 6  ;;  %v5007_v0 = vrot.slane %v8927_v25, 6  ;;  %v4505_v27 = vsel %vm1597_vm8, %v8184_v55, %v12009_v29 }
 0x324   : > { %4421 = vrot.lane.b32.xlu0 %v11936_v62, %s9019_s22  ;;  %v4199_v10 = vsel %vm10351_vm7, %v14746_v30, %v4198_v47  ;;  %v4221_v45 = vor.u32 %v4220_v33, %v4217_v54  ;;  %v4995_v50 = vrot.slane %v4993_v24, 4  ;;  %v8236_v56 = vrot.slane %v4911_v48, 10  ;;  %v14750_v48 = vld [vmem:[#allocation92_spill] sm:$0xff] }
 0x325   : > { %4388 = vrot.lane.b32.xlu1 %v11936_v62, %s9016_s10  ;;  %v4552_v62 = vsel %vm1646_vm10, %v4505_v27, %v4402_v16  ;;  %v4244_v39 = vor.u32 %v4243_v53, %v4240_v61  ;;  %v5002_v19 = vrot.slane %v5000_v38, 4  ;;  %v5003_v47 = vrot.slane %v8928_v9, 6  ;;  %v4912_v53 = vld [vmem:[#allocation2 + $0x3c] sm:$0xc] }
 0x326   : > { %v4584_v30 = vsel %vm1679_vm2, %v4552_v62, %v4437_v23  ;;  %v14747_v35 = vsel %vm10351_vm7, %v11951_v4, %v11953_v22  ;;  %v4267_v29 = vor.u32 %v4266_v6, %v4263_v49  ;;  %v12088_v33 = vcombine.low %v4987_v15, %v4990_v63  ;;  %v8929_v6 = vld [vmem:[#allocation2 + $0x44] sm:$0x3] }
 0x327   : > { %v4439_v37 = vpop.permute.xlu1 %4438  ;;  %v4472_v12 = vpop.permute.xlu0 %4471  ;;  %v12086_v17 = vcombine.low %v14747_v35, %v4199_v10  ;;  %v4508_v16 = vsel %vm1597_vm8, %v14750_v48, %v4369_v46  ;;  %v4994_v9 = vsel %vm12053_vm13, %v8235_v32, %v4993_v24  ;;  %v5009_v4 = vrot.slane %v5007_v0, 4 }
 0x328   : > { %14749 = vst [vmem:[#allocation101_spill] sm:$0xff] %v12088_v33  ;;  %v4616_v61 = vsel %vm1712_vm1, %v4584_v30, %v4472_v12  ;;  %4456 = vrot.lane.b32.xlu0 %v11971_v3, %s9017_s12  ;;  %v4554_v62 = vsel %vm1646_vm10, %v4508_v16, %v4404_v43  ;;  %v14751_v22 = vrot.slane %v11955_v58, 4  ;;  %v4997_v55 = vsel %vm12053_vm13, %v4995_v50, %v4996_v34 }
 0x329   : > { %14748 = vst [vmem:[#allocation59_spill] sm:$0xff] %v12086_v17  ;;  %4423 = vrot.lane.b32.xlu1 %v11971_v3, %s9019_s22  ;;  %8687 = vmatprep.mubr.msk.bf16.mxu0 %vm2620_vm6, %v4616_v61  ;;  %v5001_v54 = vsel %vm12053_vm13, %v8236_v56, %v5000_v38  ;;  %v4586_v23 = vsel %vm1679_vm2, %v4554_v62, %v4439_v37  ;;  %v14752_v32 = vrot.slane %v12003_v14, 4  ;;  %v14753_v10 = vrot.slane %v12018_v1, 4  ;;  %v12121_v37 = vld [vmem:[#allocation2 + $0x48] sm:$0xc] }
 0x32a   : > { %v4222_v46 = vsel %vm10351_vm7, %v14751_v22, %v4221_v45  ;;  %v5004_v49 = vsel %vm12053_vm13, %v5002_v19, %v5003_v47  ;;  %v5010_v45 = vrot.slane %v8929_v6, 6  ;;  %v12123_v56 = vld [vmem:[#allocation2 + $0x4c] sm:$0xf]  ;;  %v14754_v19 = vsel %vm10351_vm7, %v11964_v40, %v11955_v58  ;;  %v4914_v58 = vld [vmem:[#allocation2 + $0x54] sm:$0xc] }
 0x32b   : > { %v4474_v24 = vpop.permute.xlu1 %4473  ;;  %v4245_v43 = vsel %vm10351_vm7, %v14752_v32, %v4244_v39  ;;  %v3366_v50 = vpop.permute.xlu0 %3365  ;;  %v4268_v38 = vsel %vm10351_vm7, %v14753_v10, %v4267_v29  ;;  %v5014_v63 = vrot.slane %v12123_v56, 6  ;;  %v7329_v39 = vsel %vm475_vm0, %v7192_v18, 0  ;;  %v8931_v40 = vld [vmem:[#allocation2 + $0x58] sm:$0xf]  ;;  %v8932_v29 = vld [vmem:[#allocation2 + $0x64] sm:$0xf] }
 0x32c   : > { %v4618_v15 = vsel %vm1712_vm1, %v4586_v23, %v4474_v24  ;;  %4491 = vrot.lane.b32.xlu0 %v12086_v17, %s9015_s26  ;;  %v12136_v34 = vcombine.low %v14754_v19, %v4222_v46  ;;  %v12138_v25 = vcombine.low %v4994_v9, %v4997_v55  ;;  %v8237_v27 = vrot.slane %v4912_v53, 10  ;;  %v4915_v62 = vld [vmem:[#allocation2 + $0x60] sm:$0xc]  ;;  %v4916_v23 = vld [vmem:[#allocation2 + $0x6c] sm:$0xc] }
 0x32d   : > { %4458 = vrot.lane.b32.xlu1 %v12086_v17, %s9017_s12  ;;  %v5011_v47 = vsel %vm12053_vm13, %v5009_v4, %v5010_v45  ;;  %8688 = vmatmul.mubr.msk.bf16.vlgmr.msra.gmra.mxu0 %vm2620_vm6, %v4618_v15  ;;  %v14757_v18 = vsel %vm10351_vm7, %v12016_v8, %v12003_v14  ;;  %v12150_v12 = vcombine.low %v5001_v54, %v5004_v49  ;;  %v5021_v35 = vrot.slane %v8931_v40, 6  ;;  %v8935_v24 = vld [vmem:[#allocation2 + $0x70] sm:$0xf]  ;;  %v8905_v10 = vld [vmem:[%s14214_s4 + $0x98] sm:$0x3f]  }
 0x32e   : > { %14755 = vst [vmem:[#allocation48_spill] sm:$0xff] %v12136_v34  ;;  %14756 = vst [vmem:[#allocation14_spill] sm:$0xff] %v12138_v25  ;;  %v12148_v30 = vcombine.low %v14757_v18, %v4245_v43  ;;  %v5028_v48 = vrot.slane %v8932_v29, 6  ;;  %v3481_v16 = vsel %vm1646_vm10, %v11829_v42, %v11723_v51  ;;  %v14759_v9 = vsel %vm10351_vm7, %v12042_v26, %v12018_v1  ;;  %v8933_v42 = vld [vmem:[#allocation2 + $0x50] sm:$0x3] }
 0x32f   : > { %14758 = vst [vmem:[#allocation17_spill] sm:$0xff] %v12150_v12  ;;  %v3368_v61 = vpop.permute.xlu1 %3367  ;;  %v12160_v14 = vcombine.low %v14759_v9, %v4268_v38  ;;  %v5008_v8 = vsel %vm12053_vm13, %v8237_v27, %v5007_v0  ;;  %v8238_v4 = vrot.slane %v12121_v37, 10  ;;  %8760 = vmatpush3.bf16.msra.mxu0 %v7329_v39  ;;  %v3513_v22 = vsel %vm1679_vm2, %v3481_v16, %v3366_v50  ;;  %v3401_v46 = vpop.permute.xlu0 %3400  ;;  %v8934_v0 = vld [vmem:[#allocation2 + $0x5c] sm:$0x3]  ;;  %v14761_v43 = vld [vmem:[#allocation96_spill] sm:$0xff] }
 0x330   : > { %v12166_v55 = vcombine.low %v5008_v8, %v5011_v47  ;;  %v5016_v51 = vrot.slane %v5014_v63, 4  ;;  %v5017_v54 = vrot.slane %v8933_v42, 6  ;;  %v3545_v1 = vsel %vm1712_vm1, %v3513_v22, %v3401_v46  ;;  %3385 = vrot.lane.b32.xlu0 %v14743_v11, %s9017_s12  ;;  %v14762_v49 = vld [vmem:[#allocation28_spill] sm:$0xff]  ;;  %v8936_v39 = vld [vmem:[#allocation2 + $0x68] sm:$0x3]  ;;  %8801 = vmatprep.subr.msk.bf16.mxu1 %vm2653_vm14, %v8905_v10  ;;  %v14763_v22 = vld [vmem:[#allocation117_spill] sm:$0xff] }
 0x331   : > { %4493 = vrot.lane.b32.xlu1 %v12136_v34, %s9015_s26  ;;  %v8239_v26 = vrot.slane %v4914_v58, 10  ;;  %v5024_v53 = vrot.slane %v8934_v0, 6  ;;  %v5035_v32 = vrot.slane %v8935_v24, 6  ;;  %v3439_v6 = vsel %vm1597_vm8, %v14762_v49, %v14761_v43  ;;  %8651 = vmatprep.mubr.msk.bf16.mxu1 %vm2620_vm6, %v3545_v1  ;;  %v8937_v27 = vld [vmem:[#allocation2 + $0x7c] sm:$0xf] }
 0x332   : > { %14760 = vst [vmem:[#allocation13_spill] sm:$0xff] %v12166_v55  ;;  %v5023_v45 = vrot.slane %v5021_v35, 4  ;;  %v8240_v15 = vrot.slane %v4915_v62, 10  ;;  %v5030_v50 = vrot.slane %v5028_v48, 4  ;;  %v3483_v38 = vsel %vm1646_vm10, %v3439_v6, %v11740_v59  ;;  %v12186_v18 = vld [vmem:[#allocation2 + $0x88] sm:$0xf] }
 0x333   : > { %v12184_v37 = vpop.permute.xlu1 %4370  ;;  %v5031_v19 = vrot.slane %v8936_v39, 6  ;;  %v5042_v47 = vrot.slane %v8937_v27, 6  ;;  %v5049_v58 = vrot.slane %v12186_v18, 6  ;;  %v3515_v40 = vsel %vm1679_vm2, %v3483_v38, %v3368_v61  ;;  %v3403_v29 = vpop.permute.xlu0 %3402  ;;  %v8939_v9 = vld [vmem:[#allocation2 + $0x94] sm:$0xf] }
 0x334   : > { %v8241_v16 = vrot.slane %v4916_v23, 10  ;;  %v5056_v8 = vrot.slane %v8939_v9, 6  ;;  %v5507_v59 = vsel %vm2653_vm14, %v8905_v10, 0  ;;  %v3547_v62 = vsel %vm1712_vm1, %v3515_v40, %v3403_v29  ;;  %3420 = vrot.lane.b32.xlu0 %v14763_v22, %s9015_s26  ;;  %v8940_v42 = vld [vmem:[#allocation2 + $0x74] sm:$0x3] }
 0x335   : > { %3387 = vrot.lane.b32.xlu1 %v14763_v22, %s9017_s12  ;;  %v5037_v46 = vrot.slane %v5035_v32, 4  ;;  %v5038_v1 = vrot.slane %v8940_v42, 6  ;;  %v4917_v61 = vld [vmem:[#allocation2 + $0x78] sm:$0xc]  ;;  %v5045_v0 = vrot.slane %v11638_v28, 6  ;;  %8652 = vmatmul.mubr.msk.bf16.gmra.mxu1 %vm2620_vm6, %v3547_v62  ;;  %v5015_v23 = vsel %vm12053_vm13, %v8238_v4, %v5014_v63 }
 0x336   : > { %v5018_v24 = vsel %vm12053_vm13, %v5016_v51, %v5017_v54  ;;  %v5022_v43 = vsel %vm12053_vm13, %v8239_v26, %v5021_v35  ;;  %v5029_v49 = vsel %vm12053_vm13, %v8240_v15, %v5028_v48  ;;  %v5025_v28 = vsel %vm12053_vm13, %v5023_v45, %v5024_v53  ;;  %v4918_v38 = vld [vmem:[#allocation2 + $0x84] sm:$0xc]  ;;  %8720 = vmatpush3.bf16.msra.mxu1 %v5507_v59  ;;  %v4919_v35 = vld [vmem:[#allocation2 + $0x90] sm:$0xc]  ;;  %v8941_v26 = vld [vmem:[#allocation2 + $0xa0] sm:$0xf] }
 0x337   : > { %v12209_v6 = vpop.permute.xlu1 %4372  ;;  %v5032_v56 = vsel %vm12053_vm13, %v5030_v50, %v5031_v19  ;;  %v5044_v10 = vrot.slane %v5042_v47, 4  ;;  %v5051_v63 = vrot.slane %v5049_v58, 4  ;;  %v4406_v4 = vpop.permute.xlu0 %4405  ;;  %v8242_v51 = vrot.slane %v4917_v61, 10  ;;  %v14764_v53 = vld [vmem:[#allocation123_spill] sm:$0xff]  ;;  %v4920_v9 = vld [vmem:[#allocation2 + $0x9c] sm:$0xc] }
 0x338   : > { %v5058_v54 = vrot.slane %v5056_v8, 4  ;;  %v5059_v48 = vrot.slane %v11774_v13, 6  ;;  %v5063_v15 = vrot.slane %v8941_v26, 6  ;;  %3422 = vrot.lane.b32.xlu0 %v14764_v53, %s9015_s26  ;;  %v5036_v45 = vsel %vm12053_vm13, %v8241_v16, %v5035_v32  ;;  %v4921_v22 = vld [vmem:[#allocation2 + $0xa8] sm:$0xc] }
 0x339   : > { %4390 = vrot.lane.b32.xlu1 %v11971_v3, %s9016_s10  ;;  %v5039_v50 = vsel %vm12053_vm13, %v5037_v46, %v5038_v1  ;;  %v5046_v39 = vsel %vm12053_vm13, %v5044_v10, %v5045_v0  ;;  %v5052_v19 = vrot.slane %v11678_v7, 6  ;;  %v12229_v13 = vcombine.low %v5015_v23, %v5018_v24  ;;  %v8942_v46 = vld [vmem:[#allocation2 + $0xac] sm:$0xf]  ;;  %v12261_v10 = vld [vmem:[#allocation2 + $0xd8] sm:$0xe] }
 0x33a   : > { %v12231_v27 = vcombine.low %v5022_v43, %v5025_v28  ;;  %v12233_v40 = vcombine.low %v5029_v49, %v5032_v56  ;;  %v5043_v29 = vsel %vm12053_vm13, %v8242_v51, %v5042_v47  ;;  %v8243_v32 = vrot.slane %v4918_v38, 10  ;;  %v12249_v47 = vld [vmem:[#allocation2 + $0xdc] sm:$0xf] }
 0x33b   : > { %14765 = vst [vmem:[#allocation70_spill] sm:$0xff] %v12229_v13  ;;  %v4408_v59 = vpop.permute.xlu1 %4407  ;;  %v5053_v16 = vsel %vm12053_vm13, %v5051_v63, %v5052_v19  ;;  %v8244_v62 = vrot.slane %v4919_v35, 10  ;;  %v5070_v42 = vrot.slane %v8942_v46, 6  ;;  %v4441_v7 = vpop.permute.xlu0 %4440  ;;  %v12239_v1 = vcombine.low %v5036_v45, %v5039_v50  ;;  %v12278_v50 = vld [vmem:[#allocation2 + $0xb8] sm:$0xf] }
 0x33c   : > { %14766 = vst [vmem:[#allocation51_spill] sm:$0xff] %v12231_v27  ;;  %14767 = vst [vmem:[#allocation122_spill] sm:$0xff] %v12233_v40  ;;  %v12241_v61 = vcombine.low %v5043_v29, %v5046_v39  ;;  %v5060_v0 = vsel %vm12053_vm13, %v5058_v54, %v5059_v48  ;;  %v5065_v23 = vrot.slane %v5063_v15, 4  ;;  %4425 = vrot.lane.b32.xlu0 %v12086_v17, %s9019_s22  ;;  %v3228_v24 = vrot.slane %v12249_v47, 5  ;;  %v12270_v48 = vld [vmem:[#allocation2 + $0xb4] sm:$0xc] }
 0x33d   : > { %14768 = vst [vmem:[#allocation89_spill] sm:$0xff] %v12239_v1  ;;  %4392 = vrot.lane.b32.xlu1 %v12086_v17, %s9016_s10  ;;  %v5050_v43 = vsel %vm12053_vm13, %v8243_v32, %v5049_v58  ;;  %v5057_v49 = vsel %vm12053_vm13, %v8244_v62, %v5056_v8  ;;  %v8245_v28 = vrot.slane %v4920_v9, 10  ;;  %v4511_v56 = vsel %vm1597_vm8, %v14594_v41, %v12184_v37  ;;  %v12273_v37 = vld [vmem:[#allocation2 + $0xe8] sm:$0xf]  ;;  %v12281_v39 = vld [vmem:[#allocation2 + $0xc0] sm:$0xc] }
 0x33e   : > { %14769 = vst [vmem:[#allocation112_spill] sm:$0xff] %v12241_v61  ;;  %v12263_v38 = vcombine.low %v5050_v43, %v5053_v16  ;;  %v5066_v63 = vrot.slane %v11845_v36, 6  ;;  %v8246_v51 = vrot.slane %v4921_v22, 10  ;;  %v4556_v18 = vsel %vm1646_vm10, %v4511_v56, %v4406_v4  ;;  %v3056_v32 = vld [vmem:[#allocation2 + $0xe4] sm:$0xe]  ;;  %v12314_v56 = vpop.f32.mrf.mxu0 }
 0x33f   : > { %v4443_v35 = vpop.permute.xlu1 %4442  ;;  %v12267_v54 = vcombine.low %v5057_v49, %v5060_v0  ;;  %v5072_v58 = vrot.slane %v5070_v42, 4  ;;  %v5073_v8 = vrot.slane %v11975_v31, 6  ;;  %v4588_v26 = vsel %vm1679_vm2, %v4556_v18, %v4441_v7  ;;  %v4476_v41 = vpop.permute.xlu0 %4475  ;;  %v14788_v1 = vld [vmem:[#allocation58_spill] sm:$0xff]  ;;  %v8948_v40 = vld [vmem:[#allocation2 + $0x10] sm:$0xf] }
 0x340   : > { %14770 = vst [vmem:[#allocation29_spill] sm:$0xff] %v12263_v38  ;;  %v3235_v45 = vrot.slane %v12273_v37, 5  ;;  %v5067_v36 = vsel %vm12053_vm13, %v5065_v23, %v5066_v63  ;;  %v14363_v4 = vrot.slane %v12278_v50, 6  ;;  %v4514_v31 = vsel %vm1597_vm8, %v11385_v44, %v12209_v6  ;;  %4460 = vrot.lane.b32.xlu0 %v12136_v34, %s9017_s12  ;;  %v8906_v6 = vld [vmem:[%s14214_s4 + $0x90] sm:$0xff]  }
 0x341   : > { %14771 = vst [vmem:[#allocation25_spill] sm:$0xff] %v12267_v54  ;;  %v4620_v19 = vsel %vm1712_vm1, %v4588_v26, %v4476_v41  ;;  %4427 = vrot.lane.b32.xlu1 %v12136_v34, %s9019_s22  ;;  %v8134_v29 = vrot.slane %v12261_v10, 9  ;;  %v3230_v9 = vrot.slane %v3228_v24, 4  ;;  %v4558_v16 = vsel %vm1646_vm10, %v4514_v31, %v4408_v59  ;;  %8721 = vmatprep.subr.bf16.mxu1 %v8906_v6  ;;  %v14774_v26 = vld [vmem:[#allocation100_spill] sm:$0xff]  ;;  %v14775_v41 = vld [vmem:[#allocation42_spill] sm:$0xff] }
 0x342   : > { %8691 = vmatprep.mubr.msk.bf16.mxu0 %vm2620_vm6, %v4620_v19  ;;  %v5064_v62 = vsel %vm12053_vm13, %v8245_v28, %v5063_v15  ;;  %v12298_v44 = vsel %vm12053_vm13, %v8246_v51, %v5070_v42  ;;  %v4590_v46 = vsel %vm1679_vm2, %v4558_v16, %v4443_v35  ;;  %v8135_v42 = vrot.slane %v3056_v32, 9  ;;  %8722 = vmatpush3.bf16.msra.mxu1 %v8906_v6  ;;  %v14777_v6 = vld [vmem:[#allocation61_spill] sm:$0xff]  ;;  %v14783_v59 = vld [vmem:[#allocation56_spill] sm:$0xff] }
 0x343   : > { %v4478_v7 = vpop.permute.xlu1 %4477  ;;  %v12305_v0 = vcombine.low %v5064_v62, %v5067_v36  ;;  %v3370_v43 = vpop.permute.xlu0 %3369  ;;  %v3237_v49 = vrot.slane %v3235_v45, 4  ;;  %v12312_v28 = vsel %vm12053_vm13, %v5072_v58, %v5073_v8  ;;  %v3229_v63 = vsel %vm9507_vm9, %v8134_v29, %v3228_v24  ;;  %v12330_v58 = vld [vmem:[#allocation2 + $0xc4] sm:$0xf]  ;;  %v12337_v24 = vld [vmem:[#allocation2 + $0xe0] sm:$0x3] }
 0x344   : > { %v4622_v15 = vsel %vm1712_vm1, %v4590_v46, %v4478_v7  ;;  %4495 = vrot.lane.b32.xlu0 %v12148_v30, %s9015_s26  ;;  %v14773_v51 = vrot.slane %v11782_v21, 5  ;;  %v12328_v35 = vrot.slane %v14363_v4, 4  ;;  %v14367_v8 = vrot.slane %v12330_v58, 6  ;;  %v14776_v29 = vld [vmem:[#allocation118_spill] sm:$0xff]  ;;  %v12346_v7 = vld [vmem:[#allocation2 + $0xd0] sm:$0xf] }
 0x345   : > { %14772 = vst [vmem:[#allocation99_spill] sm:$0xff] %v12305_v0  ;;  %4462 = vrot.lane.b32.xlu1 %v12148_v30, %s9017_s12  ;;  %v3442_v36 = vsel %vm1597_vm8, %v14775_v41, %v14774_v26  ;;  %8692 = vmatmul.mubr.msk.bf16.gmra.mxu0 %vm2620_vm6, %v4622_v15  ;;  %v4270_v21 = vshrl.u32 %v12261_v10, 16  ;;  %v4273_v31 = vshll.u32 %v12261_v10, 16  ;;  %v4293_v19 = vshrl.u32 %v3056_v32, 16  ;;  %v14786_v0 = vld [vmem:[#allocation105_spill] sm:$0xff] }
 0x346   : > { %v3232_v18 = vsel %vm9507_vm9, %v3230_v9, %v14773_v51  ;;  %v3445_v9 = vsel %vm1597_vm8, %v14573_v20, %v14776_v29  ;;  %v3485_v16 = vsel %vm1646_vm10, %v3442_v36, %v11744_v57  ;;  %v4296_v46 = vshll.u32 %v3056_v32, 16  ;;  %v12356_v29 = vld [vmem:[#allocation2 + $0xec] sm:$0x3]  ;;  %v12358_v57 = vpop.f32.mrf.mxu0 }
 0x347   : > { %v3372_v62 = vpop.permute.xlu1 %3371  ;;  %v3517_v51 = vsel %vm1679_vm2, %v3485_v16, %v3370_v43  ;;  %v3405_v26 = vpop.permute.xlu0 %3404  ;;  %v8154_v41 = vcombine.low %v3229_v63, %v3232_v18  ;;  %v3236_v10 = vsel %vm9507_vm9, %v8135_v42, %v3235_v45  ;;  %v14778_v23 = vrot.slane %v14777_v6, 5  ;;  %v14779_v43 = vld [vmem:[#allocation9_spill] sm:$0xff] }
 0x348   : > { %v3549_v32 = vsel %vm1712_vm1, %v3517_v51, %v3405_v26  ;;  %3389 = vrot.lane.b32.xlu0 %v14764_v53, %s9017_s12  ;;  %v14780_v63 = vshrl.u32 %v14779_v43, 16  ;;  %v4284_v42 = vshrl.u32 %v12337_v24, 16  ;;  %v4287_v18 = vshll.u32 %v12337_v24, 16  ;;  %v14781_v51 = vld [vmem:[#allocation7_spill] sm:$0xff]  ;;  %v12374_v53 = vpop.f32.mrf.mxu1  ;;  %v12384_v17 = vpop.f32.mrf.mxu0 }
 0x349   : > { %v3239_v20 = vsel %vm9507_vm9, %v3237_v49, %v14778_v23  ;;  %4497 = vrot.lane.b32.xlu1 %v12160_v14, %s9015_s26  ;;  %v4924_v23 = vld [vmem:[#allocation2 + $0xcc] sm:$0xc]  ;;  %8655 = vmatprep.mubr.msk.bf16.mxu1 %vm2620_vm6, %v3549_v32  ;;  %v4272_v49 = vrot.slane %v4270_v21, 5  ;;  %v4275_v36 = vrot.slane %v4273_v31, 6  ;;  %v4295_v16 = vrot.slane %v4293_v19, 5  ;;  %v14784_v19 = vld [vmem:[#allocation34_spill] sm:$0xff] }
 0x34a   : > { %v4278_v45 = vrot.slane %v14780_v63, 5  ;;  %v14782_v26 = vshrl.u32 %v14781_v51, 16  ;;  %v3487_v22 = vsel %vm1646_vm10, %v3445_v9, %v14783_v59  ;;  %v4298_v63 = vrot.slane %v4296_v46, 6  ;;  %v12387_v9 = vpop.f32.mrf.mxu1 }
 0x34b   : > { %v12376_v43 = vpop.permute.xlu1 %4374  ;;  %v4307_v4 = vshrl.u32 %v12356_v29, 16  ;;  %v4310_v15 = vshll.u32 %v12356_v29, 16  ;;  %v3519_v32 = vsel %vm1679_vm2, %v3487_v22, %v3372_v62  ;;  %v3407_v21 = vpop.permute.xlu0 %3406  ;;  %v5086_v31 = vrot.slane %v14367_v8, 4 }
 0x34c   : > { %v4301_v6 = vrot.slane %v14782_v26, 5  ;;  %v5087_v51 = vrot.slane %v14784_v19, 6  ;;  %v8249_v26 = vrot.slane %v4924_v23, 10  ;;  %v3551_v59 = vsel %vm1712_vm1, %v3519_v32, %v3407_v21  ;;  %3424 = vrot.lane.b32.xlu0 %v8154_v41, %s9015_s26  ;;  %v14787_v23 = vld [vmem:[#allocation81_spill] sm:$0xff]  ;;  %v12398_v21 = vpop.f32.mrf.mxu1 }
 0x34d   : > { %3391 = vrot.lane.b32.xlu1 %v8154_v41, %s9017_s12  ;;  %v8155_v46 = vcombine.low %v3236_v10, %v3239_v20  ;;  %v14785_v22 = vrot.slane %v12346_v7, 6  ;;  %v5094_v3 = vrot.slane %v14786_v0, 6  ;;  %8656 = vmatmul.mubr.msk.bf16.gmra.mxu1 %vm2620_vm6, %v3551_v59  ;;  %v4276_v19 = vor.u32 %v4275_v36, %v4272_v49 }
 0x34e   : > { %v12396_v8 = vor.u32 %v14787_v23, %v4278_v45  ;;  %v4286_v54 = vrot.slane %v4284_v42, 5  ;;  %v4289_v32 = vrot.slane %v4287_v18, 6  ;;  %v4299_v61 = vor.u32 %v4298_v63, %v4295_v16 }
 0x34f   : > { %v5093_v62 = vrot.slane %v14785_v22, 4  ;;  %v4377_v38 = vpop.permute.xlu1 %4376  ;;  %v12401_v41 = vor.u32 %v14788_v1, %v4301_v6  ;;  %v4309_v10 = vrot.slane %v4307_v4, 5  ;;  %v4312_v20 = vrot.slane %v4310_v15, 6  ;;  %v4410_v22 = vpop.permute.xlu0 %4409 }
 0x350   : > { %v4979_v0 = vrot.slane %v8948_v40, 6  ;;  %v14789_v59 = vrot.slane %v12278_v50, 6  ;;  %v14790_v49 = vrot.slane %v12270_v48, 10  ;;  %v14791_v42 = vrot.slane %v12011_v52, 6  ;;  %v2913_v15 = vpop.f32.mrf.mxu0  ;;  %v2694_v50 = vpop.f32.mrf.mxu1  ;;  %3426 = vrot.lane.b32.xlu0 %v8155_v46, %s9015_s26  ;;  %v4908_v48 = vld [vmem:[#allocation2 + $0xc] sm:$0xc] }
 0x351   : > { %v14792_v1 = vrot.slane %v12330_v58, 6  ;;  %v14793_v4 = vrot.slane %v12281_v39, 10  ;;  %4394 = vrot.lane.b32.xlu1 %v12136_v34, %s9016_s10  ;;  %v5088_v52 = vsel %vm12053_vm13, %v5086_v31, %v5087_v51  ;;  %v5095_v39 = vsel %vm12053_vm13, %v5093_v62, %v5094_v3  ;;  %v8907_v46 = vld [vmem:[%s14214_s4 + $0x88] sm:$0xff]   ;;  %v14797_v3 = vld [vmem:[#allocation98_spill] sm:$0xff] }
 0x352   : > { %v5078_v45 = vsel %vm12053_vm13, %v14790_v49, %v14789_v59  ;;  %v5081_v18 = vsel %vm12053_vm13, %v12328_v35, %v14791_v42  ;;  %v14794_v35 = vrot.slane %v12346_v7, 6  ;;  %v12431_v36 = vadd.f32 %v2913_v15, %v2694_v50  ;;  %v14798_v62 = vld [vmem:[#allocation31_spill] sm:$0xff]  ;;  %8723 = vmatprep.subr.bf16.mxu1 %v8907_v46 }
 0x353   : > { %v5085_v40 = vsel %vm12053_vm13, %v14793_v4, %v14792_v1  ;;  %v4277_v16 = vrot.slane %v4276_v19, 4  ;;  %v4282_v6 = vrot.slane %v12396_v8, 4  ;;  %v4290_v63 = vor.u32 %v4289_v32, %v4286_v54  ;;  %v4412_v23 = vpop.permute.xlu1 %4411  ;;  %v4445_v59 = vpop.permute.xlu0 %4444  ;;  %v8949_v32 = vld [vmem:[#allocation2 + $0x14] sm:$0x3]  ;;  %v14803_v4 = vld [vmem:[#allocation49_spill] sm:$0xff]  ;;  %8724 = vmatpush3.bf16.msra.mxu1 %v8907_v46  ;;  %v14808_v46 = vld [vmem:[#allocation50_spill] sm:$0xff] }
 0x354   : > { %v5092_v58 = vsel %vm12053_vm13, %v8249_v26, %v14794_v35  ;;  %14795 = vst [vmem:[#allocation97_spill] sm:$0xff] %v12431_v36  ;;  %v4300_v31 = vrot.slane %v4299_v61, 4  ;;  %v4305_v7 = vrot.slane %v12401_v41, 4  ;;  %v4313_v51 = vor.u32 %v4312_v20, %v4309_v10  ;;  %4429 = vrot.lane.b32.xlu0 %v12148_v30, %s9019_s22  ;;  %v14801_v10 = vld [vmem:[#allocation102_spill] sm:$0xff]  ;;  %v14802_v20 = vld [vmem:[#allocation43_spill] sm:$0xff] }
 0x355   : > { %v12440_v26 = vcombine.low %v12298_v44, %v12312_v28  ;;  %v3463_v19 = vsel %vm1597_vm8, %v14798_v62, %v14797_v3  ;;  %v8233_v49 = vrot.slane %v4908_v48, 10  ;;  %v4981_v54 = vrot.slane %v4979_v0, 4  ;;  %4396 = vrot.lane.b32.xlu1 %v12148_v30, %s9016_s10  ;;  %v14812_v62 = vld [vmem:[#allocation107_spill] sm:$0xff] }
 0x356   : > { %v4982_v42 = vrot.slane %v8949_v32, 6  ;;  %v12449_v61 = vcombine.low %v5078_v45, %v5081_v18  ;;  %v12451_v44 = vcombine.low %v5085_v40, %v5088_v52  ;;  %v12453_v28 = vcombine.low %v5092_v58, %v5095_v39  ;;  %v14804_v45 = vld [vmem:[#allocation44_spill] sm:$0xff]  ;;  %v14805_v18 = vld [vmem:[#allocation47_spill] sm:$0xff]  ;;  %v14814_v32 = vld [vmem:[#allocation78_spill] sm:$0xff] }
 0x357   : > { %14796 = vst [vmem:[#allocation23_spill] sm:$0xff] %v12440_v26  ;;  %v3466_v1 = vsel %vm1597_vm8, %v14802_v20, %v14801_v10  ;;  %v4517_v15 = vsel %vm1597_vm8, %v14803_v4, %v12376_v43  ;;  %v4281_v50 = vsel %vm10351_vm7, %v4277_v16, %v12396_v8  ;;  %v4291_v30 = vsel %vm10351_vm7, %v4282_v6, %v4290_v63  ;;  %v4447_v52 = vpop.permute.xlu1 %4446  ;;  %v14806_v58 = vld [vmem:[#allocation120_spill] sm:$0xff]  ;;  %v4480_v6 = vpop.permute.xlu0 %4479  ;;  %v14815_v10 = vld [vmem:[#allocation65_spill] sm:$0xff] }
 0x358   : > { %14799 = vst [vmem:[#allocation114_spill] sm:$0xff] %v12451_v44  ;;  %14800 = vst [vmem:[#allocation94_spill] sm:$0xff] %v12453_v28  ;;  %v3469_v40 = vsel %vm1597_vm8, %v14805_v18, %v14804_v45  ;;  %v4560_v48 = vsel %vm1646_vm10, %v4517_v15, %v4410_v22  ;;  %v4304_v35 = vsel %vm10351_vm7, %v4300_v31, %v12401_v41  ;;  %v14807_v8 = vld [vmem:[#allocation76_spill] sm:$0xff]  ;;  %4464 = vrot.lane.b32.xlu0 %v12160_v14, %s9017_s12  ;;  %v14809_v31 = vld [vmem:[#allocation37_spill] sm:$0xff]  ;;  %vm14872_vm0 = vcmask 31744  }
 0x359   : > { %v4314_v43 = vsel %vm10351_vm7, %v4305_v7, %v4313_v51  ;;  %v3448_v39 = vsel %vm1597_vm8, %v14807_v8, %v14806_v58  ;;  %v4592_v16 = vsel %vm1679_vm2, %v4560_v48, %v4445_v59  ;;  %v4980_v63 = vsel %vm12053_vm13, %v8233_v49, %v4979_v0  ;;  %4431 = vrot.lane.b32.xlu1 %v12160_v14, %s9019_s22  ;;  %v14810_v7 = vld [vmem:[#allocation82_spill] sm:$0xff]  ;;  %v14811_v0 = vld [vmem:[#allocation32_spill] sm:$0xff]  ;;  %v14822_v8 = vld [vmem:[#allocation53_spill] sm:$0xff] }
 0x35a   : > { %v4983_v22 = vsel %vm12053_vm13, %v4981_v54, %v4982_v42  ;;  %v4520_v3 = vsel %vm1597_vm8, %v14808_v46, %v4377_v38  ;;  %v4624_v41 = vsel %vm1712_vm1, %v4592_v16, %v4480_v6  ;;  %v8202_v5 = vcombine.low %v4281_v50, %v4291_v30  ;;  %v14813_v54 = vld [vmem:[#allocation45_spill] sm:$0xff]  ;;  %v14817_v50 = vld [vmem:[#allocation79_spill] sm:$0xff]  ;;  %v14819_v18 = vld [vmem:[#allocation54_spill] sm:$0xff] }
 0x35b   : > { %v3451_v51 = vsel %vm1597_vm8, %v14810_v7, %v14809_v31  ;;  %v3454_v59 = vsel %vm1597_vm8, %v14812_v62, %v14811_v0  ;;  %v4562_v49 = vsel %vm1646_vm10, %v4520_v3, %v4412_v23  ;;  %8695 = vmatprep.mubr.msk.bf16.mxu0 %vm2620_vm6, %v4624_v41  ;;  %v8203_v38 = vcombine.low %v4304_v35, %v4314_v43  ;;  %v4482_v4 = vpop.permute.xlu1 %4481  ;;  %v14818_v23 = vld [vmem:[#allocation40_spill] sm:$0xff]  ;;  %v3374_v43 = vpop.permute.xlu0 %3373  ;;  %v14820_v58 = vld [vmem:[#allocation26_spill] sm:$0xff]  ;;  %v14825_v46 = vld [vmem:[#allocation75_spill] sm:$0xff] }
 0x35c   : > { %v3472_v42 = vsel %vm1597_vm8, %v14814_v32, %v14813_v54  ;;  %v3475_v14 = vsel %vm1597_vm8, %v14743_v11, %v14815_v10  ;;  %v4594_v20 = vsel %vm1679_vm2, %v4562_v49, %v4447_v52  ;;  %v12505_v15 = vcombine.low %v4980_v63, %v4983_v22  ;;  %v14821_v11 = vld [vmem:[#allocation35_spill] sm:$0xff]  ;;  %v14823_v16 = vld [vmem:[#allocation90_spill] sm:$0xff]  ;;  %4499 = vrot.lane.b32.xlu0 %v8202_v5, %s9015_s26  ;;  %v14827_v7 = vld [vmem:[#allocation24_spill] sm:$0xff] }
 0x35d   : > { %v3489_v30 = vsel %vm1646_vm10, %v3448_v39, %v14817_v50  ;;  %v3491_v45 = vsel %vm1646_vm10, %v3451_v51, %v14818_v23  ;;  %v12513_v48 = vsel %vm1646_vm10, %v3454_v59, %v14819_v18  ;;  %v4626_v35 = vsel %vm1712_vm1, %v4594_v20, %v4482_v4  ;;  %v14824_v39 = vld [vmem:[#allocation77_spill] sm:$0xff]  ;;  %4466 = vrot.lane.b32.xlu1 %v8202_v5, %s9017_s12  ;;  %v4907_v22 = vld [vmem:[#allocation2] sm:$0xc]  ;;  %v14826_v41 = vld [vmem:[#allocation87_spill] sm:$0xff] }
 0x35e   : > { %14816 = vst [vmem:[#allocation88_spill] sm:$0xff] %v12505_v15  ;;  %v12519_v52 = vsel %vm1646_vm10, %v14821_v11, %v14820_v58  ;;  %v12524_v6 = vsel %vm1646_vm10, %v14823_v16, %v14822_v8  ;;  %v12528_v63 = vsel %vm1646_vm10, %v3463_v19, %v14824_v39  ;;  %v12534_v3 = vsel %vm1646_vm10, %v3466_v1, %v14825_v46  ;;  %v12545_v19 = vld [vmem:[#allocation3 + $0xc] sm:$0xf]  ;;  %v12547_v0 = vld [vmem:[#allocation3 + $0x10] sm:$0xf]  ;;  %vm14886_vm14 = vmmov %vm14872_vm0 }
 0x35f   : > { %v12538_v31 = vsel %vm1646_vm10, %v3469_v40, %v14826_v41  ;;  %v12542_v51 = vsel %vm1646_vm10, %v3472_v42, %v14827_v7  ;;  %8696 = vmatmul.mubr.msk.bf16.gmra.mxu0 %vm2620_vm6, %v4626_v35  ;;  %v14828_v5 = vld [vmem:[#allocation73_spill] sm:$0xff]  ;;  %v12555_v1 = vadd.f32 %v12314_v56, %v12374_v53  ;;  %v12559_v40 = vadd.f32 %v12358_v57, %v12387_v9  ;;  %v3376_v59 = vpop.permute.xlu1 %3375  ;;  %v8950_v49 = vld [vmem:[#allocation2 + $0x4] sm:$0xf]  ;;  %v12566_v10 = vld [vmem:[#allocation3 + $0x18] sm:$0xf]  ;;  %v3409_v53 = vpop.permute.xlu0 %3408 }
 0x360   : > { %v12551_v62 = vsel %vm1646_vm10, %v3475_v14, %v14828_v5  ;;  %v4972_v54 = vrot.slane %v8950_v49, 6  ;;  %v9020_v32 = vmov 4286644096   ;;  %v12564_v42 = vld [vmem:[#allocation3 + $0x14] sm:$0x1]  ;;  %v12573_v56 = vadd.f32 %v12384_v17, %v12398_v21  ;;  %5161 = vrot.lane.b32.xlu0 %v12505_v15, %s9016_s10  ;;  %vm14888_vm11 = vmmov %vm14872_vm0 }
 0x361   : > { %14829 = vst [vmem:[#allocation84_spill] sm:$0xff] %v12551_v62  ;;  %14830 = vst [vmem:[#allocation93_spill] sm:$0xff] %v12555_v1  ;;  %v3521_v57 = vsel %vm1679_vm2, %v3489_v30, %v3374_v43  ;;  %v8232_v9 = vrot.slane %v4907_v22, 10  ;;  %v14833_v14 = vld [vmem:[#allocation74_spill] sm:$0xff]  ;;  %4501 = vrot.lane.b32.xlu1 %v8203_v38, %s9015_s26  ;;  %v12581_v50 = vld [vmem:[#allocation3 + $0x1c] sm:$0xf]  ;;  %v3523_v22 = vsel %vm1679_vm2, %v3491_v45, %v3376_v59 }
 0x362   : > { %14831 = vst [vmem:[#allocation108_spill] sm:$0xff] %v12559_v40  ;;  %5774 = vst.msk [vmem:[#allocation3] sm:$0xf] %vm5773_vm4, %v9020_v32  ;;  %v3553_v4 = vsel %vm1712_vm1, %v3521_v57, %v3409_v53  ;;  %v6397_v23 = vshrl.u32 %v12545_v19, 16  ;;  %v6400_v17 = vshll.u32 %v12545_v19, 16  ;;  %v6406_v21 = vshll.u32 %v12547_v0, 16 }
 0x363   : > { %5775 = vst.msk [vmem:[#allocation3 + $0x4] sm:$0xf] %vm5773_vm4, %v9020_v32  ;;  %5779 = vst.msk [vmem:[#allocation3 + $0xcc] sm:$0xf] %vm5773_vm4, %v9020_v32  ;;  %8659 = vmatprep.mubr.msk.bf16.mxu1 %vm2620_vm6, %v3553_v4  ;;  %v6410_v30 = vshrl.u32 %v12547_v0, 16  ;;  %v6416_v18 = vshll.u32 %v12564_v42, 16  ;;  %v4379_v43 = vpop.permute.xlu1 %4378  ;;  %v3411_v46 = vpop.permute.xlu0 %3410  ;;  %v12612_v59 = vsel %vm12053_vm13, %v8232_v9, %v4972_v54 }
 0x364   : > { %5777 = vst.msk [vmem:[#allocation3 + $0x8] sm:$0x1] %vm5776_vm5, %v9020_v32  ;;  %5781 = vst.msk [vmem:[#allocation3 + $0xd4] sm:$0x1] %vm5776_vm5, %v9020_v32  ;;  %v6421_v35 = vshrl.u32 %v12566_v10, 16  ;;  %v6424_v38 = vshll.u32 %v12566_v10, 16  ;;  %v3555_v49 = vsel %vm1712_vm1, %v3523_v22, %v3411_v46  ;;  %5196 = vrot.lane.b32.xlu0 %v12088_v33, %s9019_s22 }
 0x365   : > { %5780 = vst.msk [vmem:[#allocation3 + $0xd0] sm:$0xf] %vm5773_vm4, %v9020_v32  ;;  %14832 = vst [vmem:[#allocation119_spill] sm:$0xff] %v12573_v56  ;;  %v12591_v58 = vrot.slane %v4972_v54, 4  ;;  %v6399_v11 = vrot.slane %v6397_v23, 4  ;;  %v6402_v8 = vrot.slane %v6400_v17, 5  ;;  %5163 = vrot.lane.b32.xlu1 %v12088_v33, %s9016_s10  ;;  %8660 = vmatmul.mubr.msk.bf16.gmra.mxu1 %vm2620_vm6, %v3555_v49 }
 0x366   : > { %v12593_v16 = vrot.slane %v6406_v21, 5  ;;  %v8908_v39 = vld [vmem:[%s14214_s4 + $0x80] sm:$0xff]   ;;  %v6412_v41 = vrot.slane %v6410_v30, 4  ;;  %v12599_v7 = vrot.slane %v6416_v18, 5  ;;  %v6430_v5 = vshll.u32 %v12581_v50, 16  ;;  %v14834_v4 = vld [vmem:[#allocation60_spill] sm:$0xff]  ;;  %vm14877_vm4 = vmmov %vm14872_vm0 }
 0x367   : > { %v6403_v32 = vor.u32 %v6402_v8, %v6399_v11  ;;  %v6423_v57 = vrot.slane %v6421_v35, 4  ;;  %v6426_v53 = vrot.slane %v6424_v38, 5  ;;  %v4523_v45 = vsel %vm1597_vm8, %v14834_v4, %v4379_v43  ;;  %8725 = vmatprep.subr.bf16.mxu1 %v8908_v39  ;;  %v4381_v18 = vpop.permute.xlu1 %4380  ;;  %v4414_v54 = vpop.permute.xlu0 %4413  ;;  %v12625_v9 = vld [vmem:[#allocation3 + $0x20] sm:$0x1]  ;;  %v14835_v49 = vld [vmem:[#allocation63_spill] sm:$0xff]  ;;  %vm14879_vm5 = vmmov %vm14872_vm0 }
 0x368   : > { %v6413_v30 = vor.u32 %v6412_v41, %v12593_v16  ;;  %8726 = vmatpush3.bf16.msra.mxu1 %v8908_v39  ;;  %v12632_v41 = vrot.slane %v6430_v5, 5  ;;  %v4526_v4 = vsel %vm1597_vm8, %v14835_v49, %v4381_v18  ;;  %5231 = vrot.lane.b32.xlu0 %v12138_v25, %s9017_s12  ;;  %v12640_v39 = vld [vmem:[#allocation3 + $0x24] sm:$0xf]  ;;  %v6434_v15 = vshrl.u32 %v12581_v50, 16  ;;  %vm14892_vm12 = vmmov %vm14872_vm0 }
 0x369   : > { %v12614_v23 = vld [vmem:[#allocation3] sm:$0xf]  ;;  %v12628_v22 = vrot.slane %v6403_v32, 4  ;;  %5198 = vrot.lane.b32.xlu1 %v12138_v25, %s9019_s22  ;;  %v4564_v32 = vsel %vm1646_vm10, %v4523_v45, %v4414_v54  ;;  %v6427_v1 = vor.u32 %v6426_v53, %v6423_v57  ;;  %v6440_v28 = vshll.u32 %v12625_v9, 16  ;;  %v12663_v54 = vld [vmem:[#allocation3 + $0x2c] sm:$0x1]  ;;  %vm14894_vm7 = vmmov %vm14872_vm0 }
 0x36a   : > { %v12616_v17 = vld [vmem:[#allocation3 + $0x4] sm:$0xf]  ;;  %v6373_v35 = vshrl.u32 %v12614_v23, 16  ;;  %v6376_v38 = vshll.u32 %v12614_v23, 16  ;;  %v12630_v46 = vrot.slane %v6413_v30, 4  ;;  %v6436_v53 = vrot.slane %v6434_v15, 4  ;;  %vm14896_vm15 = vmmov %vm14872_vm0 }
 0x36b   : > { %v12618_v21 = vld [vmem:[#allocation3 + $0x8] sm:$0x1]  ;;  %v6382_v43 = vshll.u32 %v12616_v17, 16  ;;  %v6386_v11 = vshrl.u32 %v12616_v17, 16  ;;  %v6409_v18 = vsel %vm9481_vm3, %v12628_v22, %v12593_v16  ;;  %v4416_v49 = vpop.permute.xlu1 %4415  ;;  %v4449_v44 = vpop.permute.xlu0 %4448  ;;  %v6448_v16 = vshll.u32 %v12640_v39, 16 }
 0x36c   : > { %v6392_v8 = vshll.u32 %v12618_v21, 16  ;;  %v6375_v20 = vrot.slane %v6373_v35, 4  ;;  %v6378_v36 = vrot.slane %v6376_v38, 5  ;;  %v12649_v35 = vld [vmem:[#allocation3 + $0x28] sm:$0xf]  ;;  %v6419_v45 = vsel %vm9481_vm3, %v12630_v46, %v12599_v7  ;;  %5266 = vrot.lane.b32.xlu0 %v12150_v12, %s9015_s26 }
 0x36d   : > { %v6384_v33 = vrot.slane %v6382_v43, 5  ;;  %v6388_v30 = vrot.slane %v6386_v11, 4  ;;  %v6445_v43 = vshrl.u32 %v12640_v39, 16  ;;  %5233 = vrot.lane.b32.xlu1 %v12150_v12, %s9017_s12  ;;  %v6428_v57 = vrot.slane %v6427_v1, 4 }
 0x36e   : > { %v6394_v56 = vrot.slane %v6392_v8, 5  ;;  %v6379_v40 = vor.u32 %v6378_v36, %v6375_v20  ;;  %v4566_v36 = vsel %vm1646_vm10, %v4526_v4, %v4416_v49  ;;  %v4596_v11 = vsel %vm1679_vm2, %v4564_v32, %v4449_v44 }
 0x36f   : > { %v6389_v38 = vor.u32 %v6388_v30, %v6384_v33  ;;  %v6447_v8 = vrot.slane %v6445_v43, 4  ;;  %v6450_v22 = vrot.slane %v6448_v16, 5  ;;  %v4451_v46 = vpop.permute.xlu1 %4450  ;;  %v6437_v30 = vor.u32 %v6436_v53, %v12632_v41  ;;  %v4484_v62 = vpop.permute.xlu0 %4483 }
 0x370   : > { %v6380_v20 = vrot.slane %v6379_v40, 4  ;;  %v6442_v49 = vrot.slane %v6440_v28, 5  ;;  %v6454_v34 = vshll.u32 %v12649_v35, 16  ;;  %v6433_v44 = vsel %vm9481_vm3, %v6428_v57, %v12632_v41  ;;  %5165 = vrot.lane.b32.xlu0 %v12138_v25, %s9016_s10 }
 0x371   : > { %v6390_v7 = vrot.slane %v6389_v38, 4  ;;  %v6451_v1 = vor.u32 %v6450_v22, %v6447_v8  ;;  %v6458_v40 = vshrl.u32 %v12649_v35, 16  ;;  %v4628_v32 = vsel %vm1712_vm1, %v4596_v11, %v4484_v62  ;;  %5268 = vrot.lane.b32.xlu1 %v12166_v55, %s9015_s26  ;;  %v12686_v62 = vpop.f32.mrf.mxu0 }
 0x372   : > { %v6385_v4 = vsel %vm9481_vm3, %v6380_v20, %v6384_v33  ;;  %v6438_v33 = vrot.slane %v6437_v30, 4  ;;  %v6456_v28 = vrot.slane %v6454_v34, 5  ;;  %v6464_v38 = vshll.u32 %v12663_v54, 16  ;;  %8699 = vmatprep.mubr.msk.bf16.mxu0 %vm2620_vm6, %v4628_v32 }
 0x373   : > { %v6395_v15 = vsel %vm9481_vm3, %v6390_v7, %v6394_v56  ;;  %v4598_v56 = vsel %vm1679_vm2, %v4566_v36, %v4451_v46  ;;  %v6452_v41 = vrot.slane %v6451_v1, 4  ;;  %v6460_v43 = vrot.slane %v6458_v40, 4  ;;  %v4486_v20 = vpop.permute.xlu1 %4485  ;;  %v3378_v7 = vpop.permute.xlu0 %3377 }
 0x374   : > { %v12684_v16 = vmax.bf16 %v6385_v4, %v12614_v23  ;;  %v6443_v57 = vsel %vm9481_vm3, %v6438_v33, %v6442_v49  ;;  %v6466_v53 = vrot.slane %v6464_v38, 5  ;;  %v12691_v34 = vmax.bf16 %v6395_v15, %v12616_v17  ;;  %5200 = vrot.lane.b32.xlu0 %v12150_v12, %s9019_s22  ;;  %v12711_v40 = vpop.f32.mrf.mxu0 }
 0x375   : > { %v6842_v11 = vmax.bf16 %v6409_v18, %v12545_v19  ;;  %v4630_v36 = vsel %vm1712_vm1, %v4598_v56, %v4486_v20  ;;  %v6457_v8 = vsel %vm9481_vm3, %v6452_v41, %v6456_v28  ;;  %v6461_v22 = vor.u32 %v6460_v43, %v6456_v28  ;;  %5167 = vrot.lane.b32.xlu1 %v12150_v12, %s9016_s10 }
 0x376   : > { %v6843_v46 = vmax.bf16 %v6419_v45, %v12547_v0  ;;  %v3525_v4 = vsel %vm1679_vm2, %v12513_v48, %v3378_v7  ;;  %v6844_v18 = vmax.bf16 %v6433_v44, %v12566_v10  ;;  %v6845_v30 = vmax.bf16 %v6443_v57, %v12581_v50  ;;  %8700 = vmatmul.mubr.msk.bf16.gmra.mxu0 %vm2620_vm6, %v4630_v36  ;;  %v12737_v57 = vpop.f32.mrf.mxu0 }
 0x377   : > { %v8301_v49 = vrot.slane %v12614_v23, 9  ;;  %v6462_v15 = vrot.slane %v6461_v22, 4  ;;  %v6932_v45 = vrot.slane %v12616_v17, 5  ;;  %v6935_v1 = vrot.slane %v12618_v21, 5  ;;  %v3380_v32 = vpop.permute.xlu1 %3379  ;;  %v3413_v56 = vpop.permute.xlu0 %3412 }
 0x378   : > { %v8302_v48 = vrot.slane %v12545_v19, 9  ;;  %v6939_v33 = vrot.slane %v12547_v0, 5  ;;  %v6942_v44 = vrot.slane %v12564_v42, 5  ;;  %v8303_v28 = vrot.slane %v12566_v10, 9  ;;  %5235 = vrot.lane.b32.xlu0 %v12166_v55, %s9017_s12 }
 0x379   : > { %v6946_v23 = vrot.slane %v12581_v50, 5  ;;  %v3527_v38 = vsel %vm1679_vm2, %v12519_v52, %v3380_v32  ;;  %v6467_v17 = vsel %vm9481_vm3, %v6462_v15, %v6466_v53  ;;  %v6846_v19 = vmax.bf16 %v6457_v8, %v12640_v39  ;;  %5202 = vrot.lane.b32.xlu1 %v12166_v55, %s9019_s22 }
 0x37a   : > { %v6934_v21 = vrot.slane %v6932_v45, 4  ;;  %v3557_v41 = vsel %vm1712_vm1, %v3525_v4, %v3413_v56  ;;  %v6933_v0 = vsel %vm9507_vm9, %v8301_v49, %v6932_v45  ;;  %v6940_v52 = vsel %vm9507_vm9, %v8302_v48, %v6939_v33  ;;  %v4925_v48 = vld [vmem:[#allocation2 + $0xd8] sm:$0xc] }
 0x37b   : > { %v6941_v42 = vrot.slane %v6939_v33, 4  ;;  %8663 = vmatprep.mubr.msk.bf16.mxu1 %vm2620_vm6, %v3557_v41  ;;  %v6947_v50 = vsel %vm9507_vm9, %v8303_v28, %v6946_v23  ;;  %v6948_v43 = vrot.slane %v6946_v23, 4  ;;  %v6949_v20 = vrot.slane %v12625_v9, 5  ;;  %v4383_v53 = vpop.permute.xlu1 %4382  ;;  %v3415_v4 = vpop.permute.xlu0 %3414 }
 0x37c   : > { %v6936_v10 = vsel %vm9507_vm9, %v6934_v21, %v6935_v1  ;;  %v8304_v7 = vrot.slane %v12640_v39, 9  ;;  %v6953_v8 = vrot.slane %v12649_v35, 5  ;;  %v6956_v22 = vrot.slane %v12663_v54, 5  ;;  %5270 = vrot.lane.b32.xlu0 %v12229_v13, %s9015_s26  ;;  %v12768_v28 = vpop.f32.mrf.mxu0 }
 0x37d   : > { %v6943_v36 = vsel %vm9507_vm9, %v6941_v42, %v6942_v44  ;;  %v6847_v49 = vmax.bf16 %v6467_v17, %v12649_v35  ;;  %v6950_v15 = vsel %vm9507_vm9, %v6948_v43, %v6949_v20  ;;  %v7092_v9 = vmax.bf16 %v6933_v0, %v12684_v16  ;;  %5237 = vrot.lane.b32.xlu1 %v12229_v13, %s9017_s12  ;;  %v12788_v42 = vld [vmem:[#allocation3 + $0x30] sm:$0xf]  ;;  %v14839_v43 = vld [vmem:[#allocation67_spill] sm:$0xff] }
 0x37e   : > { %v7093_v45 = vmax.bf16 %v6936_v10, %v12691_v34  ;;  %v3559_v1 = vsel %vm1712_vm1, %v3527_v38, %v3415_v4  ;;  %v6954_v39 = vsel %vm9507_vm9, %v8304_v7, %v6953_v8  ;;  %v6955_v54 = vrot.slane %v6953_v8, 4  ;;  %v12778_v41 = vpop.f32.mrf.mxu0  ;;  %v14838_v10 = vld [vmem:[#allocation66_spill] sm:$0xff] }
 0x37f   : > { %v7094_v35 = vmax.bf16 %v6940_v52, %v6842_v11  ;;  %8664 = vmatmul.mubr.msk.bf16.gmra.mxu1 %vm2620_vm6, %v3559_v1  ;;  %v14837_v16 = vrot.slane %v14833_v14, 6  ;;  %v7095_v32 = vmax.bf16 %v6943_v36, %v6843_v46  ;;  %v12764_v33 = vmax.bf16 %v6947_v50, %v6844_v18  ;;  %v4385_v23 = vpop.permute.xlu1 %4384  ;;  %v4418_v17 = vpop.permute.xlu0 %4417 }
 0x380   : > { %v12766_v44 = vmax.bf16 %v6950_v15, %v6845_v30  ;;  %v6957_v11 = vsel %vm9507_vm9, %v6955_v54, %v6956_v22  ;;  %v12772_v38 = vmax.bf16 %v6954_v39, %v6846_v19  ;;  %v5098_v14 = vrot.slane %v12249_v47, 6  ;;  %v4926_v30 = vld [vmem:[#allocation2 + $0xe4] sm:$0xc]  ;;  %5169 = vrot.lane.b32.xlu0 %v12166_v55, %s9016_s10  ;;  %v6332_v39 = vld [vmem:[#allocation3 + $0x38] sm:$0x1] }
 0x381   : > { %v12762_v34 = vsel %vm12053_vm13, %v12591_v58, %v14837_v16  ;;  %v7128_v56 = vmax.bf16 %v7094_v35, %v7092_v9  ;;  %v12775_v21 = vmax.bf16 %v6957_v11, %v6847_v49  ;;  %v7129_v58 = vmax.bf16 %v7095_v32, %v7093_v45  ;;  %5272 = vrot.lane.b32.xlu1 %v12231_v27, %s9015_s26  ;;  %v12799_v9 = vld [vmem:[#allocation3 + $0x34] sm:$0xf] }
 0x382   : > { %v7130_v46 = vmax.bf16 %v12764_v33, %v7094_v35  ;;  %v8250_v18 = vrot.slane %v4925_v48, 10  ;;  %v7131_v47 = vmax.bf16 %v12766_v44, %v7095_v32  ;;  %v5100_v52 = vrot.slane %v5098_v14, 4  ;;  %v12810_v35 = vpop.f32.mrf.mxu0 }
 0x383   : > { %v7160_v0 = vmax.bf16 %v7128_v56, %v12764_v33  ;;  %v4529_v50 = vsel %vm1597_vm8, %v14838_v10, %v4383_v53  ;;  %v4532_v20 = vsel %vm1597_vm8, %v14839_v43, %v4385_v23  ;;  %v7161_v36 = vmax.bf16 %v7129_v58, %v12766_v44  ;;  %v4420_v22 = vpop.permute.xlu1 %4419  ;;  %v4453_v45 = vpop.permute.xlu0 %4452 }
 0x384   : > { %v5101_v7 = vrot.slane %v12337_v24, 6  ;;  %v4568_v8 = vsel %vm1646_vm10, %v4529_v50, %v4418_v17  ;;  %v8251_v4 = vrot.slane %v4926_v30, 10  ;;  %v5105_v49 = vrot.slane %v12273_v37, 6  ;;  %5204 = vrot.lane.b32.xlu0 %v12229_v13, %s9019_s22  ;;  %v12837_v50 = vld [vmem:[#allocation3 + $0x3c] sm:$0xf]  ;;  %v12839_v43 = vpop.f32.mrf.mxu0 }
 0x385   : > { %v5108_v15 = vrot.slane %v12356_v29, 6  ;;  %v12802_v53 = vmax.bf16 %v7130_v46, %v12772_v38  ;;  %v12805_v1 = vmax.bf16 %v7131_v47, %v12775_v21  ;;  %v5099_v24 = vsel %vm12053_vm13, %v8250_v18, %v5098_v14  ;;  %5171 = vrot.lane.b32.xlu1 %v12229_v13, %s9016_s10 }
 0x386   : > { %v6469_v54 = vshrl.u32 %v12788_v42, 16  ;;  %v4570_v37 = vsel %vm1646_vm10, %v4532_v20, %v4420_v22  ;;  %v12817_v29 = vcombine.low %v7160_v0, %v7161_v36  ;;  %v5102_v48 = vsel %vm12053_vm13, %v5100_v52, %v5101_v7 }
 0x387   : > { %v5107_v16 = vrot.slane %v5105_v49, 4  ;;  %v4600_v32 = vsel %vm1679_vm2, %v4568_v8, %v4453_v45  ;;  %v6472_v11 = vshll.u32 %v12788_v42, 16  ;;  %v6478_v56 = vshll.u32 %v12799_v9, 16  ;;  %v4455_v14 = vpop.permute.xlu1 %4454  ;;  %v4488_v30 = vpop.permute.xlu0 %4487  ;;  %v12848_v8 = vld [vmem:[#allocation3 + $0x40] sm:$0xf] }
 0x388   : > { %v6471_v23 = vrot.slane %v6469_v54, 4  ;;  %v12826_v17 = vsel %vm12053_vm13, %v8251_v4, %v5105_v49  ;;  %v6482_v46 = vshrl.u32 %v12799_v9, 16  ;;  %v6488_v18 = vshll.u32 %v6332_v39, 16  ;;  %5239 = vrot.lane.b32.xlu0 %v12231_v27, %s9017_s12 }
 0x389   : > { %v12830_v58 = vsel %vm12053_vm13, %v5107_v16, %v5108_v15  ;;  %v12833_v47 = vcombine.low %v5099_v24, %v5102_v48  ;;  %v6474_v52 = vrot.slane %v6472_v11, 5  ;;  %v6480_v10 = vrot.slane %v6478_v56, 5  ;;  %5206 = vrot.lane.b32.xlu1 %v12231_v27, %s9019_s22  ;;  %vm14899_vm13 = vmmov %vm14872_vm0 }
 0x38a   : > { %v4632_v20 = vsel %vm1712_vm1, %v4600_v32, %v4488_v30  ;;  %v6484_v60 = vrot.slane %v6482_v46, 4  ;;  %v8305_v36 = vrot.slane %v12788_v42, 9  ;;  %v6960_v7 = vrot.slane %v12799_v9, 5  ;;  %v8573_v45 = vpop.f32.mrf.mxu1  ;;  %v12859_v30 = vpop.f32.mrf.mxu0 }
 0x38b   : > { %v4602_v22 = vsel %vm1679_vm2, %v4570_v37, %v4455_v14  ;;  %8703 = vmatprep.mubr.msk.bf16.mxu0 %vm2620_vm6, %v4632_v20  ;;  %v6475_v49 = vor.u32 %v6474_v52, %v6471_v23  ;;  %v6963_v15 = vrot.slane %v6332_v39, 5  ;;  %v6490_v54 = vrot.slane %v6488_v18, 5  ;;  %v4490_v32 = vpop.permute.xlu1 %4489  ;;  %v3382_v11 = vpop.permute.xlu0 %3381  ;;  %v14840_v18 = vld [vmem:[#allocation122_spill] sm:$0xff] }
 0x38c   : > { %v6485_v24 = vor.u32 %v6484_v60, %v6480_v10  ;;  %v6962_v48 = vrot.slane %v6960_v7, 4  ;;  %v6493_v16 = vshrl.u32 %v12837_v50, 16  ;;  %v7132_v46 = vmax.bf16 %v12772_v38, %v12764_v33  ;;  %v2707_v23 = vpop.f32.mrf.mxu1  ;;  %5274 = vrot.lane.b32.xlu0 %v14840_v18, %s9015_s26  ;;  %v12870_v60 = vld [vmem:[#allocation3 + $0x44] sm:$0x1] }
 0x38d   : > { %v6476_v56 = vrot.slane %v6475_v49, 4  ;;  %v6496_v37 = vshll.u32 %v12837_v50, 16  ;;  %v6502_v14 = vshll.u32 %v12848_v8, 16  ;;  %v4634_v39 = vsel %vm1712_vm1, %v4602_v22, %v4490_v32  ;;  %5241 = vrot.lane.b32.xlu1 %v14840_v18, %s9017_s12 }
 0x38e   : > { %v6486_v52 = vrot.slane %v6485_v24, 4  ;;  %v6961_v20 = vsel %vm9507_vm9, %v8305_v36, %v6960_v7  ;;  %v7133_v33 = vmax.bf16 %v12775_v21, %v12766_v44  ;;  %8704 = vmatmul.mubr.msk.bf16.gmra.mxu0 %vm2620_vm6, %v4634_v39  ;;  %v6964_v49 = vsel %vm9507_vm9, %v6962_v48, %v6963_v15  ;;  %v8574_v0 = vpop.f32.mrf.mxu1  ;;  %v12885_v48 = vpop.f32.mrf.mxu0 }
 0x38f   : > { %v6481_v22 = vsel %vm9481_vm3, %v6476_v56, %v6480_v10  ;;  %v6495_v32 = vrot.slane %v6493_v16, 4  ;;  %v6498_v4 = vrot.slane %v6496_v37, 5  ;;  %v6504_v7 = vrot.slane %v6502_v14, 5  ;;  %v3384_v19 = vpop.permute.xlu1 %3383  ;;  %v3417_v13 = vpop.permute.xlu0 %3416  ;;  %v14842_v37 = vld [vmem:[#allocation89_spill] sm:$0xff] }
 0x390   : > { %v6491_v24 = vsel %vm9481_vm3, %v6486_v52, %v6490_v54  ;;  %v6848_v36 = vmax.bf16 %v6481_v22, %v12788_v42  ;;  %v6506_v44 = vshrl.u32 %v12848_v8, 16  ;;  %v3529_v39 = vsel %vm1679_vm2, %v12524_v6, %v3382_v11  ;;  %v2710_v54 = vpop.f32.mrf.mxu1  ;;  %5173 = vrot.lane.b32.xlu0 %v12231_v27, %s9016_s10 }
 0x391   : > { %v6849_v10 = vmax.bf16 %v6491_v24, %v12799_v9  ;;  %v6499_v56 = vor.u32 %v6498_v4, %v6495_v32  ;;  %v6512_v15 = vshll.u32 %v12870_v60, 16  ;;  %v12888_v16 = vadd.f32 %v12686_v62, %v8573_v45  ;;  %5276 = vrot.lane.b32.xlu1 %v14842_v37, %s9015_s26  ;;  %v12916_v24 = vld [vmem:[#allocation3 + $0x48] sm:$0xf] }
 0x392   : > { %v3561_v42 = vsel %vm1712_vm1, %v3529_v39, %v3417_v13  ;;  %v12895_v6 = vmax.bf16 %v6961_v20, %v6848_v36  ;;  %v6508_v9 = vrot.slane %v6506_v44, 4  ;;  %v12898_v4 = vadd.f32 %v12711_v40, %v2707_v23  ;;  %v12918_v36 = vpop.f32.mrf.mxu0 }
 0x393   : > { %14841 = vst [vmem:[#allocation10_spill] sm:$0xff] %v12888_v16  ;;  %v12901_v11 = vadd.f32 %v12768_v28, %v2710_v54  ;;  %8667 = vmatprep.mubr.msk.bf16.mxu1 %vm2620_vm6, %v3561_v42  ;;  %v12904_v62 = vmax.bf16 %v6964_v49, %v6849_v10  ;;  %v6500_v13 = vrot.slane %v6499_v56, 4  ;;  %v6514_v14 = vrot.slane %v6512_v15, 5  ;;  %v4387_v23 = vpop.permute.xlu1 %4386  ;;  %v3419_v28 = vpop.permute.xlu0 %3418 }
 0x394   : > { %14843 = vst [vmem:[#allocation85_spill] sm:$0xff] %v12898_v4  ;;  %v6509_v45 = vor.u32 %v6508_v9, %v6504_v7  ;;  %v8306_v52 = vrot.slane %v12837_v50, 9  ;;  %v6967_v22 = vrot.slane %v12848_v8, 5  ;;  %v12909_v20 = vadd.f32 %v12737_v57, %v8574_v0  ;;  %5208 = vrot.lane.b32.xlu0 %v14840_v18, %s9019_s22  ;;  %v12929_v0 = vld [vmem:[#allocation3 + $0x4c] sm:$0xf] }
 0x395   : > { %14844 = vst [vmem:[#allocation41_spill] sm:$0xff] %v12901_v11  ;;  %v3531_v40 = vsel %vm1679_vm2, %v12528_v63, %v3384_v19  ;;  %v6505_v32 = vsel %vm9481_vm3, %v6500_v13, %v6504_v7  ;;  %v6970_v49 = vrot.slane %v12870_v60, 5  ;;  %5175 = vrot.lane.b32.xlu1 %v14840_v18, %s9016_s10  ;;  %v12926_v63 = vmax.bf16 %v7132_v46, %v12895_v6  ;;  %v6338_v13 = vld [vmem:[#allocation3 + $0x50] sm:$0x1] }
 0x396   : > { %14845 = vst [vmem:[#allocation80_spill] sm:$0xff] %v12909_v20  ;;  %v3563_v44 = vsel %vm1712_vm1, %v3531_v40, %v3419_v28  ;;  %v6510_v57 = vrot.slane %v6509_v45, 4  ;;  %v6850_v19 = vmax.bf16 %v6505_v32, %v12837_v50  ;;  %v12933_v60 = vmax.bf16 %v7133_v33, %v12904_v62  ;;  %v14847_v40 = vld [vmem:[#allocation55_spill] sm:$0xff] }
 0x397   : > { %8668 = vmatmul.mubr.msk.bf16.gmra.mxu1 %vm2620_vm6, %v3563_v44  ;;  %v6968_v7 = vsel %vm9507_vm9, %v8306_v52, %v6967_v22  ;;  %v6969_v39 = vrot.slane %v6967_v22, 4  ;;  %v7134_v10 = vmax.bf16 %v12895_v6, %v12772_v38  ;;  %v6517_v50 = vshrl.u32 %v12916_v24, 16  ;;  %v4389_v42 = vpop.permute.xlu1 %4388  ;;  %v4422_v54 = vpop.permute.xlu0 %4421 }
 0x398   : > { %v6515_v46 = vsel %vm9481_vm3, %v6510_v57, %v6514_v14  ;;  %v12941_v56 = vmax.bf16 %v6968_v7, %v6850_v19  ;;  %v6520_v15 = vshll.u32 %v12916_v24, 16  ;;  %v6526_v45 = vshll.u32 %v12929_v0, 16  ;;  %v12950_v52 = vpop.f32.mrf.mxu0  ;;  %v14846_v14 = vld [vmem:[#allocation62_spill] sm:$0xff]  ;;  %5243 = vrot.lane.b32.xlu0 %v14842_v37, %s9017_s12 }
 0x399   : > { %v6851_v33 = vmax.bf16 %v6515_v46, %v12848_v8  ;;  %v6971_v9 = vsel %vm9507_vm9, %v6969_v39, %v6970_v49  ;;  %v6530_v38 = vshrl.u32 %v12929_v0, 16  ;;  %v4535_v22 = vsel %vm1597_vm8, %v14846_v14, %v4387_v23  ;;  %5210 = vrot.lane.b32.xlu1 %v14842_v37, %s9019_s22 }
 0x39a   : > { %v4538_v28 = vsel %vm1597_vm8, %v14847_v40, %v4389_v42  ;;  %v7135_v8 = vmax.bf16 %v12904_v62, %v12775_v21  ;;  %v6519_v32 = vrot.slane %v6517_v50, 4  ;;  %v6522_v44 = vrot.slane %v6520_v15, 5  ;;  %v12972_v15 = vld [vmem:[#allocation3 + $0x58] sm:$0xf] }
 0x39b   : > { %v12962_v49 = vmax.bf16 %v6971_v9, %v6851_v33  ;;  %v6528_v57 = vrot.slane %v6526_v45, 5  ;;  %v6532_v19 = vrot.slane %v6530_v38, 4  ;;  %v4572_v23 = vsel %vm1646_vm10, %v4535_v22, %v4422_v54  ;;  %v4424_v42 = vpop.permute.xlu1 %4423  ;;  %v4457_v14 = vpop.permute.xlu0 %4456  ;;  %v12970_v33 = vld [vmem:[#allocation3 + $0x54] sm:$0xf]  ;;  %v14848_v45 = vld [vmem:[#allocation112_spill] sm:$0xff] }
 0x39c   : > { %v6536_v7 = vshll.u32 %v6338_v13, 16  ;;  %v8307_v39 = vrot.slane %v12916_v24, 9  ;;  %v6974_v46 = vrot.slane %v12929_v0, 5  ;;  %v12968_v40 = vmax.bf16 %v7134_v10, %v12941_v56  ;;  %v12974_v9 = vpop.f32.mrf.mxu0  ;;  %5278 = vrot.lane.b32.xlu0 %v14848_v45, %s9015_s26 }
 0x39d   : > { %v6523_v18 = vor.u32 %v6522_v44, %v6519_v32  ;;  %v6533_v21 = vor.u32 %v6532_v19, %v6528_v57  ;;  %v6977_v50 = vrot.slane %v6338_v13, 5  ;;  %v4574_v54 = vsel %vm1646_vm10, %v4538_v28, %v4424_v42  ;;  %5245 = vrot.lane.b32.xlu1 %v14848_v45, %s9017_s12 }
 0x39e   : > { %v12982_v10 = vmax.bf16 %v7135_v8, %v12962_v49  ;;  %v6538_v38 = vrot.slane %v6536_v7, 5  ;;  %v7136_v13 = vmax.bf16 %v12941_v56, %v12895_v6  ;;  %v4604_v22 = vsel %vm1679_vm2, %v4572_v23, %v4457_v14  ;;  %v6341_v23 = vld [vmem:[#allocation3 + $0x5c] sm:$0x1] }
 0x39f   : > { %v6524_v32 = vrot.slane %v6523_v18, 4  ;;  %v6534_v44 = vrot.slane %v6533_v21, 4  ;;  %v6976_v19 = vrot.slane %v6974_v46, 4  ;;  %v6975_v28 = vsel %vm9507_vm9, %v8307_v39, %v6974_v46  ;;  %v4459_v8 = vpop.permute.xlu1 %4458  ;;  %v4492_v20 = vpop.permute.xlu0 %4491  ;;  %v14849_v21 = vld [vmem:[#allocation29_spill] sm:$0xff] }
 0x3a0   : > { %v6541_v42 = vshrl.u32 %v12970_v33, 16  ;;  %v6544_v27 = vshll.u32 %v12970_v33, 16  ;;  %v6550_v11 = vshll.u32 %v12972_v15, 16  ;;  %v7137_v18 = vmax.bf16 %v12962_v49, %v12904_v62  ;;  %v12999_v46 = vpop.f32.mrf.mxu0  ;;  %5177 = vrot.lane.b32.xlu0 %v14842_v37, %s9016_s10 }
 0x3a1   : > { %v6529_v7 = vsel %vm9481_vm3, %v6524_v32, %v6528_v57  ;;  %v6539_v6 = vsel %vm9481_vm3, %v6534_v44, %v6538_v38  ;;  %v6554_v39 = vshrl.u32 %v12972_v15, 16  ;;  %v4636_v14 = vsel %vm1712_vm1, %v4604_v22, %v4492_v20  ;;  %5280 = vrot.lane.b32.xlu1 %v14849_v21, %s9015_s26 }
 0x3a2   : > { %v6852_v57 = vmax.bf16 %v6529_v7, %v12916_v24  ;;  %v6978_v38 = vsel %vm9507_vm9, %v6976_v19, %v6977_v50  ;;  %v6543_v32 = vrot.slane %v6541_v42, 4  ;;  %8707 = vmatprep.mubr.msk.bf16.mxu0 %vm2620_vm6, %v4636_v14  ;;  %v6853_v62 = vmax.bf16 %v6539_v6, %v12929_v0  ;;  %v13018_v14 = vld [vmem:[#allocation3 + $0x60] sm:$0xf] }
 0x3a3   : > { %v6546_v44 = vrot.slane %v6544_v27, 5  ;;  %v6552_v55 = vrot.slane %v6550_v11, 5  ;;  %v6556_v4 = vrot.slane %v6554_v39, 4  ;;  %v6560_v22 = vshll.u32 %v6341_v23, 16  ;;  %v4494_v7 = vpop.permute.xlu1 %4493  ;;  %v3386_v16 = vpop.permute.xlu0 %3385 }
 0x3a4   : > { %v13011_v20 = vmax.bf16 %v6975_v28, %v6852_v57  ;;  %v8308_v12 = vrot.slane %v12970_v33, 9  ;;  %v6981_v37 = vrot.slane %v12972_v15, 5  ;;  %v4606_v24 = vsel %vm1679_vm2, %v4574_v54, %v4459_v8  ;;  %v13020_v27 = vpop.f32.mrf.mxu0  ;;  %5212 = vrot.lane.b32.xlu0 %v14848_v45, %s9019_s22 }
 0x3a5   : > { %v13016_v50 = vmax.bf16 %v6978_v38, %v6853_v62  ;;  %v6547_v19 = vor.u32 %v6546_v44, %v6543_v32  ;;  %v6557_v42 = vor.u32 %v6556_v4, %v6552_v55  ;;  %v4638_v11 = vsel %vm1712_vm1, %v4606_v24, %v4494_v7  ;;  %5179 = vrot.lane.b32.xlu1 %v14848_v45, %s9016_s10  ;;  %v13040_v38 = vld [vmem:[#allocation3 + $0x64] sm:$0xf]  ;;  %v13091_v45 = vld [vmem:[#allocation3 + $0x6c] sm:$0xf] }
 0x3a6   : > { %v3533_v0 = vsel %vm1679_vm2, %v12534_v3, %v3386_v16  ;;  %v6562_v54 = vrot.slane %v6560_v22, 5  ;;  %v6984_v28 = vrot.slane %v6341_v23, 5  ;;  %8708 = vmatmul.mubr.msk.bf16.gmra.mxu0 %vm2620_vm6, %v4638_v11  ;;  %v13031_v4 = vmax.bf16 %v7136_v13, %v13011_v20  ;;  %v13050_v22 = vpop.f32.mrf.mxu0 }
 0x3a7   : > { %v13034_v8 = vmax.bf16 %v7137_v18, %v13016_v50  ;;  %v6548_v6 = vrot.slane %v6547_v19, 4  ;;  %v6558_v39 = vrot.slane %v6557_v42, 4  ;;  %v6982_v3 = vsel %vm9507_vm9, %v8308_v12, %v6981_v37  ;;  %v3388_v32 = vpop.permute.xlu1 %3387  ;;  %v3421_v62 = vpop.permute.xlu0 %3420  ;;  %v6344_v12 = vld [vmem:[#allocation3 + $0x68] sm:$0x1] }
 0x3a8   : > { %v6983_v16 = vrot.slane %v6981_v37, 4  ;;  %v7138_v57 = vmax.bf16 %v13011_v20, %v12941_v56  ;;  %v6565_v23 = vshrl.u32 %v13018_v14, 16  ;;  %v7139_v44 = vmax.bf16 %v13016_v50, %v12962_v49  ;;  %5247 = vrot.lane.b32.xlu0 %v14849_v21, %s9017_s12 }
 0x3a9   : > { %v6553_v13 = vsel %vm9481_vm3, %v6548_v6, %v6552_v55  ;;  %v6563_v18 = vsel %vm9481_vm3, %v6558_v39, %v6562_v54  ;;  %v6568_v37 = vshll.u32 %v13018_v14, 16  ;;  %v3535_v56 = vsel %vm1679_vm2, %v12538_v31, %v3388_v32  ;;  %5214 = vrot.lane.b32.xlu1 %v14849_v21, %s9019_s22 }
 0x3aa   : > { %v3565_v24 = vsel %vm1712_vm1, %v3533_v0, %v3421_v62  ;;  %v6854_v55 = vmax.bf16 %v6553_v13, %v12970_v33  ;;  %v6567_v7 = vrot.slane %v6565_v23, 4  ;;  %v6855_v49 = vmax.bf16 %v6563_v18, %v12972_v15  ;;  %v13072_v13 = vpop.f32.mrf.mxu0 }
 0x3ab   : > { %8671 = vmatprep.mubr.msk.bf16.mxu1 %vm2620_vm6, %v3565_v24  ;;  %v6985_v19 = vsel %vm9507_vm9, %v6983_v16, %v6984_v28  ;;  %v6570_v42 = vrot.slane %v6568_v37, 5  ;;  %v6574_v31 = vshll.u32 %v13040_v38, 16  ;;  %v6578_v0 = vshrl.u32 %v13040_v38, 16  ;;  %v4391_v39 = vpop.permute.xlu1 %4390  ;;  %v3423_v33 = vpop.permute.xlu0 %3422  ;;  %v14851_v24 = vld [vmem:[#allocation39_spill] sm:$0xff] }
 0x3ac   : > { %v13065_v11 = vmax.bf16 %v6982_v3, %v6854_v55  ;;  %v6584_v54 = vshll.u32 %v6344_v12, 16  ;;  %v8309_v6 = vrot.slane %v13018_v14, 9  ;;  %v13069_v23 = vmax.bf16 %v6985_v19, %v6855_v49  ;;  %v14850_v3 = vld [vmem:[#allocation25_spill] sm:$0xff] }
 0x3ad   : > { %v6571_v32 = vor.u32 %v6570_v42, %v6567_v7  ;;  %v6576_v62 = vrot.slane %v6574_v31, 5  ;;  %v6988_v15 = vrot.slane %v13040_v38, 5  ;;  %v3567_v28 = vsel %vm1712_vm1, %v3535_v56, %v3423_v33  ;;  %5249 = vrot.lane.b32.xlu1 %v14850_v3, %s9017_s12  ;;  %5282 = vrot.lane.b32.xlu0 %v14850_v3, %s9015_s26 }
 0x3ae   : > { %v6580_v37 = vrot.slane %v6578_v0, 4  ;;  %v4541_v55 = vsel %vm1597_vm8, %v14851_v24, %v4391_v39  ;;  %8672 = vmatmul.mubr.msk.bf16.gmra.mxu1 %vm2620_vm6, %v3567_v28  ;;  %v8577_v7 = vpop.f32.mrf.mxu1  ;;  %v6586_v19 = vrot.slane %v6584_v54, 5  ;;  %v6991_v16 = vrot.slane %v6344_v12, 5  ;;  %v13103_v54 = vld [vmem:[#allocation3 + $0x70] sm:$0xf]  ;;  %v14853_v12 = vld [vmem:[#allocation104_spill] sm:$0xff] }
 0x3af   : > { %v6572_v49 = vrot.slane %v6571_v32, 4  ;;  %v13089_v42 = vadd.f32 %v12778_v41, %v8577_v7  ;;  %v6990_v33 = vrot.slane %v6988_v15, 4  ;;  %v4393_v0 = vpop.permute.xlu1 %4392  ;;  %v4426_v18 = vpop.permute.xlu0 %4425  ;;  %v13094_v39 = vmax.bf16 %v7138_v57, %v13065_v11  ;;  %v14854_v57 = vld [vmem:[#allocation99_spill] sm:$0xff] }
 0x3b0   : > { %v6581_v31 = vor.u32 %v6580_v37, %v6576_v62  ;;  %v13097_v28 = vmax.bf16 %v7139_v44, %v13069_v23  ;;  %v6989_v41 = vsel %vm9507_vm9, %v8309_v6, %v6988_v15  ;;  %v13105_v37 = vpop.f32.mrf.mxu0  ;;  %v4544_v24 = vsel %vm1597_vm8, %v14853_v12, %v4393_v0  ;;  %v2723_v7 = vpop.f32.mrf.mxu1 }
 0x3b1   : > { %14852 = vst [vmem:[#allocation18_spill] sm:$0xff] %v13089_v42  ;;  %v6577_v32 = vsel %vm9481_vm3, %v6572_v49, %v6576_v62  ;;  %5284 = vrot.lane.b32.xlu1 %v14854_v57, %s9015_s26  ;;  %5181 = vrot.lane.b32.xlu0 %v14849_v21, %s9016_s10  ;;  %v7140_v6 = vmax.bf16 %v13065_v11, %v13011_v20  ;;  %v6589_v0 = vshrl.u32 %v13091_v45, 16  ;;  %v6592_v12 = vshll.u32 %v13091_v45, 16 }
 0x3b2   : > { %v6582_v44 = vrot.slane %v6581_v31, 4  ;;  %v6856_v62 = vmax.bf16 %v6577_v32, %v13018_v14  ;;  %v13117_v15 = vadd.f32 %v12810_v35, %v2723_v7  ;;  %v6992_v49 = vsel %vm9507_vm9, %v6990_v33, %v6991_v16  ;;  %v8578_v56 = vpop.f32.mrf.mxu1  ;;  %v13133_v33 = vld [vmem:[#allocation3 + $0x74] sm:$0x1]  ;;  %v13135_v25 = vpop.f32.mrf.mxu0 }
 0x3b3   : > { %v6598_v14 = vshll.u32 %v13103_v54, 16  ;;  %v6602_v20 = vshrl.u32 %v13103_v54, 16  ;;  %v13130_v35 = vadd.f32 %v12839_v43, %v8578_v56  ;;  %v4428_v32 = vpop.permute.xlu1 %4427  ;;  %v4461_v7 = vpop.permute.xlu0 %4460  ;;  %v6594_v42 = vrot.slane %v6592_v12, 5 }
 0x3b4   : > { %14855 = vst [vmem:[#allocation12_spill] sm:$0xff] %v13117_v15  ;;  %v6587_v21 = vsel %vm9481_vm3, %v6582_v44, %v6586_v19  ;;  %v13125_v31 = vmax.bf16 %v6989_v41, %v6856_v62  ;;  %v6591_v15 = vrot.slane %v6589_v0, 4  ;;  %v4576_v19 = vsel %vm1646_vm10, %v4541_v55, %v4426_v18  ;;  %v2726_v44 = vpop.f32.mrf.mxu1 }
 0x3b5   : > { %v6857_v16 = vmax.bf16 %v6587_v21, %v13040_v38  ;;  %v4578_v41 = vsel %vm1646_vm10, %v4544_v24, %v4428_v32  ;;  %5183 = vrot.lane.b32.xlu1 %v14850_v3, %s9016_s10  ;;  %5216 = vrot.lane.b32.xlu0 %v14850_v3, %s9019_s22  ;;  %v7141_v43 = vmax.bf16 %v13069_v23, %v13016_v50  ;;  %v6600_v21 = vrot.slane %v6598_v14, 5 }
 0x3b6   : > { %v13146_v38 = vadd.f32 %v12859_v30, %v2726_v44  ;;  %v6595_v62 = vor.u32 %v6594_v42, %v6591_v15  ;;  %v6604_v18 = vrot.slane %v6602_v20, 4  ;;  %v4608_v55 = vsel %vm1679_vm2, %v4576_v19, %v4461_v7  ;;  %v8581_v24 = vpop.f32.mrf.mxu1  ;;  %v13160_v15 = vpop.f32.mrf.mxu0  ;;  %v13171_v19 = vld [vmem:[#allocation3 + $0x78] sm:$0xf] }
 0x3b7   : > { %v13148_v56 = vmax.bf16 %v6992_v49, %v6857_v16  ;;  %v6608_v0 = vshll.u32 %v13133_v33, 16  ;;  %v8310_v12 = vrot.slane %v13091_v45, 9  ;;  %v6995_v32 = vrot.slane %v13103_v54, 5  ;;  %v4463_v50 = vpop.permute.xlu1 %4462  ;;  %v4496_v14 = vpop.permute.xlu0 %4495 }
 0x3b8   : > { %v13155_v3 = vadd.f32 %v12885_v48, %v8581_v24  ;;  %v13158_v30 = vmax.bf16 %v7140_v6, %v13125_v31  ;;  %v6596_v49 = vrot.slane %v6595_v62, 4  ;;  %v6605_v42 = vor.u32 %v6604_v18, %v6600_v21  ;;  %v2739_v7 = vpop.f32.mrf.mxu1  ;;  %v13180_v24 = vld [vmem:[#allocation3 + $0x7c] sm:$0xf] }
 0x3b9   : > { %v4640_v20 = vsel %vm1712_vm1, %v4608_v55, %v4496_v14  ;;  %5218 = vrot.lane.b32.xlu1 %v14854_v57, %s9019_s22  ;;  %5251 = vrot.lane.b32.xlu0 %v14854_v57, %s9017_s12  ;;  %v13168_v48 = vmax.bf16 %v7141_v43, %v13148_v56  ;;  %v6610_v16 = vrot.slane %v6608_v0, 5  ;;  %v6998_v6 = vrot.slane %v13133_v33, 5 }
 0x3ba   : > { %v4610_v44 = vsel %vm1679_vm2, %v4578_v41, %v4463_v50  ;;  %v13175_v62 = vadd.f32 %v12918_v36, %v2739_v7  ;;  %8711 = vmatprep.mubr.msk.bf16.mxu0 %vm2620_vm6, %v4640_v20  ;;  %v6601_v18 = vsel %vm9481_vm3, %v6596_v49, %v6600_v21  ;;  %v6606_v55 = vrot.slane %v6605_v42, 4  ;;  %v8582_v43 = vpop.f32.mrf.mxu1  ;;  %v6350_v7 = vld [vmem:[#allocation3 + $0x80] sm:$0x1] }
 0x3bb   : > { %v6858_v0 = vmax.bf16 %v6601_v18, %v13091_v45  ;;  %v6996_v33 = vsel %vm9507_vm9, %v8310_v12, %v6995_v32  ;;  %v6997_v14 = vrot.slane %v6995_v32, 4  ;;  %v7142_v41 = vmax.bf16 %v13125_v31, %v13065_v11  ;;  %v4498_v50 = vpop.permute.xlu1 %4497  ;;  %v3390_v20 = vpop.permute.xlu0 %3389 }
 0x3bc   : > { %14856 = vst [vmem:[#allocation111_spill] sm:$0xff] %v13175_v62  ;;  %v13188_v36 = vadd.f32 %v12950_v52, %v8582_v43  ;;  %v6611_v21 = vsel %vm9481_vm3, %v6606_v55, %v6610_v16  ;;  %v6613_v49 = vshrl.u32 %v13171_v19, 16  ;;  %v6616_v42 = vshll.u32 %v13171_v19, 16  ;;  %v13194_v45 = vpop.f32.mrf.mxu0  ;;  %v2742_v32 = vpop.f32.mrf.mxu1 }
 0x3bd   : > { %v4642_v12 = vsel %vm1712_vm1, %v4610_v44, %v4498_v50  ;;  %5253 = vrot.lane.b32.xlu1 %v12440_v26, %s9017_s12  ;;  %5286 = vrot.lane.b32.xlu0 %v12440_v26, %s9015_s26  ;;  %v6859_v52 = vmax.bf16 %v6611_v21, %v13103_v54  ;;  %v7143_v11 = vmax.bf16 %v13148_v56, %v13069_v23  ;;  %v6622_v16 = vshll.u32 %v13180_v24, 16 }
 0x3be   : > { %14857 = vst [vmem:[#allocation109_spill] sm:$0xff] %v13188_v36  ;;  %v13206_v18 = vadd.f32 %v12974_v9, %v2742_v32  ;;  %8712 = vmatmul.mubr.msk.bf16.gmra.mxu0 %vm2620_vm6, %v4642_v12  ;;  %v6999_v44 = vsel %vm9507_vm9, %v6997_v14, %v6998_v6  ;;  %v13211_v55 = vmax.bf16 %v6996_v33, %v6858_v0  ;;  %v6615_v43 = vrot.slane %v6613_v49, 4  ;;  %v8585_v50 = vpop.f32.mrf.mxu1  ;;  %v13224_v33 = vpop.f32.mrf.mxu0 }
 0x3bf   : > { %v13213_v36 = vmax.bf16 %v6999_v44, %v6859_v52  ;;  %v6618_v54 = vrot.slane %v6616_v42, 5  ;;  %v6624_v21 = vrot.slane %v6622_v16, 5  ;;  %v6626_v23 = vshrl.u32 %v13180_v24, 16  ;;  %v3392_v12 = vpop.permute.xlu1 %3391  ;;  %v3425_v32 = vpop.permute.xlu0 %3424 }
 0x3c0   : > { %v3537_v62 = vsel %vm1679_vm2, %v12542_v51, %v3390_v20  ;;  %v13219_v9 = vadd.f32 %v12999_v46, %v8585_v50  ;;  %v13222_v6 = vmax.bf16 %v7142_v41, %v13211_v55  ;;  %v6632_v0 = vshll.u32 %v6350_v7, 16  ;;  %v2755_v49 = vpop.f32.mrf.mxu1 }
 0x3c1   : > { %v3569_v14 = vsel %vm1712_vm1, %v3537_v62, %v3425_v32  ;;  %5288 = vrot.lane.b32.xlu1 %v12449_v61, %s9015_s26  ;;  %5185 = vrot.lane.b32.xlu0 %v14854_v57, %s9016_s10  ;;  %v13232_v51 = vmax.bf16 %v7143_v11, %v13213_v36  ;;  %v6628_v46 = vrot.slane %v6626_v23, 4  ;;  %v8311_v20 = vrot.slane %v13171_v19, 9  ;;  %v13244_v32 = vld [vmem:[#allocation3 + $0x84] sm:$0xf] }
 0x3c2   : > { %14858 = vst [vmem:[#allocation115_spill] sm:$0xff] %v13219_v9  ;;  %v13236_v41 = vadd.f32 %v13020_v27, %v2755_v49  ;;  %8675 = vmatprep.mubr.msk.bf16.mxu1 %vm2620_vm6, %v3569_v14  ;;  %v6619_v42 = vor.u32 %v6618_v54, %v6615_v43  ;;  %v7002_v52 = vrot.slane %v13180_v24, 5  ;;  %v8586_v16 = vpop.f32.mrf.mxu1  ;;  %v6634_v50 = vrot.slane %v6632_v0, 5  ;;  %v14860_v57 = vld [vmem:[#allocation84_spill] sm:$0xff]  ;;  %v13253_v9 = vpop.f32.mrf.mxu0 }
 0x3c3   : > { %v6629_v11 = vor.u32 %v6628_v46, %v6624_v21  ;;  %v7005_v23 = vrot.slane %v6350_v7, 5  ;;  %v3539_v27 = vsel %vm1679_vm2, %v14860_v57, %v3392_v12  ;;  %v13249_v14 = vadd.f32 %v13050_v22, %v8586_v16  ;;  %v4395_v49 = vpop.permute.xlu1 %4394  ;;  %v3427_v62 = vpop.permute.xlu0 %3426 }
 0x3c4   : > { %14859 = vst [vmem:[#allocation36_spill] sm:$0xff] %v13236_v41  ;;  %v6620_v43 = vrot.slane %v6619_v42, 4  ;;  %v7004_v54 = vrot.slane %v7002_v52, 4  ;;  %v13251_v41 = vld [vmem:[#allocation3 + $0x88] sm:$0xf]  ;;  %v3571_v46 = vsel %vm1712_vm1, %v3539_v27, %v3427_v62  ;;  %v2758_v0 = vpop.f32.mrf.mxu1  ;;  %v7003_v7 = vsel %vm9507_vm9, %v8311_v20, %v7002_v52  ;;  %v13285_v44 = vpop.f32.mrf.mxu0 }
 0x3c5   : > { %14861 = vst [vmem:[#allocation38_spill] sm:$0xff] %v13249_v14  ;;  %5187 = vrot.lane.b32.xlu1 %v12440_v26, %s9016_s10  ;;  %5220 = vrot.lane.b32.xlu0 %v12440_v26, %s9019_s22  ;;  %v6630_v57 = vrot.slane %v6629_v11, 4  ;;  %v13265_v12 = vadd.f32 %v13072_v13, %v2758_v0  ;;  %v6637_v16 = vshrl.u32 %v13244_v32, 16  ;;  %v6640_v20 = vshll.u32 %v13244_v32, 16  ;;  %v14865_v14 = vld [vmem:[#allocation48_spill] sm:$0xff] }
 0x3c6   : > { %8676 = vmatmul.mubr.msk.bf16.gmra.mxu1 %vm2620_vm6, %v3571_v46  ;;  %v6625_v62 = vsel %vm9481_vm3, %v6620_v43, %v6624_v21  ;;  %v7006_v42 = vsel %vm9507_vm9, %v7004_v54, %v7005_v23  ;;  %v8589_v27 = vpop.f32.mrf.mxu1  ;;  %v6646_v13 = vshll.u32 %v13251_v41, 16  ;;  %v13282_v23 = vld [vmem:[#allocation3 + $0x8c] sm:$0x1]  ;;  %v6650_v0 = vshrl.u32 %v13251_v41, 16 }
 0x3c7   : > { %14862 = vst [vmem:[#allocation16_spill] sm:$0xff] %v13265_v12  ;;  %v6635_v11 = vsel %vm9481_vm3, %v6630_v57, %v6634_v50  ;;  %v6860_v22 = vmax.bf16 %v6625_v62, %v13171_v19  ;;  %v13279_v52 = vadd.f32 %v13105_v37, %v8589_v27  ;;  %v4397_v46 = vpop.permute.xlu1 %4396  ;;  %v4430_v21 = vpop.permute.xlu0 %4429  ;;  %v6639_v54 = vrot.slane %v6637_v16, 4 }
 0x3c8   : > { %v6861_v43 = vmax.bf16 %v6635_v11, %v13180_v24  ;;  %v2771_v50 = vpop.f32.mrf.mxu1  ;;  %v7144_v19 = vmax.bf16 %v13211_v55, %v13125_v31  ;;  %v7145_v24 = vmax.bf16 %v13213_v36, %v13148_v56  ;;  %v6642_v57 = vrot.slane %v6640_v20, 5 }
 0x3c9   : > { %14863 = vst [vmem:[#allocation64_spill] sm:$0xff] %v13279_v52  ;;  %5222 = vrot.lane.b32.xlu1 %v12449_v61, %s9019_s22  ;;  %5255 = vrot.lane.b32.xlu0 %v12449_v61, %s9017_s12  ;;  %v13291_v37 = vmax.bf16 %v7003_v7, %v6860_v22  ;;  %v13298_v62 = vadd.f32 %v13135_v25, %v2771_v50  ;;  %v6648_v27 = vrot.slane %v6646_v13, 5  ;;  %v6652_v11 = vrot.slane %v6650_v0, 4  ;;  %v14864_v52 = vld [vmem:[#allocation59_spill] sm:$0xff]  ;;  %v3009_v0 = vpop.f32.mrf.mxu0 }
 0x3ca   : > { %v13300_v16 = vmax.bf16 %v7006_v42, %v6861_v43  ;;  %v4547_v26 = vsel %vm1597_vm8, %v14864_v52, %v4395_v49  ;;  %v8590_v12 = vpop.f32.mrf.mxu1  ;;  %v6643_v22 = vor.u32 %v6642_v57, %v6639_v54  ;;  %v6656_v7 = vshll.u32 %v13282_v23, 16  ;;  %v14867_v54 = vld [vmem:[#allocation114_spill] sm:$0xff] }
 0x3cb   : > { %v8312_v31 = vrot.slane %v13244_v32, 9  ;;  %v4550_v56 = vsel %vm1597_vm8, %v14865_v14, %v4397_v46  ;;  %v13309_v20 = vadd.f32 %v13160_v15, %v8590_v12  ;;  %v4432_v25 = vpop.permute.xlu1 %4431  ;;  %v4465_v42 = vpop.permute.xlu0 %4464  ;;  %v6653_v43 = vor.u32 %v6652_v11, %v6648_v27 }
 0x3cc   : > { %v7009_v13 = vrot.slane %v13251_v41, 5  ;;  %v4580_v49 = vsel %vm1646_vm10, %v4547_v26, %v4430_v21  ;;  %v2774_v52 = vpop.f32.mrf.mxu1  ;;  %v13318_v14 = vmax.bf16 %v7144_v19, %v13291_v37  ;;  %v6644_v15 = vrot.slane %v6643_v22, 4  ;;  %v13327_v21 = vld [vmem:[#allocation3 + $0x90] sm:$0xf] }
 0x3cd   : > { %14866 = vst [vmem:[#allocation11_spill] sm:$0xff] %v13309_v20  ;;  %5257 = vrot.lane.b32.xlu1 %v14867_v54, %s9017_s12  ;;  %5290 = vrot.lane.b32.xlu0 %v14867_v54, %s9015_s26  ;;  %v6658_v12 = vrot.slane %v6656_v7, 5  ;;  %v4582_v46 = vsel %vm1646_vm10, %v4550_v56, %v4432_v25  ;;  %v13322_v50 = vadd.f32 %v13194_v45, %v2774_v52  ;;  %v6654_v26 = vrot.slane %v6653_v43, 4 }
 0x3ce   : > { %v13325_v57 = vmax.bf16 %v7145_v24, %v13300_v16  ;;  %v8593_v11 = vpop.f32.mrf.mxu1  ;;  %v6649_v20 = vsel %vm9481_vm3, %v6644_v15, %v6648_v27  ;;  %v7010_v19 = vsel %vm9507_vm9, %v8312_v31, %v7009_v13  ;;  %v7011_v22 = vrot.slane %v7009_v13, 4  ;;  %v8637_v27 = vpop.f32.mrf.mxu0 }
 0x3cf   : > { %14868 = vst [vmem:[#allocation110_spill] sm:$0xff] %v13322_v50  ;;  %v7012_v7 = vrot.slane %v13282_v23, 5  ;;  %v4612_v56 = vsel %vm1679_vm2, %v4580_v49, %v4465_v42  ;;  %v13336_v45 = vadd.f32 %v13224_v33, %v8593_v11  ;;  %v4467_v24 = vpop.permute.xlu1 %4466  ;;  %v4500_v25 = vpop.permute.xlu0 %4499  ;;  %v6659_v43 = vsel %vm9481_vm3, %v6654_v26, %v6658_v12  ;;  %v13341_v50 = vld [vmem:[#allocation3 + $0x94] sm:$0xf]  ;;  %v6356_v49 = vld [vmem:[#allocation3 + $0x98] sm:$0x1] }
 0x3d0   : > { %v6862_v52 = vmax.bf16 %v6649_v20, %v13244_v32  ;;  %v4644_v31 = vsel %vm1712_vm1, %v4612_v56, %v4500_v25  ;;  %v2787_v13 = vpop.f32.mrf.mxu1  ;;  %v14869_v23 = vld [vmem:[#allocation94_spill] sm:$0xff]  ;;  %v6863_v33 = vmax.bf16 %v6659_v43, %v13251_v41  ;;  %v7146_v42 = vmax.bf16 %v13291_v37, %v13211_v55 }
 0x3d1   : > { %5292 = vrot.lane.b32.xlu1 %v14869_v23, %s9015_s26  ;;  %5189 = vrot.lane.b32.xlu0 %v12449_v61, %s9016_s10  ;;  %v6661_v32 = vshrl.u32 %v13327_v21, 16  ;;  %v13353_v20 = vadd.f32 %v13253_v9, %v2787_v13  ;;  %v7013_v15 = vsel %vm9507_vm9, %v7011_v22, %v7012_v7  ;;  %v6664_v26 = vshll.u32 %v13327_v21, 16 }
 0x3d2   : > { %8715 = vmatprep.mubr.msk.bf16.mxu0 %vm2620_vm6, %v4644_v31  ;;  %v13358_v12 = vmax.bf16 %v7010_v19, %v6862_v52  ;;  %v8594_v11 = vpop.f32.mrf.mxu1  ;;  %v6670_v56 = vshll.u32 %v13341_v50, 16  ;;  %v6674_v25 = vshrl.u32 %v13341_v50, 16  ;;  %v4614_v9 = vsel %vm1679_vm2, %v4582_v46, %v4467_v24  ;;  %v3022_v52 = vpop.f32.mrf.mxu0 }
 0x3d3   : > { %14870 = vst [vmem:[#allocation72_spill] sm:$0xff] %v13353_v20  ;;  %v6663_v55 = vrot.slane %v6661_v32, 4  ;;  %v13367_v43 = vadd.f32 %v13285_v44, %v8594_v11  ;;  %v4502_v31 = vpop.permute.xlu1 %4501  ;;  %v5162_v22 = vpop.permute.xlu0 %5161  ;;  %v6666_v19 = vrot.slane %v6664_v26, 5  ;;  %v6680_v7 = vshll.u32 %v6356_v49, 16 }
 0x3d4   : > { %v4646_v13 = vsel %vm1712_vm1, %v4614_v9, %v4502_v31  ;;  %v2790_v20 = vpop.f32.mrf.mxu1  ;;  %v13374_v32 = vmax.bf16 %v7013_v15, %v6863_v33  ;;  %v7147_v44 = vmax.bf16 %v13300_v16, %v13213_v36  ;;  %v6672_v46 = vrot.slane %v6670_v56, 5 }
 0x3d5   : > { %5191 = vrot.lane.b32.xlu1 %v14867_v54, %s9016_s10  ;;  %5224 = vrot.lane.b32.xlu0 %v14867_v54, %s9019_s22  ;;  %v13378_v24 = vadd.f32 %v3009_v0, %v2790_v20  ;;  %v13382_v26 = vmax.bf16 %v7146_v42, %v13358_v12  ;;  %v6667_v11 = vor.u32 %v6666_v19, %v6663_v55  ;;  %v6676_v9 = vrot.slane %v6674_v25, 4  ;;  %s9023_s10 = smov [#allocation4]  }
 0x3d6   : > { %8716 = vmatmul.mubr.msk.bf16.gmra.mxu0 %vm2620_vm6, %v4646_v13  ;;  %v14871_v31 = vcombine.low %v12612_v59, %v12762_v34  ;;  %v8597_v33 = vpop.f32.mrf.mxu1  ;;  %v8313_v36 = vrot.slane %v13327_v21, 9  ;;  %v7016_v0 = vrot.slane %v13341_v50, 5  ;;  %v7019_v20 = vrot.slane %v6356_v49, 5  ;;  %v13394_v13 = vld [vmem:[#allocation3 + $0x9c] sm:$0xf]  ;;  %v8638_v59 = vpop.f32.mrf.mxu0  ;;  %v14874_v34 = vld [vmem:[#allocation88_spill] sm:$0xff] }
 0x3d7   : > { %8761 = vmatprep.mubr.msk.bf16.mxu0 %vm14872_vm0, %v12817_v29  ;;  %v13392_v15 = vadd.f32 %v8637_v27, %v8597_v33  ;;  %v5164_v42 = vpop.permute.xlu1 %5163  ;;  %v5197_v56 = vpop.permute.xlu0 %5196  ;;  %v6668_v55 = vrot.slane %v6667_v11, 4  ;;  %v6677_v25 = vor.u32 %v6676_v9, %v6672_v46  ;;  %v6682_v19 = vrot.slane %v6680_v7, 5  ;;  %v13407_v7 = vld [vmem:[#allocation3 + $0xa0] sm:$0xf] }
 0x3d8   : > { %v5300_v54 = vsel %vm1597_vm8, %v14871_v31, %v5162_v22  ;;  %v5303_v22 = vsel %vm1597_vm8, %v14874_v34, %v5164_v42  ;;  %v2803_v31 = vpop.f32.mrf.mxu1  ;;  %v13403_v29 = vmax.bf16 %v7147_v44, %v13374_v32  ;;  %v7018_v27 = vrot.slane %v7016_v0, 4 }
 0x3d9   : > { %14873 = vst [vmem:[#allocation106_spill] sm:$0xff] %v13392_v15  ;;  %5226 = vrot.lane.b32.xlu1 %v14869_v23, %s9019_s22  ;;  %5259 = vrot.lane.b32.xlu0 %v14869_v23, %s9017_s12  ;;  %v7148_v49 = vmax.bf16 %v13358_v12, %v13291_v37  ;;  %v13409_v11 = vadd.f32 %v3022_v52, %v2803_v31  ;;  %v6678_v33 = vrot.slane %v6677_v25, 4  ;;  %v6685_v41 = vshrl.u32 %v13394_v13, 16 }
 0x3da   : > { %v6673_v9 = vsel %vm9481_vm3, %v6668_v55, %v6672_v46  ;;  %v7017_v42 = vsel %vm9507_vm9, %v8313_v36, %v7016_v0  ;;  %v8598_v34 = vpop.f32.mrf.mxu1  ;;  %v7020_v44 = vsel %vm9507_vm9, %v7018_v27, %v7019_v20  ;;  %v6688_v37 = vshll.u32 %v13394_v13, 16  ;;  %v13424_v55 = vld [vmem:[#allocation3 + $0xa4] sm:$0x1]  ;;  %v3025_v0 = vpop.f32.mrf.mxu0 }
 0x3db   : > { %v6864_v23 = vmax.bf16 %v6673_v9, %v13327_v21  ;;  %v13420_v15 = vadd.f32 %v8638_v59, %v8598_v34  ;;  %v5199_v52 = vpop.permute.xlu1 %5198  ;;  %v5232_v31 = vpop.permute.xlu0 %5231  ;;  %v6683_v46 = vsel %vm9481_vm3, %v6678_v33, %v6682_v19  ;;  %v6694_v36 = vshll.u32 %v13407_v7, 16 }
 0x3dc   : > { %v6698_v21 = vshrl.u32 %v13407_v7, 16  ;;  %v5347_v20 = vsel %vm1646_vm10, %v5300_v54, %v5197_v56  ;;  %v2806_v25 = vpop.f32.mrf.mxu1  ;;  %v6865_v59 = vmax.bf16 %v6683_v46, %v13341_v50  ;;  %v7149_v19 = vmax.bf16 %v13374_v32, %v13300_v16 }
 0x3dd   : > { %14875 = vst [vmem:[#allocation33_spill] sm:$0xff] %v13420_v15  ;;  %5261 = vrot.lane.b32.xlu1 %v12833_v47, %s9017_s12  ;;  %5294 = vrot.lane.b32.xlu0 %v12833_v47, %s9015_s26  ;;  %v6687_v27 = vrot.slane %v6685_v41, 4  ;;  %v13436_v9 = vadd.f32 %v3025_v0, %v2806_v25  ;;  %v14876_v33 = vcombine.low %v12802_v53, %v12805_v1  ;;  %v6690_v56 = vrot.slane %v6688_v37, 5  ;;  %s9021_s12 = smov 40  }
 0x3de   : > { %v13442_v54 = vmax.bf16 %v7017_v42, %v6864_v23  ;;  %v6696_v34 = vrot.slane %v6694_v36, 5  ;;  %v5349_v15 = vsel %vm1646_vm10, %v5303_v22, %v5199_v52  ;;  %v8649_v47 = vpop.f32.mrf.mxu1  ;;  %v14878_v50 = vcombine.low %v12926_v63, %v12933_v60  ;;  %v14880_v52 = vld [vmem:[#allocation93_spill] sm:$0xff] }
 0x3df   : > { %8762 = vmatmul.mubr.msk.bf16.vlgmr.msra.gmra.mxu0 %vm14877_vm4, %v14876_v33  ;;  %v13449_v16 = vmax.bf16 %v7020_v44, %v6865_v59  ;;  %v6700_v41 = vrot.slane %v6698_v21, 4  ;;  %v6704_v46 = vshll.u32 %v13424_v55, 16  ;;  %v5379_v53 = vsel %vm1679_vm2, %v5347_v20, %v5232_v31  ;;  %v5234_v1 = vpop.permute.xlu1 %5233  ;;  %v5267_v42 = vpop.permute.xlu0 %5266  ;;  %vm14905_vm4 = vmmov %vm14872_vm0 }
 0x3e0   : > { %8765 = vmatprep.mubr.msk.bf16.mxu0 %vm14879_vm5, %v14878_v50  ;;  %v6691_v23 = vor.u32 %v6690_v56, %v6687_v27  ;;  %v8314_v37 = vrot.slane %v13394_v13, 9  ;;  %v7023_v22 = vrot.slane %v13407_v7, 5  ;;  %v13456_v36 = vadd.f32 %v8649_v47, %v14880_v52  ;;  %v3673_v60 = vpop.f32.mrf.mxu1  ;;  %v14882_v27 = vld [vmem:[#allocation108_spill] sm:$0xff]  ;;  %v14883_v50 = vld [vmem:[#allocation119_spill] sm:$0xff]  ;;  %vm14906_vm5 = vmmov %vm14872_vm0 }
 0x3e1   : > { %v5411_v63 = vsel %vm1712_vm1, %v5379_v53, %v5267_v42  ;;  %v14881_v44 = vcombine.low %v12826_v17, %v12830_v58  ;;  %v13464_v31 = vmax.bf16 %v7148_v49, %v13442_v54  ;;  %v6701_v21 = vor.u32 %v6700_v41, %v6696_v34  ;;  %v13475_v49 = vld [vmem:[#allocation3 + $0xa8] sm:$0xf]  ;;  %v13486_v42 = vld [vmem:[#allocation3 + $0xac] sm:$0xf] }
 0x3e2   : > { %v5381_v0 = vsel %vm1679_vm2, %v5349_v15, %v5234_v1  ;;  %8727 = vmatprep.mubr.msk.bf16.mxu1 %vm2620_vm6, %v5411_v63  ;;  %v13469_v20 = vmax.bf16 %v7149_v19, %v13449_v16  ;;  %v6692_v25 = vrot.slane %v6691_v23, 4  ;;  %v6706_v59 = vrot.slane %v6704_v46, 5  ;;  %v8650_v56 = vpop.f32.mrf.mxu1 }
 0x3e3   : > { %5296 = vrot.lane.b32.xlu1 %v14881_v44, %s9015_s26  ;;  %v13472_v33 = vadd.f32 %v3673_v60, %v14882_v27  ;;  %v6702_v47 = vrot.slane %v6701_v21, 4  ;;  %v7025_v17 = vrot.slane %v7023_v22, 4  ;;  %v7026_v58 = vrot.slane %v13424_v55, 5  ;;  %v5269_v15 = vpop.permute.xlu1 %5268  ;;  %v5166_v53 = vpop.permute.xlu0 %5165  ;;  %v14884_v44 = vld [vmem:[#allocation101_spill] sm:$0xff]  ;;  %s8951_s26 = scalar_lea.vmem %s14163_s17, 4096 }
 0x3e4   : > { %v13478_v41 = vadd.f32 %v8650_v56, %v14883_v50  ;;  %v6697_v19 = vsel %vm9481_vm3, %v6692_v25, %v6696_v34  ;;  %v7024_v46 = vsel %vm9507_vm9, %v8314_v37, %v7023_v22  ;;  %v7150_v1 = vmax.bf16 %v13442_v54, %v13358_v12  ;;  %v3676_v23 = vpop.f32.mrf.mxu1  ;;  %v6362_v34 = vld [vmem:[#allocation3 + $0xb0] sm:$0x1]  ;;  %p8952_p11 = scmp.ne.s32.totalorder %s14163_s17, %s8951_s26 }
 0x3e5   : > { %v5413_v55 = vsel %vm1712_vm1, %v5381_v0, %v5269_v15  ;;  %v6707_v52 = vsel %vm9481_vm3, %v6702_v47, %v6706_v59  ;;  %v6866_v63 = vmax.bf16 %v6697_v19, %v13394_v13  ;;  %v7151_v60 = vmax.bf16 %v13449_v16, %v13374_v32  ;;  %v14889_v59 = vld [vmem:[#allocation97_spill] sm:$0xff]  ;;  %v13523_v19 = vld [vmem:[#allocation3 + $0xb4] sm:$0xf] }
 0x3e6   : > { %v5306_v37 = vsel %vm1597_vm8, %v14884_v44, %v5166_v53  ;;  %8728 = vmatmul.mubr.msk.bf16.vlgmr.msra.gmra.mxu1 %vm2620_vm6, %v5413_v55  ;;  %v14885_v12 = vcombine.low %v12968_v40, %v12982_v10  ;;  %v6867_v22 = vmax.bf16 %v6707_v52, %v13407_v7  ;;  %v7027_v21 = vsel %vm9507_vm9, %v7025_v17, %v7026_v58  ;;  %p8953_p12 = pnand %p8952_p11, %p9108_p5 }
 0x3e7   : > { %v6709_v13 = vshrl.u32 %v13475_v49, 16  ;;  %v14887_v32 = vcombine.low %v13031_v4, %v13034_v8  ;;  %v13509_v0 = vmax.bf16 %v7024_v46, %v6866_v63  ;;  %v6712_v25 = vshll.u32 %v13475_v49, 16  ;;  %v5168_v27 = vpop.permute.xlu1 %5167  ;;  %v5201_v56 = vpop.permute.xlu0 %5200  ;;  %v14890_v4 = vld [vmem:[#allocation14_spill] sm:$0xff] }
 0x3e8   : > { %8766 = vmatmul.mubr.msk.bf16.gmra.mxu0 %vm14886_vm14, %v14885_v12  ;;  %v6718_v40 = vshll.u32 %v13486_v42, 16  ;;  %v6722_v10 = vshrl.u32 %v13486_v42, 16  ;;  %v13515_v7 = vadd.f32 %v3676_v23, %v14889_v59  ;;  %v13517_v47 = vmax.bf16 %v7027_v21, %v6867_v22  ;;  %vm14907_vm14 = vmmov %vm14872_vm0  ;;  %p8954_p13 = pneg %p8953_p12 }
 0x3e9   : > { %8769 = vmatprep.mubr.msk.bf16.mxu0 %vm14888_vm11, %v14887_v32  ;;  %v6711_v17 = vrot.slane %v6709_v13, 4  ;;  %v6728_v58 = vshll.u32 %v6362_v34, 16  ;;  %v5309_v8 = vsel %vm1597_vm8, %v14890_v4, %v5168_v27  ;;  %v5351_v50 = vsel %vm1646_vm10, %v5306_v37, %v5201_v56  ;;  %vm14908_vm11 = vmmov %vm14872_vm0 }
 0x3ea   : > { %v6714_v15 = vrot.slane %v6712_v25, 5  ;;  %v8315_v53 = vrot.slane %v13475_v49, 9  ;;  %v13526_v46 = vmax.bf16 %v7150_v1, %v13509_v0  ;;  %v13529_v55 = vmax.bf16 %v7151_v60, %v13517_v47  ;;  %v13536_v25 = vld [vmem:[#allocation3 + $0xb8] sm:$0xf] }
 0x3eb   : > { %v6720_v23 = vrot.slane %v6718_v40, 5  ;;  %v6724_v52 = vrot.slane %v6722_v10, 4  ;;  %v6730_v44 = vrot.slane %v6728_v58, 5  ;;  %v7030_v12 = vrot.slane %v13486_v42, 5  ;;  %v5203_v21 = vpop.permute.xlu1 %5202  ;;  %v5236_v37 = vpop.permute.xlu0 %5235 }
 0x3ec   : > { %v6715_v63 = vor.u32 %v6714_v15, %v6711_v17  ;;  %v7033_v22 = vrot.slane %v6362_v34, 5  ;;  %v7152_v32 = vmax.bf16 %v13509_v0, %v13442_v54  ;;  %v7153_v1 = vmax.bf16 %v13517_v47, %v13449_v16 }
 0x3ed   : > { %v6725_v13 = vor.u32 %v6724_v52, %v6720_v23  ;;  %v6733_v60 = vshrl.u32 %v13523_v19, 16  ;;  %v5353_v40 = vsel %vm1646_vm10, %v5309_v8, %v5203_v21  ;;  %v5383_v10 = vsel %vm1679_vm2, %v5351_v50, %v5236_v37  ;;  %v8689_v27 = vpop.f32.mrf.mxu0 }
 0x3ee   : > { %v6716_v59 = vrot.slane %v6715_v63, 4  ;;  %v7031_v34 = vsel %vm9507_vm9, %v8315_v53, %v7030_v12  ;;  %v14891_v56 = vcombine.low %v13094_v39, %v13097_v28  ;;  %v7032_v16 = vrot.slane %v7030_v12, 4 }
 0x3ef   : > { %v6726_v54 = vrot.slane %v6725_v13, 4  ;;  %v6735_v17 = vrot.slane %v6733_v60, 4  ;;  %v6736_v58 = vshll.u32 %v13523_v19, 16  ;;  %v13549_v4 = vadd.f32 %v8689_v27, %v13456_v36  ;;  %v5238_v15 = vpop.permute.xlu1 %5237  ;;  %v4748_v53 = vpop.f32.mrf.mxu0 }
 0x3f0   : > { %8770 = vmatmul.mubr.msk.bf16.gmra.mxu0 %vm14892_vm12, %v14891_v56  ;;  %v14893_v8 = vcombine.low %v13158_v30, %v13168_v48  ;;  %v6721_v50 = vsel %vm9481_vm3, %v6716_v59, %v6720_v23  ;;  %v6742_v39 = vshll.u32 %v13536_v25, 16  ;;  %v6746_v28 = vshrl.u32 %v13536_v25, 16  ;;  %v6365_v30 = vld [vmem:[#allocation3 + $0xbc] sm:$0x1]  ;;  %v5271_v21 = vpop.permute.xlu0 %5270 }
 0x3f1   : > { %v6731_v52 = vsel %vm9481_vm3, %v6726_v54, %v6730_v44  ;;  %v6868_v36 = vmax.bf16 %v6721_v50, %v13475_v49  ;;  %v7034_v63 = vsel %vm9507_vm9, %v7032_v16, %v7033_v22  ;;  %v6738_v48 = vrot.slane %v6736_v58, 5  ;;  %v8690_v59 = vpop.f32.mrf.mxu0 }
 0x3f2   : > { %8773 = vmatprep.mubr.msk.bf16.mxu0 %vm14894_vm7, %v14893_v8  ;;  %v5385_v12 = vsel %vm1679_vm2, %v5353_v40, %v5238_v15  ;;  %v13566_v23 = vadd.f32 %v4748_v53, %v13472_v33  ;;  %v6869_v37 = vmax.bf16 %v6731_v52, %v13486_v42  ;;  %v6744_v13 = vrot.slane %v6742_v39, 5  ;;  %v14897_v52 = vld [vmem:[#allocation10_spill] sm:$0xff] }
 0x3f3   : > { %v5415_v60 = vsel %vm1712_vm1, %v5383_v10, %v5271_v21  ;;  %v13570_v44 = vmax.bf16 %v7031_v34, %v6868_v36  ;;  %v6739_v49 = vor.u32 %v6738_v48, %v6735_v17  ;;  %v6748_v27 = vrot.slane %v6746_v28, 4  ;;  %v5273_v54 = vpop.permute.xlu1 %5272  ;;  %v4751_v42 = vpop.f32.mrf.mxu0 }
 0x3f4   : > { %v13573_v22 = vadd.f32 %v8690_v59, %v13478_v41  ;;  %8731 = vmatprep.mubr.msk.bf16.mxu1 %vm2620_vm6, %v5415_v60  ;;  %v13576_v40 = vmax.bf16 %v7034_v63, %v6869_v37  ;;  %v6752_v33 = vshll.u32 %v6365_v30, 16  ;;  %v8316_v56 = vrot.slane %v13523_v19, 9  ;;  %v5170_v8 = vpop.permute.xlu0 %5169  ;;  %v13617_v37 = vld [vmem:[#allocation3 + $0xc4] sm:$0xf] }
 0x3f5   : > { %v13580_v16 = vmax.bf16 %v7152_v32, %v13570_v44  ;;  %v6740_v10 = vrot.slane %v6739_v49, 4  ;;  %v6749_v34 = vor.u32 %v6748_v27, %v6744_v13  ;;  %v7037_v17 = vrot.slane %v13536_v25, 5  ;;  %v8653_v28 = vpop.f32.mrf.mxu1 }
 0x3f6   : > { %v5417_v58 = vsel %vm1712_vm1, %v5385_v12, %v5273_v54  ;;  %v13585_v41 = vadd.f32 %v4751_v42, %v13515_v7  ;;  %v13588_v50 = vmax.bf16 %v7153_v1, %v13576_v40  ;;  %v6754_v39 = vrot.slane %v6752_v33, 5  ;;  %v6368_v33 = vld [vmem:[#allocation3 + $0xc8] sm:$0x1] }
 0x3f7   : > { %8732 = vmatmul.mubr.msk.bf16.gmra.mxu1 %vm2620_vm6, %v5417_v58  ;;  %v14895_v32 = vcombine.low %v13222_v6, %v13232_v51  ;;  %v8329_v15 = vcombine.low %v13382_v26, %v13403_v29  ;;  %v8330_v7 = vcombine.low %v13464_v31, %v13469_v20  ;;  %v6745_v53 = vsel %vm9481_vm3, %v6740_v10, %v6744_v13  ;;  %v6366_v29 = vld [vmem:[#allocation3 + $0xc0] sm:$0xf]  ;;  %v14900_v31 = vld [vmem:[#allocation17_spill] sm:$0xff]  ;;  %v5172_v48 = vpop.permute.xlu1 %5171  ;;  %v3689_v12 = vpop.f32.mrf.mxu1 }
 0x3f8   : > { %v6750_v1 = vrot.slane %v6749_v34, 4  ;;  %v13602_v36 = vadd.f32 %v8653_v28, %v14897_v52  ;;  %v14898_v63 = vcombine.low %v13318_v14, %v13325_v57  ;;  %v8331_v6 = vcombine.low %v13526_v46, %v13529_v55  ;;  %v14901_v13 = vld [vmem:[#allocation85_spill] sm:$0xff]  ;;  %v14903_v58 = vld [vmem:[#allocation80_spill] sm:$0xff] }
 0x3f9   : > { %8774 = vmatmul.mubr.msk.bf16.gmra.mxu0 %vm14896_vm15, %v14895_v32  ;;  %v6870_v51 = vmax.bf16 %v6745_v53, %v13523_v19  ;;  %v7039_v26 = vrot.slane %v7037_v17, 4  ;;  %v5312_v20 = vsel %vm1597_vm8, %v14900_v31, %v5170_v8  ;;  %v7038_v14 = vsel %vm9507_vm9, %v8316_v56, %v7037_v17  ;;  %v5205_v19 = vpop.permute.xlu0 %5204  ;;  %v8654_v54 = vpop.f32.mrf.mxu1  ;;  %v14902_v34 = vld [vmem:[#allocation13_spill] sm:$0xff] }
 0x3fa   : > { %8777 = vmatprep.mubr.msk.bf16.mxu0 %vm14899_vm13, %v14898_v63  ;;  %v6755_v21 = vsel %vm9481_vm3, %v6750_v1, %v6754_v39  ;;  %v7040_v57 = vrot.slane %v6365_v30, 5  ;;  %v13620_v60 = vadd.f32 %v3689_v12, %v14901_v13  ;;  %v8332_v59 = vcombine.low %v13580_v16, %v13588_v50  ;;  %v14904_v31 = vld [vmem:[#allocation41_spill] sm:$0xff] }
 0x3fb   : > { %v6871_v49 = vmax.bf16 %v6755_v21, %v13536_v25  ;;  %v7154_v27 = vmax.bf16 %v13570_v44, %v13509_v0  ;;  %v7155_v30 = vmax.bf16 %v13576_v40, %v13517_v47  ;;  %v6757_v42 = vshrl.u32 %v6366_v29, 16  ;;  %v5207_v28 = vpop.permute.xlu1 %5206  ;;  %v3692_v32 = vpop.f32.mrf.mxu1 }
 0x3fc   : > { %v7041_v56 = vsel %vm9507_vm9, %v7039_v26, %v7040_v57  ;;  %v6760_v10 = vshll.u32 %v6366_v29, 16  ;;  %v5315_v17 = vsel %vm1597_vm8, %v14902_v34, %v5172_v48  ;;  %v13634_v8 = vadd.f32 %v8654_v54, %v14903_v58 }
 0x3fd   : > { %v13636_v25 = vmax.bf16 %v7038_v14, %v6870_v51  ;;  %v6766_v39 = vshll.u32 %v13617_v37, 16  ;;  %v6759_v53 = vrot.slane %v6757_v42, 4  ;;  %v6770_v52 = vshrl.u32 %v13617_v37, 16  ;;  %v5240_v48 = vpop.permute.xlu0 %5239  ;;  %v13649_v42 = vld [vmem:[#allocation3 + $0xcc] sm:$0xf] }
 0x3fe   : > { %v6762_v1 = vrot.slane %v6760_v10, 5  ;;  %v6776_v63 = vshll.u32 %v6368_v33, 16  ;;  %v5355_v26 = vsel %vm1646_vm10, %v5312_v20, %v5205_v19  ;;  %v13642_v12 = vadd.f32 %v3692_v32, %v14904_v31 }
 0x3ff   : > { %v13644_v21 = vmax.bf16 %v7041_v56, %v6871_v49  ;;  %v6768_v57 = vrot.slane %v6766_v39, 5  ;;  %v5357_v51 = vsel %vm1646_vm10, %v5315_v17, %v5207_v28  ;;  %v5387_v14 = vsel %vm1679_vm2, %v5355_v26, %v5240_v48  ;;  %v5242_v49 = vpop.permute.xlu1 %5241  ;;  %v13657_v39 = vld [vmem:[#allocation3 + $0xd0] sm:$0xf] }
 0x400   : > { %v6763_v13 = vor.u32 %v6762_v1, %v6759_v53  ;;  %v6772_v54 = vrot.slane %v6770_v52, 4  ;;  %v6778_v20 = vrot.slane %v6776_v63, 5  ;;  %v8317_v19 = vrot.slane %v6366_v29, 9  ;;  %v6371_v1 = vld [vmem:[#allocation3 + $0xd4] sm:$0x1] }
 0x401   : > { %8778 = vmatmul.mubr.msk.bf16.gmra.mxu0 %vm14872_vm0, %v8329_v15  ;;  %v7044_v10 = vrot.slane %v13617_v37, 5  ;;  %v7047_v34 = vrot.slane %v6368_v33, 5  ;;  %v7156_v17 = vmax.bf16 %v13636_v25, %v13570_v44  ;;  %v7157_v15 = vmax.bf16 %v13644_v21, %v13576_v40  ;;  %v5275_v32 = vpop.permute.xlu0 %5274 }
 0x402   : > { %8781 = vmatprep.mubr.msk.bf16.mxu0 %vm14905_vm4, %v8330_v7  ;;  %v6764_v56 = vrot.slane %v6763_v13, 4  ;;  %v6773_v58 = vor.u32 %v6772_v54, %v6768_v57  ;;  %v5389_v28 = vsel %vm1679_vm2, %v5357_v51, %v5242_v49  ;;  %v6781_v33 = vshrl.u32 %v13649_v42, 16 }
 0x403   : > { %v7045_v7 = vsel %vm9507_vm9, %v8317_v19, %v7044_v10  ;;  %v7046_v53 = vrot.slane %v7044_v10, 4  ;;  %v5419_v52 = vsel %vm1712_vm1, %v5387_v14, %v5275_v32  ;;  %v6784_v31 = vshll.u32 %v13649_v42, 16  ;;  %v5277_v19 = vpop.permute.xlu1 %5276 }
 0x404   : > { %v6769_v63 = vsel %vm9481_vm3, %v6764_v56, %v6768_v57  ;;  %v6774_v26 = vrot.slane %v6773_v58, 4  ;;  %8735 = vmatprep.mubr.msk.bf16.mxu1 %vm2620_vm6, %v5419_v52  ;;  %v6783_v13 = vrot.slane %v6781_v33, 4  ;;  %v6790_v54 = vshll.u32 %v13657_v39, 16 }
 0x405   : > { %v6872_v48 = vmax.bf16 %v6769_v63, %v6366_v29  ;;  %v7048_v51 = vsel %vm9507_vm9, %v7046_v53, %v7047_v34  ;;  %v6786_v14 = vrot.slane %v6784_v31, 5  ;;  %v6794_v49 = vshrl.u32 %v13657_v39, 16  ;;  %v5174_v58 = vpop.permute.xlu0 %5173  ;;  %v8693_v63 = vpop.f32.mrf.mxu0 }
 0x406   : > { %v6779_v10 = vsel %vm9481_vm3, %v6774_v26, %v6778_v20  ;;  %v6800_v57 = vshll.u32 %v6371_v1, 16  ;;  %v5421_v56 = vsel %vm1712_vm1, %v5389_v28, %v5277_v19  ;;  %v6792_v52 = vrot.slane %v6790_v54, 5 }
 0x407   : > { %v6873_v32 = vmax.bf16 %v6779_v10, %v13617_v37  ;;  %v7124_v29 = vmax.bf16 %v7045_v7, %v6872_v48  ;;  %8736 = vmatmul.mubr.msk.bf16.gmra.mxu1 %vm2620_vm6, %v5421_v56  ;;  %v7186_v20 = vmax.bf16 %v7154_v27, %v13636_v25  ;;  %v7187_v37 = vmax.bf16 %v7155_v30, %v13644_v21  ;;  %v5176_v44 = vpop.permute.xlu1 %5175 }
 0x408   : > { %v6787_v34 = vor.u32 %v6786_v14, %v6783_v13  ;;  %v6796_v28 = vrot.slane %v6794_v49, 4  ;;  %v13690_v7 = vadd.f32 %v8693_v63, %v13602_v36  ;;  %v8318_v0 = vrot.slane %v13649_v42, 9 }
 0x409   : > { %8782 = vmatmul.mubr.msk.bf16.gmra.mxu0 %vm14906_vm5, %v8331_v6  ;;  %v7125_v46 = vmax.bf16 %v7048_v51, %v6873_v32  ;;  %v7188_v55 = vmax.bf16 %v7156_v17, %v7124_v29  ;;  %v4764_v6 = vpop.f32.mrf.mxu0  ;;  %v6802_v47 = vrot.slane %v6800_v57, 5  ;;  %v7051_v40 = vrot.slane %v13657_v39, 5  ;;  %v5209_v36 = vpop.permute.xlu0 %5208  ;;  %v14909_v32 = vld [vmem:[#allocation70_spill] sm:$0xff] }
 0x40a   : > { %8785 = vmatprep.mubr.msk.bf16.mxu0 %vm14907_vm14, %v8332_v59  ;;  %v6788_v27 = vrot.slane %v6787_v34, 4  ;;  %v6797_v53 = vor.u32 %v6796_v28, %v6792_v52  ;;  %v13699_v30 = vadd.f32 %v4764_v6, %v13620_v60  ;;  %v7054_v26 = vrot.slane %v6371_v1, 5 }
 0x40b   : > { %v7189_v33 = vmax.bf16 %v7157_v15, %v7125_v46  ;;  %v8694_v16 = vpop.f32.mrf.mxu0  ;;  %v8333_v50 = vcombine.low %v7186_v20, %v7187_v37  ;;  %v7052_v31 = vsel %vm9507_vm9, %v8318_v0, %v7051_v40  ;;  %v7053_v60 = vrot.slane %v7051_v40, 4  ;;  %v5211_v54 = vpop.permute.xlu1 %5210 }
 0x40c   : > { %v6793_v59 = vsel %vm9481_vm3, %v6788_v27, %v6792_v52  ;;  %v6798_v17 = vrot.slane %v6797_v53, 4  ;;  %v13706_v48 = vadd.f32 %v8694_v16, %v13634_v8  ;;  %v7158_v1 = vmax.bf16 %v7124_v29, %v13636_v25  ;;  %v14910_v52 = vld [vmem:[#allocation18_spill] sm:$0xff] }
 0x40d   : > { %v8334_v51 = vcombine.low %v7188_v55, %v7189_v33  ;;  %v6874_v13 = vmax.bf16 %v6793_v59, %v13649_v42  ;;  %v4767_v19 = vpop.f32.mrf.mxu0  ;;  %v5244_v14 = vpop.permute.xlu0 %5243  ;;  %v7055_v8 = vsel %vm9507_vm9, %v7053_v60, %v7054_v26  ;;  %v7159_v57 = vmax.bf16 %v7125_v46, %v13644_v21  ;;  %v14912_v21 = vld [vmem:[#allocation12_spill] sm:$0xff]  ;;  %v14913_v46 = vld [vmem:[#allocation51_spill] sm:$0xff]  ;;  %vm14914_vm9 = vmmov %vm14872_vm0 }
 0x40e   : > { %v6803_v15 = vsel %vm9481_vm3, %v6798_v17, %v6802_v47  ;;  %v13713_v10 = vadd.f32 %v4767_v19, %v13642_v12  ;;  %v8657_v42 = vpop.f32.mrf.mxu1  ;;  %v5318_v5 = vsel %vm1597_vm8, %v14909_v32, %v5174_v58  ;;  %vm14911_vm3 = vmmov %vm14872_vm0  ;;  %v5321_v55 = vsel %vm1597_vm8, %v14913_v46, %v5176_v44  ;;  %v14918_v46 = vld [vmem:[#allocation109_spill] sm:$0xff] }
 0x40f   : > { %v6875_v49 = vmax.bf16 %v6803_v15, %v13657_v39  ;;  %v7126_v56 = vmax.bf16 %v7052_v31, %v6874_v13  ;;  %v3810_v25 = vadd.f32 %v8657_v42, %v14910_v52  ;;  %v5359_v29 = vsel %vm1646_vm10, %v5318_v5, %v5209_v36  ;;  %v5246_v39 = vpop.permute.xlu1 %5245  ;;  %v14915_v31 = vld [vmem:[#allocation122_spill] sm:$0xff] }
 0x410   : > { %v3705_v63 = vpop.f32.mrf.mxu1  ;;  %v5391_v20 = vsel %vm1679_vm2, %v5359_v29, %v5244_v14  ;;  %v5361_v6 = vsel %vm1646_vm10, %v5321_v55, %v5211_v54  ;;  %v14916_v14 = vld [vmem:[#allocation89_spill] sm:$0xff] }
 0x411   : > { %8786 = vmatmul.mubr.msk.bf16.gmra.mxu0 %vm14908_vm11, %v8333_v50  ;;  %v7127_v12 = vmax.bf16 %v7055_v8, %v6875_v49  ;;  %v7190_v2 = vmax.bf16 %v7158_v1, %v7126_v56  ;;  %v3808_v37 = vadd.f32 %v3705_v63, %v14912_v21  ;;  %v5279_v34 = vpop.permute.xlu0 %5278  ;;  %v5393_v47 = vsel %vm1679_vm2, %v5361_v6, %v5246_v39  ;;  %v14917_v21 = vld [vmem:[#allocation111_spill] sm:$0xff] }
 0x412   : > { %8789 = vmatprep.mubr.msk.bf16.mxu0 %vm14911_vm3, %v8334_v51  ;;  %v5423_v58 = vsel %vm1712_vm1, %v5391_v20, %v5279_v34  ;;  %v8658_v0 = vpop.f32.mrf.mxu1 }
 0x413   : > { %v7191_v28 = vmax.bf16 %v7159_v57, %v7127_v12  ;;  %v3811_v27 = vadd.f32 %v8658_v0, %v13130_v35  ;;  %8739 = vmatprep.mubr.msk.bf16.mxu1 %vm2620_vm6, %v5423_v58  ;;  %v5281_v40 = vpop.permute.xlu1 %5280 }
 0x414   : > { %v3708_v36 = vpop.f32.mrf.mxu1  ;;  %v5425_v33 = vsel %vm1712_vm1, %v5393_v47, %v5281_v40 }
 0x415   : > { %v8335_v53 = vcombine.low %v7190_v2, %v7191_v28  ;;  %v3809_v26 = vadd.f32 %v3708_v36, %v13146_v38  ;;  %v5178_v16 = vpop.permute.xlu0 %5177  ;;  %8740 = vmatmul.mubr.msk.bf16.gmra.mxu1 %vm2620_vm6, %v5425_v33 }
 0x416   : > { %v5324_v51 = vsel %vm1597_vm8, %v14915_v31, %v5178_v16 }
 0x417   : > { %v5180_v44 = vpop.permute.xlu1 %5179 }
 0x418   : > { %v5327_v49 = vsel %vm1597_vm8, %v14916_v14, %v5180_v44 }
 0x419   : > { %8790 = vmatmul.mubr.msk.bf16.gmra.mxu0 %vm14914_vm9, %v8335_v53  ;;  %v5213_v50 = vpop.permute.xlu0 %5212  ;;  %v14919_v53 = vld [vmem:[#allocation112_spill] sm:$0xff] }
 0x41a   : > { %v5363_v60 = vsel %vm1646_vm10, %v5324_v51, %v5213_v50 }
 0x41b   : > { %v5215_v59 = vpop.permute.xlu1 %5214 }
 0x41c   : > { %v5365_v42 = vsel %vm1646_vm10, %v5327_v49, %v5215_v59 }
 0x41d   : > { %v5248_v35 = vpop.permute.xlu0 %5247 }
 0x41e   : > { %v5395_v38 = vsel %vm1679_vm2, %v5363_v60, %v5248_v35 }
 0x41f   : > { %v8697_v17 = vpop.f32.mrf.mxu0  ;;  %v5250_v54 = vpop.permute.xlu1 %5249 }
 0x420   : > { %v13740_v13 = vadd.f32 %v8697_v17, %v3810_v25  ;;  %v5397_v32 = vsel %vm1679_vm2, %v5365_v42, %v5250_v54 }
 0x421   : > { %v4780_v19 = vpop.f32.mrf.mxu0  ;;  %v5283_v1 = vpop.permute.xlu0 %5282 }
 0x422   : > { %v13744_v15 = vadd.f32 %v4780_v19, %v3808_v37  ;;  %v5427_v8 = vsel %vm1712_vm1, %v5395_v38, %v5283_v1 }
 0x423   : > { %v8698_v57 = vpop.f32.mrf.mxu0  ;;  %8743 = vmatprep.mubr.msk.bf16.mxu1 %vm2620_vm6, %v5427_v8  ;;  %v5285_v5 = vpop.permute.xlu1 %5284 }
 0x424   : > { %v13750_v56 = vadd.f32 %v8698_v57, %v3811_v27  ;;  %v5429_v25 = vsel %vm1712_vm1, %v5397_v32, %v5285_v5  ;;  %v14921_v5 = vld [vmem:[#allocation25_spill] sm:$0xff] }
 0x425   : > { %v4783_v52 = vpop.f32.mrf.mxu0  ;;  %v5182_v29 = vpop.permute.xlu0 %5181  ;;  %8744 = vmatmul.mubr.msk.bf16.gmra.mxu1 %vm2620_vm6, %v5429_v25  ;;  %v14922_v25 = vld [vmem:[#allocation115_spill] sm:$0xff] }
 0x426   : > { %v13755_v12 = vadd.f32 %v4783_v52, %v3809_v26  ;;  %v8661_v39 = vpop.f32.mrf.mxu1  ;;  %v5330_v47 = vsel %vm1597_vm8, %v14919_v53, %v5182_v29  ;;  %v14920_v26 = vld [vmem:[#allocation29_spill] sm:$0xff] }
 0x427   : > { %v3814_v63 = vadd.f32 %v8661_v39, %v13155_v3  ;;  %v5184_v2 = vpop.permute.xlu1 %5183 }
 0x428   : > { %v3721_v20 = vpop.f32.mrf.mxu1  ;;  %v5333_v16 = vsel %vm1597_vm8, %v14920_v26, %v5184_v2 }
 0x429   : > { %v3812_v37 = vadd.f32 %v3721_v20, %v14917_v21  ;;  %v5217_v34 = vpop.permute.xlu0 %5216  ;;  %v14923_v21 = vld [vmem:[#allocation36_spill] sm:$0xff] }
 0x42a   : > { %v8662_v28 = vpop.f32.mrf.mxu1  ;;  %v5367_v40 = vsel %vm1646_vm10, %v5330_v47, %v5217_v34 }
 0x42b   : > { %v3815_v55 = vadd.f32 %v8662_v28, %v14918_v46  ;;  %v5219_v58 = vpop.permute.xlu1 %5218  ;;  %v14924_v28 = vld [vmem:[#allocation99_spill] sm:$0xff] }
 0x42c   : > { %v3724_v0 = vpop.f32.mrf.mxu1  ;;  %v5369_v50 = vsel %vm1646_vm10, %v5333_v16, %v5219_v58 }
 0x42d   : > { %v3813_v6 = vadd.f32 %v3724_v0, %v13206_v18  ;;  %v5252_v27 = vpop.permute.xlu0 %5251 }
 0x42e   : > { %v5399_v3 = vsel %vm1679_vm2, %v5367_v40, %v5252_v27 }
 0x42f   : > { %v5254_v36 = vpop.permute.xlu1 %5253 }
 0x430   : > { %v5401_v18 = vsel %vm1679_vm2, %v5369_v50, %v5254_v36 }
 0x431   : > { %v5287_v33 = vpop.permute.xlu0 %5286 }
 0x432   : > { %v5431_v44 = vsel %vm1712_vm1, %v5399_v3, %v5287_v33  ;;  %v14926_v3 = vld [vmem:[#allocation16_spill] sm:$0xff] }
 0x433   : > { %8747 = vmatprep.mubr.msk.bf16.mxu1 %vm2620_vm6, %v5431_v44  ;;  %v5289_v59 = vpop.permute.xlu1 %5288 }
 0x434   : > { %v5433_v35 = vsel %vm1712_vm1, %v5401_v18, %v5289_v59 }
 0x435   : > { %v5186_v17 = vpop.permute.xlu0 %5185  ;;  %8748 = vmatmul.mubr.msk.bf16.gmra.mxu1 %vm2620_vm6, %v5433_v35  ;;  %v14927_v35 = vld [vmem:[#allocation23_spill] sm:$0xff] }
 0x436   : > { %v8701_v31 = vpop.f32.mrf.mxu0  ;;  %v5336_v52 = vsel %vm1597_vm8, %v14921_v5, %v5186_v17 }
 0x437   : > { %v13774_v51 = vadd.f32 %v8701_v31, %v3814_v63  ;;  %v5188_v60 = vpop.permute.xlu1 %5187 }
 0x438   : > { %v4796_v54 = vpop.f32.mrf.mxu0  ;;  %v5339_v46 = vsel %vm1597_vm8, %v14924_v28, %v5188_v60 }
 0x439   : > { %v13776_v19 = vadd.f32 %v4796_v54, %v3812_v37  ;;  %v5221_v38 = vpop.permute.xlu0 %5220 }
 0x43a   : > { %v8702_v1 = vpop.f32.mrf.mxu0  ;;  %v5371_v39 = vsel %vm1646_vm10, %v5336_v52, %v5221_v38 }
 0x43b   : > { %v13778_v14 = vadd.f32 %v8702_v1, %v3815_v55  ;;  %v5223_v49 = vpop.permute.xlu1 %5222 }
 0x43c   : > { %v4799_v8 = vpop.f32.mrf.mxu0  ;;  %v5373_v0 = vsel %vm1646_vm10, %v5339_v46, %v5223_v49 }
 0x43d   : > { %v13780_v57 = vadd.f32 %v4799_v8, %v3813_v6  ;;  %v5256_v42 = vpop.permute.xlu0 %5255  ;;  %v14925_v6 = vld [vmem:[#allocation38_spill] sm:$0xff] }
 0x43e   : > { %v5403_v20 = vsel %vm1679_vm2, %v5371_v39, %v5256_v42 }
 0x43f   : > { %v8665_v32 = vpop.f32.mrf.mxu1  ;;  %v5258_v63 = vpop.permute.xlu1 %5257 }
 0x440   : > { %v3818_v29 = vadd.f32 %v8665_v32, %v14922_v25  ;;  %v5405_v53 = vsel %vm1679_vm2, %v5373_v0, %v5258_v63 }
 0x441   : > { %v3737_v2 = vpop.f32.mrf.mxu1  ;;  %v5291_v34 = vpop.permute.xlu0 %5290 }
 0x442   : > { %v3816_v37 = vadd.f32 %v3737_v2, %v14923_v21  ;;  %v5435_v55 = vsel %vm1712_vm1, %v5403_v20, %v5291_v34 }
 0x443   : > { %v8666_v58 = vpop.f32.mrf.mxu1  ;;  %8751 = vmatprep.mubr.msk.bf16.mxu1 %vm2620_vm6, %v5435_v55  ;;  %v5293_v47 = vpop.permute.xlu1 %5292  ;;  %v14929_v55 = vld [vmem:[#allocation11_spill] sm:$0xff] }
 0x444   : > { %v3819_v27 = vadd.f32 %v8666_v58, %v14925_v6  ;;  %v5437_v36 = vsel %vm1712_vm1, %v5405_v53, %v5293_v47  ;;  %v14930_v6 = vld [vmem:[#allocation110_spill] sm:$0xff] }
 0x445   : > { %v3740_v40 = vpop.f32.mrf.mxu1  ;;  %v5190_v26 = vpop.permute.xlu0 %5189  ;;  %8752 = vmatmul.mubr.msk.bf16.gmra.mxu1 %vm2620_vm6, %v5437_v36 }
 0x446   : > { %v3817_v33 = vadd.f32 %v3740_v40, %v14926_v3  ;;  %v5342_v17 = vsel %vm1597_vm8, %v14927_v35, %v5190_v26 }
 0x447   : > { %v5192_v16 = vpop.permute.xlu1 %5191 }
 0x448   : > { %v5345_v42 = vsel %vm1597_vm8, %v12449_v61, %v5192_v16  ;;  %v14928_v61 = vld [vmem:[#allocation64_spill] sm:$0xff]  ;;  %vm7685_vm8 = vcmask 326720  }
 0x449   : > { %v5225_v44 = vpop.permute.xlu0 %5224 }
 0x44a   : > { %v5375_v60 = vsel %vm1646_vm10, %v5342_v17, %v5225_v44 }
 0x44b   : > { %v5227_v50 = vpop.permute.xlu1 %5226 }
 0x44c   : > { %v5377_v52 = vsel %vm1646_vm10, %v5345_v42, %v5227_v50  ;;  %vm7846_vm10 = vcmask 392512  }
 0x44d   : > { %v5260_v18 = vpop.permute.xlu0 %5259 }
 0x44e   : > { %v8705_v59 = vpop.f32.mrf.mxu0  ;;  %v5407_v1 = vsel %vm1679_vm2, %v5375_v60, %v5260_v18  ;;  %v14931_v18 = vld [vmem:[#allocation72_spill] sm:$0xff] }
 0x44f   : > { %v13800_v31 = vadd.f32 %v8705_v59, %v3818_v29  ;;  %v5262_v54 = vpop.permute.xlu1 %5261 }
 0x450   : > { %v4812_v38 = vpop.f32.mrf.mxu0  ;;  %v5409_v29 = vsel %vm1679_vm2, %v5377_v52, %v5262_v54 }
 0x451   : > { %v13804_v49 = vadd.f32 %v4812_v38, %v3816_v37  ;;  %v5295_v8 = vpop.permute.xlu0 %5294 }
 0x452   : > { %v5439_v32 = vsel %vm1712_vm1, %v5407_v1, %v5295_v8  ;;  %v8706_v5 = vpop.f32.mrf.mxu0 }
 0x453   : > { %v13810_v25 = vadd.f32 %v8706_v5, %v3819_v27  ;;  %8755 = vmatprep.mubr.msk.bf16.mxu1 %vm2620_vm6, %v5439_v32 }
 0x454   : > { %v4815_v63 = vpop.f32.mrf.mxu0 }
 0x455   : > { %v5297_v39 = vpop.permute.xlu1 %5296  ;;  %v13815_v20 = vadd.f32 %v4815_v63, %v3817_v33 }
 0x456   : > { %v5441_v2 = vsel %vm1712_vm1, %v5409_v29, %v5297_v39  ;;  %v14932_v39 = vld [vmem:[#allocation106_spill] sm:$0xff] }
 0x457   : > { %v8669_v21 = vpop.f32.mrf.mxu1  ;;  %8756 = vmatmul.mubr.msk.bf16.gmra.mxu1 %vm2620_vm6, %v5441_v2 }
 0x458   : > { %v3822_v37 = vadd.f32 %v8669_v21, %v14928_v61 }
 0x459   : > { %v3753_v34 = vpop.f32.mrf.mxu1 }
 0x45a   : > { %v3820_v28 = vadd.f32 %v3753_v34, %v13298_v62 }
 0x45b   : > { %v8670_v46 = vpop.f32.mrf.mxu1 }
 0x45c   : > { %v3823_v58 = vadd.f32 %v8670_v46, %v14929_v55 }
 0x45d   : > { %v3756_v0 = vpop.f32.mrf.mxu1 }
 0x45e   : > { %v3821_v27 = vadd.f32 %v3756_v0, %v14930_v6 }
 0x466   : > { %v8709_v53 = vpop.f32.mrf.mxu0 }
 0x467   : > { %v13822_v47 = vadd.f32 %v8709_v53, %v3822_v37 }
 0x468   : > { %v4828_v40 = vpop.f32.mrf.mxu0 }
 0x469   : > { %v13824_v36 = vadd.f32 %v4828_v40, %v3820_v28 }
 0x46a   : > { %v8710_v3 = vpop.f32.mrf.mxu0 }
 0x46b   : > { %v13826_v33 = vadd.f32 %v8710_v3, %v3823_v58 }
 0x46c   : > { %v4831_v26 = vpop.f32.mrf.mxu0 }
 0x46d   : > { %v13828_v16 = vadd.f32 %v4831_v26, %v3821_v27 }
 0x46e   : > { %v8673_v44 = vpop.f32.mrf.mxu1 }
 0x46f   : > { %v3826_v62 = vadd.f32 %v8673_v44, %v13336_v45 }
 0x470   : > { %v3769_v50 = vpop.f32.mrf.mxu1 }
 0x471   : > { %v3824_v59 = vadd.f32 %v3769_v50, %v14931_v18 }
 0x472   : > { %v8674_v35 = vpop.f32.mrf.mxu1 }
 0x473   : > { %v3827_v17 = vadd.f32 %v8674_v35, %v13367_v43 }
 0x474   : > { %v3772_v60 = vpop.f32.mrf.mxu1 }
 0x475   : > { %v3825_v54 = vadd.f32 %v3772_v60, %v13378_v24  ;;  %v14933_v24 = vld [vmem:[#allocation33_spill] sm:$0xff] }
 0x47e   : > { %v8713_v38 = vpop.f32.mrf.mxu0 }
 0x47f   : > { %v13834_v1 = vadd.f32 %v8713_v38, %v3826_v62 }
 0x480   : > { %v4844_v8 = vpop.f32.mrf.mxu0 }
 0x481   : > { %v13836_v42 = vadd.f32 %v4844_v8, %v3824_v59 }
 0x482   : > { %v8714_v32 = vpop.f32.mrf.mxu0 }
 0x483   : > { %v13838_v5 = vadd.f32 %v8714_v32, %v3827_v17 }
 0x484   : > { %v4847_v52 = vpop.f32.mrf.mxu0 }
 0x485   : > { %v13840_v45 = vadd.f32 %v4847_v52, %v3825_v54 }
 0x486   : > { %v8677_v29 = vpop.f32.mrf.mxu1 }
 0x487   : > { %v3830_v63 = vadd.f32 %v8677_v29, %v14932_v39 }
 0x488   : > { %v3785_v2 = vpop.f32.mrf.mxu1 }
 0x489   : > { %v3828_v43 = vadd.f32 %v3785_v2, %v13409_v11  ;;  %v13855_v11 = vld [vmem:[%s14217_s7] ss:$0 sm:$0xff] }
 0x48a   : > { %v8678_v21 = vpop.f32.mrf.mxu1  ;;  %v13872_v2 = vld [vmem:[%s14215_s5] ss:$0 sm:$0xff] }
 0x48b   : > { %v3831_v61 = vadd.f32 %v8678_v21, %v14933_v24 }
 0x48c   : > { %v3788_v37 = vpop.f32.mrf.mxu1 }
 0x48d   : > { %v3829_v34 = vadd.f32 %v3788_v37, %v13436_v9 }
 0x496   : > { %v8717_v28 = vpop.f32.mrf.mxu0 }
 0x497   : > { %v13846_v46 = vadd.f32 %v8717_v28, %v3830_v63 }
 0x498   : > { %v4860_v55 = vpop.f32.mrf.mxu0 }
 0x499   : > { %v13848_v58 = vadd.f32 %v4860_v55, %v3828_v43 }
 0x49a   : > { %v8718_v0 = vpop.f32.mrf.mxu0 }
 0x49b   : > { %v13850_v6 = vadd.f32 %v8718_v0, %v3831_v61 }
 0x49c   : > { %v4863_v27 = vpop.f32.mrf.mxu0 }
 0x49d   : > { %v13857_v53 = vadd.f32 %v4863_v27, %v3829_v34 }
 0x49f   : > { %v8763_v40 = vpop.f32.mrf.mxu0 }
 0x4a0   : > { %v7374_v9 = vadd.f32 %v8763_v40, %v13855_v11 }
 0x4a1   : > { %v7365_v3 = vpop.f32.mrf.mxu0 }
 0x4a2   : > { %v7494_v26 = vmax.f32 %v7374_v9, 0.0  ;;  %v7366_v44 = vadd.f32 %v13855_v11, %v7365_v3 }
 0x4a3   : > { %v8764_v62 = vpop.f32.mrf.mxu0 }
 0x4a4   : > { %v7492_v50 = vmax.f32 %v7366_v44, 0.0  ;;  %v7377_v18 = vadd.f32 %v8764_v62, %v13855_v11  ;;  %7754 = vrot.lane.b32.xlu0 %v7494_v26, %s9021_s12 }
 0x4a5   : > { %v7368_v59 = vpop.f32.mrf.mxu0 }
 0x4a6   : > { %v7495_v35 = vmax.f32 %v7377_v18, 0.0  ;;  %v7369_v17 = vadd.f32 %v13855_v11, %v7368_v59  ;;  %v8729_v60 = vpop.f32.mrf.mxu1 }
 0x4a7   : > { %v5672_v29 = vadd.f32 %v8729_v60, %v13549_v4 }
 0x4a8   : > { %v8767_v54 = vpop.f32.mrf.mxu0  ;;  %7756 = vrot.lane.b32.xlu1 %v7495_v35, %s9021_s12  ;;  %7750 = vrot.lane.b32.xlu0 %v7492_v50, %s9021_s12  ;;  %v5543_v8 = vpop.f32.mrf.mxu1  ;;  %v7493_v52 = vmax.f32 %v7369_v17, 0.0 }
 0x4a9   : > { %v7390_v38 = vadd.f32 %v8767_v54, %v13855_v11  ;;  %v5711_v4 = vadd.f32 %v13872_v2, %v5672_v29  ;;  %v5670_v34 = vadd.f32 %v5543_v8, %v13566_v23 }
 0x4aa   : > { %v7381_v32 = vpop.f32.mrf.mxu0  ;;  %v8730_v24 = vpop.f32.mrf.mxu1 }
 0x4ab   : > { %v7498_v39 = vmax.f32 %v7390_v38, 0.0  ;;  %v7382_v63 = vadd.f32 %v13855_v11, %v7381_v32  ;;  %v5673_v28 = vadd.f32 %v8730_v24, %v13573_v22  ;;  %v5743_v9 = vmax.f32 %v5711_v4, 0.0 }
 0x4ac   : > { %v8768_v43 = vpop.f32.mrf.mxu0  ;;  %7752 = vrot.lane.b32.xlu1 %v7493_v52, %s9021_s12  ;;  %v5546_v40 = vpop.f32.mrf.mxu1  ;;  %v5709_v3 = vadd.f32 %v13872_v2, %v5670_v34 }
 0x4ad   : > { %v7496_v21 = vmax.f32 %v7382_v63, 0.0  ;;  %7762 = vrot.lane.b32.xlu0 %v7498_v39, %s9021_s12  ;;  %v7393_v61 = vadd.f32 %v8768_v43, %v13855_v11  ;;  %v5712_v44 = vadd.f32 %v13872_v2, %v5673_v28  ;;  %v5671_v62 = vadd.f32 %v5546_v40, %v13585_v41 }
 0x4ae   : > { %v7384_v37 = vpop.f32.mrf.mxu0  ;;  %v5741_v50 = vmax.f32 %v5709_v3, 0.0 }
 0x4af   : > { %v7499_v55 = vmax.f32 %v7393_v61, 0.0  ;;  %v7385_v0 = vadd.f32 %v13855_v11, %v7384_v37  ;;  %v5744_v59 = vmax.f32 %v5712_v44, 0.0  ;;  %v5710_v35 = vadd.f32 %v13872_v2, %v5671_v62 }
 0x4b0   : > { %v8771_v27 = vpop.f32.mrf.mxu0 }
 0x4b1   : > { %7758 = vrot.lane.b32.xlu0 %v7496_v21, %s9021_s12  ;;  %7764 = vrot.lane.b32.xlu1 %v7499_v55, %s9021_s12  ;;  %v7497_v23 = vmax.f32 %v7385_v0, 0.0  ;;  %v7406_v22 = vadd.f32 %v8771_v27, %v13855_v11  ;;  %v5742_v32 = vmax.f32 %v5710_v35, 0.0 }
 0x4b2   : > { %v7397_v26 = vpop.f32.mrf.mxu0 }
 0x4b3   : > { %v7502_v60 = vmax.f32 %v7406_v22, 0.0  ;;  %v7398_v54 = vadd.f32 %v13855_v11, %v7397_v26 }
 0x4b4   : > { %v8772_v18 = vpop.f32.mrf.mxu0 }
 0x4b5   : > { %7593 = vrot.lane.b32.xlu0 %v5743_v9, %s9022_s24  ;;  %7760 = vrot.lane.b32.xlu1 %v7497_v23, %s9021_s12  ;;  %v7409_v38 = vadd.f32 %v8772_v18, %v13855_v11  ;;  %v7500_v52 = vmax.f32 %v7398_v54, 0.0 }
 0x4b6   : > { %v7400_v39 = vpop.f32.mrf.mxu0 }
 0x4b7   : > { %v8733_v17 = vpop.f32.mrf.mxu1  ;;  %v7503_v63 = vmax.f32 %v7409_v38, 0.0  ;;  %v7401_v37 = vadd.f32 %v13855_v11, %v7400_v39 }
 0x4b8   : > { %v5676_v8 = vadd.f32 %v8733_v17, %v13690_v7 }
 0x4b9   : > { %7589 = vrot.lane.b32.xlu0 %v5741_v50, %s9022_s24  ;;  %7595 = vrot.lane.b32.xlu1 %v5744_v59, %s9022_s24  ;;  %v5559_v41 = vpop.f32.mrf.mxu1  ;;  %v8775_v24 = vpop.f32.mrf.mxu0  ;;  %v7501_v27 = vmax.f32 %v7401_v37, 0.0 }
 0x4ba   : > { %v5715_v43 = vadd.f32 %v13872_v2, %v5676_v8  ;;  %v5674_v21 = vadd.f32 %v5559_v41, %v13699_v30  ;;  %v7422_v30 = vadd.f32 %v8775_v24, %v13855_v11 }
 0x4bb   : > { %v8734_v29 = vpop.f32.mrf.mxu1  ;;  %v7413_v28 = vpop.f32.mrf.mxu0 }
 0x4bc   : > { %v5677_v61 = vadd.f32 %v8734_v29, %v13706_v48  ;;  %v5747_v7 = vmax.f32 %v5715_v43, 0.0  ;;  %v5713_v34 = vadd.f32 %v13872_v2, %v5674_v21  ;;  %v7506_v44 = vmax.f32 %v7422_v30, 0.0 }
 0x4bd   : > { %7770 = vrot.lane.b32.xlu0 %v7502_v60, %s9021_s12  ;;  %7591 = vrot.lane.b32.xlu1 %v5742_v32, %s9022_s24  ;;  %v5562_v4 = vpop.f32.mrf.mxu1  ;;  %v8776_v40 = vpop.f32.mrf.mxu0  ;;  %v7414_v62 = vadd.f32 %v13855_v11, %v7413_v28 }
 0x4be   : > { %v5716_v55 = vadd.f32 %v13872_v2, %v5677_v61  ;;  %v5675_v0 = vadd.f32 %v5562_v4, %v13713_v10  ;;  %v5745_v48 = vmax.f32 %v5713_v34, 0.0  ;;  %v7425_v23 = vadd.f32 %v8776_v40, %v13855_v11 }
 0x4bf   : > { %v7504_v18 = vmax.f32 %v7414_v62, 0.0  ;;  %v7416_v35 = vpop.f32.mrf.mxu0 }
 0x4c0   : > { %v5748_v9 = vmax.f32 %v5716_v55, 0.0  ;;  %v5714_v3 = vadd.f32 %v13872_v2, %v5675_v0  ;;  %v7507_v17 = vmax.f32 %v7425_v23, 0.0  ;;  %v7417_v8 = vadd.f32 %v13855_v11, %v7416_v35 }
 0x4c1   : > { %7766 = vrot.lane.b32.xlu0 %v7500_v52, %s9021_s12  ;;  %7772 = vrot.lane.b32.xlu1 %v7503_v63, %s9021_s12  ;;  %v8779_v41 = vpop.f32.mrf.mxu0 }
 0x4c2   : > { %v5746_v50 = vmax.f32 %v5714_v3, 0.0  ;;  %v7505_v43 = vmax.f32 %v7417_v8, 0.0 }
 0x4c3   : > { %v7429_v29 = vpop.f32.mrf.mxu0 }
 0x4c5   : > { %7601 = vrot.lane.b32.xlu0 %v5747_v7, %s9022_s24  ;;  %7768 = vrot.lane.b32.xlu1 %v7501_v27, %s9021_s12  ;;  %v8780_v21 = vpop.f32.mrf.mxu0  ;;  %v7430_v7 = vadd.f32 %v13855_v11, %v7429_v29 }
 0x4c6   : > { %v7441_v34 = vadd.f32 %v8780_v21, %v13855_v11 }
 0x4c7   : > { %v8737_v26 = vpop.f32.mrf.mxu1  ;;  %v7508_v0 = vmax.f32 %v7430_v7, 0.0  ;;  %v7432_v30 = vpop.f32.mrf.mxu0 }
 0x4c8   : > { %v5680_v22 = vadd.f32 %v8737_v26, %v13740_v13 }
 0x4c9   : > { %7597 = vrot.lane.b32.xlu0 %v5745_v48, %s9022_s24  ;;  %7603 = vrot.lane.b32.xlu1 %v5748_v9, %s9022_s24  ;;  %v5575_v10 = vpop.f32.mrf.mxu1  ;;  %v7511_v48 = vmax.f32 %v7441_v34, 0.0  ;;  %v8783_v3 = vpop.f32.mrf.mxu0 }
 0x4ca   : > { %v5719_v60 = vadd.f32 %v13872_v2, %v5680_v22  ;;  %v5678_v54 = vadd.f32 %v5575_v10, %v13744_v15  ;;  %v7438_v15 = vadd.f32 %v8779_v41, %v13855_v11 }
 0x4cb   : > { %v8738_v59 = vpop.f32.mrf.mxu1  ;;  %v7445_v23 = vpop.f32.mrf.mxu0 }
 0x4cc   : > { %v5681_v38 = vadd.f32 %v8738_v59, %v13750_v56  ;;  %v5751_v13 = vmax.f32 %v5719_v60, 0.0  ;;  %v5717_v52 = vadd.f32 %v13872_v2, %v5678_v54  ;;  %v7510_v4 = vmax.f32 %v7438_v15, 0.0 }
 0x4cd   : > { %7778 = vrot.lane.b32.xlu0 %v7506_v44, %s9021_s12  ;;  %7599 = vrot.lane.b32.xlu1 %v5746_v50, %s9022_s24  ;;  %v5578_v32 = vpop.f32.mrf.mxu1  ;;  %v7433_v44 = vadd.f32 %v13855_v11, %v7432_v30  ;;  %v8784_v59 = vpop.f32.mrf.mxu0  ;;  %v7446_v41 = vadd.f32 %v13855_v11, %v7445_v23 }
 0x4ce   : > { %v5720_v39 = vadd.f32 %v13872_v2, %v5681_v38  ;;  %v5679_v63 = vadd.f32 %v5578_v32, %v13755_v12  ;;  %v5749_v56 = vmax.f32 %v5717_v52, 0.0  ;;  %v7457_v38 = vadd.f32 %v8784_v59, %v13855_v11 }
 0x4cf   : > { %v7448_v32 = vpop.f32.mrf.mxu0  ;;  %v7512_v52 = vmax.f32 %v7446_v41, 0.0 }
 0x4d0   : > { %v5752_v24 = vmax.f32 %v5720_v39, 0.0  ;;  %v5718_v61 = vadd.f32 %v13872_v2, %v5679_v63  ;;  %v7515_v63 = vmax.f32 %v7457_v38, 0.0  ;;  %v7449_v21 = vadd.f32 %v13855_v11, %v7448_v32 }
 0x4d1   : > { %7774 = vrot.lane.b32.xlu0 %v7504_v18, %s9021_s12  ;;  %7780 = vrot.lane.b32.xlu1 %v7507_v17, %s9021_s12  ;;  %v7509_v18 = vmax.f32 %v7433_v44, 0.0  ;;  %v8787_v39 = vpop.f32.mrf.mxu0 }
 0x4d2   : > { %v5750_v55 = vmax.f32 %v5718_v61, 0.0 }
 0x4d5   : > { %7609 = vrot.lane.b32.xlu0 %v5751_v13, %s9022_s24  ;;  %7776 = vrot.lane.b32.xlu1 %v7505_v43, %s9021_s12  ;;  %v8741_v37 = vpop.f32.mrf.mxu1 }
 0x4d6   : > { %v5684_v28 = vadd.f32 %v8741_v37, %v13774_v51 }
 0x4d7   : > { %v5591_v12 = vpop.f32.mrf.mxu1 }
 0x4d8   : > { %v5723_v40 = vadd.f32 %v13872_v2, %v5684_v28  ;;  %v5682_v9 = vadd.f32 %v5591_v12, %v13776_v19  ;;  %v7454_v19 = vadd.f32 %v8783_v3, %v13855_v11  ;;  %v7513_v12 = vmax.f32 %v7449_v21, 0.0 }
 0x4d9   : > { %7605 = vrot.lane.b32.xlu0 %v5749_v56, %s9022_s24  ;;  %7611 = vrot.lane.b32.xlu1 %v5752_v24, %s9022_s24  ;;  %v8742_v27 = vpop.f32.mrf.mxu1 }
 0x4da   : > { %v5685_v26 = vadd.f32 %v8742_v27, %v13778_v14  ;;  %v5755_v51 = vmax.f32 %v5723_v40, 0.0  ;;  %v5721_v10 = vadd.f32 %v13872_v2, %v5682_v9  ;;  %v7514_v54 = vmax.f32 %v7454_v19, 0.0 }
 0x4db   : > { %v5594_v62 = vpop.f32.mrf.mxu1 }
 0x4dc   : > { %v5724_v22 = vadd.f32 %v13872_v2, %v5685_v26  ;;  %v5683_v50 = vadd.f32 %v5594_v62, %v13780_v57  ;;  %v5753_v14 = vmax.f32 %v5721_v10, 0.0 }
 0x4dd   : > { %7786 = vrot.lane.b32.xlu0 %v7510_v4, %s9021_s12  ;;  %7607 = vrot.lane.b32.xlu1 %v5750_v55, %s9022_s24 }
 0x4de   : > { %v5756_v35 = vmax.f32 %v5724_v22, 0.0  ;;  %v5722_v17 = vadd.f32 %v13872_v2, %v5683_v50 }
 0x4e0   : > { %v5754_v13 = vmax.f32 %v5722_v17, 0.0 }
 0x4e1   : > { %7782 = vrot.lane.b32.xlu0 %v7508_v0, %s9021_s12  ;;  %7788 = vrot.lane.b32.xlu1 %v7511_v48, %s9021_s12 }
 0x4e5   : > { %7617 = vrot.lane.b32.xlu0 %v5755_v51, %s9022_s24  ;;  %7784 = vrot.lane.b32.xlu1 %v7509_v18, %s9021_s12  ;;  %v8745_v60 = vpop.f32.mrf.mxu1 }
 0x4e6   : > { %v5688_v8 = vadd.f32 %v8745_v60, %v13800_v31  ;;  %v7461_v31 = vpop.f32.mrf.mxu0 }
 0x4e7   : > { %v5607_v57 = vpop.f32.mrf.mxu1  ;;  %v7462_v30 = vadd.f32 %v13855_v11, %v7461_v31 }
 0x4e8   : > { %v5727_v43 = vadd.f32 %v13872_v2, %v5688_v8  ;;  %v5686_v15 = vadd.f32 %v5607_v57, %v13804_v49  ;;  %v7470_v49 = vadd.f32 %v8787_v39, %v13855_v11 }
 0x4e9   : > { %7613 = vrot.lane.b32.xlu0 %v5753_v14, %s9022_s24  ;;  %7619 = vrot.lane.b32.xlu1 %v5756_v35, %s9022_s24  ;;  %v8746_v29 = vpop.f32.mrf.mxu1  ;;  %v7516_v44 = vmax.f32 %v7462_v30, 0.0 }
 0x4ea   : > { %v5689_v56 = vadd.f32 %v8746_v29, %v13810_v25  ;;  %v5759_v61 = vmax.f32 %v5727_v43, 0.0  ;;  %v5725_v37 = vadd.f32 %v13872_v2, %v5686_v15  ;;  %v8788_v25 = vpop.f32.mrf.mxu0  ;;  %v7518_v27 = vmax.f32 %v7470_v49, 0.0 }
 0x4eb   : > { %v5610_v24 = vpop.f32.mrf.mxu1  ;;  %v7473_v40 = vadd.f32 %v8788_v25, %v13855_v11 }
 0x4ec   : > { %v5728_v4 = vadd.f32 %v13872_v2, %v5689_v56  ;;  %v5687_v7 = vadd.f32 %v5610_v24, %v13815_v20  ;;  %v5757_v34 = vmax.f32 %v5725_v37, 0.0  ;;  %v7464_v48 = vpop.f32.mrf.mxu0 }
 0x4ed   : > { %7794 = vrot.lane.b32.xlu0 %v7514_v54, %s9021_s12  ;;  %7615 = vrot.lane.b32.xlu1 %v5754_v13, %s9022_s24  ;;  %v7519_v51 = vmax.f32 %v7473_v40, 0.0  ;;  %v7465_v18 = vadd.f32 %v13855_v11, %v7464_v48 }
 0x4ee   : > { %v5760_v28 = vmax.f32 %v5728_v4, 0.0  ;;  %v5726_v55 = vadd.f32 %v13872_v2, %v5687_v7  ;;  %v13975_v3 = vpop.f32.mrf.mxu0 }
 0x4f0   : > { %v5758_v26 = vmax.f32 %v5726_v55, 0.0  ;;  %v7477_v22 = vpop.f32.mrf.mxu0 }
 0x4f1   : > { %7790 = vrot.lane.b32.xlu0 %v7512_v52, %s9021_s12  ;;  %7796 = vrot.lane.b32.xlu1 %v7515_v63, %s9021_s12 }
 0x4f2   : > { %v13986_v59 = vpop.f32.mrf.mxu0 }
 0x4f4   : > { %v7480_v54 = vpop.f32.mrf.mxu0 }
 0x4f5   : > { %7625 = vrot.lane.b32.xlu0 %v5759_v61, %s9022_s24  ;;  %7792 = vrot.lane.b32.xlu1 %v7513_v12, %s9021_s12  ;;  %v8749_v0 = vpop.f32.mrf.mxu1  ;;  %v7481_v13 = vadd.f32 %v13855_v11, %v7480_v54 }
 0x4f6   : > { %v5692_v9 = vadd.f32 %v8749_v0, %v13822_v47 }
 0x4f7   : > { %v5623_v20 = vpop.f32.mrf.mxu1  ;;  %v7521_v15 = vmax.f32 %v7481_v13, 0.0 }
 0x4f8   : > { %v5731_v10 = vadd.f32 %v13872_v2, %v5692_v9  ;;  %v5690_v23 = vadd.f32 %v5623_v20, %v13824_v36  ;;  %v7517_v36 = vmax.f32 %v7465_v18, 0.0 }
 0x4f9   : > { %7621 = vrot.lane.b32.xlu0 %v5757_v34, %s9022_s24  ;;  %7627 = vrot.lane.b32.xlu1 %v5760_v28, %s9022_s24  ;;  %v8750_v62 = vpop.f32.mrf.mxu1 }
 0x4fa   : > { %v5693_v50 = vadd.f32 %v8750_v62, %v13826_v33  ;;  %v5763_v19 = vmax.f32 %v5731_v10, 0.0  ;;  %v5729_v14 = vadd.f32 %v13872_v2, %v5690_v23  ;;  %v7478_v33 = vadd.f32 %v13855_v11, %v7477_v22 }
 0x4fb   : > { %v5626_v47 = vpop.f32.mrf.mxu1  ;;  %v7489_v10 = vadd.f32 %v13986_v59, %v13855_v11 }
 0x4fc   : > { %v5732_v35 = vadd.f32 %v13872_v2, %v5693_v50  ;;  %v5691_v17 = vadd.f32 %v5626_v47, %v13828_v16  ;;  %v5761_v60 = vmax.f32 %v5729_v14, 0.0  ;;  %v7520_v32 = vmax.f32 %v7478_v33, 0.0 }
 0x4fd   : > { %7802 = vrot.lane.b32.xlu0 %v7518_v27, %s9021_s12  ;;  %7623 = vrot.lane.b32.xlu1 %v5758_v26, %s9022_s24  ;;  %v7523_v22 = vmax.f32 %v7489_v10, 0.0 }
 0x4fe   : > { %v5764_v41 = vmax.f32 %v5732_v35, 0.0  ;;  %v5730_v57 = vadd.f32 %v13872_v2, %v5691_v17 }
 0x500   : > { %v5762_v39 = vmax.f32 %v5730_v57, 0.0 }
 0x501   : > { %7798 = vrot.lane.b32.xlu0 %v7516_v44, %s9021_s12  ;;  %7804 = vrot.lane.b32.xlu1 %v7519_v51, %s9021_s12 }
 0x505   : > { %7633 = vrot.lane.b32.xlu0 %v5763_v19, %s9022_s24  ;;  %7800 = vrot.lane.b32.xlu1 %v7517_v36, %s9021_s12  ;;  %v8753_v38 = vpop.f32.mrf.mxu1 }
 0x506   : > { %v5696_v8 = vadd.f32 %v8753_v38, %v13834_v1 }
 0x507   : > { %v5639_v16 = vpop.f32.mrf.mxu1 }
 0x508   : > { %v5735_v52 = vadd.f32 %v13872_v2, %v5696_v8  ;;  %v5694_v29 = vadd.f32 %v5639_v16, %v13836_v42 }
 0x509   : > { %7629 = vrot.lane.b32.xlu0 %v5761_v60, %s9022_s24  ;;  %7635 = vrot.lane.b32.xlu1 %v5764_v41, %s9022_s24  ;;  %v8754_v63 = vpop.f32.mrf.mxu1 }
 0x50a   : > { %v5697_v43 = vadd.f32 %v8754_v63, %v13838_v5  ;;  %v5767_v56 = vmax.f32 %v5735_v52, 0.0  ;;  %v5733_v21 = vadd.f32 %v13872_v2, %v5694_v29 }
 0x50b   : > { %v5642_v1 = vpop.f32.mrf.mxu1 }
 0x50c   : > { %v5736_v24 = vadd.f32 %v13872_v2, %v5697_v43  ;;  %v5695_v31 = vadd.f32 %v5642_v1, %v13840_v45  ;;  %v5765_v42 = vmax.f32 %v5733_v21, 0.0 }
 0x50d   : > { %7806 = vrot.lane.b32.xlu0 %v7520_v32, %s9021_s12  ;;  %7631 = vrot.lane.b32.xlu1 %v5762_v39, %s9022_s24 }
 0x50e   : > { %v5768_v61 = vmax.f32 %v5736_v24, 0.0  ;;  %v5734_v5 = vadd.f32 %v13872_v2, %v5695_v31 }
 0x510   : > { %v5766_v4 = vmax.f32 %v5734_v5, 0.0 }
 0x511   : > { %7641 = vrot.lane.b32.xlu0 %v5767_v56, %s9022_s24  ;;  %7808 = vrot.lane.b32.xlu1 %v7521_v15, %s9021_s12 }
 0x515   : > { %7637 = vrot.lane.b32.xlu0 %v5765_v42, %s9022_s24  ;;  %7643 = vrot.lane.b32.xlu1 %v5768_v61, %s9022_s24 }
 0x516   : > { %v7755_v37 = vpop.permute.xlu0 %7754 }
 0x517   : > { %v8757_v7 = vpop.f32.mrf.mxu1 }
 0x518   : > { %v5700_v12 = vadd.f32 %v8757_v7, %v13846_v46 }
 0x519   : > { %7639 = vrot.lane.b32.xlu1 %v5766_v4, %s9022_s24  ;;  %v5655_v45 = vpop.f32.mrf.mxu1 }
 0x51a   : > { %v5739_v49 = vadd.f32 %v13872_v2, %v5700_v12  ;;  %v5698_v25 = vadd.f32 %v5655_v45, %v13848_v58  ;;  %v7757_v34 = vpop.permute.xlu1 %7756  ;;  %v7751_v28 = vpop.permute.xlu0 %7750  ;;  %v7486_v58 = vadd.f32 %v13975_v3, %v13855_v11 }
 0x51b   : > { %v8758_v55 = vpop.f32.mrf.mxu1 }
 0x51c   : > { %v5771_v0 = vmax.f32 %v5739_v49, 0.0  ;;  %v5737_v27 = vadd.f32 %v13872_v2, %v5698_v25  ;;  %v5701_v30 = vadd.f32 %v8758_v55, %v13850_v6 }
 0x51d   : > { %v5658_v48 = vpop.f32.mrf.mxu1 }
 0x51e   : > { %v5740_v20 = vadd.f32 %v13872_v2, %v5701_v30  ;;  %v5699_v46 = vadd.f32 %v5658_v48, %v13857_v53  ;;  %v7753_v40 = vpop.permute.xlu1 %7752  ;;  %7649 = vrot.lane.b32.xlu0 %v5771_v0, %s9022_s24  ;;  %v5769_v26 = vmax.f32 %v5737_v27, 0.0  ;;  %v7522_v53 = vmax.f32 %v7486_v58, 0.0 }
 0x51f   : > { %v7763_v9 = vpop.permute.xlu0 %7762 }
 0x520   : > { %v5772_v44 = vmax.f32 %v5740_v20, 0.0  ;;  %v5738_v62 = vadd.f32 %v13872_v2, %v5699_v46 }
 0x522   : > { %7645 = vrot.lane.b32.xlu0 %v5769_v26, %s9022_s24  ;;  %7651 = vrot.lane.b32.xlu1 %v5772_v44, %s9022_s24  ;;  %v5770_v3 = vmax.f32 %v5738_v62, 0.0 }
 0x523   : > { %v7759_v6 = vpop.permute.xlu0 %7758  ;;  %v7765_v51 = vpop.permute.xlu1 %7764 }
 0x526   : > { %7810 = vrot.lane.b32.xlu0 %v7522_v53, %s9021_s12  ;;  %7647 = vrot.lane.b32.xlu1 %v5770_v3, %s9022_s24 }
 0x527   : > { %v7594_v2 = vpop.permute.xlu0 %7593  ;;  %v7761_v23 = vpop.permute.xlu1 %7760 }
 0x528   : > { %7688 = vst.msk [vmem:[%s9590_s20 + $0x10] sm:$0xff] %vm7685_vm8, %v7594_v2 }
 0x529   : > { %7849 = vst.msk [vmem:[%s9590_s20 + $0x10] sm:$0xff] %vm7846_vm10, %v7755_v37 }
 0x52a   : > { %7812 = vrot.lane.b32.xlu1 %v7523_v22, %s9021_s12  ;;  %s8955_s12 = sshll.u32 %s9023_s10, 4  ;;  %s8956_s12 = int_to_ptr.vmem [resolvable:$false] %s8955_s12 }
 0x52b   : > { %v7590_v11 = vpop.permute.xlu0 %7589  ;;  %v7596_v50 = vpop.permute.xlu1 %7595  ;;  %s8957_s22 = scalar_lea.vmem %s8956_s12, 8192  ;;  %p8958_p0 = scmp.lt.s32.totalorder %s14163_s17, %s8956_s12 }
 0x52c   : > { %7686 = vst.msk [vmem:[%s9590_s20] sm:$0xff] %vm7685_vm8, %v7590_v11  ;;  %7689 = vst.msk [vmem:[%s9590_s20 + $0x18] sm:$0xff] %vm7685_vm8, %v7596_v50  ;;  %p8959_p1 = scmp.lt.s32.totalorder %s8957_s22, %s8951_s26 }
 0x52d   : > { %7847 = vst.msk [vmem:[%s9590_s20] sm:$0xff] %vm7846_vm10, %v7751_v28  ;;  %7850 = vst.msk [vmem:[%s9590_s20 + $0x18] sm:$0xff] %vm7846_vm10, %v7757_v34 }
 0x52e   : > { %p8960_p2 = por %p8959_p1, %p8958_p0 }
 0x52f   : > { %v7771_v18 = vpop.permute.xlu0 %7770  ;;  %v7592_v47 = vpop.permute.xlu1 %7591 }
 0x530   : > { %7687 = vst.msk [vmem:[%s9590_s20 + $0x8] sm:$0xff] %vm7685_vm8, %v7592_v47  ;;  %p8961_p3 = pnand %p8960_p2, %p8954_p13 }
 0x531   : > { %7848 = vst.msk [vmem:[%s9590_s20 + $0x8] sm:$0xff] %vm7846_vm10, %v7753_v40 }
 0x533   : > { %v7767_v19 = vpop.permute.xlu0 %7766  ;;  %v7773_v14 = vpop.permute.xlu1 %7772 }
 0x537   : > { %v7602_v59 = vpop.permute.xlu0 %7601  ;;  %v7769_v35 = vpop.permute.xlu1 %7768 }
 0x538   : > { %7692 = vst.msk [vmem:[%s9590_s20 + $0x30] sm:$0xff] %vm7685_vm8, %v7602_v59 }
 0x539   : > { %7853 = vst.msk [vmem:[%s9590_s20 + $0x30] sm:$0xff] %vm7846_vm10, %v7763_v9 }
 0x53b   : > { %v7598_v17 = vpop.permute.xlu0 %7597  ;;  %v7604_v36 = vpop.permute.xlu1 %7603 }
 0x53c   : > { %7690 = vst.msk [vmem:[%s9590_s20 + $0x20] sm:$0xff] %vm7685_vm8, %v7598_v17  ;;  %7693 = vst.msk [vmem:[%s9590_s20 + $0x38] sm:$0xff] %vm7685_vm8, %v7604_v36 }
 0x53d   : > { %7851 = vst.msk [vmem:[%s9590_s20 + $0x20] sm:$0xff] %vm7846_vm10, %v7759_v6  ;;  %7854 = vst.msk [vmem:[%s9590_s20 + $0x38] sm:$0xff] %vm7846_vm10, %v7765_v51 }
 0x53f   : > { %v7779_v33 = vpop.permute.xlu0 %7778  ;;  %v7600_v60 = vpop.permute.xlu1 %7599 }
 0x540   : > { %7691 = vst.msk [vmem:[%s9590_s20 + $0x28] sm:$0xff] %vm7685_vm8, %v7600_v60 }
 0x541   : > { %7852 = vst.msk [vmem:[%s9590_s20 + $0x28] sm:$0xff] %vm7846_vm10, %v7761_v23 }
 0x543   : > { %v7775_v54 = vpop.permute.xlu0 %7774  ;;  %v7781_v41 = vpop.permute.xlu1 %7780 }
 0x547   : > { %v7610_v57 = vpop.permute.xlu0 %7609  ;;  %v7777_v38 = vpop.permute.xlu1 %7776 }
 0x548   : > { %7696 = vst.msk [vmem:[%s9590_s20 + $0x50] sm:$0xff] %vm7685_vm8, %v7610_v57 }
 0x549   : > { %7857 = vst.msk [vmem:[%s9590_s20 + $0x50] sm:$0xff] %vm7846_vm10, %v7771_v18 }
 0x54b   : > { %v7606_v8 = vpop.permute.xlu0 %7605  ;;  %v7612_v32 = vpop.permute.xlu1 %7611 }
 0x54c   : > { %7694 = vst.msk [vmem:[%s9590_s20 + $0x40] sm:$0xff] %vm7685_vm8, %v7606_v8  ;;  %7697 = vst.msk [vmem:[%s9590_s20 + $0x58] sm:$0xff] %vm7685_vm8, %v7612_v32 }
 0x54d   : > { %7855 = vst.msk [vmem:[%s9590_s20 + $0x40] sm:$0xff] %vm7846_vm10, %v7767_v19  ;;  %7858 = vst.msk [vmem:[%s9590_s20 + $0x58] sm:$0xff] %vm7846_vm10, %v7773_v14 }
 0x54f   : > { %v7787_v16 = vpop.permute.xlu0 %7786  ;;  %v7608_v13 = vpop.permute.xlu1 %7607 }
 0x550   : > { %7695 = vst.msk [vmem:[%s9590_s20 + $0x48] sm:$0xff] %vm7685_vm8, %v7608_v13 }
 0x551   : > { %7856 = vst.msk [vmem:[%s9590_s20 + $0x48] sm:$0xff] %vm7846_vm10, %v7769_v35 }
 0x553   : > { %v7783_v52 = vpop.permute.xlu0 %7782  ;;  %v7789_v29 = vpop.permute.xlu1 %7788 }
 0x557   : > { %v7618_v39 = vpop.permute.xlu0 %7617  ;;  %v7785_v63 = vpop.permute.xlu1 %7784 }
 0x558   : > { %7700 = vst.msk [vmem:[%s9590_s20 + $0x70] sm:$0xff] %vm7685_vm8, %v7618_v39 }
 0x559   : > { %7861 = vst.msk [vmem:[%s9590_s20 + $0x70] sm:$0xff] %vm7846_vm10, %v7779_v33 }
 0x55b   : > { %v7614_v43 = vpop.permute.xlu0 %7613  ;;  %v7620_v15 = vpop.permute.xlu1 %7619 }
 0x55c   : > { %7698 = vst.msk [vmem:[%s9590_s20 + $0x60] sm:$0xff] %vm7685_vm8, %v7614_v43  ;;  %7701 = vst.msk [vmem:[%s9590_s20 + $0x78] sm:$0xff] %vm7685_vm8, %v7620_v15 }
 0x55d   : > { %7859 = vst.msk [vmem:[%s9590_s20 + $0x60] sm:$0xff] %vm7846_vm10, %v7775_v54  ;;  %7862 = vst.msk [vmem:[%s9590_s20 + $0x78] sm:$0xff] %vm7846_vm10, %v7781_v41 }
 0x55f   : > { %v7795_v1 = vpop.permute.xlu0 %7794  ;;  %v7616_v56 = vpop.permute.xlu1 %7615 }
 0x560   : > { %7699 = vst.msk [vmem:[%s9590_s20 + $0x68] sm:$0xff] %vm7685_vm8, %v7616_v56 }
 0x561   : > { %7860 = vst.msk [vmem:[%s9590_s20 + $0x68] sm:$0xff] %vm7846_vm10, %v7777_v38 }
 0x563   : > { %v7791_v21 = vpop.permute.xlu0 %7790  ;;  %v7797_v24 = vpop.permute.xlu1 %7796 }
 0x567   : > { %v7626_v31 = vpop.permute.xlu0 %7625  ;;  %v7793_v42 = vpop.permute.xlu1 %7792 }
 0x568   : > { %7704 = vst.msk [vmem:[%s9590_s20 + $0x90] sm:$0xff] %vm7685_vm8, %v7626_v31 }
 0x569   : > { %7865 = vst.msk [vmem:[%s9590_s20 + $0x90] sm:$0xff] %vm7846_vm10, %v7787_v16 }
 0x56b   : > { %v7622_v61 = vpop.permute.xlu0 %7621  ;;  %v7628_v5 = vpop.permute.xlu1 %7627 }
 0x56c   : > { %7702 = vst.msk [vmem:[%s9590_s20 + $0x80] sm:$0xff] %vm7685_vm8, %v7622_v61  ;;  %7705 = vst.msk [vmem:[%s9590_s20 + $0x98] sm:$0xff] %vm7685_vm8, %v7628_v5 }
 0x56d   : > { %7863 = vst.msk [vmem:[%s9590_s20 + $0x80] sm:$0xff] %vm7846_vm10, %v7783_v52  ;;  %7866 = vst.msk [vmem:[%s9590_s20 + $0x98] sm:$0xff] %vm7846_vm10, %v7789_v29 }
 0x56f   : > { %v7803_v37 = vpop.permute.xlu0 %7802  ;;  %v7624_v4 = vpop.permute.xlu1 %7623 }
 0x570   : > { %7703 = vst.msk [vmem:[%s9590_s20 + $0x88] sm:$0xff] %vm7685_vm8, %v7624_v4 }
 0x571   : > { %7864 = vst.msk [vmem:[%s9590_s20 + $0x88] sm:$0xff] %vm7846_vm10, %v7785_v63 }
 0x573   : > { %v7799_v7 = vpop.permute.xlu0 %7798  ;;  %v7805_v12 = vpop.permute.xlu1 %7804 }
 0x577   : > { %v7634_v45 = vpop.permute.xlu0 %7633  ;;  %v7801_v49 = vpop.permute.xlu1 %7800 }
 0x578   : > { %7708 = vst.msk [vmem:[%s9590_s20 + $0xb0] sm:$0xff] %vm7685_vm8, %v7634_v45 }
 0x579   : > { %7869 = vst.msk [vmem:[%s9590_s20 + $0xb0] sm:$0xff] %vm7846_vm10, %v7795_v1 }
 0x57b   : > { %v7630_v25 = vpop.permute.xlu0 %7629  ;;  %v7636_v34 = vpop.permute.xlu1 %7635 }
 0x57c   : > { %7706 = vst.msk [vmem:[%s9590_s20 + $0xa0] sm:$0xff] %vm7685_vm8, %v7630_v25  ;;  %7709 = vst.msk [vmem:[%s9590_s20 + $0xb8] sm:$0xff] %vm7685_vm8, %v7636_v34 }
 0x57d   : > { %7867 = vst.msk [vmem:[%s9590_s20 + $0xa0] sm:$0xff] %vm7846_vm10, %v7791_v21  ;;  %7870 = vst.msk [vmem:[%s9590_s20 + $0xb8] sm:$0xff] %vm7846_vm10, %v7797_v24 }
 0x57f   : > { %v7807_v28 = vpop.permute.xlu0 %7806  ;;  %v7632_v55 = vpop.permute.xlu1 %7631 }
 0x580   : > { %7707 = vst.msk [vmem:[%s9590_s20 + $0xa8] sm:$0xff] %vm7685_vm8, %v7632_v55 }
 0x581   : > { %7868 = vst.msk [vmem:[%s9590_s20 + $0xa8] sm:$0xff] %vm7846_vm10, %v7793_v42 }
 0x583   : > { %v7642_v0 = vpop.permute.xlu0 %7641  ;;  %v7809_v27 = vpop.permute.xlu1 %7808 }
 0x584   : > { %7712 = vst.msk [vmem:[%s9590_s20 + $0xd0] sm:$0xff] %vm7685_vm8, %v7642_v0 }
 0x585   : > { %7873 = vst.msk [vmem:[%s9590_s20 + $0xd0] sm:$0xff] %vm7846_vm10, %v7803_v37 }
 0x587   : > { %v7638_v30 = vpop.permute.xlu0 %7637  ;;  %v7644_v48 = vpop.permute.xlu1 %7643 }
 0x588   : > { %7710 = vst.msk [vmem:[%s9590_s20 + $0xc0] sm:$0xff] %vm7685_vm8, %v7638_v30  ;;  %7713 = vst.msk [vmem:[%s9590_s20 + $0xd8] sm:$0xff] %vm7685_vm8, %v7644_v48 }
 0x589   : > { %7871 = vst.msk [vmem:[%s9590_s20 + $0xc0] sm:$0xff] %vm7846_vm10, %v7799_v7  ;;  %7874 = vst.msk [vmem:[%s9590_s20 + $0xd8] sm:$0xff] %vm7846_vm10, %v7805_v12 }
 0x58b   : > { %v7640_v20 = vpop.permute.xlu1 %7639 }
 0x58c   : > { %7711 = vst.msk [vmem:[%s9590_s20 + $0xc8] sm:$0xff] %vm7685_vm8, %v7640_v20 }
 0x58d   : > { %7872 = vst.msk [vmem:[%s9590_s20 + $0xc8] sm:$0xff] %vm7846_vm10, %v7801_v49 }
 0x590   : > { %v7650_v46 = vpop.permute.xlu0 %7649 }
 0x591   : > { %7716 = vst.msk [vmem:[%s9590_s20 + $0xf0] sm:$0xff] %vm7685_vm8, %v7650_v46 }
 0x594   : > { %v7652_v40 = vpop.permute.xlu1 %7651  ;;  %v7646_v9 = vpop.permute.xlu0 %7645 }
 0x595   : > { %7717 = vst.msk [vmem:[%s9590_s20 + $0xf8] sm:$0xff] %vm7685_vm8, %v7652_v40  ;;  %7714 = vst.msk [vmem:[%s9590_s20 + $0xe0] sm:$0xff] %vm7685_vm8, %v7646_v9 }
 0x596   : > { %7875 = vst.msk [vmem:[%s9590_s20 + $0xe0] sm:$0xff] %vm7846_vm10, %v7807_v28 }
 0x598   : > { %v7648_v58 = vpop.permute.xlu1 %7647  ;;  %v7811_v26 = vpop.permute.xlu0 %7810 }
 0x599   : > { %7715 = vst.msk [vmem:[%s9590_s20 + $0xe8] sm:$0xff] %vm7685_vm8, %v7648_v58 }
 0x59a   : > { %7877 = vst.msk [vmem:[%s9590_s20 + $0xf0] sm:$0xff] %vm7846_vm10, %v7811_v26  ;;  %7876 = vst.msk [vmem:[%s9590_s20 + $0xe8] sm:$0xff] %vm7846_vm10, %v7809_v27 }
 0x59c   : > { %v7813_v44 = vpop.permute.xlu1 %7812 }
 0x59d   : > { %7878 = vst.msk [vmem:[%s9590_s20 + $0xf8] sm:$0xff] %vm7846_vm10, %v7813_v44 }
 0x59e   : > { %8964 = shalt.err (!%p8961_p3)
}
 0x59f   : > { %s8965_s13 = scalar_lea.hbm %s14161_s21, 4096  ;;  %s8969_s25 = scalar_lea.hbm %s14218_s8, 8192 }
 0x5a0   : > { %p8966_p4 = scmp.ne.s32.totalorder %s14161_s21, %s8965_s13  ;;  %p8970_p9 = scmp.lt.s32.totalorder %s14161_s21, %s14218_s8 }
 0x5a1   : > { %p8971_p10 = scmp.lt.s32.totalorder %s8969_s25, %s8965_s13 }
 0x5a2   : > { %p8967_p7 = pnand %p8966_p4, %p9108_p5 }
 0x5a3   : > { %p8972_p11 = por %p8971_p10, %p8970_p9 }
 0x5a4   : > { %p8968_p8 = pneg %p8967_p7 }
 0x5a6   : > { %p8973_p12 = pnand %p8972_p11, %p8968_p8 }
 0x5a8   : > { %8976 = shalt.err (!%p8973_p12)
}
 0x5a9   : > { %s9024_s26 = smov 128  }
 0x5aa   : > { %8803 = dma.vmem_to_hbm [thread:$0]  (%p9108_p5), %s14163_s17, 4096, %s14161_s21, %s14169_s9, %s9024_s26, %s9024_s26, %s9022_s24  }
 0x5ab PF: > { %p8809_p13 = scmp.ge.s32.totalorder %s9011_s30, 2  ;;  %s7908_s10 = sand.u32 1, %s8999_s27  }
 0x5ac   : > { %s7909_s12 = scalar_lea.sflag [#allocation5], %s7908_s10 }
 0x5ad   : > { %p8806_p0 = pnand %p8809_p13, %p9112_p6 }
 0x5af   : > { %p8807_p1 = pneg %p8806_p0 }
 0x5b1   : > { %8994 = dma.done.wait (%p8807_p1), %s7909_s12, 4096  }
 0x5b2   : > { %8996 = vsyncadd (%p8807_p1), %s7909_s12, 4294963200  ;;  %p18_p2 = scmp.ge.s32.totalorder %s9095_s11, 4   ;;  %s14934_s27 = smov %s9003_s28 }
 0x5b3   : > { %s14935_s28 = smov %s9007_s29  ;;  %s14936_s29 = smov %s9106_s14 }
 0x5b4   : > { %s14937_s30 = smov %s9095_s11  ;;  %20 = sbr.rel (!%p18_p2) target bundleno = 3 (0x3), region = 97 }
 0x5b9   :  { %7914 = vsyncpa [#allocation5], 1 }
 0x5ba   :  { %7916 = vsyncpa [#allocation5 + $0x1], 1 }

</bundles_post_ra>
